<compile_context>
chip_gen: v7x
topology: tpu7x:2x2x1
jax: 0.10.0
libtpu: 0.0.40
codegen_flags: <defaults>
</compile_context>

<pallas_src>
import functools

import jax
import jax.numpy as jnp
from jax import lax
from jax.experimental import pallas as pl
from jax.experimental.pallas import tpu as pltpu

CONV_TN = 256  # output-channel tile: 2 tiles of 256 -> both v7x TCs get weight DMA work


# -----------------------------------------------------------------------------
# Pallas kernel: implicit-GEMM 3x3 / stride-2 / pad-1 conv + bias + ReLU
# -----------------------------------------------------------------------------
def _conv3x3s2_relu_kernel(xph_ref, w_ref, b_ref, o_ref, *, OH, OW):
    # xph_ref: (2, 2, B, HP/2, WP/2, C) phase-decomposed padded NHWC input (bf16)
    #          xph[ph, pw, b, i, j, c] == x_padded[b, 2*i+ph, 2*j+pw, c]
    # w_ref:   (1, 9, C, tn)  weight tile, tap-major (bf16)
    # b_ref:   (1, tn)        bias tile (f32)
    # o_ref:   (M, tn)        output tile, M = B*OH*OW, rows in NHWC order (bf16)
    B = xph_ref.shape[2]
    C = xph_ref.shape[5]
    tn = o_ref.shape[1]
    M = B * OH * OW

    acc = jnp.zeros((M, tn), jnp.float32)
    for kh in range(3):
        ph, ih = kh % 2, kh // 2
        for kw in range(3):
            pw, iw = kw % 2, kw // 2
            # contiguous window: x_padded[b, 2*oh+kh, 2*ow+kw, :] for all (b,oh,ow)
            win = xph_ref[ph, pw, :, pl.ds(ih, OH), pl.ds(iw, OW), :]   # (B, OH, OW, C)
            acc += jnp.dot(win.reshape(M, C), w_ref[0, kh * 3 + kw],
                           preferred_element_type=jnp.float32)
    o_ref[...] = jnp.maximum(acc + b_ref[...], 0.0).astype(o_ref.dtype)


def conv3x3s2_relu(xph, w_packed, bias2d, *, OH, OW):
    """xph: (2,2,B,HP/2,WP/2,C) bf16, w_packed: (NT,9,C,tn) bf16, bias2d: (1,N) f32.

    Returns NHWC output (B, OH, OW, N) bf16.  Grid tiles output channels only and is
    marked "parallel" so multi-TensorCore chips split the (dominant) weight DMA.
    """
    _, _, B, _, _, C = xph.shape
    NT, taps, C2, tn = w_packed.shape
    assert C2 == C and taps == 9
    M, N = B * OH * OW, NT * tn

    kernel = functools.partial(_conv3x3s2_relu_kernel, OH=OH, OW=OW)
    out2d = pl.pallas_call(
        kernel,
        out_shape=jax.ShapeDtypeStruct((M, N), jnp.bfloat16),
        grid_spec=pltpu.PrefetchScalarGridSpec(
            num_scalar_prefetch=0,
            grid=(NT,),
            in_specs=[
                pl.BlockSpec(xph.shape, lambda n: (0, 0, 0, 0, 0, 0)),  # resident activation
                pl.BlockSpec((1, taps, C, tn), lambda n: (n, 0, 0, 0)),  # contiguous weight tile
                pl.BlockSpec((1, tn), lambda n: (0, n)),                 # bias tile
            ],
            out_specs=pl.BlockSpec((M, tn), lambda n: (0, n)),
        ),
        compiler_params=pltpu.CompilerParams(
            dimension_semantics=("parallel",),
            vmem_limit_bytes=32 * 1024 * 1024,
        ),
    )(xph, w_packed, bias2d)
    return out2d.reshape(B, OH, OW, N)


# -----------------------------------------------------------------------------
# Pallas kernel: folded MLP (mlp1 @ mlp2), K split across a parallel grid
# -----------------------------------------------------------------------------
def _mlp_partial_kernel(x_ref, w_ref, o_ref):
    o_ref[0, :, :] = jnp.dot(x_ref[...], w_ref[...], preferred_element_type=jnp.float32)


def mlp_fused(xflat, w, b, *, ksplit=2):
    """xflat: (B, K) bf16, w: (K, N) bf16, b: (N,) f32 -> (B, N) f32.

    K is split across `ksplit` parallel grid points (partial sums), so on v7x both
    TensorCores stream half of the 2 MB fused weight; the partial-sum + bias epilogue
    is a tiny XLA op on a (ksplit, B, N) array.
    """
    B, K = xflat.shape
    N = w.shape[1]
    assert K % ksplit == 0
    tk = K // ksplit

    partial = pl.pallas_call(
        _mlp_partial_kernel,
        out_shape=jax.ShapeDtypeStruct((ksplit, B, N), jnp.float32),
        grid_spec=pltpu.PrefetchScalarGridSpec(
            num_scalar_prefetch=0,
            grid=(ksplit,),
            in_specs=[
                pl.BlockSpec((B, tk), lambda k: (0, k)),
                pl.BlockSpec((tk, N), lambda k: (k, 0)),
            ],
            out_specs=pl.BlockSpec((1, B, N), lambda k: (k, 0, 0)),
        ),
        compiler_params=pltpu.CompilerParams(
            dimension_semantics=("parallel",),
            vmem_limit_bytes=32 * 1024 * 1024,
        ),
    )(xflat, w)
    return partial.sum(axis=0) + b[None, :]


# -----------------------------------------------------------------------------
# Tiny XLA-side data prep (non-expanding): pad + phase-split the small activations.
# For conv1 this single transpose also absorbs the NCHW->NHWC conversion.
# -----------------------------------------------------------------------------
def nchw_to_phases(x):
    """(B, C, H, W) -> (2, 2, B, (H+2)/2, (W+2)/2, C)."""
    B, C, H, W = x.shape
    xp = jnp.pad(x, ((0, 0), (0, 0), (1, 1), (1, 1)))
    xp = xp.reshape(B, C, (H + 2) // 2, 2, (W + 2) // 2, 2)
    return xp.transpose(3, 5, 0, 2, 4, 1)


def nhwc_to_phases(x):
    """(B, H, W, C) -> (2, 2, B, (H+2)/2, (W+2)/2, C)."""
    B, H, W, C = x.shape
    xp = jnp.pad(x, ((0, 0), (1, 1), (1, 1), (0, 0)))
    xp = xp.reshape(B, (H + 2) // 2, 2, (W + 2) // 2, 2, C)
    return xp.transpose(2, 4, 0, 1, 3, 5)


# -----------------------------------------------------------------------------
# Parameters: raw PyTorch-layout init + one-time prep (pack / permute / fold / bf16)
# -----------------------------------------------------------------------------
def init_params(key):
    ks = jax.random.split(key, 8)
    return {
        "conv1_w": jax.random.normal(ks[0], (512, 512, 3, 3), jnp.float32) * 0.02,
        "conv1_b": jax.random.normal(ks[1], (512,), jnp.float32) * 0.02,
        "conv2_w": jax.random.normal(ks[2], (512, 512, 3, 3), jnp.float32) * 0.02,
        "conv2_b": jax.random.normal(ks[3], (512,), jnp.float32) * 0.02,
        "mlp1_w": jax.random.normal(ks[4], (512, 8192), jnp.float32) * 0.001,  # (out, in)
        "mlp1_b": jax.random.normal(ks[5], (512,), jnp.float32) * 0.001,
        "mlp2_w": jax.random.normal(ks[6], (2, 512), jnp.float32) * 0.001,     # (out, in)
        "mlp2_b": jax.random.normal(ks[7], (2,), jnp.float32) * 0.001,
    }


def prepare_params(raw, *, conv_tn=CONV_TN):
    """One-time parameter prep, outside the forward pass."""

    def pack_conv_w(w):
        # (OC, IC, 3, 3) -> (OC//tn, 9, IC, tn): tap-major, contiguous per N-tile.
        OC, IC, KH, KW = w.shape
        nt = OC // conv_tn
        w9 = w.transpose(2, 3, 1, 0).reshape(KH * KW, IC, OC)        # [t, ic, oc]
        return (w9.reshape(KH * KW, IC, nt, conv_tn)
                  .transpose(2, 0, 1, 3)                             # [nt, t, ic, j]
                  .astype(jnp.bfloat16))

    # mlp1 input dim is indexed in NCHW flatten order (c*16 + h*4 + w); permute its
    # columns to the NHWC flatten order (h*4*512 + w*512 + c) used by our conv2 output.
    w1 = raw["mlp1_w"].reshape(512, 512, 4, 4).transpose(0, 2, 3, 1).reshape(512, 8192)
    w2 = raw["mlp2_w"]                                   # (2, 512)
    # No nonlinearity between mlp1 and mlp2 in the source module: exact fold (f32).
    w_fused = w1.T @ w2.T                                # (8192, 2)
    b_fused = raw["mlp1_b"] @ w2.T + raw["mlp2_b"]       # (2,)
    NPAD = 128                                           # lane-dense output; sliced to 2 outside
    w_fused = jnp.pad(w_fused, ((0, 0), (0, NPAD - 2))).astype(jnp.bfloat16)
    b_fused = jnp.pad(b_fused, (0, NPAD - 2)).astype(jnp.float32)

    return {
        "conv1_wp": pack_conv_w(raw["conv1_w"]),                          # (2, 9, 512, 256) bf16
        "conv1_b": raw["conv1_b"].reshape(1, -1).astype(jnp.float32),     # (1, 512)
        "conv2_wp": pack_conv_w(raw["conv2_w"]),
        "conv2_b": raw["conv2_b"].reshape(1, -1).astype(jnp.float32),
        "mlp_w": w_fused,                                                 # (8192, 128) bf16
        "mlp_b": b_fused,                                                 # (128,) f32
    }


# -----------------------------------------------------------------------------
# Discriminator forward (semantics of the PyTorch module, NCHW input)
# -----------------------------------------------------------------------------
def discriminator_forward(params, x):
    # x: (B, 512, 16, 16) NCHW float32
    B, C, H, W = x.shape
    xb = x.astype(jnp.bfloat16)

    OH1, OW1 = (H - 1) // 2 + 1, (W - 1) // 2 + 1
    h1 = conv3x3s2_relu(nchw_to_phases(xb), params["conv1_wp"], params["conv1_b"],
                        OH=OH1, OW=OW1)                                    # (B, 8, 8, 512) NHWC
    OH2, OW2 = (OH1 - 1) // 2 + 1, (OW1 - 1) // 2 + 1
    h2 = conv3x3s2_relu(nhwc_to_phases(h1), params["conv2_wp"], params["conv2_b"],
                        OH=OH2, OW=OW2)                                    # (B, 4, 4, 512) NHWC

    flat = h2.reshape(B, -1)                                               # (B, 8192), NHWC order
    out = mlp_fused(flat, params["mlp_w"], params["mlp_b"])                # (B, 128) f32
    return out[:, :2]                                                      # (B, 2)


# -----------------------------------------------------------------------------
# Pure-JAX f32 reference of the PyTorch module (for a one-time numeric check)
# -----------------------------------------------------------------------------
def reference_forward(raw, x):
    y = lax.conv_general_dilated(x, raw["conv1_w"], window_strides=(2, 2),
                                 padding=((1, 1), (1, 1)),
                                 dimension_numbers=("NCHW", "OIHW", "NCHW"))
    y = jnp.maximum(y + raw["conv1_b"].reshape(1, -1, 1, 1), 0.0)
    y = lax.conv_general_dilated(y, raw["conv2_w"], window_strides=(2, 2),
                                 padding=((1, 1), (1, 1)),
                                 dimension_numbers=("NCHW", "OIHW", "NCHW"))
    y = jnp.maximum(y + raw["conv2_b"].reshape(1, -1, 1, 1), 0.0)
    y = y.reshape(y.shape[0], -1)                        # NCHW flatten, as in torch .view
    y = y @ raw["mlp1_w"].T + raw["mlp1_b"]
    y = y @ raw["mlp2_w"].T + raw["mlp2_b"]
    return y


if __name__ == "__main__":
    key = jax.random.PRNGKey(0)
    k_x, k_p = jax.random.split(key)
    # The module hard-codes 512 channels and 8192 flattened features, so the input
    # must be (B, 512, 16, 16); smallest batch B=2.
    x = jax.random.normal(k_x, (2, 512, 16, 16), jnp.float32)
    raw = init_params(k_p)
    params = prepare_params(raw)

    fwd = jax.jit(discriminator_forward)
    out = jax.block_until_ready(fwd(params, x))
    assert out.shape == (2, 2), out.shape
    assert bool(jnp.all(jnp.isfinite(out)))

    # One-time numeric check against the f32 reference (bf16 activations/weights
    # give ~1% relative error; generous threshold).
    ref = reference_forward(raw, x)
    rel = float(jnp.max(jnp.abs(out - ref)) / (jnp.max(jnp.abs(ref)) + 1e-6))
    assert rel < 0.1, f"mismatch vs reference: {rel}"

    print("KERNEL_OK")
</pallas_src>

<mosaic_0001>
module attributes {stable_mosaic.version = 11 : i64} {
  func.func @_conv3x3s2_relu_kernel(%arg0: i32, %arg1: memref<2x2x2x9x9x512xbf16, #tpu.memory_space<vmem>>, %arg2: memref<1x9x512x256xbf16, #tpu.memory_space<vmem>>, %arg3: memref<1x256xf32, #tpu.memory_space<vmem>>, %arg4: memref<128x256xbf16, #tpu.memory_space<vmem>>) attributes {dimension_semantics = [#tpu.dimension_semantics<parallel>], iteration_bounds = array<i64: 2>, scalar_prefetch = 0 : i64, scratch_operands = 0 : i64, tpu.core_type = #tpu.core_type<tc>, window_params = [{pipeline_mode = #tpu.pipeline_mode<synchronous>, transform_indices = @transform_0, window_bounds = array<i64: 2, 2, 2, 9, 9, 512>}, {transform_indices = @transform_1, window_bounds = array<i64: 1, 9, 512, 256>}, {transform_indices = @transform_2, window_bounds = array<i64: 1, 256>}, {transform_indices = @transform_3, window_bounds = array<i64: 128, 256>}]} {
    %cst = arith.constant 0.000000e+00 : f32
    %0 = vector.broadcast %cst : f32 to vector<128x256xf32>
    %c0 = arith.constant 0 : index
    %c0_0 = arith.constant 0 : index
    %c0_1 = arith.constant 0 : index
    %c0_2 = arith.constant 0 : index
    %c0_3 = arith.constant 0 : index
    %c0_4 = arith.constant 0 : index
    %1 = vector.load %arg1[%c0, %c0_0, %c0_1, %c0_2, %c0_3, %c0_4] : memref<2x2x2x9x9x512xbf16, #tpu.memory_space<vmem>>, vector<1x1x2x8x8x512xbf16>
    %2 = vector.shape_cast %1 : vector<1x1x2x8x8x512xbf16> to vector<2x8x8x512xbf16>
    %3 = vector.shape_cast %2 : vector<2x8x8x512xbf16> to vector<128x512xbf16>
    %c0_5 = arith.constant 0 : index
    %c0_6 = arith.constant 0 : index
    %c0_7 = arith.constant 0 : index
    %c0_8 = arith.constant 0 : index
    %4 = vector.load %arg2[%c0_5, %c0_6, %c0_7, %c0_8] : memref<1x9x512x256xbf16, #tpu.memory_space<vmem>>, vector<1x1x512x256xbf16>
    %5 = vector.shape_cast %4 : vector<1x1x512x256xbf16> to vector<512x256xbf16>
    %cst_9 = arith.constant dense<0.000000e+00> : vector<128x256xf32>
    %6 = tpu.matmul %3, %5, %cst_9 {dimension_numbers = #tpu.dot_dimension_numbers<[1], [0], [0], [1], [0, 0, 1, 1], [], []>} : vector<128x512xbf16>, vector<512x256xbf16>, vector<128x256xf32> -> vector<128x256xf32>
    %7 = arith.addf %0, %6 : vector<128x256xf32>
    %c0_10 = arith.constant 0 : index
    %c1 = arith.constant 1 : index
    %c0_11 = arith.constant 0 : index
    %c0_12 = arith.constant 0 : index
    %c0_13 = arith.constant 0 : index
    %c0_14 = arith.constant 0 : index
    %8 = vector.load %arg1[%c0_10, %c1, %c0_11, %c0_12, %c0_13, %c0_14] : memref<2x2x2x9x9x512xbf16, #tpu.memory_space<vmem>>, vector<1x1x2x8x8x512xbf16>
    %9 = vector.shape_cast %8 : vector<1x1x2x8x8x512xbf16> to vector<2x8x8x512xbf16>
    %10 = vector.shape_cast %9 : vector<2x8x8x512xbf16> to vector<128x512xbf16>
    %c0_15 = arith.constant 0 : index
    %c1_16 = arith.constant 1 : index
    %c0_17 = arith.constant 0 : index
    %c0_18 = arith.constant 0 : index
    %11 = vector.load %arg2[%c0_15, %c1_16, %c0_17, %c0_18] : memref<1x9x512x256xbf16, #tpu.memory_space<vmem>>, vector<1x1x512x256xbf16>
    %12 = vector.shape_cast %11 : vector<1x1x512x256xbf16> to vector<512x256xbf16>
    %cst_19 = arith.constant dense<0.000000e+00> : vector<128x256xf32>
    %13 = tpu.matmul %10, %12, %cst_19 {dimension_numbers = #tpu.dot_dimension_numbers<[1], [0], [0], [1], [0, 0, 1, 1], [], []>} : vector<128x512xbf16>, vector<512x256xbf16>, vector<128x256xf32> -> vector<128x256xf32>
    %14 = arith.addf %7, %13 : vector<128x256xf32>
    %c0_20 = arith.constant 0 : index
    %c0_21 = arith.constant 0 : index
    %c0_22 = arith.constant 0 : index
    %c0_23 = arith.constant 0 : index
    %c1_24 = arith.constant 1 : index
    %c0_25 = arith.constant 0 : index
    %15 = vector.load %arg1[%c0_20, %c0_21, %c0_22, %c0_23, %c1_24, %c0_25] : memref<2x2x2x9x9x512xbf16, #tpu.memory_space<vmem>>, vector<1x1x2x8x8x512xbf16>
    %16 = vector.shape_cast %15 : vector<1x1x2x8x8x512xbf16> to vector<2x8x8x512xbf16>
    %17 = vector.shape_cast %16 : vector<2x8x8x512xbf16> to vector<128x512xbf16>
    %c0_26 = arith.constant 0 : index
    %c2 = arith.constant 2 : index
    %c0_27 = arith.constant 0 : index
    %c0_28 = arith.constant 0 : index
    %18 = vector.load %arg2[%c0_26, %c2, %c0_27, %c0_28] : memref<1x9x512x256xbf16, #tpu.memory_space<vmem>>, vector<1x1x512x256xbf16>
    %19 = vector.shape_cast %18 : vector<1x1x512x256xbf16> to vector<512x256xbf16>
    %cst_29 = arith.constant dense<0.000000e+00> : vector<128x256xf32>
    %20 = tpu.matmul %17, %19, %cst_29 {dimension_numbers = #tpu.dot_dimension_numbers<[1], [0], [0], [1], [0, 0, 1, 1], [], []>} : vector<128x512xbf16>, vector<512x256xbf16>, vector<128x256xf32> -> vector<128x256xf32>
    %21 = arith.addf %14, %20 : vector<128x256xf32>
    %c1_30 = arith.constant 1 : index
    %c0_31 = arith.constant 0 : index
    %c0_32 = arith.constant 0 : index
    %c0_33 = arith.constant 0 : index
    %c0_34 = arith.constant 0 : index
    %c0_35 = arith.constant 0 : index
    %22 = vector.load %arg1[%c1_30, %c0_31, %c0_32, %c0_33, %c0_34, %c0_35] : memref<2x2x2x9x9x512xbf16, #tpu.memory_space<vmem>>, vector<1x1x2x8x8x512xbf16>
    %23 = vector.shape_cast %22 : vector<1x1x2x8x8x512xbf16> to vector<2x8x8x512xbf16>
    %24 = vector.shape_cast %23 : vector<2x8x8x512xbf16> to vector<128x512xbf16>
    %c0_36 = arith.constant 0 : index
    %c3 = arith.constant 3 : index
    %c0_37 = arith.constant 0 : index
    %c0_38 = arith.constant 0 : index
    %25 = vector.load %arg2[%c0_36, %c3, %c0_37, %c0_38] : memref<1x9x512x256xbf16, #tpu.memory_space<vmem>>, vector<1x1x512x256xbf16>
    %26 = vector.shape_cast %25 : vector<1x1x512x256xbf16> to vector<512x256xbf16>
    %cst_39 = arith.constant dense<0.000000e+00> : vector<128x256xf32>
    %27 = tpu.matmul %24, %26, %cst_39 {dimension_numbers = #tpu.dot_dimension_numbers<[1], [0], [0], [1], [0, 0, 1, 1], [], []>} : vector<128x512xbf16>, vector<512x256xbf16>, vector<128x256xf32> -> vector<128x256xf32>
    %28 = arith.addf %21, %27 : vector<128x256xf32>
    %c1_40 = arith.constant 1 : index
    %c1_41 = arith.constant 1 : index
    %c0_42 = arith.constant 0 : index
    %c0_43 = arith.constant 0 : index
    %c0_44 = arith.constant 0 : index
    %c0_45 = arith.constant 0 : index
    %29 = vector.load %arg1[%c1_40, %c1_41, %c0_42, %c0_43, %c0_44, %c0_45] : memref<2x2x2x9x9x512xbf16, #tpu.memory_space<vmem>>, vector<1x1x2x8x8x512xbf16>
    %30 = vector.shape_cast %29 : vector<1x1x2x8x8x512xbf16> to vector<2x8x8x512xbf16>
    %31 = vector.shape_cast %30 : vector<2x8x8x512xbf16> to vector<128x512xbf16>
    %c0_46 = arith.constant 0 : index
    %c4 = arith.constant 4 : index
    %c0_47 = arith.constant 0 : index
    %c0_48 = arith.constant 0 : index
    %32 = vector.load %arg2[%c0_46, %c4, %c0_47, %c0_48] : memref<1x9x512x256xbf16, #tpu.memory_space<vmem>>, vector<1x1x512x256xbf16>
    %33 = vector.shape_cast %32 : vector<1x1x512x256xbf16> to vector<512x256xbf16>
    %cst_49 = arith.constant dense<0.000000e+00> : vector<128x256xf32>
    %34 = tpu.matmul %31, %33, %cst_49 {dimension_numbers = #tpu.dot_dimension_numbers<[1], [0], [0], [1], [0, 0, 1, 1], [], []>} : vector<128x512xbf16>, vector<512x256xbf16>, vector<128x256xf32> -> vector<128x256xf32>
    %35 = arith.addf %28, %34 : vector<128x256xf32>
    %c1_50 = arith.constant 1 : index
    %c0_51 = arith.constant 0 : index
    %c0_52 = arith.constant 0 : index
    %c0_53 = arith.constant 0 : index
    %c1_54 = arith.constant 1 : index
    %c0_55 = arith.constant 0 : index
    %36 = vector.load %arg1[%c1_50, %c0_51, %c0_52, %c0_53, %c1_54, %c0_55] : memref<2x2x2x9x9x512xbf16, #tpu.memory_space<vmem>>, vector<1x1x2x8x8x512xbf16>
    %37 = vector.shape_cast %36 : vector<1x1x2x8x8x512xbf16> to vector<2x8x8x512xbf16>
    %38 = vector.shape_cast %37 : vector<2x8x8x512xbf16> to vector<128x512xbf16>
    %c0_56 = arith.constant 0 : index
    %c5 = arith.constant 5 : index
    %c0_57 = arith.constant 0 : index
    %c0_58 = arith.constant 0 : index
    %39 = vector.load %arg2[%c0_56, %c5, %c0_57, %c0_58] : memref<1x9x512x256xbf16, #tpu.memory_space<vmem>>, vector<1x1x512x256xbf16>
    %40 = vector.shape_cast %39 : vector<1x1x512x256xbf16> to vector<512x256xbf16>
    %cst_59 = arith.constant dense<0.000000e+00> : vector<128x256xf32>
    %41 = tpu.matmul %38, %40, %cst_59 {dimension_numbers = #tpu.dot_dimension_numbers<[1], [0], [0], [1], [0, 0, 1, 1], [], []>} : vector<128x512xbf16>, vector<512x256xbf16>, vector<128x256xf32> -> vector<128x256xf32>
    %42 = arith.addf %35, %41 : vector<128x256xf32>
    %c0_60 = arith.constant 0 : index
    %c0_61 = arith.constant 0 : index
    %c0_62 = arith.constant 0 : index
    %c1_63 = arith.constant 1 : index
    %c0_64 = arith.constant 0 : index
    %c0_65 = arith.constant 0 : index
    %43 = vector.load %arg1[%c0_60, %c0_61, %c0_62, %c1_63, %c0_64, %c0_65] : memref<2x2x2x9x9x512xbf16, #tpu.memory_space<vmem>>, vector<1x1x2x8x8x512xbf16>
    %44 = vector.shape_cast %43 : vector<1x1x2x8x8x512xbf16> to vector<2x8x8x512xbf16>
    %45 = vector.shape_cast %44 : vector<2x8x8x512xbf16> to vector<128x512xbf16>
    %c0_66 = arith.constant 0 : index
    %c6 = arith.constant 6 : index
    %c0_67 = arith.constant 0 : index
    %c0_68 = arith.constant 0 : index
    %46 = vector.load %arg2[%c0_66, %c6, %c0_67, %c0_68] : memref<1x9x512x256xbf16, #tpu.memory_space<vmem>>, vector<1x1x512x256xbf16>
    %47 = vector.shape_cast %46 : vector<1x1x512x256xbf16> to vector<512x256xbf16>
    %cst_69 = arith.constant dense<0.000000e+00> : vector<128x256xf32>
    %48 = tpu.matmul %45, %47, %cst_69 {dimension_numbers = #tpu.dot_dimension_numbers<[1], [0], [0], [1], [0, 0, 1, 1], [], []>} : vector<128x512xbf16>, vector<512x256xbf16>, vector<128x256xf32> -> vector<128x256xf32>
    %49 = arith.addf %42, %48 : vector<128x256xf32>
    %c0_70 = arith.constant 0 : index
    %c1_71 = arith.constant 1 : index
    %c0_72 = arith.constant 0 : index
    %c1_73 = arith.constant 1 : index
    %c0_74 = arith.constant 0 : index
    %c0_75 = arith.constant 0 : index
    %50 = vector.load %arg1[%c0_70, %c1_71, %c0_72, %c1_73, %c0_74, %c0_75] : memref<2x2x2x9x9x512xbf16, #tpu.memory_space<vmem>>, vector<1x1x2x8x8x512xbf16>
    %51 = vector.shape_cast %50 : vector<1x1x2x8x8x512xbf16> to vector<2x8x8x512xbf16>
    %52 = vector.shape_cast %51 : vector<2x8x8x512xbf16> to vector<128x512xbf16>
    %c0_76 = arith.constant 0 : index
    %c7 = arith.constant 7 : index
    %c0_77 = arith.constant 0 : index
    %c0_78 = arith.constant 0 : index
    %53 = vector.load %arg2[%c0_76, %c7, %c0_77, %c0_78] : memref<1x9x512x256xbf16, #tpu.memory_space<vmem>>, vector<1x1x512x256xbf16>
    %54 = vector.shape_cast %53 : vector<1x1x512x256xbf16> to vector<512x256xbf16>
    %cst_79 = arith.constant dense<0.000000e+00> : vector<128x256xf32>
    %55 = tpu.matmul %52, %54, %cst_79 {dimension_numbers = #tpu.dot_dimension_numbers<[1], [0], [0], [1], [0, 0, 1, 1], [], []>} : vector<128x512xbf16>, vector<512x256xbf16>, vector<128x256xf32> -> vector<128x256xf32>
    %56 = arith.addf %49, %55 : vector<128x256xf32>
    %c0_80 = arith.constant 0 : index
    %c0_81 = arith.constant 0 : index
    %c0_82 = arith.constant 0 : index
    %c1_83 = arith.constant 1 : index
    %c1_84 = arith.constant 1 : index
    %c0_85 = arith.constant 0 : index
    %57 = vector.load %arg1[%c0_80, %c0_81, %c0_82, %c1_83, %c1_84, %c0_85] : memref<2x2x2x9x9x512xbf16, #tpu.memory_space<vmem>>, vector<1x1x2x8x8x512xbf16>
    %58 = vector.shape_cast %57 : vector<1x1x2x8x8x512xbf16> to vector<2x8x8x512xbf16>
    %59 = vector.shape_cast %58 : vector<2x8x8x512xbf16> to vector<128x512xbf16>
    %c0_86 = arith.constant 0 : index
    %c8 = arith.constant 8 : index
    %c0_87 = arith.constant 0 : index
    %c0_88 = arith.constant 0 : index
    %60 = vector.load %arg2[%c0_86, %c8, %c0_87, %c0_88] : memref<1x9x512x256xbf16, #tpu.memory_space<vmem>>, vector<1x1x512x256xbf16>
    %61 = vector.shape_cast %60 : vector<1x1x512x256xbf16> to vector<512x256xbf16>
    %cst_89 = arith.constant dense<0.000000e+00> : vector<128x256xf32>
    %62 = tpu.matmul %59, %61, %cst_89 {dimension_numbers = #tpu.dot_dimension_numbers<[1], [0], [0], [1], [0, 0, 1, 1], [], []>} : vector<128x512xbf16>, vector<512x256xbf16>, vector<128x256xf32> -> vector<128x256xf32>
    %63 = arith.addf %56, %62 : vector<128x256xf32>
    %c0_90 = arith.constant 0 : index
    %c0_91 = arith.constant 0 : index
    %64 = vector.load %arg3[%c0_90, %c0_91] : memref<1x256xf32, #tpu.memory_space<vmem>>, vector<1x256xf32>
    %65 = vector.broadcast %64 : vector<1x256xf32> to vector<128x256xf32>
    %66 = arith.addf %63, %65 : vector<128x256xf32>
    %cst_92 = arith.constant 0.000000e+00 : f32
    %67 = vector.broadcast %cst_92 : f32 to vector<128x256xf32>
    %68 = arith.maximumf %66, %67 : vector<128x256xf32>
    %69 = arith.truncf %68 : vector<128x256xf32> to vector<128x256xbf16>
    %c0_93 = arith.constant 0 : index
    %c0_94 = arith.constant 0 : index
    %70 = vector.load %arg4[%c0_93, %c0_94] : memref<128x256xbf16, #tpu.memory_space<vmem>>, vector<128x256xbf16>
    tpu.vector_store %arg4[%c0_93, %c0_94], %69 {strides = array<i32>} : memref<128x256xbf16, #tpu.memory_space<vmem>>, vector<128x256xbf16>,
    return
  }
  func.func @transform_0(%arg0: i32) -> (i32, i32, i32, i32, i32, i32) {
    %c0_i32 = arith.constant 0 : i32
    %c0_i32_0 = arith.constant 0 : i32
    %c0_i32_1 = arith.constant 0 : i32
    %c0_i32_2 = arith.constant 0 : i32
    %c0_i32_3 = arith.constant 0 : i32
    %c0_i32_4 = arith.constant 0 : i32
    %c0_i32_5 = arith.constant 0 : i32
    return %c0_i32, %c0_i32_0, %c0_i32_1, %c0_i32_2, %c0_i32_3, %c0_i32_4 : i32, i32, i32, i32, i32, i32
  }
  func.func @transform_1(%arg0: i32) -> (i32, i32, i32, i32) {
    %c0_i32 = arith.constant 0 : i32
    %c0_i32_0 = arith.constant 0 : i32
    %c0_i32_1 = arith.constant 0 : i32
    %c0_i32_2 = arith.constant 0 : i32
    return %arg0, %c0_i32, %c0_i32_0, %c0_i32_1 : i32, i32, i32, i32
  }
  func.func @transform_2(%arg0: i32) -> (i32, i32) {
    %c0_i32 = arith.constant 0 : i32
    %c0_i32_0 = arith.constant 0 : i32
    return %c0_i32, %arg0 : i32, i32
  }
  func.func @transform_3(%arg0: i32) -> (i32, i32) {
    %c0_i32 = arith.constant 0 : i32
    %c0_i32_0 = arith.constant 0 : i32
    return %c0_i32, %arg0 : i32, i32
  }
}

module attributes {stable_mosaic.version = 11 : i64} {
  func.func @_conv3x3s2_relu_kernel(%arg0: i32, %arg1: memref<2x2x2x5x5x512xbf16, #tpu.memory_space<vmem>>, %arg2: memref<1x9x512x256xbf16, #tpu.memory_space<vmem>>, %arg3: memref<1x256xf32, #tpu.memory_space<vmem>>, %arg4: memref<32x256xbf16, #tpu.memory_space<vmem>>) attributes {dimension_semantics = [#tpu.dimension_semantics<parallel>], iteration_bounds = array<i64: 2>, scalar_prefetch = 0 : i64, scratch_operands = 0 : i64, tpu.core_type = #tpu.core_type<tc>, window_params = [{pipeline_mode = #tpu.pipeline_mode<synchronous>, transform_indices = @transform_0, window_bounds = array<i64: 2, 2, 2, 5, 5, 512>}, {transform_indices = @transform_1, window_bounds = array<i64: 1, 9, 512, 256>}, {transform_indices = @transform_2, window_bounds = array<i64: 1, 256>}, {transform_indices = @transform_3, window_bounds = array<i64: 32, 256>}]} {
    %cst = arith.constant 0.000000e+00 : f32
    %0 = vector.broadcast %cst : f32 to vector<32x256xf32>
    %c0 = arith.constant 0 : index
    %c0_0 = arith.constant 0 : index
    %c0_1 = arith.constant 0 : index
    %c0_2 = arith.constant 0 : index
    %c0_3 = arith.constant 0 : index
    %c0_4 = arith.constant 0 : index
    %1 = vector.load %arg1[%c0, %c0_0, %c0_1, %c0_2, %c0_3, %c0_4] : memref<2x2x2x5x5x512xbf16, #tpu.memory_space<vmem>>, vector<1x1x2x4x4x512xbf16>
    %2 = vector.shape_cast %1 : vector<1x1x2x4x4x512xbf16> to vector<2x4x4x512xbf16>
    %3 = vector.shape_cast %2 : vector<2x4x4x512xbf16> to vector<32x512xbf16>
    %c0_5 = arith.constant 0 : index
    %c0_6 = arith.constant 0 : index
    %c0_7 = arith.constant 0 : index
    %c0_8 = arith.constant 0 : index
    %4 = vector.load %arg2[%c0_5, %c0_6, %c0_7, %c0_8] : memref<1x9x512x256xbf16, #tpu.memory_space<vmem>>, vector<1x1x512x256xbf16>
    %5 = vector.shape_cast %4 : vector<1x1x512x256xbf16> to vector<512x256xbf16>
    %cst_9 = arith.constant dense<0.000000e+00> : vector<32x256xf32>
    %6 = tpu.matmul %3, %5, %cst_9 {dimension_numbers = #tpu.dot_dimension_numbers<[1], [0], [0], [1], [0, 0, 1, 1], [], []>} : vector<32x512xbf16>, vector<512x256xbf16>, vector<32x256xf32> -> vector<32x256xf32>
    %7 = arith.addf %0, %6 : vector<32x256xf32>
    %c0_10 = arith.constant 0 : index
    %c1 = arith.constant 1 : index
    %c0_11 = arith.constant 0 : index
    %c0_12 = arith.constant 0 : index
    %c0_13 = arith.constant 0 : index
    %c0_14 = arith.constant 0 : index
    %8 = vector.load %arg1[%c0_10, %c1, %c0_11, %c0_12, %c0_13, %c0_14] : memref<2x2x2x5x5x512xbf16, #tpu.memory_space<vmem>>, vector<1x1x2x4x4x512xbf16>
    %9 = vector.shape_cast %8 : vector<1x1x2x4x4x512xbf16> to vector<2x4x4x512xbf16>
    %10 = vector.shape_cast %9 : vector<2x4x4x512xbf16> to vector<32x512xbf16>
    %c0_15 = arith.constant 0 : index
    %c1_16 = arith.constant 1 : index
    %c0_17 = arith.constant 0 : index
    %c0_18 = arith.constant 0 : index
    %11 = vector.load %arg2[%c0_15, %c1_16, %c0_17, %c0_18] : memref<1x9x512x256xbf16, #tpu.memory_space<vmem>>, vector<1x1x512x256xbf16>
    %12 = vector.shape_cast %11 : vector<1x1x512x256xbf16> to vector<512x256xbf16>
    %cst_19 = arith.constant dense<0.000000e+00> : vector<32x256xf32>
    %13 = tpu.matmul %10, %12, %cst_19 {dimension_numbers = #tpu.dot_dimension_numbers<[1], [0], [0], [1], [0, 0, 1, 1], [], []>} : vector<32x512xbf16>, vector<512x256xbf16>, vector<32x256xf32> -> vector<32x256xf32>
    %14 = arith.addf %7, %13 : vector<32x256xf32>
    %c0_20 = arith.constant 0 : index
    %c0_21 = arith.constant 0 : index
    %c0_22 = arith.constant 0 : index
    %c0_23 = arith.constant 0 : index
    %c1_24 = arith.constant 1 : index
    %c0_25 = arith.constant 0 : index
    %15 = vector.load %arg1[%c0_20, %c0_21, %c0_22, %c0_23, %c1_24, %c0_25] : memref<2x2x2x5x5x512xbf16, #tpu.memory_space<vmem>>, vector<1x1x2x4x4x512xbf16>
    %16 = vector.shape_cast %15 : vector<1x1x2x4x4x512xbf16> to vector<2x4x4x512xbf16>
    %17 = vector.shape_cast %16 : vector<2x4x4x512xbf16> to vector<32x512xbf16>
    %c0_26 = arith.constant 0 : index
    %c2 = arith.constant 2 : index
    %c0_27 = arith.constant 0 : index
    %c0_28 = arith.constant 0 : index
    %18 = vector.load %arg2[%c0_26, %c2, %c0_27, %c0_28] : memref<1x9x512x256xbf16, #tpu.memory_space<vmem>>, vector<1x1x512x256xbf16>
    %19 = vector.shape_cast %18 : vector<1x1x512x256xbf16> to vector<512x256xbf16>
    %cst_29 = arith.constant dense<0.000000e+00> : vector<32x256xf32>
    %20 = tpu.matmul %17, %19, %cst_29 {dimension_numbers = #tpu.dot_dimension_numbers<[1], [0], [0], [1], [0, 0, 1, 1], [], []>} : vector<32x512xbf16>, vector<512x256xbf16>, vector<32x256xf32> -> vector<32x256xf32>
    %21 = arith.addf %14, %20 : vector<32x256xf32>
    %c1_30 = arith.constant 1 : index
    %c0_31 = arith.constant 0 : index
    %c0_32 = arith.constant 0 : index
    %c0_33 = arith.constant 0 : index
    %c0_34 = arith.constant 0 : index
    %c0_35 = arith.constant 0 : index
    %22 = vector.load %arg1[%c1_30, %c0_31, %c0_32, %c0_33, %c0_34, %c0_35] : memref<2x2x2x5x5x512xbf16, #tpu.memory_space<vmem>>, vector<1x1x2x4x4x512xbf16>
    %23 = vector.shape_cast %22 : vector<1x1x2x4x4x512xbf16> to vector<2x4x4x512xbf16>
    %24 = vector.shape_cast %23 : vector<2x4x4x512xbf16> to vector<32x512xbf16>
    %c0_36 = arith.constant 0 : index
    %c3 = arith.constant 3 : index
    %c0_37 = arith.constant 0 : index
    %c0_38 = arith.constant 0 : index
    %25 = vector.load %arg2[%c0_36, %c3, %c0_37, %c0_38] : memref<1x9x512x256xbf16, #tpu.memory_space<vmem>>, vector<1x1x512x256xbf16>
    %26 = vector.shape_cast %25 : vector<1x1x512x256xbf16> to vector<512x256xbf16>
    %cst_39 = arith.constant dense<0.000000e+00> : vector<32x256xf32>
    %27 = tpu.matmul %24, %26, %cst_39 {dimension_numbers = #tpu.dot_dimension_numbers<[1], [0], [0], [1], [0, 0, 1, 1], [], []>} : vector<32x512xbf16>, vector<512x256xbf16>, vector<32x256xf32> -> vector<32x256xf32>
    %28 = arith.addf %21, %27 : vector<32x256xf32>
    %c1_40 = arith.constant 1 : index
    %c1_41 = arith.constant 1 : index
    %c0_42 = arith.constant 0 : index
    %c0_43 = arith.constant 0 : index
    %c0_44 = arith.constant 0 : index
    %c0_45 = arith.constant 0 : index
    %29 = vector.load %arg1[%c1_40, %c1_41, %c0_42, %c0_43, %c0_44, %c0_45] : memref<2x2x2x5x5x512xbf16, #tpu.memory_space<vmem>>, vector<1x1x2x4x4x512xbf16>
    %30 = vector.shape_cast %29 : vector<1x1x2x4x4x512xbf16> to vector<2x4x4x512xbf16>
    %31 = vector.shape_cast %30 : vector<2x4x4x512xbf16> to vector<32x512xbf16>
    %c0_46 = arith.constant 0 : index
    %c4 = arith.constant 4 : index
    %c0_47 = arith.constant 0 : index
    %c0_48 = arith.constant 0 : index
    %32 = vector.load %arg2[%c0_46, %c4, %c0_47, %c0_48] : memref<1x9x512x256xbf16, #tpu.memory_space<vmem>>, vector<1x1x512x256xbf16>
    %33 = vector.shape_cast %32 : vector<1x1x512x256xbf16> to vector<512x256xbf16>
    %cst_49 = arith.constant dense<0.000000e+00> : vector<32x256xf32>
    %34 = tpu.matmul %31, %33, %cst_49 {dimension_numbers = #tpu.dot_dimension_numbers<[1], [0], [0], [1], [0, 0, 1, 1], [], []>} : vector<32x512xbf16>, vector<512x256xbf16>, vector<32x256xf32> -> vector<32x256xf32>
    %35 = arith.addf %28, %34 : vector<32x256xf32>
    %c1_50 = arith.constant 1 : index
    %c0_51 = arith.constant 0 : index
    %c0_52 = arith.constant 0 : index
    %c0_53 = arith.constant 0 : index
    %c1_54 = arith.constant 1 : index
    %c0_55 = arith.constant 0 : index
    %36 = vector.load %arg1[%c1_50, %c0_51, %c0_52, %c0_53, %c1_54, %c0_55] : memref<2x2x2x5x5x512xbf16, #tpu.memory_space<vmem>>, vector<1x1x2x4x4x512xbf16>
    %37 = vector.shape_cast %36 : vector<1x1x2x4x4x512xbf16> to vector<2x4x4x512xbf16>
    %38 = vector.shape_cast %37 : vector<2x4x4x512xbf16> to vector<32x512xbf16>
    %c0_56 = arith.constant 0 : index
    %c5 = arith.constant 5 : index
    %c0_57 = arith.constant 0 : index
    %c0_58 = arith.constant 0 : index
    %39 = vector.load %arg2[%c0_56, %c5, %c0_57, %c0_58] : memref<1x9x512x256xbf16, #tpu.memory_space<vmem>>, vector<1x1x512x256xbf16>
    %40 = vector.shape_cast %39 : vector<1x1x512x256xbf16> to vector<512x256xbf16>
    %cst_59 = arith.constant dense<0.000000e+00> : vector<32x256xf32>
    %41 = tpu.matmul %38, %40, %cst_59 {dimension_numbers = #tpu.dot_dimension_numbers<[1], [0], [0], [1], [0, 0, 1, 1], [], []>} : vector<32x512xbf16>, vector<512x256xbf16>, vector<32x256xf32> -> vector<32x256xf32>
    %42 = arith.addf %35, %41 : vector<32x256xf32>
    %c0_60 = arith.constant 0 : index
    %c0_61 = arith.constant 0 : index
    %c0_62 = arith.constant 0 : index
    %c1_63 = arith.constant 1 : index
    %c0_64 = arith.constant 0 : index
    %c0_65 = arith.constant 0 : index
    %43 = vector.load %arg1[%c0_60, %c0_61, %c0_62, %c1_63, %c0_64, %c0_65] : memref<2x2x2x5x5x512xbf16, #tpu.memory_space<vmem>>, vector<1x1x2x4x4x512xbf16>
    %44 = vector.shape_cast %43 : vector<1x1x2x4x4x512xbf16> to vector<2x4x4x512xbf16>
    %45 = vector.shape_cast %44 : vector<2x4x4x512xbf16> to vector<32x512xbf16>
    %c0_66 = arith.constant 0 : index
    %c6 = arith.constant 6 : index
    %c0_67 = arith.constant 0 : index
    %c0_68 = arith.constant 0 : index
    %46 = vector.load %arg2[%c0_66, %c6, %c0_67, %c0_68] : memref<1x9x512x256xbf16, #tpu.memory_space<vmem>>, vector<1x1x512x256xbf16>
    %47 = vector.shape_cast %46 : vector<1x1x512x256xbf16> to vector<512x256xbf16>
    %cst_69 = arith.constant dense<0.000000e+00> : vector<32x256xf32>
    %48 = tpu.matmul %45, %47, %cst_69 {dimension_numbers = #tpu.dot_dimension_numbers<[1], [0], [0], [1], [0, 0, 1, 1], [], []>} : vector<32x512xbf16>, vector<512x256xbf16>, vector<32x256xf32> -> vector<32x256xf32>
    %49 = arith.addf %42, %48 : vector<32x256xf32>
    %c0_70 = arith.constant 0 : index
    %c1_71 = arith.constant 1 : index
    %c0_72 = arith.constant 0 : index
    %c1_73 = arith.constant 1 : index
    %c0_74 = arith.constant 0 : index
    %c0_75 = arith.constant 0 : index
    %50 = vector.load %arg1[%c0_70, %c1_71, %c0_72, %c1_73, %c0_74, %c0_75] : memref<2x2x2x5x5x512xbf16, #tpu.memory_space<vmem>>, vector<1x1x2x4x4x512xbf16>
    %51 = vector.shape_cast %50 : vector<1x1x2x4x4x512xbf16> to vector<2x4x4x512xbf16>
    %52 = vector.shape_cast %51 : vector<2x4x4x512xbf16> to vector<32x512xbf16>
    %c0_76 = arith.constant 0 : index
    %c7 = arith.constant 7 : index
    %c0_77 = arith.constant 0 : index
    %c0_78 = arith.constant 0 : index
    %53 = vector.load %arg2[%c0_76, %c7, %c0_77, %c0_78] : memref<1x9x512x256xbf16, #tpu.memory_space<vmem>>, vector<1x1x512x256xbf16>
    %54 = vector.shape_cast %53 : vector<1x1x512x256xbf16> to vector<512x256xbf16>
    %cst_79 = arith.constant dense<0.000000e+00> : vector<32x256xf32>
    %55 = tpu.matmul %52, %54, %cst_79 {dimension_numbers = #tpu.dot_dimension_numbers<[1], [0], [0], [1], [0, 0, 1, 1], [], []>} : vector<32x512xbf16>, vector<512x256xbf16>, vector<32x256xf32> -> vector<32x256xf32>
    %56 = arith.addf %49, %55 : vector<32x256xf32>
    %c0_80 = arith.constant 0 : index
    %c0_81 = arith.constant 0 : index
    %c0_82 = arith.constant 0 : index
    %c1_83 = arith.constant 1 : index
    %c1_84 = arith.constant 1 : index
    %c0_85 = arith.constant 0 : index
    %57 = vector.load %arg1[%c0_80, %c0_81, %c0_82, %c1_83, %c1_84, %c0_85] : memref<2x2x2x5x5x512xbf16, #tpu.memory_space<vmem>>, vector<1x1x2x4x4x512xbf16>
    %58 = vector.shape_cast %57 : vector<1x1x2x4x4x512xbf16> to vector<2x4x4x512xbf16>
    %59 = vector.shape_cast %58 : vector<2x4x4x512xbf16> to vector<32x512xbf16>
    %c0_86 = arith.constant 0 : index
    %c8 = arith.constant 8 : index
    %c0_87 = arith.constant 0 : index
    %c0_88 = arith.constant 0 : index
    %60 = vector.load %arg2[%c0_86, %c8, %c0_87, %c0_88] : memref<1x9x512x256xbf16, #tpu.memory_space<vmem>>, vector<1x1x512x256xbf16>
    %61 = vector.shape_cast %60 : vector<1x1x512x256xbf16> to vector<512x256xbf16>
    %cst_89 = arith.constant dense<0.000000e+00> : vector<32x256xf32>
    %62 = tpu.matmul %59, %61, %cst_89 {dimension_numbers = #tpu.dot_dimension_numbers<[1], [0], [0], [1], [0, 0, 1, 1], [], []>} : vector<32x512xbf16>, vector<512x256xbf16>, vector<32x256xf32> -> vector<32x256xf32>
    %63 = arith.addf %56, %62 : vector<32x256xf32>
    %c0_90 = arith.constant 0 : index
    %c0_91 = arith.constant 0 : index
    %64 = vector.load %arg3[%c0_90, %c0_91] : memref<1x256xf32, #tpu.memory_space<vmem>>, vector<1x256xf32>
    %65 = vector.broadcast %64 : vector<1x256xf32> to vector<32x256xf32>
    %66 = arith.addf %63, %65 : vector<32x256xf32>
    %cst_92 = arith.constant 0.000000e+00 : f32
    %67 = vector.broadcast %cst_92 : f32 to vector<32x256xf32>
    %68 = arith.maximumf %66, %67 : vector<32x256xf32>
    %69 = arith.truncf %68 : vector<32x256xf32> to vector<32x256xbf16>
    %c0_93 = arith.constant 0 : index
    %c0_94 = arith.constant 0 : index
    %70 = vector.load %arg4[%c0_93, %c0_94] : memref<32x256xbf16, #tpu.memory_space<vmem>>, vector<32x256xbf16>
    tpu.vector_store %arg4[%c0_93, %c0_94], %69 {strides = array<i32>} : memref<32x256xbf16, #tpu.memory_space<vmem>>, vector<32x256xbf16>,
    return
  }
  func.func @transform_0(%arg0: i32) -> (i32, i32, i32, i32, i32, i32) {
    %c0_i32 = arith.constant 0 : i32
    %c0_i32_0 = arith.constant 0 : i32
    %c0_i32_1 = arith.constant 0 : i32
    %c0_i32_2 = arith.constant 0 : i32
    %c0_i32_3 = arith.constant 0 : i32
    %c0_i32_4 = arith.constant 0 : i32
    %c0_i32_5 = arith.constant 0 : i32
    return %c0_i32, %c0_i32_0, %c0_i32_1, %c0_i32_2, %c0_i32_3, %c0_i32_4 : i32, i32, i32, i32, i32, i32
  }
  func.func @transform_1(%arg0: i32) -> (i32, i32, i32, i32) {
    %c0_i32 = arith.constant 0 : i32
    %c0_i32_0 = arith.constant 0 : i32
    %c0_i32_1 = arith.constant 0 : i32
    %c0_i32_2 = arith.constant 0 : i32
    return %arg0, %c0_i32, %c0_i32_0, %c0_i32_1 : i32, i32, i32, i32
  }
  func.func @transform_2(%arg0: i32) -> (i32, i32) {
    %c0_i32 = arith.constant 0 : i32
    %c0_i32_0 = arith.constant 0 : i32
    return %c0_i32, %arg0 : i32, i32
  }
  func.func @transform_3(%arg0: i32) -> (i32, i32) {
    %c0_i32 = arith.constant 0 : i32
    %c0_i32_0 = arith.constant 0 : i32
    return %c0_i32, %arg0 : i32, i32
  }
}

module attributes {stable_mosaic.version = 11 : i64} {
  func.func @_mlp_partial_kernel(%arg0: i32, %arg1: memref<2x4096xbf16, #tpu.memory_space<vmem>>, %arg2: memref<4096x128xbf16, #tpu.memory_space<vmem>>, %arg3: memref<1x2x128xf32, #tpu.memory_space<vmem>>) attributes {dimension_semantics = [#tpu.dimension_semantics<parallel>], iteration_bounds = array<i64: 2>, scalar_prefetch = 0 : i64, scratch_operands = 0 : i64, tpu.core_type = #tpu.core_type<tc>, window_params = [{transform_indices = @transform_0, window_bounds = array<i64: 2, 4096>}, {transform_indices = @transform_1, window_bounds = array<i64: 4096, 128>}, {transform_indices = @transform_2, window_bounds = array<i64: 1, 2, 128>}]} {
    %c0 = arith.constant 0 : index
    %c0_0 = arith.constant 0 : index
    %0 = vector.load %arg1[%c0, %c0_0] : memref<2x4096xbf16, #tpu.memory_space<vmem>>, vector<2x4096xbf16>
    %c0_1 = arith.constant 0 : index
    %c0_2 = arith.constant 0 : index
    %1 = vector.load %arg2[%c0_1, %c0_2] : memref<4096x128xbf16, #tpu.memory_space<vmem>>, vector<4096x128xbf16>
    %cst = arith.constant dense<0.000000e+00> : vector<2x128xf32>
    %2 = tpu.matmul %0, %1, %cst {dimension_numbers = #tpu.dot_dimension_numbers<[1], [0], [0], [1], [0, 0, 1, 1], [], []>} : vector<2x4096xbf16>, vector<4096x128xbf16>, vector<2x128xf32> -> vector<2x128xf32>
    %c0_3 = arith.constant 0 : index
    %c0_4 = arith.constant 0 : index
    %c0_5 = arith.constant 0 : index
    %3 = vector.load %arg3[%c0_3, %c0_4, %c0_5] : memref<1x2x128xf32, #tpu.memory_space<vmem>>, vector<1x2x128xf32>
    %4 = vector.shape_cast %3 : vector<1x2x128xf32> to vector<2x128xf32>
    %5 = vector.shape_cast %2 : vector<2x128xf32> to vector<1x2x128xf32>
    tpu.vector_store %arg3[%c0_3, %c0_4, %c0_5], %5 {strides = array<i32>} : memref<1x2x128xf32, #tpu.memory_space<vmem>>, vector<1x2x128xf32>,
    return
  }
  func.func @transform_0(%arg0: i32) -> (i32, i32) {
    %c0_i32 = arith.constant 0 : i32
    %c0_i32_0 = arith.constant 0 : i32
    return %c0_i32, %arg0 : i32, i32
  }
  func.func @transform_1(%arg0: i32) -> (i32, i32) {
    %c0_i32 = arith.constant 0 : i32
    %c0_i32_0 = arith.constant 0 : i32
    return %arg0, %c0_i32 : i32, i32
  }
  func.func @transform_2(%arg0: i32) -> (i32, i32, i32) {
    %c0_i32 = arith.constant 0 : i32
    %c0_i32_0 = arith.constant 0 : i32
    %c0_i32_1 = arith.constant 0 : i32
    return %arg0, %c0_i32, %c0_i32_0 : i32, i32, i32
  }
}

</mosaic_0001>

<bundles_post_ra>
// kernel: discriminator_forward.3
= control target key start
LH: loop header
LB: loop body
LE: loop exit
PB: predicated region body
PF: predicated region fallthrough
CT: control target
= control target key end

     0   :  { %s12523_s12 = smov 0   ;;  %s12525_s13 = smov 0   ;;  %s15242_s0 = inlined_call_operand.vmem [shape: bf16[2,2,2,9,9,512], index: 0, kind: input, shape index: {}]   ;;  %s15243_s1 = inlined_call_operand.vmem [shape: bf16[2,9,512,256], index: 1, kind: input, shape index: {}]   ;;  %s15244_s2 = inlined_call_operand.vmem [shape: f32[1,512], index: 2, kind: input, shape index: {}]   ;;  %s15245_s3 = inlined_call_operand.vmem [shape: bf16[128,512], index: 3, kind: output, shape index: {}]  }
   0x1   :  { %s12527_s14 = smov 0  }
   0x2 LB: > { %s12536_s15 = sadd.s32 4294967295, %s12501_s14   ;;  %s12538_s16 = sadd.s32 1, %s12501_s14   ;;  %s12501_s14 = sphi %s12527_s14, %s15251_s14   ;;  %s12497_s13 = sphi %s12525_s13, %s15250_s13   ;;  %s12493_s12 = sphi %s12523_s12, %s15249_s12  }
   0x3   : > { %s90_s17 = ssub.s32 %s12501_s14, %s12538_s16  ;;  %s93_s18 = sadd.s32 1, %s12497_s13 }
   0x4   : > { %p91_p0 = scmp.eq.s32.totalorder %s90_s17, 0  ;;  %p103_p1 = scmp.ne.s32.totalorder %s12497_s13, %s12493_s12 }
   0x5   : > { %p104_p2 = scmp.eq.s32.totalorder %s12536_s15, 1  ;;  %p9340_p3 = scmp.ge.s32.totalorder %s12501_s14, 1 }
   0x6   : > { %s12546_s19 = scalar_select %p91_p0, %s12497_s13, %s93_s18  }
   0x7   : > { %p12548_p4 = por %p104_p2, %p103_p1  ;;  %p147_p5 = scmp.lt.s32.totalorder %s12501_s14, 3 }
   0x9   : > { %p148_p6 = pnand %p9340_p3, %p147_p5 }
   0xa   : > { %p174_p7 = scmp.lt.s32.totalorder (!%p148_p6), %s12536_s15, 1  ;;  %v12556_v0 = vld [vmem:[%s15242_s0 + $0x240] sm:$0xff] (!%p148_p6)  ;;  %v12566_v2 = vld [vmem:[%s15242_s0 + $0x6c8] sm:$0xff] (!%p148_p6)  ;;  %vm1855_vm0 = vsmask.f32 (!%p148_p6), 3328  ;;  %s9343_s8 = sshll.u32 (!%p148_p6), %s12536_s15, 1 }
   0xb   : > { %151 = sbr.rel (%p148_p6) target bundleno = 889 (0x379), region = 32  ;;  %v12561_v1 = vld [vmem:[%s15242_s0 + $0x260] sm:$0xff] (!%p148_p6)  ;;  %v12575_v5 = vld [vmem:[%s15242_s0 + $0x6e8] sm:$0xff] (!%p148_p6)  ;;  %vm1856_vm1 = vsmask.f32 (!%p148_p6), 7440  ;;  %p180_p8 = scmp.lt.s32.totalorder (!%p148_p6), %s9343_s8, 3 }
   0xc   : > { %v9440_v3 = vcombine.low (!%p148_p6), %v12556_v0, %v12561_v1  ;;  %v9441_v4 = vcombine.high (!%p148_p6), %v12556_v0, %v12561_v1  ;;  %v10082_v6 = vcombine.low (!%p148_p6), %v12566_v2, %v12575_v5  ;;  %v10083_v7 = vcombine.high (!%p148_p6), %v12566_v2, %v12575_v5  ;;  %v9352_v0 = vld [vmem:[%s15242_s0 + $0x2c0] sm:$0xff] (!%p148_p6)  ;;  %v9993_v2 = vld [vmem:[%s15242_s0 + $0x748] sm:$0xff] (!%p148_p6)  ;;  %vm12846_vm2 = vmor (!%p148_p6), %vm1855_vm0, %vm1856_vm1  ;;  %s171_s11 = sand.u32 (!%p148_p6), 1, %s12493_s12  }
   0xd   : > { %v9354_v1 = vld [vmem:[%s15242_s0 + $0x2e0] sm:$0xff] (!%p148_p6)  ;;  %s9341_s14 = sshll.u32 (!%p148_p6), %s171_s11, 7 }
   0xe   : > { %891 = vmatprep.mubr.bf16.mxu1 (!%p148_p6), %v9441_v4  ;;  %4636 = vmatprep.mubr.bf16.mxu0 (!%p148_p6), %v10083_v7  ;;  %s15164_s12 = scalar_lea.vmem (!%p148_p6), [#allocation2], %s9341_s14 }
  0x12   : > { %s175_s29 = scalar_select %p174_p7, %s12536_s15, 1 }
  0x13   : > { %s15253_s8 = smov (!%p180_p8, %s9343_s8), 3  ;;  %s11045_s17 = sshll.u32 (%p12548_p4), %s12536_s15, 3 }
  0x14   : > { %s11590_s30 = smul.u32 4608, %s175_s29  ;;  %s9184_s22 = scalar_lea.vmem (%p12548_p4), %s15245_s3, %s11045_s17 }
  0x16   : > { %s12585_s6 = scalar_lea.vmem %s15243_s1, %s11590_s30 }
  0x17   : > { %v11615_v8 = vld [vmem:[%s12585_s6 + $0x204] ss:$8 sps:$4 sm:$0xff]   ;;  %v11619_v10 = vld [vmem:[%s12585_s6 + $0x200] ss:$8 sps:$4 sm:$0xff]   ;;  %v11621_v12 = vld [vmem:[%s12585_s6 + $0x214] ss:$8 sps:$4 sm:$0xff]  }
  0x18   : > { %v11617_v9 = vld [vmem:[%s12585_s6 + $0x904] ss:$8 sps:$4 sm:$0xff]   ;;  %859 = vmatprep.subr.bf16.mxu1 %v11615_v8  ;;  %v11620_v11 = vld [vmem:[%s12585_s6 + $0x900] ss:$8 sps:$4 sm:$0xff]   ;;  %v11623_v13 = vld [vmem:[%s12585_s6 + $0x914] ss:$8 sps:$4 sm:$0xff]  }
  0x19   : > { %4604 = vmatprep.subr.bf16.mxu0 %v11617_v9  ;;  %860 = vmatpush1.bf16.msra.mxu1 %v11619_v10  ;;  %v11625_v14 = vld [vmem:[%s12585_s6 + $0x210] ss:$8 sps:$4 sm:$0xff]   ;;  %v11627_v16 = vld [vmem:[%s12585_s6 + $0x224] ss:$8 sps:$4 sm:$0xff]   ;;  %v11631_v18 = vld [vmem:[%s12585_s6 + $0x220] ss:$8 sps:$4 sm:$0xff]  }
  0x1a   : > { %4605 = vmatpush1.bf16.msra.mxu0 %v11620_v11  ;;  %861 = vmatprep.subr.bf16.mxu1 %v11621_v12  ;;  %v11626_v15 = vld [vmem:[%s12585_s6 + $0x910] ss:$8 sps:$4 sm:$0xff]   ;;  %v11629_v17 = vld [vmem:[%s12585_s6 + $0x924] ss:$8 sps:$4 sm:$0xff]   ;;  %v11632_v19 = vld [vmem:[%s12585_s6 + $0x920] ss:$8 sps:$4 sm:$0xff]  }
  0x1b   : > { %4606 = vmatprep.subr.bf16.mxu0 %v11623_v13  ;;  %v11633_v20 = vld [vmem:[%s12585_s6 + $0x234] ss:$8 sps:$4 sm:$0xff]   ;;  %v11637_v22 = vld [vmem:[%s12585_s6 + $0x230] ss:$8 sps:$4 sm:$0xff]   ;;  %v11639_v24 = vld [vmem:[%s12585_s6 + $0x244] ss:$8 sps:$4 sm:$0xff]  }
  0x1c   : > { %v11635_v21 = vld [vmem:[%s12585_s6 + $0x934] ss:$8 sps:$4 sm:$0xff]   ;;  %v11638_v23 = vld [vmem:[%s12585_s6 + $0x930] ss:$8 sps:$4 sm:$0xff]   ;;  %v11641_v25 = vld [vmem:[%s12585_s6 + $0x944] ss:$8 sps:$4 sm:$0xff]  }
  0x1d   : > { %862 = vmatpush1.bf16.msra.mxu1 %v11625_v14  ;;  %v11643_v26 = vld [vmem:[%s12585_s6 + $0x240] ss:$8 sps:$4 sm:$0xff]   ;;  %v11645_v28 = vld [vmem:[%s12585_s6 + $0x254] ss:$8 sps:$4 sm:$0xff]   ;;  %v11649_v30 = vld [vmem:[%s12585_s6 + $0x250] ss:$8 sps:$4 sm:$0xff]  }
  0x1e   : > { %4607 = vmatpush1.bf16.msra.mxu0 %v11626_v15  ;;  %863 = vmatprep.subr.bf16.mxu1 %v11627_v16  ;;  %v11644_v27 = vld [vmem:[%s12585_s6 + $0x940] ss:$8 sps:$4 sm:$0xff]   ;;  %v11647_v29 = vld [vmem:[%s12585_s6 + $0x954] ss:$8 sps:$4 sm:$0xff]   ;;  %v11650_v31 = vld [vmem:[%s12585_s6 + $0x950] ss:$8 sps:$4 sm:$0xff]  }
  0x1f   : > { %4608 = vmatprep.subr.bf16.mxu0 %v11629_v17  ;;  %v11651_v32 = vld [vmem:[%s12585_s6 + $0x264] ss:$8 sps:$4 sm:$0xff]   ;;  %v11655_v34 = vld [vmem:[%s12585_s6 + $0x260] ss:$8 sps:$4 sm:$0xff]   ;;  %v11657_v36 = vld [vmem:[%s12585_s6 + $0x274] ss:$8 sps:$4 sm:$0xff]  }
  0x20   : > { %v11653_v33 = vld [vmem:[%s12585_s6 + $0x964] ss:$8 sps:$4 sm:$0xff]   ;;  %v11656_v35 = vld [vmem:[%s12585_s6 + $0x960] ss:$8 sps:$4 sm:$0xff]   ;;  %v11659_v37 = vld [vmem:[%s12585_s6 + $0x974] ss:$8 sps:$4 sm:$0xff]  }
  0x21   : > { %864 = vmatpush1.bf16.msra.mxu1 %v11631_v18  ;;  %v11661_v38 = vld [vmem:[%s12585_s6 + $0x270] ss:$8 sps:$4 sm:$0xff]   ;;  %v11663_v40 = vld [vmem:[%s12585_s6 + $0x284] ss:$8 sps:$4 sm:$0xff]   ;;  %v11667_v42 = vld [vmem:[%s12585_s6 + $0x280] ss:$8 sps:$4 sm:$0xff]  }
  0x22   : > { %4609 = vmatpush1.bf16.msra.mxu0 %v11632_v19  ;;  %865 = vmatprep.subr.bf16.mxu1 %v11633_v20  ;;  %v11662_v39 = vld [vmem:[%s12585_s6 + $0x970] ss:$8 sps:$4 sm:$0xff]   ;;  %v11665_v41 = vld [vmem:[%s12585_s6 + $0x984] ss:$8 sps:$4 sm:$0xff]   ;;  %v11668_v43 = vld [vmem:[%s12585_s6 + $0x980] ss:$8 sps:$4 sm:$0xff]  }
  0x23   : > { %4610 = vmatprep.subr.bf16.mxu0 %v11635_v21  ;;  %v11669_v44 = vld [vmem:[%s12585_s6 + $0x294] ss:$8 sps:$4 sm:$0xff]   ;;  %v11673_v46 = vld [vmem:[%s12585_s6 + $0x290] ss:$8 sps:$4 sm:$0xff]   ;;  %v11675_v48 = vld [vmem:[%s12585_s6 + $0x2a4] ss:$8 sps:$4 sm:$0xff]  }
  0x24   : > { %v11671_v45 = vld [vmem:[%s12585_s6 + $0x994] ss:$8 sps:$4 sm:$0xff]   ;;  %v11674_v47 = vld [vmem:[%s12585_s6 + $0x990] ss:$8 sps:$4 sm:$0xff]   ;;  %v11677_v49 = vld [vmem:[%s12585_s6 + $0x9a4] ss:$8 sps:$4 sm:$0xff]  }
  0x25   : > { %866 = vmatpush1.bf16.msra.mxu1 %v11637_v22  ;;  %v11679_v50 = vld [vmem:[%s12585_s6 + $0x2a0] ss:$8 sps:$4 sm:$0xff]   ;;  %v11681_v52 = vld [vmem:[%s12585_s6 + $0x2b4] ss:$8 sps:$4 sm:$0xff]   ;;  %v11685_v54 = vld [vmem:[%s12585_s6 + $0x2b0] ss:$8 sps:$4 sm:$0xff]  }
  0x26   : > { %4611 = vmatpush1.bf16.msra.mxu0 %v11638_v23  ;;  %867 = vmatprep.subr.bf16.mxu1 %v11639_v24  ;;  %v11680_v51 = vld [vmem:[%s12585_s6 + $0x9a0] ss:$8 sps:$4 sm:$0xff]   ;;  %v11683_v53 = vld [vmem:[%s12585_s6 + $0x9b4] ss:$8 sps:$4 sm:$0xff]   ;;  %v11686_v55 = vld [vmem:[%s12585_s6 + $0x9b0] ss:$8 sps:$4 sm:$0xff]  }
  0x27   : > { %4612 = vmatprep.subr.bf16.mxu0 %v11641_v25  ;;  %v11687_v56 = vld [vmem:[%s12585_s6 + $0x2c4] ss:$8 sps:$4 sm:$0xff]   ;;  %v11691_v58 = vld [vmem:[%s12585_s6 + $0x2c0] ss:$8 sps:$4 sm:$0xff]   ;;  %v11693_v60 = vld [vmem:[%s12585_s6 + $0x2d4] ss:$8 sps:$4 sm:$0xff]  }
  0x28   : > { %v11689_v57 = vld [vmem:[%s12585_s6 + $0x9c4] ss:$8 sps:$4 sm:$0xff]   ;;  %v11692_v59 = vld [vmem:[%s12585_s6 + $0x9c0] ss:$8 sps:$4 sm:$0xff]   ;;  %v11695_v61 = vld [vmem:[%s12585_s6 + $0x9d4] ss:$8 sps:$4 sm:$0xff]  }
  0x29   : > { %868 = vmatpush1.bf16.msra.mxu1 %v11643_v26  ;;  %v11697_v62 = vld [vmem:[%s12585_s6 + $0x2d0] ss:$8 sps:$4 sm:$0xff]   ;;  %v11699_v4 = vld [vmem:[%s12585_s6 + $0x2e4] ss:$8 sps:$4 sm:$0xff]   ;;  %v11703_v8 = vld [vmem:[%s12585_s6 + $0x2e0] ss:$8 sps:$4 sm:$0xff]  }
  0x2a   : > { %4613 = vmatpush1.bf16.msra.mxu0 %v11644_v27  ;;  %869 = vmatprep.subr.bf16.mxu1 %v11645_v28  ;;  %v11698_v63 = vld [vmem:[%s12585_s6 + $0x9d0] ss:$8 sps:$4 sm:$0xff]   ;;  %v11701_v7 = vld [vmem:[%s12585_s6 + $0x9e4] ss:$8 sps:$4 sm:$0xff]   ;;  %v11704_v9 = vld [vmem:[%s12585_s6 + $0x9e0] ss:$8 sps:$4 sm:$0xff]  }
  0x2b   : > { %4614 = vmatprep.subr.bf16.mxu0 %v11647_v29  ;;  %v11705_v10 = vld [vmem:[%s12585_s6 + $0x2f4] ss:$8 sps:$4 sm:$0xff]   ;;  %v11709_v12 = vld [vmem:[%s12585_s6 + $0x2f0] ss:$8 sps:$4 sm:$0xff]   ;;  %v11713_v14 = vld [vmem:[%s12585_s6 + $0x304] ss:$8 sps:$4 sm:$0xff]  }
  0x2c   : > { %v11707_v11 = vld [vmem:[%s12585_s6 + $0x9f4] ss:$8 sps:$4 sm:$0xff]   ;;  %v11710_v13 = vld [vmem:[%s12585_s6 + $0x9f0] ss:$8 sps:$4 sm:$0xff]   ;;  %v11716_v15 = vld [vmem:[%s12585_s6 + $0xa04] ss:$8 sps:$4 sm:$0xff]  }
  0x2d   : > { %870 = vmatpush1.bf16.msra.mxu1 %v11649_v30  ;;  %v9348_v16 = vld [vmem:[%s15242_s0 + $0x280] sm:$0xff]  ;;  %v9989_v18 = vld [vmem:[%s15242_s0 + $0x708] sm:$0xff]  ;;  %v11719_v22 = vld [vmem:[%s12585_s6 + $0x314] ss:$8 sps:$4 sm:$0xff]  }
  0x2e   : > { %4615 = vmatpush1.bf16.msra.mxu0 %v11650_v31  ;;  %871 = vmatprep.subr.bf16.mxu1 %v11651_v32  ;;  %v9350_v17 = vld [vmem:[%s15242_s0 + $0x2a0] sm:$0xff]  ;;  %v9991_v19 = vld [vmem:[%s15242_s0 + $0x728] sm:$0xff]  ;;  %v11722_v23 = vld [vmem:[%s12585_s6 + $0xa14] ss:$8 sps:$4 sm:$0xff]  }
  0x2f   : > { %4616 = vmatprep.subr.bf16.mxu0 %v11653_v33  ;;  %v11711_v20 = vld [vmem:[%s12585_s6 + $0x300] ss:$8 sps:$4 sm:$0xff]   ;;  %v9445_v24 = vcombine.high %v9348_v16, %v9350_v17  ;;  %v10087_v25 = vcombine.high %v9989_v18, %v9991_v19  ;;  %v11717_v26 = vld [vmem:[%s12585_s6 + $0x310] ss:$8 sps:$4 sm:$0xff]   ;;  %v11725_v28 = vld [vmem:[%s12585_s6 + $0x324] ss:$8 sps:$4 sm:$0xff]  }
  0x30   : > { %v11714_v21 = vld [vmem:[%s12585_s6 + $0xa00] ss:$8 sps:$4 sm:$0xff]   ;;  %v11720_v27 = vld [vmem:[%s12585_s6 + $0xa10] ss:$8 sps:$4 sm:$0xff]   ;;  %v11728_v29 = vld [vmem:[%s12585_s6 + $0xa24] ss:$8 sps:$4 sm:$0xff]  }
  0x31   : > { %872 = vmatpush1.bf16.msra.mxu1 %v11655_v34  ;;  %v11723_v5 = vld [vmem:[%s12585_s6 + $0x320] ss:$8 sps:$4 sm:$0xff]   ;;  %v11731_v32 = vld [vmem:[%s12585_s6 + $0x334] ss:$8 sps:$4 sm:$0xff]   ;;  %v9449_v34 = vcombine.high %v9352_v0, %v9354_v1 }
  0x32   : > { %4617 = vmatpush1.bf16.msra.mxu0 %v11656_v35  ;;  %873 = vmatprep.subr.bf16.mxu1 %v11657_v36  ;;  %v9995_v30 = vld [vmem:[%s15242_s0 + $0x768] sm:$0xff]  ;;  %v11734_v33 = vld [vmem:[%s12585_s6 + $0xa34] ss:$8 sps:$4 sm:$0xff]   ;;  %v11729_v36 = vld [vmem:[%s12585_s6 + $0x330] ss:$8 sps:$4 sm:$0xff]  }
  0x33   : > { %4618 = vmatprep.subr.bf16.mxu0 %v11659_v37  ;;  %v11726_v31 = vld [vmem:[%s12585_s6 + $0xa20] ss:$8 sps:$4 sm:$0xff]   ;;  %v10091_v35 = vcombine.high %v9993_v2, %v9995_v30  ;;  %v11732_v37 = vld [vmem:[%s12585_s6 + $0xa30] ss:$8 sps:$4 sm:$0xff]  }
  0x35   : > { %874 = vmatpush1.bf16.msra.mxu1 %v11661_v38  ;;  %v11737_v38 = vld [vmem:[%s12585_s6 + $0x344] ss:$8 sps:$4 sm:$0xff]  }
  0x36   : > { %4619 = vmatpush1.bf16.msra.mxu0 %v11662_v39  ;;  %875 = vmatprep.subr.bf16.mxu1 %v11663_v40  ;;  %v11740_v39 = vld [vmem:[%s12585_s6 + $0xa44] ss:$8 sps:$4 sm:$0xff]  }
  0x37   : > { %4620 = vmatprep.subr.bf16.mxu0 %v11665_v41  ;;  %v9356_v40 = vld [vmem:[%s15242_s0 + $0x300] sm:$0xff] }
  0x38   : > { %v9358_v41 = vld [vmem:[%s15242_s0 + $0x320] sm:$0xff] }
  0x39   : > { %876 = vmatpush1.bf16.msra.mxu1 %v11667_v42  ;;  %v9997_v42 = vld [vmem:[%s15242_s0 + $0x788] sm:$0xff] }
  0x3a   : > { %4621 = vmatpush1.bf16.msra.mxu0 %v11668_v43  ;;  %877 = vmatprep.subr.bf16.mxu1 %v11669_v44  ;;  %v9448_v43 = vcombine.low %v9352_v0, %v9354_v1  ;;  %v11735_v44 = vld [vmem:[%s12585_s6 + $0x340] ss:$8 sps:$4 sm:$0xff]   ;;  %v11773_v0 = vld [vmem:[%s12585_s6 + $0x3a4] ss:$8 sps:$4 sm:$0xff]  }
  0x3b   : > { %4622 = vmatprep.subr.bf16.mxu0 %v11671_v45  ;;  %v10090_v45 = vcombine.low %v9993_v2, %v9995_v30  ;;  %v11776_v1 = vld [vmem:[%s12585_s6 + $0xaa4] ss:$8 sps:$4 sm:$0xff]  }
  0x3c   : > { %v12771_v30 = vld [vmem:[%s15242_s0 + $0x3e0] sm:$0xff] }
  0x3d   : > { %878 = vmatpush1.bf16.msra.mxu1 %v11673_v46  ;;  %v9999_v46 = vld [vmem:[%s15242_s0 + $0x7a8] sm:$0xff] }
  0x3e   : > { %4623 = vmatpush1.bf16.msra.mxu0 %v11674_v47  ;;  %879 = vmatprep.subr.bf16.mxu1 %v11675_v48  ;;  %v11738_v47 = vld [vmem:[%s12585_s6 + $0xa40] ss:$8 sps:$4 sm:$0xff]   ;;  %v11743_v48 = vld [vmem:[%s12585_s6 + $0x354] ss:$8 sps:$4 sm:$0xff]  }
  0x3f   : > { %4624 = vmatprep.subr.bf16.mxu0 %v11677_v49  ;;  %v11746_v49 = vld [vmem:[%s12585_s6 + $0xa54] ss:$8 sps:$4 sm:$0xff]  }
  0x41   : > { %880 = vmatpush1.bf16.msra.mxu1 %v11679_v50  ;;  %v9453_v50 = vcombine.high %v9356_v40, %v9358_v41 }
  0x42   : > { %4625 = vmatpush1.bf16.msra.mxu0 %v11680_v51  ;;  %881 = vmatprep.subr.bf16.mxu1 %v11681_v52  ;;  %v10095_v51 = vcombine.high %v9997_v42, %v9999_v46  ;;  %v11741_v52 = vld [vmem:[%s12585_s6 + $0x350] ss:$8 sps:$4 sm:$0xff]  }
  0x43   : > { %4626 = vmatprep.subr.bf16.mxu0 %v11683_v53  ;;  %v11744_v53 = vld [vmem:[%s12585_s6 + $0xa50] ss:$8 sps:$4 sm:$0xff]  }
  0x45   : > { %882 = vmatpush1.bf16.msra.mxu1 %v11685_v54  ;;  %v11749_v54 = vld [vmem:[%s12585_s6 + $0x364] ss:$8 sps:$4 sm:$0xff]  }
  0x46   : > { %4627 = vmatpush1.bf16.msra.mxu0 %v11686_v55  ;;  %883 = vmatprep.subr.bf16.mxu1 %v11687_v56  ;;  %v11752_v55 = vld [vmem:[%s12585_s6 + $0xa64] ss:$8 sps:$4 sm:$0xff]  }
  0x47   : > { %4628 = vmatprep.subr.bf16.mxu0 %v11689_v57  ;;  %v9360_v56 = vld [vmem:[%s15242_s0 + $0x360] sm:$0xff] }
  0x48   : > { %v9362_v57 = vld [vmem:[%s15242_s0 + $0x380] sm:$0xff] }
  0x49   : > { %884 = vmatpush1.bf16.msra.mxu1 %v11691_v58  ;;  %v9452_v58 = vcombine.low %v9356_v40, %v9358_v41 }
  0x4a   : > { %4629 = vmatpush1.bf16.msra.mxu0 %v11692_v59  ;;  %885 = vmatprep.subr.bf16.mxu1 %v11693_v60  ;;  %v10094_v59 = vcombine.low %v9997_v42, %v9999_v46  ;;  %v10001_v60 = vld [vmem:[%s15242_s0 + $0x7e8] sm:$0xff]  ;;  %v11777_v46 = vld [vmem:[%s12585_s6 + $0x3b0] ss:$8 sps:$4 sm:$0xff]  }
  0x4b   : > { %4630 = vmatprep.subr.bf16.mxu0 %v11695_v61  ;;  %v10003_v61 = vld [vmem:[%s15242_s0 + $0x808] sm:$0xff] }
  0x4d   : > { %886 = vmatpush1.bf16.msra.mxu1 %v11697_v62  ;;  %v11747_v62 = vld [vmem:[%s12585_s6 + $0x360] ss:$8 sps:$4 sm:$0xff]  }
  0x4e   : > { %4631 = vmatpush1.bf16.msra.mxu0 %v11698_v63  ;;  %887 = vmatprep.subr.bf16.mxu1 %v11699_v4  ;;  %v11750_v63 = vld [vmem:[%s12585_s6 + $0xa60] ss:$8 sps:$4 sm:$0xff]   ;;  %v11755_v4 = vld [vmem:[%s12585_s6 + $0x374] ss:$8 sps:$4 sm:$0xff]  }
  0x4f   : > { %4632 = vmatprep.subr.bf16.mxu0 %v11701_v7  ;;  %v11758_v7 = vld [vmem:[%s12585_s6 + $0xa74] ss:$8 sps:$4 sm:$0xff]  }
  0x51   : > { %888 = vmatpush1.bf16.msra.mxu1 %v11703_v8  ;;  %v9457_v8 = vcombine.high %v9360_v56, %v9362_v57 }
  0x52   : > { %4633 = vmatpush1.bf16.msra.mxu0 %v11704_v9  ;;  %889 = vmatprep.subr.bf16.mxu1 %v11705_v10  ;;  %v10099_v9 = vcombine.high %v10001_v60, %v10003_v61  ;;  %v11753_v10 = vld [vmem:[%s12585_s6 + $0x370] ss:$8 sps:$4 sm:$0xff]  }
  0x53   : > { %4634 = vmatprep.subr.bf16.mxu0 %v11707_v11  ;;  %v11756_v11 = vld [vmem:[%s12585_s6 + $0xa70] ss:$8 sps:$4 sm:$0xff]  }
  0x55   : > { %890 = vmatpush1.bf16.msra.mxu1 %v11709_v12  ;;  %v11761_v12 = vld [vmem:[%s12585_s6 + $0x384] ss:$8 sps:$4 sm:$0xff]  }
  0x56   : > { %4635 = vmatpush1.bf16.msra.mxu0 %v11710_v13  ;;  %972 = vmatprep.subr.bf16.mxu1 %v11713_v14  ;;  %v11764_v13 = vld [vmem:[%s12585_s6 + $0xa84] ss:$8 sps:$4 sm:$0xff]  }
  0x57   : > { %5774 = vmatprep.subr.bf16.mxu0 %v11716_v15  ;;  %v12742_v14 = vld [vmem:[%s15242_s0 + $0x3a0] sm:$0xff] }
  0x58   : > { %892 = vmatmul.mubr.bf16.vlgmr.msra.gmra.mrb[0].mxu1 %v9440_v3  ;;  %v9444_v3 = vcombine.low %v9348_v16, %v9350_v17  ;;  %v9366_v15 = vld [vmem:[%s15242_s0 + $0x3c0] sm:$0xff] }
  0x59   : > { %4637 = vmatmul.mubr.bf16.vlgmr.msra.gmra.mrb[0].mxu0 %v10082_v6  ;;  %973 = vmatpush1.bf16.msra.mxu1 %v11711_v20  ;;  %v10086_v6 = vcombine.low %v9989_v18, %v9991_v19  ;;  %v11759_v16 = vld [vmem:[%s12585_s6 + $0x380] ss:$8 sps:$4 sm:$0xff]   ;;  %v9456_v19 = vcombine.low %v9360_v56, %v9362_v57  ;;  %v10098_v20 = vcombine.low %v10001_v60, %v10003_v61 }
  0x5a   : > { %5775 = vmatpush1.bf16.msra.mxu0 %v11714_v21  ;;  %974 = vmatprep.subr.bf16.mxu1 %v11719_v22  ;;  %v11762_v17 = vld [vmem:[%s12585_s6 + $0xa80] ss:$8 sps:$4 sm:$0xff]   ;;  %v11767_v22 = vld [vmem:[%s12585_s6 + $0x394] ss:$8 sps:$4 sm:$0xff]  }
  0x5b   : > { %5776 = vmatprep.subr.bf16.mxu0 %v11722_v23  ;;  %901 = vmatprep.mubr.bf16.mxu1 %v9445_v24  ;;  %v10005_v18 = vld [vmem:[%s15242_s0 + $0x828] sm:$0xff]  ;;  %v10176_v23 = vld [vmem:[%s15242_s0 + $0x480] sm:$0xff]  ;;  %v11770_v24 = vld [vmem:[%s12585_s6 + $0xa94] ss:$8 sps:$4 sm:$0xff]  }
  0x5c   : > { %4646 = vmatprep.mubr.bf16.mxu0 %v10087_v25  ;;  %v10007_v21 = vld [vmem:[%s15242_s0 + $0x848] sm:$0xff]  ;;  %v10180_v25 = vld [vmem:[%s15242_s0 + $0x4a0] sm:$0xff]  ;;  %v4814_v2 = vshrl.u32 %v10176_v23, 16 }
  0x5d   : > { %975 = vmatpush1.bf16.msra.mxu1 %v11717_v26  ;;  %v11765_v26 = vld [vmem:[%s12585_s6 + $0x390] ss:$8 sps:$4 sm:$0xff]  }
  0x5e   : > { %5777 = vmatpush1.bf16.msra.mxu0 %v11720_v27  ;;  %976 = vmatprep.subr.bf16.mxu1 %v11725_v28  ;;  %v11768_v27 = vld [vmem:[%s12585_s6 + $0xa90] ss:$8 sps:$4 sm:$0xff]   ;;  %v9461_v28 = vcombine.high %v12742_v14, %v9366_v15  ;;  %v4816_v40 = vrot.slane %v4814_v2, 4  ;;  %v11800_v2 = vld [vmem:[%s12585_s6 + $0xae4] ss:$8 sps:$4 sm:$0xff]  }
  0x5f   : > { %5778 = vmatprep.subr.bf16.mxu0 %v11728_v29  ;;  %v10103_v29 = vcombine.high %v10005_v18, %v10007_v21 }
  0x60   : > { %902 = vmatmul.mubr.bf16.gmra.mrb[4].mxu1 %v9444_v3  ;;  %v4817_v3 = vshll.u32 %v10176_v23, 16 }
  0x61   : > { %4647 = vmatmul.mubr.bf16.gmra.mrb[4].mxu0 %v10086_v6  ;;  %977 = vmatpush1.bf16.msra.mxu1 %v11723_v5  ;;  %v4842_v5 = vshrl.u32 %v10180_v25, 16  ;;  %v4845_v6 = vshll.u32 %v10180_v25, 16 }
  0x62   : > { %5779 = vmatpush1.bf16.msra.mxu0 %v11726_v31  ;;  %978 = vmatprep.subr.bf16.mxu1 %v11731_v32  ;;  %v12776_v31 = vld [vmem:[%s15242_s0 + $0x400] sm:$0xff]  ;;  %v12781_v32 = vld [vmem:[%s15242_s0 + $0x868] sm:$0xff]  ;;  %v4819_v41 = vrot.slane %v4817_v3, 5 }
  0x63   : > { %5780 = vmatprep.subr.bf16.mxu0 %v11734_v33  ;;  %911 = vmatprep.mubr.bf16.mxu1 %v9449_v34  ;;  %v11771_v33 = vld [vmem:[%s12585_s6 + $0x3a0] ss:$8 sps:$4 sm:$0xff]   ;;  %v4844_v42 = vrot.slane %v4842_v5, 4 }
  0x64   : > { %4656 = vmatprep.mubr.bf16.mxu0 %v10091_v35  ;;  %v11774_v34 = vld [vmem:[%s12585_s6 + $0xaa0] ss:$8 sps:$4 sm:$0xff]   ;;  %v4820_v56 = vor.u32 %v4819_v41, %v4816_v40 }
  0x65   : > { %979 = vmatpush1.bf16.msra.mxu1 %v11729_v36  ;;  %v12788_v35 = vld [vmem:[%s15242_s0 + $0x888] sm:$0xff]  ;;  %v9460_v36 = vcombine.low %v12742_v14, %v9366_v15 }
  0x66   : > { %5781 = vmatpush1.bf16.msra.mxu0 %v11732_v37  ;;  %980 = vmatprep.subr.bf16.mxu1 %v11737_v38  ;;  %v10102_v37 = vcombine.low %v10005_v18, %v10007_v21  ;;  %v10178_v38 = vld [vmem:[%s15242_s0 + $0x490] sm:$0x11]  ;;  %v11795_v40 = vld [vmem:[%s12585_s6 + $0x3e0] ss:$8 sps:$4 sm:$0xff]  }
  0x67   : > { %5782 = vmatprep.subr.bf16.mxu0 %v11740_v39  ;;  %v10182_v39 = vld [vmem:[%s15242_s0 + $0x4b0] sm:$0x11] }
  0x68   : > { %912 = vmatmul.mubr.bf16.gmra.mrb[8].mxu1 %v9448_v43  ;;  %v4847_v43 = vrot.slane %v4845_v6, 5  ;;  %v10186_v18 = vld [vmem:[%s15242_s0 + $0x4d0] sm:$0x11]  ;;  %v12874_v6 = vld [vmem:[%s15242_s0 + $0x248] sm:$0xff] }
  0x69   : > { %4657 = vmatmul.mubr.bf16.gmra.mrb[8].mxu0 %v10090_v45  ;;  %981 = vmatpush1.bf16.msra.mxu1 %v11735_v44  ;;  %v11779_v44 = vld [vmem:[%s12585_s6 + $0x3b4] ss:$8 sps:$4 sm:$0xff]   ;;  %v4879_v5 = vshll.u32 %v10186_v18, 16 }
  0x6a   : > { %5783 = vmatpush1.bf16.msra.mxu0 %v11738_v47  ;;  %982 = vmatprep.subr.bf16.mxu1 %v11743_v48  ;;  %v11782_v45 = vld [vmem:[%s12585_s6 + $0xab4] ss:$8 sps:$4 sm:$0xff]   ;;  %v11780_v47 = vld [vmem:[%s12585_s6 + $0xab0] ss:$8 sps:$4 sm:$0xff]   ;;  %v9465_v48 = vcombine.high %v12771_v30, %v12776_v31  ;;  %v4848_v57 = vor.u32 %v4847_v43, %v4844_v42  ;;  %v11798_v42 = vld [vmem:[%s12585_s6 + $0xae0] ss:$8 sps:$4 sm:$0xff]  }
  0x6b   : > { %5784 = vmatprep.subr.bf16.mxu0 %v11746_v49  ;;  %921 = vmatprep.mubr.bf16.mxu1 %v9453_v50  ;;  %v10107_v49 = vcombine.high %v12781_v32, %v12788_v35  ;;  %v10184_v50 = vld [vmem:[%s15242_s0 + $0x4c0] sm:$0xff]  ;;  %v11803_v43 = vld [vmem:[%s12585_s6 + $0x3f4] ss:$8 sps:$4 sm:$0xff]  }
  0x6c   : > { %4666 = vmatprep.mubr.bf16.mxu0 %v10095_v51  ;;  %v10188_v51 = vld [vmem:[%s15242_s0 + $0x4e0] sm:$0xff] }
  0x6d   : > { %983 = vmatpush1.bf16.msra.mxu1 %v11741_v52  ;;  %v11785_v52 = vld [vmem:[%s12585_s6 + $0x3c4] ss:$8 sps:$4 sm:$0xff]   ;;  %v4898_v60 = vshrl.u32 %v10188_v51, 16  ;;  %v4901_v61 = vshll.u32 %v10188_v51, 16  ;;  %v10194_v51 = vld [vmem:[%s15242_s0 + $0x510] sm:$0x11] }
  0x6e   : > { %5785 = vmatpush1.bf16.msra.mxu0 %v11744_v53  ;;  %984 = vmatprep.subr.bf16.mxu1 %v11749_v54  ;;  %v11788_v53 = vld [vmem:[%s12585_s6 + $0xac4] ss:$8 sps:$4 sm:$0xff]   ;;  %v4823_v54 = vshll.u32 %v10178_v38, 16 }
  0x6f   : > { %5786 = vmatprep.subr.bf16.mxu0 %v11752_v55  ;;  %v4851_v55 = vshll.u32 %v10182_v39, 16  ;;  %v4903_v23 = vrot.slane %v4901_v61, 5  ;;  %v10200_v61 = vld [vmem:[%s15242_s0 + $0x540] sm:$0xff] }
  0x70   : > { %922 = vmatmul.mubr.bf16.gmra.mrb[12].mxu1 %v9452_v58  ;;  %v4870_v58 = vshrl.u32 %v10184_v50, 16  ;;  %v4825_v14 = vrot.slane %v4823_v54, 5 }
  0x71   : > { %4667 = vmatmul.mubr.bf16.gmra.mrb[12].mxu0 %v10094_v59  ;;  %985 = vmatpush1.bf16.msra.mxu1 %v11747_v62  ;;  %v4873_v59 = vshll.u32 %v10184_v50, 16  ;;  %v11783_v62 = vld [vmem:[%s12585_s6 + $0x3c0] ss:$8 sps:$4 sm:$0xff]   ;;  %v4853_v15 = vrot.slane %v4851_v55, 5 }
  0x72   : > { %5787 = vmatpush1.bf16.msra.mxu0 %v11750_v63  ;;  %986 = vmatprep.subr.bf16.mxu1 %v11755_v4  ;;  %v11786_v63 = vld [vmem:[%s12585_s6 + $0xac0] ss:$8 sps:$4 sm:$0xff]  }
  0x73   : > { %5788 = vmatprep.subr.bf16.mxu0 %v11758_v7  ;;  %931 = vmatprep.mubr.bf16.mxu1 %v9457_v8  ;;  %v12818_v4 = vld [vmem:[%s15242_s0 + $0x420] sm:$0xff]  ;;  %v9464_v7 = vcombine.low %v12771_v30, %v12776_v31  ;;  %v10106_v8 = vcombine.low %v12781_v32, %v12788_v35  ;;  %v4875_v21 = vrot.slane %v4873_v59, 5  ;;  %v12879_v30 = vld [vmem:[%s15242_s0 + $0x268] sm:$0xff]  ;;  %v10198_v59 = vld [vmem:[%s15242_s0 + $0x530] sm:$0x11] }
  0x74   : > { %4676 = vmatprep.mubr.bf16.mxu0 %v10099_v9  ;;  %v11791_v9 = vld [vmem:[%s12585_s6 + $0x3d4] ss:$8 sps:$4 sm:$0xff]  }
  0x75   : > { %987 = vmatpush1.bf16.msra.mxu1 %v11753_v10  ;;  %v11794_v10 = vld [vmem:[%s12585_s6 + $0xad4] ss:$8 sps:$4 sm:$0xff]  }
  0x76   : > { %5789 = vmatpush1.bf16.msra.mxu0 %v11756_v11  ;;  %988 = vmatprep.subr.bf16.mxu1 %v11761_v12  ;;  %v12829_v11 = vld [vmem:[%s15242_s0 + $0x440] sm:$0xff]  ;;  %v12834_v12 = vld [vmem:[%s15242_s0 + $0x8a8] sm:$0xff] }
  0x77   : > { %5790 = vmatprep.subr.bf16.mxu0 %v11764_v13  ;;  %v12839_v13 = vld [vmem:[%s15242_s0 + $0x8c8] sm:$0xff]  ;;  %v9469_v25 = vcombine.high %v12818_v4, %v12829_v11  ;;  %v9468_v39 = vcombine.low %v12818_v4, %v12829_v11 }
  0x78   : > { %932 = vmatmul.mubr.bf16.gmra.mrb[16].mxu1 %v9456_v19  ;;  %v10110_v41 = vcombine.low %v12834_v12, %v12839_v13  ;;  %v12930_v11 = vld [vmem:[%s15242_s0 + $0x2a8] sm:$0xff] }
  0x79   : > { %4677 = vmatmul.mubr.bf16.gmra.mrb[16].mxu0 %v10098_v20  ;;  %989 = vmatpush1.bf16.msra.mxu1 %v11759_v16  ;;  %v4821_v16 = vrot.slane %v4820_v56, 4  ;;  %v4872_v20 = vrot.slane %v4870_v58, 4  ;;  %v11809_v58 = vld [vmem:[%s12585_s6 + $0x4] ss:$8 sps:$4 sm:$0xff]  }
  0x7a   : > { %5791 = vmatpush1.bf16.msra.mxu0 %v11762_v17  ;;  %990 = vmatprep.subr.bf16.mxu1 %v11767_v22  ;;  %v4849_v17 = vrot.slane %v4848_v57, 4  ;;  %v4900_v22 = vrot.slane %v4898_v60, 4  ;;  %v11804_v57 = vld [vmem:[%s12585_s6 + $0xaf0] ss:$8 sps:$4 sm:$0xff]   ;;  %v11812_v60 = vld [vmem:[%s12585_s6 + $0xb04] ss:$8 sps:$4 sm:$0xff]  }
  0x7b   : > { %5792 = vmatprep.subr.bf16.mxu0 %v11770_v24  ;;  %941 = vmatprep.mubr.bf16.mxu1 %v9461_v28  ;;  %v11789_v24 = vld [vmem:[%s12585_s6 + $0x3d0] ss:$8 sps:$4 sm:$0xff]   ;;  %v12869_v3 = vsel %vm12846_vm2, %v4821_v16, %v4825_v14  ;;  %v4876_v32 = vor.u32 %v4875_v21, %v4872_v20  ;;  %v4982_v16 = vshrl.u32 %v10200_v61, 16  ;;  %v11810_v21 = vld [vmem:[%s12585_s6 + $0xb00] ss:$8 sps:$4 sm:$0xff]  }
  0x7c   : > { %4686 = vmatprep.mubr.bf16.mxu0 %v10103_v29  ;;  %v11792_v28 = vld [vmem:[%s12585_s6 + $0xad0] ss:$8 sps:$4 sm:$0xff]   ;;  %v10192_v29 = vld [vmem:[%s15242_s0 + $0x500] sm:$0xff]  ;;  %v12883_v31 = vsel %vm12846_vm2, %v4849_v17, %v4853_v15  ;;  %v4963_v15 = vshll.u32 %v10198_v59, 16  ;;  %v4985_v17 = vshll.u32 %v10200_v61, 16 }
  0x7d   : > { %991 = vmatpush1.bf16.msra.mxu1 %v11765_v26  ;;  %v10111_v26 = vcombine.high %v12834_v12, %v12839_v13  ;;  %v4926_v35 = vshrl.u32 %v10192_v29, 16  ;;  %v10304_v4 = vcombine.low %v12869_v3, %v12883_v31  ;;  %v11828_v59 = vld [vmem:[%s12585_s6 + $0xb30] ss:$8 sps:$4 sm:$0xff]  }
  0x7e   : > { %5793 = vmatpush1.bf16.msra.mxu0 %v11768_v27  ;;  %992 = vmatprep.subr.bf16.mxu1 %v11773_v0  ;;  %v10190_v27 = vld [vmem:[%s15242_s0 + $0x4f0] sm:$0x11]  ;;  %v10196_v0 = vld [vmem:[%s15242_s0 + $0x520] sm:$0xff] }
  0x7f   : > { %5794 = vmatprep.subr.bf16.mxu0 %v11776_v1  ;;  %v11797_v1 = vld [vmem:[%s12585_s6 + $0x3e4] ss:$8 sps:$4 sm:$0xff]   ;;  %v4957_v38 = vshll.u32 %v10196_v0, 16 }
  0x80   : > { %942 = vmatmul.mubr.bf16.gmra.mrb[20].mxu1 %v9460_v36  ;;  %v4929_v36 = vshll.u32 %v10192_v29, 16 }
  0x81   : > { %4687 = vmatmul.mubr.bf16.gmra.mrb[20].mxu0 %v10102_v37  ;;  %993 = vmatpush1.bf16.msra.mxu1 %v11771_v33  ;;  %v4904_v33 = vor.u32 %v4903_v23, %v4900_v22  ;;  %v4954_v37 = vshrl.u32 %v10196_v0, 16  ;;  %v4959_v56 = vrot.slane %v4957_v38, 5  ;;  %v11815_v22 = vld [vmem:[%s12585_s6 + $0x14] ss:$8 sps:$4 sm:$0xff]  }
  0x82   : > { %5795 = vmatpush1.bf16.msra.mxu0 %v11774_v34  ;;  %994 = vmatprep.subr.bf16.mxu1 %v11779_v44  ;;  %v4907_v34 = vshll.u32 %v10190_v27, 16  ;;  %v11806_v44 = vld [vmem:[%s12585_s6 + $0xaf4] ss:$8 sps:$4 sm:$0xff]   ;;  %v4931_v54 = vrot.slane %v4929_v36, 5  ;;  %v11813_v27 = vld [vmem:[%s12585_s6 + $0x10] ss:$8 sps:$4 sm:$0xff]  }
  0x83   : > { %5796 = vmatprep.subr.bf16.mxu0 %v11782_v45  ;;  %951 = vmatprep.mubr.bf16.mxu1 %v9465_v48  ;;  %v9443_v45 = vcombine.high %v12874_v6, %v12879_v30  ;;  %v4877_v48 = vrot.slane %v4876_v32, 4  ;;  %v4956_v55 = vrot.slane %v4954_v37, 4  ;;  %v11818_v23 = vld [vmem:[%s12585_s6 + $0xb14] ss:$8 sps:$4 sm:$0xff]  }
  0x84   : > { %4696 = vmatprep.mubr.bf16.mxu0 %v10107_v49  ;;  %v4905_v49 = vrot.slane %v4904_v33, 4  ;;  %v4909_v50 = vrot.slane %v4907_v34, 5  ;;  %v10212_v33 = vld [vmem:[%s15242_s0 + $0x5c0] sm:$0xff]  ;;  %v10202_v34 = vld [vmem:[%s15242_s0 + $0x550] sm:$0x11] }
  0x85   : > { %995 = vmatpush1.bf16.msra.mxu1 %v11777_v46  ;;  %v4881_v46 = vrot.slane %v4879_v5, 5  ;;  %v4960_v14 = vor.u32 %v4959_v56, %v4956_v55  ;;  %v11824_v5 = vld [vmem:[%s12585_s6 + $0xb24] ss:$8 sps:$4 sm:$0xff]  }
  0x86   : > { %5797 = vmatpush1.bf16.msra.mxu0 %v11780_v47  ;;  %996 = vmatprep.subr.bf16.mxu1 %v11785_v52  ;;  %v10305_v47 = vcombine.high %v12869_v3, %v12883_v31  ;;  %v11801_v52 = vld [vmem:[%s12585_s6 + $0x3f0] ss:$8 sps:$4 sm:$0xff]   ;;  %v12934_v12 = vsel %vm12846_vm2, %v4905_v49, %v4909_v50  ;;  %v11821_v3 = vld [vmem:[%s12585_s6 + $0x24] ss:$8 sps:$4 sm:$0xff]   ;;  %v4991_v50 = vshll.u32 %v10202_v34, 16 }
  0x87   : > { %5798 = vmatprep.subr.bf16.mxu0 %v11788_v53  ;;  %v4928_v53 = vrot.slane %v4926_v35, 4  ;;  %v10206_v35 = vld [vmem:[%s15242_s0 + $0x570] sm:$0x11] }
  0x88   : > { %952 = vmatmul.mubr.bf16.gmra.mrb[24].mxu1 %v9464_v7  ;;  %v12919_v7 = vsel %vm12846_vm2, %v4877_v48, %v4881_v46  ;;  %v11827_v46 = vld [vmem:[%s12585_s6 + $0x34] ss:$8 sps:$4 sm:$0xff]   ;;  %v12982_v48 = vld [vmem:[%s15242_s0 + $0x2e8] sm:$0xff] }
  0x89   : > { %4697 = vmatmul.mubr.bf16.gmra.mrb[24].mxu0 %v10106_v8  ;;  %997 = vmatpush1.bf16.msra.mxu1 %v11783_v62  ;;  %v10204_v62 = vld [vmem:[%s15242_s0 + $0x560] sm:$0xff]  ;;  %v4935_v8 = vshll.u32 %v10194_v51, 16  ;;  %v4932_v13 = vor.u32 %v4931_v54, %v4928_v53  ;;  %v11830_v53 = vld [vmem:[%s12585_s6 + $0xb34] ss:$8 sps:$4 sm:$0xff]  }
  0x8a   : > { %5799 = vmatpush1.bf16.msra.mxu0 %v11786_v63  ;;  %998 = vmatprep.subr.bf16.mxu1 %v11791_v9  ;;  %v9442_v63 = vcombine.low %v12874_v6, %v12879_v30  ;;  %v11807_v9 = vld [vmem:[%s12585_s6] ss:$8 sps:$4 sm:$0xff]   ;;  %v5010_v18 = vshrl.u32 %v10204_v62, 16  ;;  %v5013_v20 = vshll.u32 %v10204_v62, 16  ;;  %v4984_v6 = vrot.slane %v4982_v16, 4 }
  0x8b   : > { %5800 = vmatprep.subr.bf16.mxu0 %v11794_v10  ;;  %961 = vmatprep.mubr.bf16.mxu1 %v9469_v25  ;;  %v12925_v10 = vld [vmem:[%s15242_s0 + $0x288] sm:$0xff]  ;;  %v10309_v25 = vcombine.high %v12919_v7, %v12934_v12  ;;  %v4933_v29 = vrot.slane %v4932_v13, 4  ;;  %v4937_v0 = vrot.slane %v4935_v8, 5  ;;  %v4987_v30 = vrot.slane %v4985_v17, 5  ;;  %v10210_v54 = vld [vmem:[%s15242_s0 + $0x5b0] sm:$0x11] }
  0x8c   : > { %4706 = vmatprep.mubr.bf16.mxu0 %v10111_v26  ;;  %v10208_v26 = vld [vmem:[%s15242_s0 + $0x5a0] sm:$0xff]  ;;  %v5012_v31 = vrot.slane %v5010_v18, 4  ;;  %v5015_v32 = vrot.slane %v5013_v20, 5  ;;  %v9446_v38 = vcombine.low %v12925_v10, %v12930_v11  ;;  %v4993_v8 = vrot.slane %v4991_v50, 5 }
  0x8d   : > { %999 = vmatpush1.bf16.msra.mxu1 %v11789_v24  ;;  %v9447_v24 = vcombine.high %v12925_v10, %v12930_v11  ;;  %v5038_v36 = vshrl.u32 %v10208_v26, 16  ;;  %v5041_v37 = vshll.u32 %v10208_v26, 16  ;;  %v4988_v49 = vor.u32 %v4987_v30, %v4984_v6  ;;  %v10214_v11 = vld [vmem:[%s15242_s0 + $0x5d0] sm:$0x11]  ;;  %v11836_v17 = vld [vmem:[%s12585_s6 + $0xb44] ss:$8 sps:$4 sm:$0xff]  }
  0x8e   : > { %5801 = vmatpush1.bf16.msra.mxu0 %v11792_v28  ;;  %1000 = vmatprep.subr.bf16.mxu1 %v11797_v1  ;;  %v11816_v28 = vld [vmem:[%s12585_s6 + $0xb10] ss:$8 sps:$4 sm:$0xff]   ;;  %v4961_v1 = vrot.slane %v4960_v14, 4  ;;  %v5016_v51 = vor.u32 %v5015_v32, %v5012_v31  ;;  %v5047_v14 = vshll.u32 %v10210_v54, 16 }
  0x8f   : > { %5802 = vmatprep.subr.bf16.mxu0 %v11800_v2  ;;  %v4965_v2 = vrot.slane %v4963_v15, 5  ;;  %v5040_v55 = vrot.slane %v5038_v36, 4  ;;  %v5043_v56 = vrot.slane %v5041_v37, 5  ;;  %v10218_v6 = vld [vmem:[%s15242_s0 + $0x5f0] sm:$0x11] }
  0x90   : > { %962 = vmatmul.mubr.bf16.gmra.mrb[28].mxu1 %v9468_v39  ;;  %v10308_v39 = vcombine.low %v12919_v7, %v12934_v12  ;;  %v4989_v7 = vrot.slane %v4988_v49, 4  ;;  %v11833_v12 = vld [vmem:[%s12585_s6 + $0x44] ss:$8 sps:$4 sm:$0xff]   ;;  %v10222_v32 = vld [vmem:[%s15242_s0 + $0x610] sm:$0x11] }
  0x91   : > { %4707 = vmatmul.mubr.bf16.gmra.mrb[28].mxu0 %v10110_v41  ;;  %1001 = vmatpush1.bf16.msra.mxu1 %v11795_v40  ;;  %v11819_v40 = vld [vmem:[%s12585_s6 + $0x20] ss:$8 sps:$4 sm:$0xff]   ;;  %v5044_v13 = vor.u32 %v5043_v56, %v5040_v55 }
  0x92   : > { %5803 = vmatpush1.bf16.msra.mxu0 %v11798_v42  ;;  %1002 = vmatprep.subr.bf16.mxu1 %v11803_v43  ;;  %v11822_v41 = vld [vmem:[%s12585_s6 + $0xb20] ss:$8 sps:$4 sm:$0xff]   ;;  %v12967_v42 = vsel %vm12846_vm2, %v4933_v29, %v4937_v0  ;;  %v12971_v43 = vsel %vm12846_vm2, %v4961_v1, %v4965_v2  ;;  %v11842_v29 = vld [vmem:[%s12585_s6 + $0xb54] ss:$8 sps:$4 sm:$0xff]   ;;  %v13025_v1 = vsel %vm12846_vm2, %v4989_v7, %v4993_v8 }
  0x93   : > { %5804 = vmatprep.subr.bf16.mxu0 %v11806_v44  ;;  %1004 = vmatprep.mubr.bf16.mxu1 %v9443_v45  ;;  %v5066_v44 = vshrl.u32 %v10212_v33, 16  ;;  %v5069_v45 = vshll.u32 %v10212_v33, 16  ;;  %v10313_v61 = vcombine.high %v12967_v42, %v12971_v43  ;;  %v13021_v0 = vld [vmem:[%s15242_s0 + $0x328] sm:$0xff] }
  0x94   : > { %5806 = vmatprep.mubr.bf16.mxu0 %v10305_v47  ;;  %v12977_v47 = vld [vmem:[%s15242_s0 + $0x2c8] sm:$0xff] }
  0x95   : > { %1003 = vmatpush1.bf16.msra.mxu1 %v11801_v52  ;;  %v5019_v52 = vshll.u32 %v10206_v35, 16  ;;  %v5068_v62 = vrot.slane %v5066_v44, 4  ;;  %v9450_v26 = vcombine.low %v12977_v47, %v12982_v48  ;;  %v13059_v49 = vld [vmem:[%s15242_s0 + $0x388] sm:$0xff] }
  0x96   : > { %5805 = vmatpush1.bf16.msra.mxu0 %v11804_v57  ;;  %1565 = vmatprep.subr.bf16.mxu1 %v11809_v58  ;;  %v10216_v57 = vld [vmem:[%s15242_s0 + $0x5e0] sm:$0xff]  ;;  %v11825_v58 = vld [vmem:[%s12585_s6 + $0x30] ss:$8 sps:$4 sm:$0xff]  }
  0x97   : > { %5887 = vmatprep.subr.bf16.mxu0 %v11812_v60  ;;  %v9451_v60 = vcombine.high %v12977_v47, %v12982_v48  ;;  %v5021_v10 = vrot.slane %v5019_v52, 5  ;;  %v5094_v15 = vshrl.u32 %v10216_v57, 16  ;;  %v5097_v16 = vshll.u32 %v10216_v57, 16  ;;  %v11848_v47 = vld [vmem:[%s12585_s6 + $0xb64] ss:$8 sps:$4 sm:$0xff]  }
  0x98   : > { %1005 = vmatmul.mubr.bf16.vlgmr.msra.gmra.mrb[0].mxu1 %v9442_v63  ;;  %v5071_v63 = vrot.slane %v5069_v45, 5  ;;  %v5103_v45 = vshll.u32 %v10218_v6, 16  ;;  %v13054_v48 = vld [vmem:[%s15242_s0 + $0x368] sm:$0xff] }
  0x99   : > { %5807 = vmatmul.mubr.bf16.vlgmr.msra.gmra.mrb[0].mxu0 %v10304_v4  ;;  %1566 = vmatpush1.bf16.msra.mxu1 %v11807_v9  ;;  %v10220_v4 = vld [vmem:[%s15242_s0 + $0x600] sm:$0xff]  ;;  %v5017_v9 = vrot.slane %v5016_v51, 4  ;;  %v5096_v30 = vrot.slane %v5094_v15, 4  ;;  %v5099_v31 = vrot.slane %v5097_v16, 5  ;;  %v9459_v8 = vcombine.high %v13054_v48, %v13059_v49 }
  0x9a   : > { %5888 = vmatpush1.bf16.msra.mxu0 %v11810_v21  ;;  %1567 = vmatprep.subr.bf16.mxu1 %v11815_v22  ;;  %v5122_v18 = vshrl.u32 %v10220_v4, 16  ;;  %v5125_v20 = vshll.u32 %v10220_v4, 16  ;;  %v11831_v21 = vld [vmem:[%s12585_s6 + $0x40] ss:$8 sps:$4 sm:$0xff]   ;;  %v5105_v4 = vrot.slane %v5103_v45, 5 }
  0x9b   : > { %5889 = vmatprep.subr.bf16.mxu0 %v11818_v23  ;;  %1014 = vmatprep.mubr.bf16.mxu1 %v9447_v24  ;;  %v11834_v22 = vld [vmem:[%s12585_s6 + $0xb40] ss:$8 sps:$4 sm:$0xff]   ;;  %v5072_v24 = vor.u32 %v5071_v63, %v5068_v62  ;;  %v13029_v2 = vsel %vm12846_vm2, %v5017_v9, %v5021_v10  ;;  %v5100_v44 = vor.u32 %v5099_v31, %v5096_v30  ;;  %v11854_v62 = vld [vmem:[%s12585_s6 + $0xb74] ss:$8 sps:$4 sm:$0xff]  }
  0x9c   : > { %5816 = vmatprep.mubr.bf16.mxu0 %v10309_v25  ;;  %v13010_v23 = vld [vmem:[%s15242_s0 + $0x308] sm:$0xff]  ;;  %v5075_v25 = vshll.u32 %v10214_v11, 16  ;;  %v5124_v33 = vrot.slane %v5122_v18, 4  ;;  %v5127_v34 = vrot.slane %v5125_v20, 5  ;;  %v10317_v36 = vcombine.high %v13025_v1, %v13029_v2  ;;  %v10226_v11 = vld [vmem:[%s15242_s0 + $0x630] sm:$0x11] }
  0x9d   : > { %1568 = vmatpush1.bf16.msra.mxu1 %v11813_v27  ;;  %v10312_v27 = vcombine.low %v12967_v42, %v12971_v43  ;;  %v9455_v35 = vcombine.high %v13010_v23, %v13021_v0  ;;  %v5073_v37 = vrot.slane %v5072_v24, 4  ;;  %v11840_v42 = vld [vmem:[%s12585_s6 + $0xb50] ss:$8 sps:$4 sm:$0xff]   ;;  %v11845_v43 = vld [vmem:[%s12585_s6 + $0x64] ss:$8 sps:$4 sm:$0xff]   ;;  %v5101_v63 = vrot.slane %v5100_v44, 4 }
  0x9e   : > { %5890 = vmatpush1.bf16.msra.mxu0 %v11816_v28  ;;  %1569 = vmatprep.subr.bf16.mxu1 %v11821_v3  ;;  %v11839_v28 = vld [vmem:[%s12585_s6 + $0x54] ss:$8 sps:$4 sm:$0xff]   ;;  %v5045_v3 = vrot.slane %v5044_v13, 4  ;;  %v5128_v51 = vor.u32 %v5127_v34, %v5124_v33  ;;  %v11852_v18 = vld [vmem:[%s12585_s6 + $0xb70] ss:$8 sps:$4 sm:$0xff]   ;;  %v9458_v20 = vcombine.low %v13054_v48, %v13059_v49 }
  0x9f   : > { %5891 = vmatprep.subr.bf16.mxu0 %v11824_v5  ;;  %v5049_v5 = vrot.slane %v5047_v14, 5  ;;  %v11858_v33 = vld [vmem:[%s12585_s6 + $0xb80] ss:$8 sps:$4 sm:$0xff]   ;;  %v11863_v34 = vld [vmem:[%s12585_s6 + $0x94] ss:$8 sps:$4 sm:$0xff]  }
  0xa0   : > { %1015 = vmatmul.mubr.bf16.gmra.mrb[4].mxu1 %v9446_v38  ;;  %v5077_v38 = vrot.slane %v5075_v25, 5  ;;  %v5129_v10 = vrot.slane %v5128_v51, 4  ;;  %v11860_v25 = vld [vmem:[%s12585_s6 + $0xb84] ss:$8 sps:$4 sm:$0xff]   ;;  %v10238_v51 = vld [vmem:[%s15242_s0 + $0x690] sm:$0x11] }
  0xa1   : > { %5817 = vmatmul.mubr.bf16.gmra.mrb[4].mxu0 %v10308_v39  ;;  %1570 = vmatpush1.bf16.msra.mxu1 %v11819_v40  ;;  %v10224_v39 = vld [vmem:[%s15242_s0 + $0x620] sm:$0xff]  ;;  %v11837_v40 = vld [vmem:[%s12585_s6 + $0x50] ss:$8 sps:$4 sm:$0xff]   ;;  %v13063_v50 = vsel %vm12846_vm2, %v5045_v3, %v5049_v5  ;;  %v13117_v3 = vld [vmem:[%s15242_s0 + $0x3c8] sm:$0xff] }
  0xa2   : > { %5892 = vmatpush1.bf16.msra.mxu0 %v11822_v41  ;;  %1571 = vmatprep.subr.bf16.mxu1 %v11827_v46  ;;  %v10228_v41 = vld [vmem:[%s15242_s0 + $0x640] sm:$0xff]  ;;  %v5131_v46 = vshll.u32 %v10222_v32, 16  ;;  %v5150_v52 = vshrl.u32 %v10224_v39, 16  ;;  %v13068_v54 = vsel %vm12846_vm2, %v5073_v37, %v5077_v38  ;;  %v5153_v55 = vshll.u32 %v10224_v39, 16  ;;  %v10177_v38 = vld [vmem:[%s15242_s0 + $0x488] sm:$0xff] }
  0xa3   : > { %5893 = vmatprep.subr.bf16.mxu0 %v11830_v53  ;;  %1024 = vmatprep.mubr.bf16.mxu1 %v9451_v60  ;;  %v11843_v53 = vld [vmem:[%s12585_s6 + $0x60] ss:$8 sps:$4 sm:$0xff]   ;;  %v5178_v56 = vshrl.u32 %v10228_v41, 16  ;;  %v5181_v57 = vshll.u32 %v10228_v41, 16  ;;  %v10321_v9 = vcombine.high %v13063_v50, %v13068_v54  ;;  %v10320_v24 = vcombine.low %v13063_v50, %v13068_v54  ;;  %v11864_v41 = vld [vmem:[%s12585_s6 + $0xb90] ss:$8 sps:$4 sm:$0xff]  }
  0xa4   : > { %5826 = vmatprep.mubr.bf16.mxu0 %v10313_v61  ;;  %v11846_v60 = vld [vmem:[%s12585_s6 + $0xb60] ss:$8 sps:$4 sm:$0xff]   ;;  %v11851_v61 = vld [vmem:[%s12585_s6 + $0x74] ss:$8 sps:$4 sm:$0xff]   ;;  %v5133_v7 = vrot.slane %v5131_v46, 5  ;;  %v5152_v13 = vrot.slane %v5150_v52, 4 }
  0xa5   : > { %1572 = vmatpush1.bf16.msra.mxu1 %v11825_v58  ;;  %v9454_v58 = vcombine.low %v13010_v23, %v13021_v0  ;;  %v5155_v14 = vrot.slane %v5153_v55, 5  ;;  %v5180_v15 = vrot.slane %v5178_v56, 4  ;;  %v5183_v16 = vrot.slane %v5181_v57, 5  ;;  %v10236_v23 = vld [vmem:[%s15242_s0 + $0x680] sm:$0xff]  ;;  %v10181_v39 = vld [vmem:[%s15242_s0 + $0x4a8] sm:$0xff] }
  0xa6   : > { %5894 = vmatpush1.bf16.msra.mxu0 %v11828_v59  ;;  %1573 = vmatprep.subr.bf16.mxu1 %v11833_v12  ;;  %v10316_v59 = vcombine.low %v13025_v1, %v13029_v2  ;;  %v10230_v12 = vld [vmem:[%s15242_s0 + $0x650] sm:$0x11]  ;;  %v13112_v0 = vsel %vm12846_vm2, %v5129_v10, %v5133_v7  ;;  %v5234_v30 = vshrl.u32 %v10236_v23, 16  ;;  %v5237_v31 = vshll.u32 %v10236_v23, 16  ;;  %v11855_v32 = vld [vmem:[%s12585_s6 + $0x80] ss:$8 sps:$4 sm:$0xff]  }
  0xa7   : > { %5895 = vmatprep.subr.bf16.mxu0 %v11836_v17  ;;  %v11849_v17 = vld [vmem:[%s12585_s6 + $0x70] ss:$8 sps:$4 sm:$0xff]   ;;  %v5156_v1 = vor.u32 %v5155_v14, %v5152_v13  ;;  %v5184_v2 = vor.u32 %v5183_v16, %v5180_v15  ;;  %v4828_v52 = vshrl.u32 %v10177_v38, 16  ;;  %v4856_v54 = vshrl.u32 %v10181_v39, 16  ;;  %v11869_v57 = vld [vmem:[%s12585_s6 + $0xa4] ss:$8 sps:$4 sm:$0xff]  }
  0xa8   : > { %1025 = vmatmul.mubr.bf16.gmra.mrb[8].mxu1 %v9450_v26  ;;  %v13104_v26 = vld [vmem:[%s15242_s0 + $0x3a8] sm:$0xff]  ;;  %v10234_v46 = vld [vmem:[%s15242_s0 + $0x670] sm:$0x11]  ;;  %v5236_v49 = vrot.slane %v5234_v30, 4  ;;  %v5239_v50 = vrot.slane %v5237_v31, 5  ;;  %v4859_v55 = vshll.u32 %v10181_v39, 16 }
  0xa9   : > { %5827 = vmatmul.mubr.bf16.gmra.mrb[8].mxu0 %v10312_v27  ;;  %1574 = vmatpush1.bf16.msra.mxu1 %v11831_v21  ;;  %v11857_v21 = vld [vmem:[%s12585_s6 + $0x84] ss:$8 sps:$4 sm:$0xff]   ;;  %v13108_v27 = vsel %vm12846_vm2, %v5101_v63, %v5105_v4  ;;  %v5157_v44 = vrot.slane %v5156_v1, 4  ;;  %v5185_v45 = vrot.slane %v5184_v2, 4  ;;  %v9462_v56 = vcombine.low %v13104_v26, %v13117_v3  ;;  %v11875_v4 = vld [vmem:[%s12585_s6 + $0xb4] ss:$8 sps:$4 sm:$0xff]  }
  0xaa   : > { %5896 = vmatpush1.bf16.msra.mxu0 %v11834_v22  ;;  %1575 = vmatprep.subr.bf16.mxu1 %v11839_v28  ;;  %v10232_v22 = vld [vmem:[%s15242_s0 + $0x660] sm:$0xff]  ;;  %v5159_v28 = vshll.u32 %v10226_v11, 16  ;;  %v11878_v7 = vld [vmem:[%s12585_s6 + $0xbb4] ss:$8 sps:$4 sm:$0xff]   ;;  %v5215_v11 = vshll.u32 %v10234_v46, 16  ;;  %v5243_v13 = vshll.u32 %v10238_v51, 16 }
  0xab   : > { %5897 = vmatprep.subr.bf16.mxu0 %v11842_v29  ;;  %1034 = vmatprep.mubr.bf16.mxu1 %v9455_v35  ;;  %v5187_v29 = vshll.u32 %v10230_v12, 16  ;;  %v5206_v5 = vshrl.u32 %v10232_v22, 16  ;;  %v5209_v6 = vshll.u32 %v10232_v22, 16  ;;  %v11866_v35 = vld [vmem:[%s12585_s6 + $0xb94] ss:$8 sps:$4 sm:$0xff]   ;;  %v5240_v12 = vor.u32 %v5239_v50, %v5236_v49 }
  0xac   : > { %5836 = vmatprep.mubr.bf16.mxu0 %v10317_v36  ;;  %v5161_v36 = vrot.slane %v5159_v28, 5  ;;  %v4830_v14 = vrot.slane %v4828_v52, 4  ;;  %v4858_v16 = vrot.slane %v4856_v54, 4  ;;  %v11873_v22 = vld [vmem:[%s12585_s6 + $0xb0] ss:$8 sps:$4 sm:$0xff]   ;;  %v5217_v28 = vrot.slane %v5215_v11, 5 }
  0xad   : > { %1576 = vmatpush1.bf16.msra.mxu1 %v11837_v40  ;;  %v5189_v37 = vrot.slane %v5187_v29, 5  ;;  %v11861_v40 = vld [vmem:[%s12585_s6 + $0x90] ss:$8 sps:$4 sm:$0xff]   ;;  %v5211_v48 = vrot.slane %v5209_v6, 5  ;;  %v5241_v29 = vrot.slane %v5240_v12, 4 }
  0xae   : > { %5898 = vmatpush1.bf16.msra.mxu0 %v11840_v42  ;;  %1577 = vmatprep.subr.bf16.mxu1 %v11845_v43  ;;  %v9463_v42 = vcombine.high %v13104_v26, %v13117_v3  ;;  %v10325_v43 = vcombine.high %v13108_v27, %v13112_v0  ;;  %v11876_v23 = vld [vmem:[%s12585_s6 + $0xbb0] ss:$8 sps:$4 sm:$0xff]   ;;  %v10189_v26 = vld [vmem:[%s15242_s0 + $0x4e8] sm:$0xff] }
  0xaf   : > { %5899 = vmatprep.subr.bf16.mxu0 %v11848_v47  ;;  %v5208_v47 = vrot.slane %v5206_v5, 4  ;;  %v13155_v63 = vsel %vm12846_vm2, %v5185_v45, %v5189_v37  ;;  %v11881_v1 = vld [vmem:[%s12585_s6 + $0xc4] ss:$8 sps:$4 sm:$0xff]  }
  0xb0   : > { %1035 = vmatmul.mubr.bf16.gmra.mrb[12].mxu1 %v9454_v58  ;;  %v11872_v58 = vld [vmem:[%s12585_s6 + $0xba4] ss:$8 sps:$4 sm:$0xff]  }
  0xb1   : > { %5837 = vmatmul.mubr.bf16.gmra.mrb[12].mxu0 %v10316_v59  ;;  %1578 = vmatpush1.bf16.msra.mxu1 %v11843_v53  ;;  %v4831_v53 = vshll.u32 %v10177_v38, 16  ;;  %v11867_v59 = vld [vmem:[%s12585_s6 + $0xa0] ss:$8 sps:$4 sm:$0xff]   ;;  %v5212_v10 = vor.u32 %v5211_v48, %v5208_v47  ;;  %v11884_v30 = vld [vmem:[%s12585_s6 + $0xbc4] ss:$8 sps:$4 sm:$0xff]  }
  0xb2   : > { %5900 = vmatpush1.bf16.msra.mxu0 %v11846_v60  ;;  %1579 = vmatprep.subr.bf16.mxu1 %v11851_v61  ;;  %v10324_v60 = vcombine.low %v13108_v27, %v13112_v0  ;;  %v11870_v61 = vld [vmem:[%s12585_s6 + $0xba0] ss:$8 sps:$4 sm:$0xff]   ;;  %v5245_v0 = vrot.slane %v5243_v13, 5 }
  0xb3   : > { %5901 = vmatprep.subr.bf16.mxu0 %v11854_v62  ;;  %1044 = vmatprep.mubr.bf16.mxu1 %v9459_v8  ;;  %v13151_v62 = vsel %vm12846_vm2, %v5157_v44, %v5161_v36  ;;  %v13162_v8 = vld [vmem:[%s15242_s0 + $0x3e8] sm:$0xff]  ;;  %v4833_v15 = vrot.slane %v4831_v53, 5  ;;  %v5213_v27 = vrot.slane %v5212_v10, 4  ;;  %v11890_v44 = vld [vmem:[%s12585_s6 + $0xbd4] ss:$8 sps:$4 sm:$0xff]  }
  0xb4   : > { %5846 = vmatprep.mubr.bf16.mxu0 %v10321_v9  ;;  %v13167_v9 = vld [vmem:[%s15242_s0 + $0x408] sm:$0xff]  ;;  %v11885_v53 = vld [vmem:[%s12585_s6 + $0xd0] ss:$8 sps:$4 sm:$0xff]  }
  0xb5   : > { %1580 = vmatpush1.bf16.msra.mxu1 %v11849_v17  ;;  %v4861_v17 = vrot.slane %v4859_v55, 5  ;;  %v4834_v2 = vor.u32 %v4833_v15, %v4830_v14  ;;  %v11882_v36 = vld [vmem:[%s12585_s6 + $0xbc0] ss:$8 sps:$4 sm:$0xff]   ;;  %v9466_v39 = vcombine.low %v13162_v8, %v13167_v9 }
  0xb6   : > { %5902 = vmatpush1.bf16.msra.mxu0 %v11852_v18  ;;  %1581 = vmatprep.subr.bf16.mxu1 %v11857_v21  ;;  %v10179_v18 = vld [vmem:[%s15242_s0 + $0x498] sm:$0x11]  ;;  %v10185_v21 = vld [vmem:[%s15242_s0 + $0x4c8] sm:$0xff] }
  0xb7   : > { %5903 = vmatprep.subr.bf16.mxu0 %v11860_v25  ;;  %v10329_v25 = vcombine.high %v13151_v62, %v13155_v63  ;;  %v4837_v3 = vshll.u32 %v10179_v18, 16  ;;  %v4862_v5 = vor.u32 %v4861_v17, %v4858_v16  ;;  %v4884_v31 = vshrl.u32 %v10185_v21, 16  ;;  %v13194_v37 = vld [vmem:[%s15242_s0 + $0x428] sm:$0xff] }
  0xb8   : > { %1045 = vmatmul.mubr.bf16.gmra.mrb[16].mxu1 %v9458_v20  ;;  %v10183_v20 = vld [vmem:[%s15242_s0 + $0x4b8] sm:$0x11]  ;;  %v13199_v38 = vld [vmem:[%s15242_s0 + $0x448] sm:$0xff]  ;;  %v4835_v45 = vrot.slane %v4834_v2, 4 }
  0xb9   : > { %5847 = vmatmul.mubr.bf16.gmra.mrb[16].mxu0 %v10320_v24  ;;  %1582 = vmatpush1.bf16.msra.mxu1 %v11855_v32  ;;  %v9467_v24 = vcombine.high %v13162_v8, %v13167_v9  ;;  %v4865_v6 = vshll.u32 %v10183_v20, 16  ;;  %v4887_v32 = vshll.u32 %v10185_v21, 16  ;;  %v4839_v46 = vrot.slane %v4837_v3, 5  ;;  %v13251_v8 = vld [vmem:[%s15242_s0 + $0x20] sm:$0xff]  ;;  %v11900_v2 = vld [vmem:[%s12585_s6 + $0xbf0] ss:$8 sps:$4 sm:$0xff]  }
  0xba   : > { %5904 = vmatpush1.bf16.msra.mxu0 %v11858_v33  ;;  %1583 = vmatprep.subr.bf16.mxu1 %v11863_v34  ;;  %v4912_v33 = vshrl.u32 %v10189_v26, 16  ;;  %v4915_v34 = vshll.u32 %v10189_v26, 16  ;;  %v4863_v47 = vrot.slane %v4862_v5, 4  ;;  %v4886_v49 = vrot.slane %v4884_v31, 4  ;;  %v11891_v13 = vld [vmem:[%s12585_s6 + $0xe0] ss:$8 sps:$4 sm:$0xff]  }
  0xbb   : > { %5905 = vmatprep.subr.bf16.mxu0 %v11866_v35  ;;  %1054 = vmatprep.mubr.bf16.mxu1 %v9463_v42  ;;  %v11879_v35 = vld [vmem:[%s12585_s6 + $0xc0] ss:$8 sps:$4 sm:$0xff]   ;;  %v13208_v42 = vsel %vm12846_vm2, %v5213_v27, %v5217_v28  ;;  %v4867_v48 = vrot.slane %v4865_v6, 5  ;;  %v4889_v50 = vrot.slane %v4887_v32, 5  ;;  %v9471_v54 = vcombine.high %v13194_v37, %v13199_v38  ;;  %v10199_v3 = vld [vmem:[%s15242_s0 + $0x538] sm:$0x11] }
  0xbc   : > { %5856 = vmatprep.mubr.bf16.mxu0 %v10325_v43  ;;  %v13212_v43 = vsel %vm12846_vm2, %v5241_v29, %v5245_v0  ;;  %v4914_v51 = vrot.slane %v4912_v33, 4  ;;  %v4917_v52 = vrot.slane %v4915_v34, 5  ;;  %v11894_v14 = vld [vmem:[%s12585_s6 + $0xbe0] ss:$8 sps:$4 sm:$0xff]   ;;  %v9470_v20 = vcombine.low %v13194_v37, %v13199_v38  ;;  %v10195_v0 = vld [vmem:[%s15242_s0 + $0x518] sm:$0x11] }
  0xbd   : > { %1584 = vmatpush1.bf16.msra.mxu1 %v11861_v40  ;;  %v10328_v40 = vcombine.low %v13151_v62, %v13155_v63  ;;  %v10333_v55 = vcombine.high %v13208_v42, %v13212_v43  ;;  %v13236_v62 = vsel %vm12846_vm2, %v4835_v45, %v4839_v46  ;;  %v13240_v63 = vsel %vm12846_vm2, %v4863_v47, %v4867_v48  ;;  %v10201_v32 = vld [vmem:[%s15242_s0 + $0x548] sm:$0xff] }
  0xbe   : > { %5906 = vmatpush1.bf16.msra.mxu0 %v11864_v41  ;;  %1585 = vmatprep.subr.bf16.mxu1 %v11869_v57  ;;  %v11887_v41 = vld [vmem:[%s12585_s6 + $0xd4] ss:$8 sps:$4 sm:$0xff]   ;;  %v4890_v9 = vor.u32 %v4889_v50, %v4886_v49  ;;  %v4918_v11 = vor.u32 %v4917_v52, %v4914_v51  ;;  %v10332_v21 = vcombine.low %v13208_v42, %v13212_v43  ;;  %v10205_v33 = vld [vmem:[%s15242_s0 + $0x568] sm:$0xff]  ;;  %v13296_v42 = vld [vmem:[%s15242_s0 + $0x40] sm:$0xff]  ;;  %v4977_v46 = vshll.u32 %v10199_v3, 16 }
  0xbf   : > { %5907 = vmatprep.subr.bf16.mxu0 %v11872_v58  ;;  %v10191_v57 = vld [vmem:[%s15242_s0 + $0x4f8] sm:$0x11]  ;;  %v10193_v58 = vld [vmem:[%s15242_s0 + $0x508] sm:$0xff]  ;;  %v13301_v43 = vld [vmem:[%s15242_s0 + $0x60] sm:$0xff]  ;;  %v4996_v47 = vshrl.u32 %v10201_v32, 16  ;;  %v10306_v48 = vcombine.low %v13236_v62, %v13240_v63  ;;  %v4999_v50 = vshll.u32 %v10201_v32, 16 }
  0xc0   : > { %1055 = vmatmul.mubr.bf16.gmra.mrb[20].mxu1 %v9462_v56  ;;  %v10187_v56 = vld [vmem:[%s15242_s0 + $0x4d8] sm:$0x11]  ;;  %v4921_v12 = vshll.u32 %v10191_v57, 16  ;;  %v4940_v15 = vshrl.u32 %v10193_v58, 16  ;;  %v4943_v16 = vshll.u32 %v10193_v58, 16  ;;  %v4891_v26 = vrot.slane %v4890_v9, 4 }
  0xc1   : > { %5857 = vmatmul.mubr.bf16.gmra.mrb[20].mxu0 %v10324_v60  ;;  %1586 = vmatpush1.bf16.msra.mxu1 %v11867_v59  ;;  %v10197_v59 = vld [vmem:[%s15242_s0 + $0x528] sm:$0xff]  ;;  %v11888_v60 = vld [vmem:[%s12585_s6 + $0xbd0] ss:$8 sps:$4 sm:$0xff]   ;;  %v4893_v10 = vshll.u32 %v10187_v56, 16  ;;  %v4919_v28 = vrot.slane %v4918_v11, 4  ;;  %v5024_v51 = vshrl.u32 %v10205_v33, 16 }
  0xc2   : > { %5908 = vmatpush1.bf16.msra.mxu0 %v11870_v61  ;;  %1587 = vmatprep.subr.bf16.mxu1 %v11875_v4  ;;  %v11893_v61 = vld [vmem:[%s12585_s6 + $0xe4] ss:$8 sps:$4 sm:$0xff]   ;;  %v4968_v17 = vshrl.u32 %v10197_v59, 16  ;;  %v4971_v18 = vshll.u32 %v10197_v59, 16  ;;  %v4923_v29 = vrot.slane %v4921_v12, 5  ;;  %v4942_v5 = vrot.slane %v4940_v15, 4 }
  0xc3   : > { %5909 = vmatprep.subr.bf16.mxu0 %v11878_v7  ;;  %1064 = vmatprep.mubr.bf16.mxu1 %v9467_v24  ;;  %v11896_v4 = vld [vmem:[%s12585_s6 + $0xbe4] ss:$8 sps:$4 sm:$0xff]   ;;  %v4895_v27 = vrot.slane %v4893_v10, 5  ;;  %v4945_v6 = vrot.slane %v4943_v16, 5  ;;  %v11911_v49 = vld [vmem:[%s12585_s6 + $0x114] ss:$8 sps:$4 sm:$0xff]  }
  0xc4   : > { %5866 = vmatprep.mubr.bf16.mxu0 %v10329_v25  ;;  %v13246_v7 = vld [vmem:[%s15242_s0] sm:$0xff]  ;;  %v10307_v25 = vcombine.high %v13236_v62, %v13240_v63  ;;  %v4973_v31 = vrot.slane %v4971_v18, 5  ;;  %v13289_v38 = vsel %vm12846_vm2, %v4919_v28, %v4923_v29  ;;  %v5027_v52 = vshll.u32 %v10205_v33, 16  ;;  %v10213_v58 = vld [vmem:[%s15242_s0 + $0x5c8] sm:$0xff]  ;;  %v11909_v59 = vld [vmem:[%s12585_s6 + $0x110] ss:$8 sps:$4 sm:$0xff]  }
  0xc5   : > { %1588 = vmatpush1.bf16.msra.mxu1 %v11873_v22  ;;  %v11899_v22 = vld [vmem:[%s12585_s6 + $0xf4] ss:$8 sps:$4 sm:$0xff]   ;;  %v9537_v24 = vcombine.high %v13246_v7, %v13251_v8  ;;  %v9536_v34 = vcombine.low %v13246_v7, %v13251_v8  ;;  %v13285_v37 = vsel %vm12846_vm2, %v4891_v26, %v4895_v27  ;;  %v4979_v63 = vrot.slane %v4977_v46, 5  ;;  %v11917_v18 = vld [vmem:[%s12585_s6 + $0x124] ss:$8 sps:$4 sm:$0xff]  }
  0xc6   : > { %5910 = vmatpush1.bf16.msra.mxu0 %v11876_v23  ;;  %1589 = vmatprep.subr.bf16.mxu1 %v11881_v1  ;;  %v11902_v23 = vld [vmem:[%s12585_s6 + $0xbf4] ss:$8 sps:$4 sm:$0xff]   ;;  %v11897_v1 = vld [vmem:[%s12585_s6 + $0xf0] ss:$8 sps:$4 sm:$0xff]   ;;  %v10311_v56 = vcombine.high %v13285_v37, %v13289_v38  ;;  %v4998_v7 = vrot.slane %v4996_v47, 4  ;;  %v5001_v9 = vrot.slane %v4999_v50, 5 }
  0xc7   : > { %5911 = vmatprep.subr.bf16.mxu0 %v11884_v30  ;;  %v4970_v30 = vrot.slane %v4968_v17, 4  ;;  %v5026_v10 = vrot.slane %v5024_v51, 4  ;;  %v5029_v11 = vrot.slane %v5027_v52, 5  ;;  %v5080_v15 = vshrl.u32 %v10213_v58, 16  ;;  %v11923_v27 = vld [vmem:[%s12585_s6 + $0x134] ss:$8 sps:$4 sm:$0xff]  }
  0xc8   : > { %1065 = vmatmul.mubr.bf16.gmra.mrb[24].mxu1 %v9466_v39  ;;  %v4949_v39 = vshll.u32 %v10195_v0, 16  ;;  %v5083_v16 = vshll.u32 %v10213_v58, 16  ;;  %v9540_v17 = vcombine.low %v13296_v42, %v13301_v43  ;;  %v13345_v28 = vld [vmem:[%s15242_s0 + $0x80] sm:$0xff]  ;;  %v5002_v0 = vor.u32 %v5001_v9, %v4998_v7  ;;  %v10211_v3 = vld [vmem:[%s15242_s0 + $0x5b8] sm:$0x11] }
  0xc9   : > { %5867 = vmatmul.mubr.bf16.gmra.mrb[24].mxu0 %v10328_v40  ;;  %1590 = vmatpush1.bf16.msra.mxu1 %v11879_v35  ;;  %v11905_v35 = vld [vmem:[%s12585_s6 + $0x104] ss:$8 sps:$4 sm:$0xff]   ;;  %v11903_v40 = vld [vmem:[%s12585_s6 + $0x100] ss:$8 sps:$4 sm:$0xff]   ;;  %v4974_v45 = vor.u32 %v4973_v31, %v4970_v30  ;;  %v5082_v30 = vrot.slane %v5080_v15, 4  ;;  %v5061_v46 = vshll.u32 %v10211_v3, 16 }
  0xca   : > { %5912 = vmatpush1.bf16.msra.mxu0 %v11882_v36  ;;  %1591 = vmatprep.subr.bf16.mxu1 %v11887_v41  ;;  %v11908_v36 = vld [vmem:[%s12585_s6 + $0xc04] ss:$8 sps:$4 sm:$0xff]   ;;  %v11906_v41 = vld [vmem:[%s12585_s6 + $0xc00] ss:$8 sps:$4 sm:$0xff]   ;;  %v4951_v57 = vrot.slane %v4949_v39, 5  ;;  %v5085_v31 = vrot.slane %v5083_v16, 5 }
  0xcb   : > { %5913 = vmatprep.subr.bf16.mxu0 %v11890_v44  ;;  %1074 = vmatprep.mubr.bf16.mxu1 %v9471_v54  ;;  %v4946_v44 = vor.u32 %v4945_v6, %v4942_v5  ;;  %v10209_v54 = vld [vmem:[%s15242_s0 + $0x5a8] sm:$0xff]  ;;  %v4975_v62 = vrot.slane %v4974_v45, 4  ;;  %v13350_v29 = vld [vmem:[%s15242_s0 + $0xa0] sm:$0xff]  ;;  %v11926_v32 = vld [vmem:[%s12585_s6 + $0xc34] ss:$8 sps:$4 sm:$0xff]   ;;  %v5063_v9 = vrot.slane %v5061_v46, 5 }
  0xcc   : > { %5876 = vmatprep.mubr.bf16.mxu0 %v10333_v55  ;;  %v9541_v55 = vcombine.high %v13296_v42, %v13301_v43  ;;  %v5052_v12 = vshrl.u32 %v10209_v54, 16  ;;  %v10215_v33 = vld [vmem:[%s15242_s0 + $0x5d8] sm:$0x11]  ;;  %v11929_v47 = vld [vmem:[%s12585_s6 + $0x144] ss:$8 sps:$4 sm:$0xff]   ;;  %v5086_v50 = vor.u32 %v5085_v31, %v5082_v30 }
  0xcd   : > { %1592 = vmatpush1.bf16.msra.mxu1 %v11885_v53  ;;  %v11914_v53 = vld [vmem:[%s12585_s6 + $0xc14] ss:$8 sps:$4 sm:$0xff]   ;;  %v5089_v51 = vshll.u32 %v10215_v33, 16  ;;  %v11930_v58 = vld [vmem:[%s12585_s6 + $0xc40] ss:$8 sps:$4 sm:$0xff]  }
  0xce   : > { %5914 = vmatpush1.bf16.msra.mxu0 %v11888_v60  ;;  %1593 = vmatprep.subr.bf16.mxu1 %v11893_v61  ;;  %v11912_v60 = vld [vmem:[%s12585_s6 + $0xc10] ss:$8 sps:$4 sm:$0xff]   ;;  %v4947_v61 = vrot.slane %v4946_v44, 4  ;;  %v5054_v5 = vrot.slane %v5052_v12, 4  ;;  %v5087_v12 = vrot.slane %v5086_v50, 4  ;;  %v13431_v3 = vld [vmem:[%s15242_s0 + $0x140] sm:$0xff] }
  0xcf   : > { %5915 = vmatprep.subr.bf16.mxu0 %v11896_v4  ;;  %v10203_v4 = vld [vmem:[%s15242_s0 + $0x558] sm:$0x11] }
  0xd0   : > { %1075 = vmatmul.mubr.bf16.gmra.mrb[28].mxu1 %v9470_v20  ;;  %v11920_v20 = vld [vmem:[%s12585_s6 + $0xc24] ss:$8 sps:$4 sm:$0xff]   ;;  %v5005_v26 = vshll.u32 %v10203_v4, 16  ;;  %v10227_v50 = vld [vmem:[%s15242_s0 + $0x638] sm:$0x11] }
  0xd1   : > { %5877 = vmatmul.mubr.bf16.gmra.mrb[28].mxu0 %v10332_v21  ;;  %1594 = vmatpush1.bf16.msra.mxu1 %v11891_v13  ;;  %v10207_v13 = vld [vmem:[%s15242_s0 + $0x578] sm:$0x11]  ;;  %v11915_v21 = vld [vmem:[%s12585_s6 + $0x120] ss:$8 sps:$4 sm:$0xff]  }
  0xd2   : > { %5916 = vmatpush1.bf16.msra.mxu0 %v11894_v14  ;;  %1595 = vmatprep.subr.bf16.mxu1 %v11899_v22  ;;  %v5055_v14 = vshll.u32 %v10209_v54, 16  ;;  %v10310_v22 = vcombine.low %v13285_v37, %v13289_v38  ;;  %v9545_v37 = vcombine.high %v13345_v28, %v13350_v29  ;;  %v5007_v39 = vrot.slane %v5005_v26, 5  ;;  %v10225_v26 = vld [vmem:[%s15242_s0 + $0x628] sm:$0xff] }
  0xd3   : > { %5917 = vmatprep.subr.bf16.mxu0 %v11902_v23  ;;  %1597 = vmatprep.mubr.bf16.mxu1 %v9537_v24  ;;  %v11918_v23 = vld [vmem:[%s12585_s6 + $0xc20] ss:$8 sps:$4 sm:$0xff]   ;;  %v13335_v24 = vsel %vm12846_vm2, %v4947_v61, %v4951_v57  ;;  %v11938_v61 = vld [vmem:[%s12585_s6 + $0xc54] ss:$8 sps:$4 sm:$0xff]   ;;  %v5167_v33 = vshll.u32 %v10225_v26, 16 }
  0xd4   : > { %5919 = vmatprep.mubr.bf16.mxu0 %v10307_v25  ;;  %v13339_v25 = vsel %vm12846_vm2, %v4975_v62, %v4979_v63  ;;  %v5057_v6 = vrot.slane %v5055_v14, 5  ;;  %v11927_v57 = vld [vmem:[%s12585_s6 + $0x140] ss:$8 sps:$4 sm:$0xff]  }
  0xd5   : > { %1596 = vmatpush1.bf16.msra.mxu1 %v11897_v1  ;;  %v5030_v1 = vor.u32 %v5029_v11, %v5026_v10  ;;  %v10315_v38 = vcombine.high %v13335_v24, %v13339_v25  ;;  %v13384_v62 = vld [vmem:[%s15242_s0 + $0xc0] sm:$0xff]  ;;  %v10219_v10 = vld [vmem:[%s15242_s0 + $0x5f8] sm:$0x11] }
  0xd6   : > { %5918 = vmatpush1.bf16.msra.mxu0 %v11900_v2  ;;  %1678 = vmatprep.subr.bf16.mxu1 %v11905_v35  ;;  %v5033_v2 = vshll.u32 %v10207_v13, 16  ;;  %v11921_v35 = vld [vmem:[%s12585_s6 + $0x130] ss:$8 sps:$4 sm:$0xff]   ;;  %v13389_v63 = vld [vmem:[%s15242_s0 + $0xe0] sm:$0xff]  ;;  %v5091_v13 = vrot.slane %v5089_v51, 5 }
  0xd7   : > { %6610 = vmatprep.subr.bf16.mxu0 %v11908_v36  ;;  %v11924_v36 = vld [vmem:[%s12585_s6 + $0xc30] ss:$8 sps:$4 sm:$0xff]   ;;  %v5031_v44 = vrot.slane %v5030_v1, 4 }
  0xd8   : > { %1598 = vmatmul.mubr.bf16.vlgmr.msra.gmra.mrb[0].mxu1 %v9536_v34  ;;  %v10217_v34 = vld [vmem:[%s15242_s0 + $0x5e8] sm:$0xff]  ;;  %v5035_v45 = vrot.slane %v5033_v2, 5  ;;  %v5117_v2 = vshll.u32 %v10219_v10, 16  ;;  %v11945_v51 = vld [vmem:[%s12585_s6 + $0x170] ss:$8 sps:$4 sm:$0xff]   ;;  %v5173_v10 = vshll.u32 %v10227_v50, 16 }
  0xd9   : > { %5920 = vmatmul.mubr.bf16.vlgmr.msra.gmra.mrb[0].mxu0 %v10306_v48  ;;  %1679 = vmatpush1.bf16.msra.mxu1 %v11903_v40  ;;  %v10221_v40 = vld [vmem:[%s15242_s0 + $0x608] sm:$0xff]  ;;  %v5108_v52 = vshrl.u32 %v10217_v34, 16 }
  0xda   : > { %6611 = vmatpush1.bf16.msra.mxu0 %v11906_v41  ;;  %1680 = vmatprep.subr.bf16.mxu1 %v11911_v49  ;;  %v5003_v41 = vrot.slane %v5002_v0, 4  ;;  %v11932_v48 = vld [vmem:[%s12585_s6 + $0xc44] ss:$8 sps:$4 sm:$0xff]   ;;  %v5058_v49 = vor.u32 %v5057_v6, %v5054_v5  ;;  %v5136_v54 = vshrl.u32 %v10221_v40, 16  ;;  %v13397_v7 = vsel %vm12846_vm2, %v5031_v44, %v5035_v45 }
  0xdb   : > { %6612 = vmatprep.subr.bf16.mxu0 %v11914_v53  ;;  %1607 = vmatprep.mubr.bf16.mxu1 %v9541_v55  ;;  %v5111_v53 = vshll.u32 %v10217_v34, 16  ;;  %v5139_v55 = vshll.u32 %v10221_v40, 16  ;;  %v5110_v14 = vrot.slane %v5108_v52, 4  ;;  %v13422_v0 = vld [vmem:[%s15242_s0 + $0x120] sm:$0xff]  ;;  %v13435_v5 = vsel %vm12846_vm2, %v5087_v12, %v5091_v13  ;;  %v11947_v40 = vld [vmem:[%s12585_s6 + $0x174] ss:$8 sps:$4 sm:$0xff]  }
  0xdc   : > { %5929 = vmatprep.mubr.bf16.mxu0 %v10311_v56  ;;  %v9544_v56 = vcombine.low %v13345_v28, %v13350_v29  ;;  %v13393_v4 = vsel %vm12846_vm2, %v5003_v41, %v5007_v39  ;;  %v5059_v11 = vrot.slane %v5058_v49, 4  ;;  %v5138_v16 = vrot.slane %v5136_v54, 4  ;;  %v11942_v39 = vld [vmem:[%s12585_s6 + $0xc60] ss:$8 sps:$4 sm:$0xff]   ;;  %v11950_v41 = vld [vmem:[%s12585_s6 + $0xc74] ss:$8 sps:$4 sm:$0xff]  }
  0xdd   : > { %1681 = vmatpush1.bf16.msra.mxu1 %v11909_v59  ;;  %v10314_v59 = vcombine.low %v13335_v24, %v13339_v25  ;;  %v5113_v15 = vrot.slane %v5111_v53, 5  ;;  %v11941_v24 = vld [vmem:[%s12585_s6 + $0x164] ss:$8 sps:$4 sm:$0xff]   ;;  %v9553_v44 = vcombine.high %v13422_v0, %v13431_v3  ;;  %v5119_v45 = vrot.slane %v5117_v2, 5 }
  0xde   : > { %6613 = vmatpush1.bf16.msra.mxu0 %v11912_v60  ;;  %1682 = vmatprep.subr.bf16.mxu1 %v11917_v18  ;;  %v11935_v60 = vld [vmem:[%s12585_s6 + $0x154] ss:$8 sps:$4 sm:$0xff]   ;;  %v11933_v18 = vld [vmem:[%s12585_s6 + $0x150] ss:$8 sps:$4 sm:$0xff]   ;;  %v11944_v25 = vld [vmem:[%s12585_s6 + $0xc64] ss:$8 sps:$4 sm:$0xff]   ;;  %v13426_v1 = vsel %vm12846_vm2, %v5059_v11, %v5063_v9 }
  0xdf   : > { %6614 = vmatprep.subr.bf16.mxu0 %v11920_v20  ;;  %v11936_v20 = vld [vmem:[%s12585_s6 + $0xc50] ss:$8 sps:$4 sm:$0xff]   ;;  %v5114_v6 = vor.u32 %v5113_v15, %v5110_v14  ;;  %v10323_v46 = vcombine.high %v13426_v1, %v13435_v5  ;;  %v5169_v53 = vrot.slane %v5167_v33, 5  ;;  %v11951_v11 = vld [vmem:[%s12585_s6 + $0x180] ss:$8 sps:$4 sm:$0xff]  }
  0xe0   : > { %1608 = vmatmul.mubr.bf16.gmra.mrb[4].mxu1 %v9540_v17  ;;  %v5141_v17 = vrot.slane %v5139_v55, 5  ;;  %v13477_v12 = vld [vmem:[%s15242_s0 + $0x160] sm:$0xff] }
  0xe1   : > { %5930 = vmatmul.mubr.bf16.gmra.mrb[4].mxu0 %v10310_v22  ;;  %1683 = vmatpush1.bf16.msra.mxu1 %v11915_v21  ;;  %v9549_v21 = vcombine.high %v13384_v62, %v13389_v63  ;;  %v10319_v22 = vcombine.high %v13393_v4, %v13397_v7  ;;  %v13482_v13 = vld [vmem:[%s15242_s0 + $0x180] sm:$0xff] }
  0xe2   : > { %6615 = vmatpush1.bf16.msra.mxu0 %v11918_v23  ;;  %1684 = vmatprep.subr.bf16.mxu1 %v11923_v27  ;;  %v10223_v23 = vld [vmem:[%s15242_s0 + $0x618] sm:$0x11]  ;;  %v10229_v27 = vld [vmem:[%s15242_s0 + $0x648] sm:$0xff]  ;;  %v5142_v30 = vor.u32 %v5141_v17, %v5138_v16 }
  0xe3   : > { %6616 = vmatprep.subr.bf16.mxu0 %v11926_v32  ;;  %1617 = vmatprep.mubr.bf16.mxu1 %v9545_v37  ;;  %v5145_v31 = vshll.u32 %v10223_v23, 16  ;;  %v5164_v32 = vshrl.u32 %v10225_v26, 16  ;;  %v5192_v34 = vshrl.u32 %v10229_v27, 16  ;;  %v11939_v37 = vld [vmem:[%s12585_s6 + $0x160] ss:$8 sps:$4 sm:$0xff]   ;;  %v9557_v26 = vcombine.high %v13477_v12, %v13482_v13 }
  0xe4   : > { %5939 = vmatprep.mubr.bf16.mxu0 %v10315_v38  ;;  %v10318_v38 = vcombine.low %v13393_v4, %v13397_v7  ;;  %v10322_v4 = vcombine.low %v13426_v1, %v13435_v5  ;;  %v11956_v7 = vld [vmem:[%s12585_s6 + $0xc84] ss:$8 sps:$4 sm:$0xff]   ;;  %v11954_v23 = vld [vmem:[%s12585_s6 + $0xc80] ss:$8 sps:$4 sm:$0xff]   ;;  %v11960_v1 = vld [vmem:[%s12585_s6 + $0xc90] ss:$8 sps:$4 sm:$0xff]  }
  0xe5   : > { %1685 = vmatpush1.bf16.msra.mxu1 %v11921_v35  ;;  %v5195_v35 = vshll.u32 %v10229_v27, 16  ;;  %v5147_v49 = vrot.slane %v5145_v31, 5  ;;  %v5166_v52 = vrot.slane %v5164_v32, 4  ;;  %v5194_v54 = vrot.slane %v5192_v34, 4 }
  0xe6   : > { %6617 = vmatpush1.bf16.msra.mxu0 %v11924_v36  ;;  %1686 = vmatprep.subr.bf16.mxu1 %v11929_v47  ;;  %v9548_v36 = vcombine.low %v13384_v62, %v13389_v63  ;;  %v5115_v47 = vrot.slane %v5114_v6, 4  ;;  %v5175_v5 = vrot.slane %v5173_v10, 5 }
  0xe7   : > { %6618 = vmatprep.subr.bf16.mxu0 %v11932_v48  ;;  %v5143_v48 = vrot.slane %v5142_v30, 4  ;;  %v5197_v55 = vrot.slane %v5195_v35, 5  ;;  %v5170_v15 = vor.u32 %v5169_v53, %v5166_v52  ;;  %v10235_v35 = vld [vmem:[%s15242_s0 + $0x678] sm:$0x11]  ;;  %v11966_v52 = vld [vmem:[%s12585_s6 + $0xca0] ss:$8 sps:$4 sm:$0xff]  }
  0xe8   : > { %1618 = vmatmul.mubr.bf16.gmra.mrb[8].mxu1 %v9544_v56  ;;  %v11948_v56 = vld [vmem:[%s12585_s6 + $0xc70] ss:$8 sps:$4 sm:$0xff]   ;;  %v13471_v9 = vsel %vm12846_vm2, %v5115_v47, %v5119_v45  ;;  %v13518_v47 = vld [vmem:[%s15242_s0 + $0x1c0] sm:$0xff]  ;;  %v11971_v53 = vld [vmem:[%s12585_s6 + $0x1b4] ss:$8 sps:$4 sm:$0xff]  }
  0xe9   : > { %5940 = vmatmul.mubr.bf16.gmra.mrb[8].mxu0 %v10314_v59  ;;  %1687 = vmatpush1.bf16.msra.mxu1 %v11927_v57  ;;  %v10231_v57 = vld [vmem:[%s15242_s0 + $0x658] sm:$0x11]  ;;  %v10237_v59 = vld [vmem:[%s15242_s0 + $0x688] sm:$0xff]  ;;  %v5148_v14 = vsel %vm12846_vm2, %v5143_v48, %v5147_v49  ;;  %v5198_v16 = vor.u32 %v5197_v55, %v5194_v54  ;;  %v5171_v2 = vrot.slane %v5170_v15, 4  ;;  %v5229_v49 = vshll.u32 %v10235_v35, 16  ;;  %v13539_v15 = vld [vmem:[%s15242_s0 + $0x200] sm:$0xff] }
  0xea   : > { %6619 = vmatpush1.bf16.msra.mxu0 %v11930_v58  ;;  %1688 = vmatprep.subr.bf16.mxu1 %v11935_v60  ;;  %v10233_v58 = vld [vmem:[%s15242_s0 + $0x668] sm:$0xff]  ;;  %v9552_v60 = vcombine.low %v13422_v0, %v13431_v3  ;;  %v5201_v17 = vshll.u32 %v10231_v57, 16  ;;  %v10327_v27 = vcombine.high %v13471_v9, %v5148_v14  ;;  %v11957_v0 = vld [vmem:[%s12585_s6 + $0x190] ss:$8 sps:$4 sm:$0xff]   ;;  %v11974_v54 = vld [vmem:[%s12585_s6 + $0xcb4] ss:$8 sps:$4 sm:$0xff]   ;;  %v10497_v35 = vcombine.high %v13251_v8, %v13296_v42 }
  0xeb   : > { %6620 = vmatprep.subr.bf16.mxu0 %v11938_v61  ;;  %1627 = vmatprep.mubr.bf16.mxu1 %v9549_v21  ;;  %v11953_v61 = vld [vmem:[%s12585_s6 + $0x184] ss:$8 sps:$4 sm:$0xff]   ;;  %v5248_v21 = vshrl.u32 %v10237_v59, 16  ;;  %v5199_v6 = vrot.slane %v5198_v16, 4  ;;  %v5176_v45 = vsel %vm12846_vm2, %v5171_v2, %v5175_v5  ;;  %v11969_v55 = vld [vmem:[%s12585_s6 + $0x1b0] ss:$8 sps:$4 sm:$0xff]  }
  0xec   : > { %5949 = vmatprep.mubr.bf16.mxu0 %v10319_v22  ;;  %v5251_v22 = vshll.u32 %v10237_v59, 16  ;;  %v5203_v30 = vrot.slane %v5201_v17, 5  ;;  %v5231_v59 = vrot.slane %v5229_v49, 5  ;;  %v12002_v49 = vld [vmem:[%s12585_s6 + $0xd00] ss:$8 sps:$4 sm:$0xff]  }
  0xed   : > { %1689 = vmatpush1.bf16.msra.mxu1 %v11933_v18  ;;  %v5220_v18 = vshrl.u32 %v10233_v58, 16  ;;  %v5250_v33 = vrot.slane %v5248_v21, 4  ;;  %v11983_v21 = vld [vmem:[%s12585_s6 + $0x1d4] ss:$8 sps:$4 sm:$0xff]  }
  0xee   : > { %6621 = vmatpush1.bf16.msra.mxu0 %v11936_v20  ;;  %1690 = vmatprep.subr.bf16.mxu1 %v11941_v24  ;;  %v5223_v20 = vshll.u32 %v10233_v58, 16  ;;  %v11959_v24 = vld [vmem:[%s12585_s6 + $0x194] ss:$8 sps:$4 sm:$0xff]   ;;  %v5253_v34 = vrot.slane %v5251_v22, 5 }
  0xef   : > { %6622 = vmatprep.subr.bf16.mxu0 %v11944_v25  ;;  %v11962_v25 = vld [vmem:[%s12585_s6 + $0xc94] ss:$8 sps:$4 sm:$0xff]   ;;  %v5222_v31 = vrot.slane %v5220_v18, 4  ;;  %v11975_v18 = vld [vmem:[%s12585_s6 + $0x1c0] ss:$8 sps:$4 sm:$0xff]  }
  0xf0   : > { %1628 = vmatmul.mubr.bf16.gmra.mrb[12].mxu1 %v9548_v36  ;;  %v5225_v32 = vrot.slane %v5223_v20, 5  ;;  %v10239_v36 = vld [vmem:[%s15242_s0 + $0x698] sm:$0x11]  ;;  %v5254_v50 = vor.u32 %v5253_v34, %v5250_v33  ;;  %v11978_v20 = vld [vmem:[%s12585_s6 + $0xcc0] ss:$8 sps:$4 sm:$0xff]  }
  0xf1   : > { %5950 = vmatmul.mubr.bf16.gmra.mrb[12].mxu0 %v10318_v38  ;;  %1691 = vmatpush1.bf16.msra.mxu1 %v11939_v37  ;;  %v9556_v37 = vcombine.low %v13477_v12, %v13482_v13  ;;  %v11965_v38 = vld [vmem:[%s12585_s6 + $0x1a4] ss:$8 sps:$4 sm:$0xff]   ;;  %v11986_v22 = vld [vmem:[%s12585_s6 + $0xcd4] ss:$8 sps:$4 sm:$0xff]  }
  0xf2   : > { %6623 = vmatpush1.bf16.msra.mxu0 %v11942_v39  ;;  %1692 = vmatprep.subr.bf16.mxu1 %v11947_v40  ;;  %v11968_v39 = vld [vmem:[%s12585_s6 + $0xca4] ss:$8 sps:$4 sm:$0xff]   ;;  %v11963_v40 = vld [vmem:[%s12585_s6 + $0x1a0] ss:$8 sps:$4 sm:$0xff]   ;;  %v5226_v48 = vor.u32 %v5225_v32, %v5222_v31  ;;  %v11995_v32 = vld [vmem:[%s12585_s6 + $0x1f4] ss:$8 sps:$4 sm:$0xff]  }
  0xf3   : > { %6624 = vmatprep.subr.bf16.mxu0 %v11950_v41  ;;  %1637 = vmatprep.mubr.bf16.mxu1 %v9553_v44  ;;  %v10326_v41 = vcombine.low %v13471_v9, %v5148_v14  ;;  %v13509_v44 = vld [vmem:[%s15242_s0 + $0x1a0] sm:$0xff]  ;;  %v13565_v31 = vld [vmem:[%s15242_s0 + $0x28] sm:$0xff]  ;;  %v11998_v33 = vld [vmem:[%s12585_s6 + $0xcf4] ss:$8 sps:$4 sm:$0xff]  }
  0xf4   : > { %5959 = vmatprep.mubr.bf16.mxu0 %v10323_v46  ;;  %v5204_v46 = vsel %vm12846_vm2, %v5199_v6, %v5203_v30  ;;  %v5227_v58 = vrot.slane %v5226_v48, 4  ;;  %v11980_v9 = vld [vmem:[%s12585_s6 + $0xcc4] ss:$8 sps:$4 sm:$0xff]   ;;  %v9560_v10 = vcombine.low %v13509_v44, %v13518_v47  ;;  %v11990_v6 = vld [vmem:[%s12585_s6 + $0xce0] ss:$8 sps:$4 sm:$0xff]  }
  0xf5   : > { %1693 = vmatpush1.bf16.msra.mxu1 %v11945_v51  ;;  %v5257_v51 = vshll.u32 %v10239_v36, 16  ;;  %v10331_v57 = vcombine.high %v5176_v45, %v5204_v46  ;;  %v13534_v14 = vld [vmem:[%s15242_s0 + $0x1e0] sm:$0xff]  ;;  %v186_v30 = vld [vmem:[%s15242_s0 + $0x8] sm:$0xff]  ;;  %v11993_v36 = vld [vmem:[%s12585_s6 + $0x1f0] ss:$8 sps:$4 sm:$0xff]  }
  0xf6   : > { %6625 = vmatpush1.bf16.msra.mxu0 %v11948_v56  ;;  %1694 = vmatprep.subr.bf16.mxu1 %v11953_v61  ;;  %v9561_v56 = vcombine.high %v13509_v44, %v13518_v47  ;;  %v5232_v16 = vsel %vm12846_vm2, %v5227_v58, %v5231_v59  ;;  %v9564_v2 = vcombine.low %v13534_v14, %v13539_v15  ;;  %v11999_v48 = vld [vmem:[%s12585_s6 + $0x400] ss:$8 sps:$4 sm:$0xff]  }
  0xf7   : > { %6626 = vmatprep.subr.bf16.mxu0 %v11956_v7  ;;  %v5259_v61 = vrot.slane %v5257_v51, 5  ;;  %v11977_v7 = vld [vmem:[%s12585_s6 + $0x1c4] ss:$8 sps:$4 sm:$0xff]   ;;  %v9539_v34 = vcombine.high %v186_v30, %v13565_v31  ;;  %v12010_v51 = vld [vmem:[%s12585_s6 + $0xd14] ss:$8 sps:$4 sm:$0xff]   ;;  %v10500_v58 = vcombine.low %v13301_v43, %v13345_v28 }
  0xf8   : > { %1638 = vmatmul.mubr.bf16.gmra.mrb[16].mxu1 %v9552_v60  ;;  %v5255_v60 = vrot.slane %v5254_v50, 4  ;;  %v12007_v50 = vld [vmem:[%s12585_s6 + $0x414] ss:$8 sps:$4 sm:$0xff]   ;;  %v13609_v59 = vld [vmem:[%s15242_s0 + $0x88] sm:$0xff] }
  0xf9   : > { %5960 = vmatmul.mubr.bf16.gmra.mrb[16].mxu0 %v10322_v4  ;;  %1695 = vmatpush1.bf16.msra.mxu1 %v11951_v11  ;;  %v11972_v4 = vld [vmem:[%s12585_s6 + $0xcb0] ss:$8 sps:$4 sm:$0xff]   ;;  %v10330_v11 = vcombine.low %v5176_v45, %v5204_v46  ;;  %v10496_v45 = vcombine.low %v13251_v8, %v13296_v42  ;;  %v13587_v46 = vld [vmem:[%s15242_s0 + $0x68] sm:$0xff]  ;;  %v10501_v8 = vcombine.high %v13301_v43, %v13345_v28  ;;  %v12022_v43 = vld [vmem:[%s12585_s6 + $0xd34] ss:$8 sps:$4 sm:$0xff]  }
  0xfa   : > { %6627 = vmatpush1.bf16.msra.mxu0 %v11954_v23  ;;  %1696 = vmatprep.subr.bf16.mxu1 %v11959_v24  ;;  %v5260_v17 = vsel %vm12846_vm2, %v5255_v60, %v5259_v61  ;;  %v9565_v23 = vcombine.high %v13534_v14, %v13539_v15  ;;  %v12005_v42 = vld [vmem:[%s12585_s6 + $0x410] ss:$8 sps:$4 sm:$0xff]   ;;  %v13614_v60 = vld [vmem:[%s15242_s0 + $0xa8] sm:$0xff] }
  0xfb   : > { %6628 = vmatprep.subr.bf16.mxu0 %v11962_v25  ;;  %1647 = vmatprep.mubr.bf16.mxu1 %v9557_v26  ;;  %v10335_v24 = vcombine.high %v5232_v16, %v5260_v17  ;;  %v11981_v25 = vld [vmem:[%s12585_s6 + $0x1d0] ss:$8 sps:$4 sm:$0xff]   ;;  %v10334_v5 = vcombine.low %v5232_v16, %v5260_v17  ;;  %v12014_v61 = vld [vmem:[%s12585_s6 + $0xd20] ss:$8 sps:$4 sm:$0xff]   ;;  %v9547_v28 = vcombine.high %v13609_v59, %v13614_v60  ;;  %v12028_v16 = vld [vmem:[%s12585_s6 + $0xd44] ss:$8 sps:$4 sm:$0xff]  }
  0xfc   : > { %5969 = vmatprep.mubr.bf16.mxu0 %v10327_v27  ;;  %v11984_v26 = vld [vmem:[%s12585_s6 + $0xcd0] ss:$8 sps:$4 sm:$0xff]   ;;  %v11989_v27 = vld [vmem:[%s12585_s6 + $0x1e4] ss:$8 sps:$4 sm:$0xff]   ;;  %v9546_v17 = vcombine.low %v13609_v59, %v13614_v60 }
  0xfd   : > { %1697 = vmatpush1.bf16.msra.mxu1 %v11957_v0  ;;  %v11992_v0 = vld [vmem:[%s12585_s6 + $0xce4] ss:$8 sps:$4 sm:$0xff]  }
  0xfe   : > { %6629 = vmatpush1.bf16.msra.mxu0 %v11960_v1  ;;  %1698 = vmatprep.subr.bf16.mxu1 %v11965_v38  ;;  %v11987_v1 = vld [vmem:[%s12585_s6 + $0x1e0] ss:$8 sps:$4 sm:$0xff]   ;;  %v12001_v38 = vld [vmem:[%s12585_s6 + $0x404] ss:$8 sps:$4 sm:$0xff]  }
  0xff   : > { %6630 = vmatprep.subr.bf16.mxu0 %v11968_v39  ;;  %v12004_v39 = vld [vmem:[%s12585_s6 + $0xd04] ss:$8 sps:$4 sm:$0xff]  }
 0x100   : > { %1648 = vmatmul.mubr.bf16.gmra.mrb[20].mxu1 %v9556_v37  ;;  %v11996_v37 = vld [vmem:[%s12585_s6 + $0xcf0] ss:$8 sps:$4 sm:$0xff]  }
 0x101   : > { %5970 = vmatmul.mubr.bf16.gmra.mrb[20].mxu0 %v10326_v41  ;;  %1699 = vmatpush1.bf16.msra.mxu1 %v11963_v40  ;;  %v13579_v40 = vld [vmem:[%s15242_s0 + $0x48] sm:$0xff]  ;;  %v9538_v41 = vcombine.low %v186_v30, %v13565_v31 }
 0x102   : > { %6631 = vmatpush1.bf16.msra.mxu0 %v11966_v52  ;;  %1700 = vmatprep.subr.bf16.mxu1 %v11971_v53  ;;  %v9543_v52 = vcombine.high %v13579_v40, %v13587_v46  ;;  %v12008_v53 = vld [vmem:[%s12585_s6 + $0xd10] ss:$8 sps:$4 sm:$0xff]   ;;  %v202_v30 = vld [vmem:[%s15242_s0 + $0x128] sm:$0xff] }
 0x103   : > { %6632 = vmatprep.subr.bf16.mxu0 %v11974_v54  ;;  %1657 = vmatprep.mubr.bf16.mxu1 %v9561_v56  ;;  %v12013_v54 = vld [vmem:[%s12585_s6 + $0x424] ss:$8 sps:$4 sm:$0xff]   ;;  %v12011_v56 = vld [vmem:[%s12585_s6 + $0x420] ss:$8 sps:$4 sm:$0xff]  }
 0x104   : > { %5979 = vmatprep.mubr.bf16.mxu0 %v10331_v57  ;;  %v9542_v57 = vcombine.low %v13579_v40, %v13587_v46 }
 0x105   : > { %1701 = vmatpush1.bf16.msra.mxu1 %v11969_v55  ;;  %v12016_v55 = vld [vmem:[%s12585_s6 + $0xd24] ss:$8 sps:$4 sm:$0xff]  }
 0x106   : > { %6633 = vmatpush1.bf16.msra.mxu0 %v11972_v4  ;;  %1702 = vmatprep.subr.bf16.mxu1 %v11977_v7  ;;  %v12019_v4 = vld [vmem:[%s12585_s6 + $0x434] ss:$8 sps:$4 sm:$0xff]   ;;  %v10505_v7 = vcombine.high %v13350_v29, %v13384_v62 }
 0x107   : > { %6634 = vmatprep.subr.bf16.mxu0 %v11980_v9  ;;  %v12017_v9 = vld [vmem:[%s12585_s6 + $0x430] ss:$8 sps:$4 sm:$0xff]  }
 0x108   : > { %1658 = vmatmul.mubr.bf16.gmra.mrb[24].mxu1 %v9560_v10  ;;  %v12020_v10 = vld [vmem:[%s12585_s6 + $0xd30] ss:$8 sps:$4 sm:$0xff]  }
 0x109   : > { %5980 = vmatmul.mubr.bf16.gmra.mrb[24].mxu0 %v10330_v11  ;;  %1703 = vmatpush1.bf16.msra.mxu1 %v11975_v18  ;;  %v12025_v11 = vld [vmem:[%s12585_s6 + $0x444] ss:$8 sps:$4 sm:$0xff]   ;;  %v10504_v18 = vcombine.low %v13350_v29, %v13384_v62  ;;  %v12026_v29 = vld [vmem:[%s12585_s6 + $0xd40] ss:$8 sps:$4 sm:$0xff]   ;;  %v12031_v62 = vld [vmem:[%s12585_s6 + $0x454] ss:$8 sps:$4 sm:$0xff]  }
 0x10a   : > { %6635 = vmatpush1.bf16.msra.mxu0 %v11978_v20  ;;  %1704 = vmatprep.subr.bf16.mxu1 %v11983_v21  ;;  %v13634_v20 = vld [vmem:[%s15242_s0 + $0xc8] sm:$0xff] }
 0x10b   : > { %6636 = vmatprep.subr.bf16.mxu0 %v11986_v22  ;;  %1667 = vmatprep.mubr.bf16.mxu1 %v9565_v23  ;;  %v13639_v21 = vld [vmem:[%s15242_s0 + $0xe8] sm:$0xff]  ;;  %v10414_v22 = vld [vmem:[%s15242_s0 + $0x100] sm:$0xff] }
 0x10c   : > { %5989 = vmatprep.mubr.bf16.mxu0 %v10335_v24  ;;  %v12023_v23 = vld [vmem:[%s12585_s6 + $0x440] ss:$8 sps:$4 sm:$0xff]   ;;  %v12034_v24 = vld [vmem:[%s12585_s6 + $0xd54] ss:$8 sps:$4 sm:$0xff]  }
 0x10d   : > { %1705 = vmatpush1.bf16.msra.mxu1 %v11981_v25  ;;  %v9551_v25 = vcombine.high %v13634_v20, %v13639_v21 }
 0x10e   : > { %6637 = vmatpush1.bf16.msra.mxu0 %v11984_v26  ;;  %1706 = vmatprep.subr.bf16.mxu1 %v11989_v27  ;;  %v10509_v26 = vcombine.high %v13389_v63, %v10414_v22  ;;  %v12029_v27 = vld [vmem:[%s12585_s6 + $0x450] ss:$8 sps:$4 sm:$0xff]  }
 0x10f   : > { %6638 = vmatprep.subr.bf16.mxu0 %v11992_v0  ;;  %v12032_v0 = vld [vmem:[%s12585_s6 + $0xd50] ss:$8 sps:$4 sm:$0xff]  }
 0x110   : > { %1668 = vmatmul.mubr.bf16.gmra.mrb[28].mxu1 %v9564_v2  ;;  %v12040_v2 = vld [vmem:[%s12585_s6 + $0xd64] ss:$8 sps:$4 sm:$0xff]  }
 0x111   : > { %5990 = vmatmul.mubr.bf16.gmra.mrb[28].mxu0 %v10334_v5  ;;  %1707 = vmatpush1.bf16.msra.mxu1 %v11987_v1  ;;  %v12037_v1 = vld [vmem:[%s12585_s6 + $0x464] ss:$8 sps:$4 sm:$0xff]   ;;  %v9550_v5 = vcombine.low %v13634_v20, %v13639_v21 }
 0x112   : > { %6639 = vmatpush1.bf16.msra.mxu0 %v11990_v6  ;;  %1708 = vmatprep.subr.bf16.mxu1 %v11995_v32  ;;  %v10508_v6 = vcombine.low %v13389_v63, %v10414_v22  ;;  %v13664_v32 = vld [vmem:[%s15242_s0 + $0x148] sm:$0xff]  ;;  %v12046_v63 = vld [vmem:[%s12585_s6 + $0xd74] ss:$8 sps:$4 sm:$0xff]  }
 0x113   : > { %6640 = vmatprep.subr.bf16.mxu0 %v11998_v33  ;;  %1710 = vmatprep.mubr.bf16.mxu1 %v9539_v34  ;;  %v12035_v33 = vld [vmem:[%s12585_s6 + $0x460] ss:$8 sps:$4 sm:$0xff]  }
 0x114   : > { %6642 = vmatprep.mubr.bf16.mxu0 %v10497_v35  ;;  %v12038_v34 = vld [vmem:[%s12585_s6 + $0xd60] ss:$8 sps:$4 sm:$0xff]   ;;  %v12043_v35 = vld [vmem:[%s12585_s6 + $0x474] ss:$8 sps:$4 sm:$0xff]  }
 0x115   : > { %1709 = vmatpush1.bf16.msra.mxu1 %v11993_v36  ;;  %v9555_v36 = vcombine.high %v202_v30, %v13664_v32  ;;  %v13723_v22 = vld [vmem:[%s15242_s0 + $0x1c8] sm:$0xff] }
 0x116   : > { %6641 = vmatpush1.bf16.msra.mxu0 %v11996_v37  ;;  %2819 = vmatprep.subr.bf16.mxu1 %v12001_v38  ;;  %v10513_v37 = vcombine.high %v13431_v3, %v13477_v12  ;;  %v12041_v38 = vld [vmem:[%s12585_s6 + $0x470] ss:$8 sps:$4 sm:$0xff]  }
 0x117   : > { %6723 = vmatprep.subr.bf16.mxu0 %v12004_v39  ;;  %v12044_v39 = vld [vmem:[%s12585_s6 + $0xd70] ss:$8 sps:$4 sm:$0xff]  }
 0x118   : > { %1711 = vmatmul.mubr.bf16.vlgmr.msra.gmra.mrb[0].mxu1 %v9538_v41  ;;  %v12049_v41 = vld [vmem:[%s12585_s6 + $0x484] ss:$8 sps:$4 sm:$0xff]  }
 0x119   : > { %6643 = vmatmul.mubr.bf16.vlgmr.msra.gmra.mrb[0].mxu0 %v10496_v45  ;;  %2820 = vmatpush1.bf16.msra.mxu1 %v11999_v48  ;;  %v12052_v45 = vld [vmem:[%s12585_s6 + $0xd84] ss:$8 sps:$4 sm:$0xff]   ;;  %v9554_v48 = vcombine.low %v202_v30, %v13664_v32 }
 0x11a   : > { %6724 = vmatpush1.bf16.msra.mxu0 %v12002_v49  ;;  %2821 = vmatprep.subr.bf16.mxu1 %v12007_v50  ;;  %v12047_v49 = vld [vmem:[%s12585_s6 + $0x480] ss:$8 sps:$4 sm:$0xff]   ;;  %v10512_v50 = vcombine.low %v13431_v3, %v13477_v12  ;;  %v12058_v12 = vld [vmem:[%s12585_s6 + $0xd94] ss:$8 sps:$4 sm:$0xff]  }
 0x11b   : > { %6725 = vmatprep.subr.bf16.mxu0 %v12010_v51  ;;  %1720 = vmatprep.mubr.bf16.mxu1 %v9543_v52  ;;  %v13684_v51 = vld [vmem:[%s15242_s0 + $0x168] sm:$0xff]  ;;  %v1791_v3 = vld [vmem:[%s15242_s0] sm:$0xff] }
 0x11c   : > { %6652 = vmatprep.mubr.bf16.mxu0 %v10501_v8  ;;  %v13689_v52 = vld [vmem:[%s15242_s0 + $0x188] sm:$0xff] }
 0x11d   : > { %2822 = vmatpush1.bf16.msra.mxu1 %v12005_v42  ;;  %v12050_v8 = vld [vmem:[%s12585_s6 + $0xd80] ss:$8 sps:$4 sm:$0xff]   ;;  %v12055_v42 = vld [vmem:[%s12585_s6 + $0x494] ss:$8 sps:$4 sm:$0xff]  }
 0x11e   : > { %6726 = vmatpush1.bf16.msra.mxu0 %v12008_v53  ;;  %2823 = vmatprep.subr.bf16.mxu1 %v12013_v54  ;;  %v9559_v53 = vcombine.high %v13684_v51, %v13689_v52  ;;  %v10517_v54 = vcombine.high %v13482_v13, %v13509_v44 }
 0x11f   : > { %6727 = vmatprep.subr.bf16.mxu0 %v12016_v55  ;;  %v1795_v55 = vld [vmem:[%s15242_s0 + $0x20] sm:$0xff] }
 0x120   : > { %1721 = vmatmul.mubr.bf16.gmra.mrb[4].mxu1 %v9542_v57  ;;  %v1859_v57 = vshrl.u32 %v1791_v3, 16 }
 0x121   : > { %6653 = vmatmul.mubr.bf16.gmra.mrb[4].mxu0 %v10500_v58  ;;  %2824 = vmatpush1.bf16.msra.mxu1 %v12011_v56  ;;  %v12053_v56 = vld [vmem:[%s12585_s6 + $0x490] ss:$8 sps:$4 sm:$0xff]   ;;  %v1862_v58 = vshll.u32 %v1791_v3, 16  ;;  %v13762_v3 = vld [vmem:[%s15242_s0 + $0x208] sm:$0xff] }
 0x122   : > { %6728 = vmatpush1.bf16.msra.mxu0 %v12014_v61  ;;  %2825 = vmatprep.subr.bf16.mxu1 %v12019_v4  ;;  %v12056_v61 = vld [vmem:[%s12585_s6 + $0xd90] ss:$8 sps:$4 sm:$0xff]   ;;  %v12061_v4 = vld [vmem:[%s12585_s6 + $0x4a4] ss:$8 sps:$4 sm:$0xff]  }
 0x123   : > { %6729 = vmatprep.subr.bf16.mxu0 %v12022_v43  ;;  %1730 = vmatprep.mubr.bf16.mxu1 %v9547_v28  ;;  %v12064_v43 = vld [vmem:[%s12585_s6 + $0xda4] ss:$8 sps:$4 sm:$0xff]   ;;  %v1887_v28 = vshrl.u32 %v1795_v55, 16 }
 0x124   : > { %6662 = vmatprep.mubr.bf16.mxu0 %v10505_v7  ;;  %v1890_v7 = vshll.u32 %v1795_v55, 16  ;;  %v1805_v55 = vld [vmem:[%s15242_s0 + $0x70] sm:$0x11] }
 0x125   : > { %2826 = vmatpush1.bf16.msra.mxu1 %v12017_v9  ;;  %v12059_v9 = vld [vmem:[%s12585_s6 + $0x4a0] ss:$8 sps:$4 sm:$0xff]  }
 0x126   : > { %6730 = vmatpush1.bf16.msra.mxu0 %v12020_v10  ;;  %2827 = vmatprep.subr.bf16.mxu1 %v12025_v11  ;;  %v12062_v10 = vld [vmem:[%s12585_s6 + $0xda0] ss:$8 sps:$4 sm:$0xff]   ;;  %v9558_v11 = vcombine.low %v13684_v51, %v13689_v52 }
 0x127   : > { %6731 = vmatprep.subr.bf16.mxu0 %v12028_v16  ;;  %v10516_v16 = vcombine.low %v13482_v13, %v13509_v44  ;;  %v1793_v13 = vld [vmem:[%s15242_s0 + $0x10] sm:$0x11] }
 0x128   : > { %1731 = vmatmul.mubr.bf16.gmra.mrb[8].mxu1 %v9546_v17  ;;  %v12067_v17 = vld [vmem:[%s12585_s6 + $0x4b4] ss:$8 sps:$4 sm:$0xff]   ;;  %v1868_v30 = vshll.u32 %v1793_v13, 16 }
 0x129   : > { %6663 = vmatmul.mubr.bf16.gmra.mrb[8].mxu0 %v10504_v18  ;;  %2828 = vmatpush1.bf16.msra.mxu1 %v12023_v23  ;;  %v13718_v18 = vld [vmem:[%s15242_s0 + $0x1a8] sm:$0xff]  ;;  %v1861_v23 = vrot.slane %v1859_v57, 4  ;;  %v1797_v44 = vld [vmem:[%s15242_s0 + $0x30] sm:$0x11] }
 0x12a   : > { %6732 = vmatpush1.bf16.msra.mxu0 %v12026_v29  ;;  %2829 = vmatprep.subr.bf16.mxu1 %v12031_v62  ;;  %v1864_v29 = vrot.slane %v1862_v58, 5  ;;  %v12070_v62 = vld [vmem:[%s12585_s6 + $0xdb4] ss:$8 sps:$4 sm:$0xff]  }
 0x12b   : > { %6733 = vmatprep.subr.bf16.mxu0 %v12034_v24  ;;  %1740 = vmatprep.mubr.bf16.mxu1 %v9551_v25  ;;  %v1889_v24 = vrot.slane %v1887_v28, 4  ;;  %v1892_v25 = vrot.slane %v1890_v7, 5 }
 0x12c   : > { %6672 = vmatprep.mubr.bf16.mxu0 %v10509_v26  ;;  %v1799_v26 = vld [vmem:[%s15242_s0 + $0x40] sm:$0xff] }
 0x12d   : > { %2830 = vmatpush1.bf16.msra.mxu1 %v12029_v27  ;;  %v12065_v27 = vld [vmem:[%s12585_s6 + $0x4b0] ss:$8 sps:$4 sm:$0xff]  }
 0x12e   : > { %6734 = vmatpush1.bf16.msra.mxu0 %v12032_v0  ;;  %2831 = vmatprep.subr.bf16.mxu1 %v12037_v1  ;;  %v9563_v0 = vcombine.high %v13718_v18, %v13723_v22  ;;  %v10521_v1 = vcombine.high %v13518_v47, %v13534_v14 }
 0x12f   : > { %6735 = vmatprep.subr.bf16.mxu0 %v12040_v2  ;;  %v1803_v2 = vld [vmem:[%s15242_s0 + $0x60] sm:$0xff] }
 0x130   : > { %1741 = vmatmul.mubr.bf16.gmra.mrb[12].mxu1 %v9550_v5  ;;  %v12068_v5 = vld [vmem:[%s12585_s6 + $0xdb0] ss:$8 sps:$4 sm:$0xff]  }
 0x131   : > { %6673 = vmatmul.mubr.bf16.gmra.mrb[12].mxu0 %v10508_v6  ;;  %2832 = vmatpush1.bf16.msra.mxu1 %v12035_v33  ;;  %v1865_v6 = vor.u32 %v1864_v29, %v1861_v23  ;;  %v1896_v33 = vshll.u32 %v1797_v44, 16  ;;  %v1952_v23 = vshll.u32 %v1805_v55, 16  ;;  %v12085_v29 = vld [vmem:[%s12585_s6 + $0x4e4] ss:$8 sps:$4 sm:$0xff]  }
 0x132   : > { %6736 = vmatpush1.bf16.msra.mxu0 %v12038_v34  ;;  %2833 = vmatprep.subr.bf16.mxu1 %v12043_v35  ;;  %v12073_v34 = vld [vmem:[%s12585_s6 + $0x4c4] ss:$8 sps:$4 sm:$0xff]   ;;  %v1915_v35 = vshrl.u32 %v1799_v26, 16 }
 0x133   : > { %6737 = vmatprep.subr.bf16.mxu0 %v12046_v63  ;;  %1750 = vmatprep.mubr.bf16.mxu1 %v9555_v36  ;;  %v1918_v63 = vshll.u32 %v1799_v26, 16  ;;  %v12076_v36 = vld [vmem:[%s12585_s6 + $0xdc4] ss:$8 sps:$4 sm:$0xff]  }
 0x134   : > { %6682 = vmatprep.mubr.bf16.mxu0 %v10513_v37  ;;  %v1893_v37 = vor.u32 %v1892_v25, %v1889_v24  ;;  %v12100_v55 = vld [vmem:[%s12585_s6 + $0xe04] ss:$8 sps:$4 sm:$0xff]  }
 0x135   : > { %2834 = vmatpush1.bf16.msra.mxu1 %v12041_v38  ;;  %v1943_v38 = vshrl.u32 %v1803_v2, 16  ;;  %v1920_v57 = vrot.slane %v1918_v63, 5  ;;  %v1954_v63 = vrot.slane %v1952_v23, 5 }
 0x136   : > { %6738 = vmatpush1.bf16.msra.mxu0 %v12044_v39  ;;  %2835 = vmatprep.subr.bf16.mxu1 %v12049_v41  ;;  %v1946_v39 = vshll.u32 %v1803_v2, 16  ;;  %v12071_v41 = vld [vmem:[%s12585_s6 + $0x4c0] ss:$8 sps:$4 sm:$0xff]   ;;  %v1894_v58 = vrot.slane %v1893_v37, 4  ;;  %v10499_v37 = vcombine.high %v13565_v31, %v13579_v40 }
 0x137   : > { %6739 = vmatprep.subr.bf16.mxu0 %v12052_v45  ;;  %v10520_v45 = vcombine.low %v13518_v47, %v13534_v14  ;;  %v13767_v47 = vld [vmem:[%s15242_s0 + $0x220] sm:$0xff]  ;;  %v1866_v14 = vrot.slane %v1865_v6, 4 }
 0x138   : > { %1751 = vmatmul.mubr.bf16.gmra.mrb[16].mxu1 %v9554_v48  ;;  %v12074_v48 = vld [vmem:[%s12585_s6 + $0xdc0] ss:$8 sps:$4 sm:$0xff]   ;;  %v10525_v7 = vcombine.high %v13539_v15, %v13767_v47 }
 0x139   : > { %6683 = vmatmul.mubr.bf16.gmra.mrb[16].mxu0 %v10512_v50  ;;  %2836 = vmatpush1.bf16.msra.mxu1 %v12047_v49  ;;  %v9562_v49 = vcombine.low %v13718_v18, %v13723_v22  ;;  %v12079_v50 = vld [vmem:[%s12585_s6 + $0x4d4] ss:$8 sps:$4 sm:$0xff]   ;;  %v12083_v2 = vld [vmem:[%s12585_s6 + $0x4e0] ss:$8 sps:$4 sm:$0xff]  }
 0x13a   : > { %6740 = vmatpush1.bf16.msra.mxu0 %v12050_v8  ;;  %2837 = vmatprep.subr.bf16.mxu1 %v12055_v42  ;;  %v12082_v8 = vld [vmem:[%s12585_s6 + $0xdd4] ss:$8 sps:$4 sm:$0xff]   ;;  %v13757_v42 = vld [vmem:[%s15242_s0 + $0x1e8] sm:$0xff] }
 0x13b   : > { %6741 = vmatprep.subr.bf16.mxu0 %v12058_v12  ;;  %1760 = vmatprep.mubr.bf16.mxu1 %v9559_v53  ;;  %v1870_v12 = vrot.slane %v1868_v30, 5  ;;  %v1898_v53 = vrot.slane %v1896_v33, 5  ;;  %v9567_v28 = vcombine.high %v13757_v42, %v13762_v3  ;;  %v12086_v6 = vld [vmem:[%s12585_s6 + $0xde0] ss:$8 sps:$4 sm:$0xff]   ;;  %v12091_v30 = vld [vmem:[%s12585_s6 + $0x4f4] ss:$8 sps:$4 sm:$0xff]  }
 0x13c   : > { %6692 = vmatprep.mubr.bf16.mxu0 %v10517_v54  ;;  %v1801_v54 = vld [vmem:[%s15242_s0 + $0x50] sm:$0x11] }
 0x13d   : > { %2838 = vmatpush1.bf16.msra.mxu1 %v12053_v56  ;;  %v1917_v56 = vrot.slane %v1915_v35, 4  ;;  %v13791_v13 = vsel %vm12846_vm2, %v1866_v14, %v1870_v12  ;;  %v13795_v44 = vsel %vm12846_vm2, %v1894_v58, %v1898_v53  ;;  %v12094_v33 = vld [vmem:[%s12585_s6 + $0xdf4] ss:$8 sps:$4 sm:$0xff]   ;;  %v1815_v14 = vld [vmem:[%s15242_s0 + $0xc0] sm:$0xff]  ;;  %v10498_v12 = vcombine.low %v13565_v31, %v13579_v40 }
 0x13e   : > { %6742 = vmatpush1.bf16.msra.mxu0 %v12056_v61  ;;  %2839 = vmatprep.subr.bf16.mxu1 %v12061_v4  ;;  %v1945_v61 = vrot.slane %v1943_v38, 4  ;;  %v1948_v4 = vrot.slane %v1946_v39, 5  ;;  %v1809_v38 = vld [vmem:[%s15242_s0 + $0x90] sm:$0x11]  ;;  %v1819_v53 = vld [vmem:[%s15242_s0 + $0xe0] sm:$0xff] }
 0x13f   : > { %6743 = vmatprep.subr.bf16.mxu0 %v12064_v43  ;;  %v12077_v43 = vld [vmem:[%s12585_s6 + $0x4d0] ss:$8 sps:$4 sm:$0xff]   ;;  %v12095_v31 = vld [vmem:[%s12585_s6 + $0x500] ss:$8 sps:$4 sm:$0xff]  }
 0x140   : > { %1761 = vmatmul.mubr.bf16.gmra.mrb[20].mxu1 %v9558_v11  ;;  %v12080_v11 = vld [vmem:[%s12585_s6 + $0xdd0] ss:$8 sps:$4 sm:$0xff]   ;;  %v1949_v24 = vor.u32 %v1948_v4, %v1945_v61 }
 0x141   : > { %6693 = vmatmul.mubr.bf16.gmra.mrb[20].mxu0 %v10516_v16  ;;  %2840 = vmatpush1.bf16.msra.mxu1 %v12059_v9  ;;  %v1807_v9 = vld [vmem:[%s15242_s0 + $0x80] sm:$0xff]  ;;  %v1921_v16 = vor.u32 %v1920_v57, %v1917_v56  ;;  %v1813_v39 = vld [vmem:[%s15242_s0 + $0xb0] sm:$0x11]  ;;  %v1980_v57 = vshll.u32 %v1809_v38, 16 }
 0x142   : > { %6744 = vmatpush1.bf16.msra.mxu0 %v12062_v10  ;;  %2841 = vmatprep.subr.bf16.mxu1 %v12067_v17  ;;  %v1811_v10 = vld [vmem:[%s15242_s0 + $0xa0] sm:$0xff]  ;;  %v1924_v17 = vshll.u32 %v1801_v54, 16  ;;  %v1971_v25 = vshrl.u32 %v1807_v9, 16  ;;  %v1974_v26 = vshll.u32 %v1807_v9, 16  ;;  %v9696_v54 = vcombine.low %v13791_v13, %v13795_v44 }
 0x143   : > { %6745 = vmatprep.subr.bf16.mxu0 %v12070_v62  ;;  %1770 = vmatprep.mubr.bf16.mxu1 %v9563_v0  ;;  %v12088_v62 = vld [vmem:[%s12585_s6 + $0xde4] ss:$8 sps:$4 sm:$0xff]   ;;  %v2002_v0 = vshll.u32 %v1811_v10, 16  ;;  %v2008_v58 = vshll.u32 %v1813_v39, 16  ;;  %v2055_v9 = vshrl.u32 %v1819_v53, 16  ;;  %v10502_v39 = vcombine.low %v13587_v46, %v13609_v59 }
 0x144   : > { %6702 = vmatprep.mubr.bf16.mxu0 %v10521_v1  ;;  %v9566_v1 = vcombine.low %v13757_v42, %v13762_v3  ;;  %v1926_v35 = vrot.slane %v1924_v17, 5  ;;  %v1982_v17 = vrot.slane %v1980_v57, 5  ;;  %v12107_v38 = vld [vmem:[%s12585_s6 + $0x520] ss:$8 sps:$4 sm:$0xff]  }
 0x145   : > { %2842 = vmatpush1.bf16.msra.mxu1 %v12065_v27  ;;  %v1999_v27 = vshrl.u32 %v1811_v10, 16  ;;  %v2058_v10 = vshll.u32 %v1819_v53, 16  ;;  %v2010_v23 = vrot.slane %v2008_v58, 5  ;;  %v1831_v57 = vld [vmem:[%s15242_s0 + $0x160] sm:$0xff]  ;;  %v12113_v58 = vld [vmem:[%s12585_s6 + $0x530] ss:$8 sps:$4 sm:$0xff]  }
 0x146   : > { %6746 = vmatpush1.bf16.msra.mxu0 %v12068_v5  ;;  %2843 = vmatprep.subr.bf16.mxu1 %v12073_v34  ;;  %v10524_v5 = vcombine.low %v13539_v15, %v13767_v47  ;;  %v1922_v34 = vrot.slane %v1921_v16, 4  ;;  %v1950_v15 = vrot.slane %v1949_v24, 4  ;;  %v12097_v47 = vld [vmem:[%s12585_s6 + $0x504] ss:$8 sps:$4 sm:$0xff]   ;;  %v12106_v16 = vld [vmem:[%s12585_s6 + $0xe14] ss:$8 sps:$4 sm:$0xff]  }
 0x147   : > { %6747 = vmatprep.subr.bf16.mxu0 %v12076_v36  ;;  %v9697_v36 = vcombine.high %v13791_v13, %v13795_v44  ;;  %v12101_v13 = vld [vmem:[%s12585_s6 + $0x510] ss:$8 sps:$4 sm:$0xff]  }
 0x148   : > { %1771 = vmatmul.mubr.bf16.gmra.mrb[24].mxu1 %v9562_v49  ;;  %v2001_v49 = vrot.slane %v1999_v27, 4  ;;  %v13831_v56 = vsel %vm12846_vm2, %v1922_v34, %v1926_v35  ;;  %v13836_v40 = vsel %vm12846_vm2, %v1950_v15, %v1954_v63  ;;  %v12104_v44 = vld [vmem:[%s12585_s6 + $0xe10] ss:$8 sps:$4 sm:$0xff]  }
 0x149   : > { %6703 = vmatmul.mubr.bf16.gmra.mrb[24].mxu0 %v10520_v45  ;;  %2844 = vmatpush1.bf16.msra.mxu1 %v12071_v41  ;;  %v12089_v41 = vld [vmem:[%s12585_s6 + $0x4f0] ss:$8 sps:$4 sm:$0xff]   ;;  %v1973_v45 = vrot.slane %v1971_v25, 4  ;;  %v9701_v24 = vcombine.high %v13831_v56, %v13836_v40  ;;  %v10503_v25 = vcombine.high %v13587_v46, %v13609_v59  ;;  %v9700_v15 = vcombine.low %v13831_v56, %v13836_v40 }
 0x14a   : > { %6748 = vmatpush1.bf16.msra.mxu0 %v12074_v48  ;;  %2845 = vmatprep.subr.bf16.mxu1 %v12079_v50  ;;  %v1976_v48 = vrot.slane %v1974_v26, 5  ;;  %v2004_v50 = vrot.slane %v2002_v0, 5  ;;  %v1817_v0 = vld [vmem:[%s15242_s0 + $0xd0] sm:$0x11] }
 0x14b   : > { %6749 = vmatprep.subr.bf16.mxu0 %v12082_v8  ;;  %1780 = vmatprep.mubr.bf16.mxu1 %v9567_v28  ;;  %v12092_v8 = vld [vmem:[%s12585_s6 + $0xdf0] ss:$8 sps:$4 sm:$0xff]   ;;  %v2027_v28 = vshrl.u32 %v1815_v14, 16 }
 0x14c   : > { %6712 = vmatprep.mubr.bf16.mxu0 %v10525_v7  ;;  %v1977_v61 = vor.u32 %v1976_v48, %v1973_v45  ;;  %v2005_v4 = vor.u32 %v2004_v50, %v2001_v49  ;;  %v2030_v7 = vshll.u32 %v1815_v14, 16  ;;  %v2036_v45 = vshll.u32 %v1817_v0, 16  ;;  %v12115_v49 = vld [vmem:[%s12585_s6 + $0x534] ss:$8 sps:$4 sm:$0xff]   ;;  %v12122_v0 = vld [vmem:[%s12585_s6 + $0xe40] ss:$8 sps:$4 sm:$0xff]  }
 0x14d   : > { %2846 = vmatpush1.bf16.msra.mxu1 %v12077_v43  ;;  %v12098_v43 = vld [vmem:[%s12585_s6 + $0xe00] ss:$8 sps:$4 sm:$0xff]   ;;  %v12118_v50 = vld [vmem:[%s12585_s6 + $0xe34] ss:$8 sps:$4 sm:$0xff]  }
 0x14e   : > { %6750 = vmatpush1.bf16.msra.mxu0 %v12080_v11  ;;  %2847 = vmatprep.subr.bf16.mxu1 %v12085_v29  ;;  %v12103_v11 = vld [vmem:[%s12585_s6 + $0x514] ss:$8 sps:$4 sm:$0xff]   ;;  %v1823_v29 = vld [vmem:[%s15242_s0 + $0x120] sm:$0xff]  ;;  %v1978_v26 = vrot.slane %v1977_v61, 4  ;;  %v2006_v27 = vrot.slane %v2005_v4, 4  ;;  %v10507_v61 = vcombine.high %v13614_v60, %v13634_v20  ;;  %v2038_v4 = vrot.slane %v2036_v45, 5 }
 0x14f   : > { %6751 = vmatprep.subr.bf16.mxu0 %v12088_v62  ;;  %v1827_v62 = vld [vmem:[%s15242_s0 + $0x140] sm:$0xff]  ;;  %v2086_v34 = vshll.u32 %v1823_v29, 16  ;;  %v1825_v46 = vld [vmem:[%s15242_s0 + $0x130] sm:$0x11] }
 0x150   : > { %1781 = vmatmul.mubr.bf16.gmra.mrb[28].mxu1 %v9566_v1  ;;  %v1821_v1 = vld [vmem:[%s15242_s0 + $0xf0] sm:$0x11]  ;;  %v2111_v35 = vshrl.u32 %v1827_v62, 16  ;;  %v2114_v63 = vshll.u32 %v1827_v62, 16  ;;  %v2142_v62 = vshll.u32 %v1831_v57, 16 }
 0x151   : > { %6713 = vmatmul.mubr.bf16.gmra.mrb[28].mxu0 %v10524_v5  ;;  %2848 = vmatpush1.bf16.msra.mxu1 %v12083_v2  ;;  %v2029_v2 = vrot.slane %v2027_v28, 4  ;;  %v2032_v5 = vrot.slane %v2030_v7, 5  ;;  %v2064_v48 = vshll.u32 %v1821_v1, 16  ;;  %v1829_v59 = vld [vmem:[%s15242_s0 + $0x150] sm:$0x11]  ;;  %v1835_v28 = vld [vmem:[%s15242_s0 + $0x180] sm:$0xff] }
 0x152   : > { %6752 = vmatpush1.bf16.msra.mxu0 %v12086_v6  ;;  %2849 = vmatprep.subr.bf16.mxu1 %v12091_v30  ;;  %v2057_v6 = vrot.slane %v2055_v9, 4  ;;  %v2060_v30 = vrot.slane %v2058_v10, 5  ;;  %v2116_v56 = vrot.slane %v2114_v63, 5  ;;  %v2092_v10 = vshll.u32 %v1825_v46, 16  ;;  %v12127_v1 = vld [vmem:[%s12585_s6 + $0x554] ss:$8 sps:$4 sm:$0xff]  }
 0x153   : > { %6753 = vmatprep.subr.bf16.mxu0 %v12094_v33  ;;  %2851 = vmatprep.mubr.bf16.mxu1 %v9697_v36  ;;  %v2083_v33 = vshrl.u32 %v1823_v29, 16  ;;  %v12109_v36 = vld [vmem:[%s12585_s6 + $0x524] ss:$8 sps:$4 sm:$0xff]   ;;  %v2033_v14 = vor.u32 %v2032_v5, %v2029_v2  ;;  %v2139_v29 = vshrl.u32 %v1831_v57, 16  ;;  %v12130_v2 = vld [vmem:[%s12585_s6 + $0xe54] ss:$8 sps:$4 sm:$0xff]  }
 0x154   : > { %6755 = vmatprep.mubr.bf16.mxu0 %v10499_v37  ;;  %v12112_v37 = vld [vmem:[%s12585_s6 + $0xe24] ss:$8 sps:$4 sm:$0xff]  }
 0x155   : > { %2850 = vmatpush1.bf16.msra.mxu1 %v12089_v41  ;;  %v12110_v41 = vld [vmem:[%s12585_s6 + $0xe20] ss:$8 sps:$4 sm:$0xff]   ;;  %v2085_v53 = vrot.slane %v2083_v33, 4  ;;  %v2034_v7 = vrot.slane %v2033_v14, 4  ;;  %v2094_v33 = vrot.slane %v2092_v10, 5  ;;  %v2141_v63 = vrot.slane %v2139_v29, 4 }
 0x156   : > { %6754 = vmatpush1.bf16.msra.mxu0 %v12092_v8  ;;  %2932 = vmatprep.subr.bf16.mxu1 %v12097_v47  ;;  %v13871_v8 = vsel %vm12846_vm2, %v1978_v26, %v1982_v17  ;;  %v13875_v47 = vsel %vm12846_vm2, %v2006_v27, %v2010_v23  ;;  %v12119_v26 = vld [vmem:[%s12585_s6 + $0x540] ss:$8 sps:$4 sm:$0xff]   ;;  %v10506_v27 = vcombine.low %v13614_v60, %v13634_v20  ;;  %v12136_v46 = vld [vmem:[%s12585_s6 + $0xe64] ss:$8 sps:$4 sm:$0xff]  }
 0x157   : > { %7446 = vmatprep.subr.bf16.mxu0 %v12100_v55  ;;  %v2113_v55 = vrot.slane %v2111_v35, 4  ;;  %v9705_v40 = vcombine.high %v13871_v8, %v13875_v47  ;;  %v13907_v5 = vsel %vm12846_vm2, %v2034_v7, %v2038_v4  ;;  %v1833_v35 = vld [vmem:[%s15242_s0 + $0x170] sm:$0x11]  ;;  %v12134_v4 = vld [vmem:[%s12585_s6 + $0xe60] ss:$8 sps:$4 sm:$0xff]  }
 0x158   : > { %2852 = vmatmul.mubr.bf16.vlgmr.msra.gmra.mrb[0].mxu1 %v9696_v54  ;;  %v2088_v54 = vrot.slane %v2086_v34, 5 }
 0x159   : > { %6756 = vmatmul.mubr.bf16.vlgmr.msra.gmra.mrb[0].mxu0 %v10498_v12  ;;  %2933 = vmatpush1.bf16.msra.mxu1 %v12095_v31  ;;  %v2061_v12 = vor.u32 %v2060_v30, %v2057_v6  ;;  %v12116_v31 = vld [vmem:[%s12585_s6 + $0xe30] ss:$8 sps:$4 sm:$0xff]   ;;  %v2117_v23 = vor.u32 %v2116_v56, %v2113_v55  ;;  %v13916_v30 = vld [vmem:[%s15242_s0 + $0x108] sm:$0xff] }
 0x15a   : > { %7447 = vmatpush1.bf16.msra.mxu0 %v12098_v43  ;;  %2934 = vmatprep.subr.bf16.mxu1 %v12103_v11  ;;  %v2066_v43 = vrot.slane %v2064_v48, 5  ;;  %v2120_v11 = vshll.u32 %v1829_v59, 16  ;;  %v2089_v17 = vor.u32 %v2088_v54, %v2085_v53  ;;  %v10511_v45 = vcombine.high %v13639_v21, %v13916_v30  ;;  %v1839_v48 = vld [vmem:[%s15242_s0 + $0x1a0] sm:$0xff] }
 0x15b   : > { %7448 = vmatprep.subr.bf16.mxu0 %v12106_v16  ;;  %2861 = vmatprep.mubr.bf16.mxu1 %v9701_v24  ;;  %v2062_v9 = vrot.slane %v2061_v12, 4  ;;  %v12121_v16 = vld [vmem:[%s12585_s6 + $0x544] ss:$8 sps:$4 sm:$0xff]   ;;  %v2170_v24 = vshll.u32 %v1835_v28, 16  ;;  %v2118_v20 = vrot.slane %v2117_v23, 4  ;;  %v2195_v55 = vshrl.u32 %v1839_v48, 16 }
 0x15c   : > { %6765 = vmatprep.mubr.bf16.mxu0 %v10503_v25  ;;  %v9704_v25 = vcombine.low %v13871_v8, %v13875_v47  ;;  %v2122_v34 = vrot.slane %v2120_v11, 5  ;;  %v2090_v60 = vrot.slane %v2089_v17, 4  ;;  %v2148_v47 = vshll.u32 %v1833_v35, 16  ;;  %v12133_v12 = vld [vmem:[%s12585_s6 + $0x564] ss:$8 sps:$4 sm:$0xff]  }
 0x15d   : > { %2935 = vmatpush1.bf16.msra.mxu1 %v12101_v13  ;;  %v12124_v13 = vld [vmem:[%s12585_s6 + $0xe44] ss:$8 sps:$4 sm:$0xff]   ;;  %v13911_v6 = vsel %vm12846_vm2, %v2062_v9, %v2066_v43  ;;  %v2198_v56 = vshll.u32 %v1839_v48, 16  ;;  %v12139_v43 = vld [vmem:[%s12585_s6 + $0x574] ss:$8 sps:$4 sm:$0xff]   ;;  %v2197_v29 = vrot.slane %v2195_v55, 4 }
 0x15e   : > { %7449 = vmatpush1.bf16.msra.mxu0 %v12104_v44  ;;  %2936 = vmatprep.subr.bf16.mxu1 %v12109_v36  ;;  %v2167_v44 = vshrl.u32 %v1835_v28, 16  ;;  %v2144_v36 = vrot.slane %v2142_v62, 5  ;;  %v13940_v59 = vsel %vm12846_vm2, %v2090_v60, %v2094_v33  ;;  %v13944_v53 = vsel %vm12846_vm2, %v2118_v20, %v2122_v34  ;;  %v12142_v28 = vld [vmem:[%s12585_s6 + $0xe74] ss:$8 sps:$4 sm:$0xff]   ;;  %v12143_v60 = vld [vmem:[%s12585_s6 + $0x580] ss:$8 sps:$4 sm:$0xff]  }
 0x15f   : > { %7450 = vmatprep.subr.bf16.mxu0 %v12112_v37  ;;  %v1837_v37 = vld [vmem:[%s15242_s0 + $0x190] sm:$0x11]  ;;  %v2150_v9 = vrot.slane %v2148_v47, 5  ;;  %v9713_v11 = vcombine.high %v13940_v59, %v13944_v53  ;;  %v2200_v62 = vrot.slane %v2198_v56, 5  ;;  %v1796_v48 = vld [vmem:[%s15242_s0 + $0x28] sm:$0xff]  ;;  %v10519_v47 = vcombine.high %v13689_v52, %v13718_v18 }
 0x160   : > { %2862 = vmatmul.mubr.bf16.gmra.mrb[4].mxu1 %v9700_v15  ;;  %v2169_v15 = vrot.slane %v2167_v44, 4  ;;  %v2145_v8 = vor.u32 %v2144_v36, %v2141_v63  ;;  %v2176_v14 = vshll.u32 %v1837_v37, 16  ;;  %v1841_v17 = vld [vmem:[%s15242_s0 + $0x1b0] sm:$0x11]  ;;  %v12146_v37 = vld [vmem:[%s12585_s6 + $0xe80] ss:$8 sps:$4 sm:$0xff]  }
 0x161   : > { %6766 = vmatmul.mubr.bf16.gmra.mrb[4].mxu0 %v10502_v39  ;;  %2937 = vmatpush1.bf16.msra.mxu1 %v12107_v38  ;;  %v2172_v38 = vrot.slane %v2170_v24, 5  ;;  %v12125_v39 = vld [vmem:[%s12585_s6 + $0x550] ss:$8 sps:$4 sm:$0xff]   ;;  %v2201_v33 = vor.u32 %v2200_v62, %v2197_v29  ;;  %v12166_v62 = vld [vmem:[%s12585_s6 + $0xeb4] ss:$8 sps:$4 sm:$0xff]  }
 0x162   : > { %7451 = vmatpush1.bf16.msra.mxu0 %v12110_v41  ;;  %2938 = vmatprep.subr.bf16.mxu1 %v12115_v49  ;;  %v9709_v41 = vcombine.high %v13907_v5, %v13911_v6  ;;  %v1843_v49 = vld [vmem:[%s15242_s0 + $0x1c0] sm:$0xff]  ;;  %v2146_v7 = vrot.slane %v2145_v8, 4  ;;  %v2178_v10 = vrot.slane %v2176_v14, 5  ;;  %v1845_v23 = vld [vmem:[%s15242_s0 + $0x1d0] sm:$0x11] }
 0x163   : > { %7452 = vmatprep.subr.bf16.mxu0 %v12118_v50  ;;  %2871 = vmatprep.mubr.bf16.mxu1 %v9705_v40  ;;  %v12128_v50 = vld [vmem:[%s12585_s6 + $0xe50] ss:$8 sps:$4 sm:$0xff]   ;;  %v2173_v54 = vor.u32 %v2172_v38, %v2169_v15  ;;  %v2223_v57 = vshrl.u32 %v1843_v49, 16  ;;  %v12131_v40 = vld [vmem:[%s12585_s6 + $0x560] ss:$8 sps:$4 sm:$0xff]   ;;  %v2202_v14 = vrot.slane %v2201_v33, 4 }
 0x164   : > { %6775 = vmatprep.mubr.bf16.mxu0 %v10507_v61  ;;  %v10510_v61 = vcombine.low %v13639_v21, %v13916_v30  ;;  %v12137_v24 = vld [vmem:[%s12585_s6 + $0x570] ss:$8 sps:$4 sm:$0xff]   ;;  %v12151_v15 = vld [vmem:[%s12585_s6 + $0x594] ss:$8 sps:$4 sm:$0xff]   ;;  %v12169_v33 = vld [vmem:[%s12585_s6 + $0x5c4] ss:$8 sps:$4 sm:$0xff]  }
 0x165   : > { %2939 = vmatpush1.bf16.msra.mxu1 %v12113_v58  ;;  %v2226_v58 = vshll.u32 %v1843_v49, 16  ;;  %v2174_v21 = vrot.slane %v2173_v54, 4  ;;  %v12154_v38 = vld [vmem:[%s12585_s6 + $0xe94] ss:$8 sps:$4 sm:$0xff]   ;;  %v12149_v49 = vld [vmem:[%s12585_s6 + $0x590] ss:$8 sps:$4 sm:$0xff]  }
 0x166   : > { %7453 = vmatpush1.bf16.msra.mxu0 %v12116_v31  ;;  %2940 = vmatprep.subr.bf16.mxu1 %v12121_v16  ;;  %v9708_v31 = vcombine.low %v13907_v5, %v13911_v6  ;;  %v10515_v16 = vcombine.high %v13664_v32, %v13684_v51  ;;  %v12148_v5 = vld [vmem:[%s12585_s6 + $0xe84] ss:$8 sps:$4 sm:$0xff]   ;;  %v13980_v6 = vsel %vm12846_vm2, %v2146_v7, %v2150_v9 }
 0x167   : > { %7454 = vmatprep.subr.bf16.mxu0 %v12124_v13  ;;  %v2225_v13 = vrot.slane %v2223_v57, 4  ;;  %v2228_v44 = vrot.slane %v2226_v58, 5  ;;  %v13984_v30 = vsel %vm12846_vm2, %v2174_v21, %v2178_v10  ;;  %v10518_v7 = vcombine.low %v13689_v52, %v13718_v18 }
 0x168   : > { %2872 = vmatmul.mubr.bf16.gmra.mrb[8].mxu1 %v9704_v25  ;;  %v12140_v25 = vld [vmem:[%s12585_s6 + $0xe70] ss:$8 sps:$4 sm:$0xff]   ;;  %v9717_v8 = vcombine.high %v13980_v6, %v13984_v30 }
 0x169   : > { %6776 = vmatmul.mubr.bf16.gmra.mrb[8].mxu0 %v10506_v27  ;;  %2941 = vmatpush1.bf16.msra.mxu1 %v12119_v26  ;;  %v12145_v26 = vld [vmem:[%s12585_s6 + $0x584] ss:$8 sps:$4 sm:$0xff]   ;;  %v10514_v27 = vcombine.low %v13664_v32, %v13684_v51  ;;  %v2204_v32 = vshll.u32 %v1841_v17, 16  ;;  %v2232_v51 = vshll.u32 %v1845_v23, 16  ;;  %v2229_v34 = vor.u32 %v2228_v44, %v2225_v13 }
 0x16a   : > { %7455 = vmatpush1.bf16.msra.mxu0 %v12122_v0  ;;  %2942 = vmatprep.subr.bf16.mxu1 %v12127_v1  ;;  %v1847_v0 = vld [vmem:[%s15242_s0 + $0x1e0] sm:$0xff] }
 0x16b   : > { %7456 = vmatprep.subr.bf16.mxu0 %v12130_v2  ;;  %2881 = vmatprep.mubr.bf16.mxu1 %v9709_v41  ;;  %v1851_v1 = vld [vmem:[%s15242_s0 + $0x200] sm:$0xff]  ;;  %v9712_v2 = vcombine.low %v13940_v59, %v13944_v53  ;;  %v2251_v20 = vshrl.u32 %v1847_v0, 16  ;;  %v2254_v35 = vshll.u32 %v1847_v0, 16  ;;  %v2234_v41 = vrot.slane %v2232_v51, 5  ;;  %v1853_v53 = vld [vmem:[%s15242_s0 + $0x210] sm:$0x11] }
 0x16c   : > { %6785 = vmatprep.mubr.bf16.mxu0 %v10511_v45  ;;  %v2279_v63 = vshrl.u32 %v1851_v1, 16  ;;  %v2282_v36 = vshll.u32 %v1851_v1, 16  ;;  %v1792_v45 = vld [vmem:[%s15242_s0 + $0x8] sm:$0xff]  ;;  %v2288_v29 = vshll.u32 %v1853_v53, 16  ;;  %v10523_v1 = vcombine.high %v13723_v22, %v13757_v42 }
 0x16d   : > { %2943 = vmatpush1.bf16.msra.mxu1 %v12125_v39  ;;  %v2206_v39 = vrot.slane %v2204_v32, 5  ;;  %v12157_v59 = vld [vmem:[%s12585_s6 + $0x5a4] ss:$8 sps:$4 sm:$0xff]   ;;  %v2253_v54 = vrot.slane %v2251_v20, 4  ;;  %v2256_v55 = vrot.slane %v2254_v35, 5  ;;  %v1873_v58 = vshrl.u32 %v1792_v45, 16 }
 0x16e   : > { %7457 = vmatpush1.bf16.msra.mxu0 %v12128_v50  ;;  %2944 = vmatprep.subr.bf16.mxu1 %v12133_v12  ;;  %v12152_v50 = vld [vmem:[%s12585_s6 + $0xe90] ss:$8 sps:$4 sm:$0xff]   ;;  %v2230_v12 = vrot.slane %v2229_v34, 4  ;;  %v2281_v56 = vrot.slane %v2279_v63, 4  ;;  %v2284_v57 = vrot.slane %v2282_v36, 5 }
 0x16f   : > { %7458 = vmatprep.subr.bf16.mxu0 %v12136_v46  ;;  %v1849_v46 = vld [vmem:[%s15242_s0 + $0x1f0] sm:$0x11]  ;;  %v14017_v9 = vsel %vm12846_vm2, %v2202_v14, %v2206_v39  ;;  %v2257_v17 = vor.u32 %v2256_v55, %v2253_v54  ;;  %v1875_v52 = vrot.slane %v1873_v58, 4  ;;  %v12172_v34 = vld [vmem:[%s12585_s6 + $0xec4] ss:$8 sps:$4 sm:$0xff]  }
 0x170   : > { %2882 = vmatmul.mubr.bf16.gmra.mrb[12].mxu1 %v9708_v31  ;;  %v1876_v31 = vshll.u32 %v1792_v45, 16  ;;  %v2260_v10 = vshll.u32 %v1849_v46, 16  ;;  %v14023_v21 = vsel %vm12846_vm2, %v2230_v12, %v2234_v41  ;;  %v2285_v23 = vor.u32 %v2284_v57, %v2281_v56  ;;  %v12167_v39 = vld [vmem:[%s12585_s6 + $0x5c0] ss:$8 sps:$4 sm:$0xff]   ;;  %v12178_v14 = vld [vmem:[%s12585_s6 + $0xed4] ss:$8 sps:$4 sm:$0xff]  }
 0x171   : > { %6786 = vmatmul.mubr.bf16.gmra.mrb[12].mxu0 %v10510_v61  ;;  %2945 = vmatpush1.bf16.msra.mxu1 %v12131_v40  ;;  %v1901_v40 = vshrl.u32 %v1796_v48, 16  ;;  %v1904_v61 = vshll.u32 %v1796_v48, 16  ;;  %v9721_v0 = vcombine.high %v14017_v9, %v14023_v21  ;;  %v12170_v41 = vld [vmem:[%s12585_s6 + $0xec0] ss:$8 sps:$4 sm:$0xff]   ;;  %v9720_v45 = vcombine.low %v14017_v9, %v14023_v21  ;;  %v12173_v57 = vld [vmem:[%s12585_s6 + $0x5d0] ss:$8 sps:$4 sm:$0xff]  }
 0x172   : > { %7459 = vmatpush1.bf16.msra.mxu0 %v12134_v4  ;;  %2946 = vmatprep.subr.bf16.mxu1 %v12139_v43  ;;  %v12160_v4 = vld [vmem:[%s12585_s6 + $0xea4] ss:$8 sps:$4 sm:$0xff]   ;;  %v9716_v43 = vcombine.low %v13980_v6, %v13984_v30  ;;  %v1878_v18 = vrot.slane %v1876_v31, 5  ;;  %v2258_v6 = vrot.slane %v2257_v17, 4  ;;  %v2262_v32 = vrot.slane %v2260_v10, 5 }
 0x173   : > { %7460 = vmatprep.subr.bf16.mxu0 %v12142_v28  ;;  %2891 = vmatprep.mubr.bf16.mxu1 %v9713_v11  ;;  %v12155_v28 = vld [vmem:[%s12585_s6 + $0x5a0] ss:$8 sps:$4 sm:$0xff]   ;;  %v1903_v13 = vrot.slane %v1901_v40, 4  ;;  %v1906_v44 = vrot.slane %v1904_v61, 5  ;;  %v2286_v51 = vrot.slane %v2285_v23, 4  ;;  %v2290_v30 = vrot.slane %v2288_v29, 5 }
 0x174   : > { %6795 = vmatprep.mubr.bf16.mxu0 %v10515_v16  ;;  %v12158_v11 = vld [vmem:[%s12585_s6 + $0xea0] ss:$8 sps:$4 sm:$0xff]   ;;  %v12163_v16 = vld [vmem:[%s12585_s6 + $0x5b4] ss:$8 sps:$4 sm:$0xff]   ;;  %v10522_v48 = vcombine.low %v13723_v22, %v13757_v42  ;;  %v12176_v58 = vld [vmem:[%s12585_s6 + $0xed0] ss:$8 sps:$4 sm:$0xff]  }
 0x175   : > { %2947 = vmatpush1.bf16.msra.mxu1 %v12137_v24  ;;  %v1794_v24 = vld [vmem:[%s15242_s0 + $0x18] sm:$0x11]  ;;  %v1907_v35 = vor.u32 %v1906_v44, %v1903_v13  ;;  %v14103_v21 = vld [vmem:[%s15242_s0 + $0x280] sm:$0xff] }
 0x176   : > { %7461 = vmatpush1.bf16.msra.mxu0 %v12140_v25  ;;  %2948 = vmatprep.subr.bf16.mxu1 %v12145_v26  ;;  %v1798_v25 = vld [vmem:[%s15242_s0 + $0x38] sm:$0x11]  ;;  %v1882_v20 = vshll.u32 %v1794_v24, 16  ;;  %v12179_v24 = vld [vmem:[%s12585_s6 + $0x5e0] ss:$8 sps:$4 sm:$0xff]  }
 0x177   : > { %7462 = vmatprep.subr.bf16.mxu0 %v12148_v5  ;;  %v12161_v26 = vld [vmem:[%s12585_s6 + $0x5b0] ss:$8 sps:$4 sm:$0xff]   ;;  %v1804_v5 = vld [vmem:[%s15242_s0 + $0x68] sm:$0xff]  ;;  %v1910_v63 = vshll.u32 %v1798_v25, 16  ;;  %v1908_v12 = vrot.slane %v1907_v35, 4 }
 0x178   : > { %2892 = vmatmul.mubr.bf16.gmra.mrb[16].mxu1 %v9712_v2  ;;  %v1800_v2 = vld [vmem:[%s15242_s0 + $0x48] sm:$0xff]  ;;  %v1884_v42 = vrot.slane %v1882_v20, 5  ;;  %v1806_v61 = vld [vmem:[%s15242_s0 + $0x78] sm:$0x11] }
 0x179   : > { %6796 = vmatmul.mubr.bf16.gmra.mrb[16].mxu0 %v10514_v27  ;;  %2949 = vmatpush1.bf16.msra.mxu1 %v12143_v60  ;;  %v12164_v27 = vld [vmem:[%s12585_s6 + $0xeb0] ss:$8 sps:$4 sm:$0xff]   ;;  %v1879_v60 = vor.u32 %v1878_v18, %v1875_v52  ;;  %v1929_v36 = vshrl.u32 %v1800_v2, 16  ;;  %v1912_v46 = vrot.slane %v1910_v63, 5  ;;  %v1966_v29 = vshll.u32 %v1806_v61, 16 }
 0x17a   : > { %7463 = vmatpush1.bf16.msra.mxu0 %v12146_v37  ;;  %2950 = vmatprep.subr.bf16.mxu1 %v12151_v15  ;;  %v1932_v37 = vshll.u32 %v1800_v2, 16  ;;  %v1957_v15 = vshrl.u32 %v1804_v5, 16  ;;  %v1814_v63 = vld [vmem:[%s15242_s0 + $0xb8] sm:$0x11] }
 0x17b   : > { %7464 = vmatprep.subr.bf16.mxu0 %v12154_v38  ;;  %2901 = vmatprep.mubr.bf16.mxu1 %v9717_v8  ;;  %v1960_v38 = vshll.u32 %v1804_v5, 16  ;;  %v14059_v8 = vsel %vm12846_vm2, %v2286_v51, %v2290_v30  ;;  %v1880_v22 = vrot.slane %v1879_v60, 4  ;;  %v1931_v53 = vrot.slane %v1929_v36, 4  ;;  %v12185_v30 = vld [vmem:[%s12585_s6 + $0x5f0] ss:$8 sps:$4 sm:$0xff]  }
 0x17c   : > { %6805 = vmatprep.mubr.bf16.mxu0 %v10519_v47  ;;  %v14064_v47 = vld [vmem:[%s15242_s0 + $0x228] sm:$0xff]  ;;  %v1934_v54 = vrot.slane %v1932_v37, 5  ;;  %v1959_v55 = vrot.slane %v1957_v15, 4  ;;  %v1968_v51 = vrot.slane %v1966_v29, 5  ;;  %v12197_v61 = vld [vmem:[%s12585_s6 + $0x610] ss:$8 sps:$4 sm:$0xff]  }
 0x17d   : > { %2951 = vmatpush1.bf16.msra.mxu1 %v12149_v49  ;;  %v12175_v49 = vld [vmem:[%s12585_s6 + $0x5d4] ss:$8 sps:$4 sm:$0xff]   ;;  %v1962_v56 = vrot.slane %v1960_v38, 5  ;;  %v10527_v40 = vcombine.high %v13762_v3, %v14064_v47  ;;  %v14089_v9 = vsel %vm12846_vm2, %v1880_v22, %v1884_v42  ;;  %v10526_v25 = vcombine.low %v13762_v3, %v14064_v47  ;;  %v12193_v36 = vld [vmem:[%s12585_s6 + $0x604] ss:$8 sps:$4 sm:$0xff]  }
 0x17e   : > { %7465 = vmatpush1.bf16.msra.mxu0 %v12152_v50  ;;  %2952 = vmatprep.subr.bf16.mxu1 %v12157_v59  ;;  %v14055_v50 = vsel %vm12846_vm2, %v2258_v6, %v2262_v32  ;;  %v1802_v59 = vld [vmem:[%s15242_s0 + $0x58] sm:$0x11]  ;;  %v1935_v17 = vor.u32 %v1934_v54, %v1931_v53  ;;  %v1816_v37 = vld [vmem:[%s15242_s0 + $0xc8] sm:$0xff]  ;;  %v2022_v22 = vshll.u32 %v1814_v63, 16 }
 0x17f   : > { %7466 = vmatprep.subr.bf16.mxu0 %v12160_v4  ;;  %v9725_v31 = vcombine.high %v14055_v50, %v14059_v8  ;;  %v12181_v4 = vld [vmem:[%s12585_s6 + $0x5e4] ss:$8 sps:$4 sm:$0xff]   ;;  %v1938_v10 = vshll.u32 %v1802_v59, 16  ;;  %v1963_v23 = vor.u32 %v1962_v56, %v1959_v55  ;;  %v9724_v44 = vcombine.low %v14055_v50, %v14059_v8  ;;  %v1810_v3 = vld [vmem:[%s15242_s0 + $0x98] sm:$0x11] }
 0x180   : > { %2902 = vmatmul.mubr.bf16.gmra.mrb[20].mxu1 %v9716_v43  ;;  %v1808_v43 = vld [vmem:[%s15242_s0 + $0x88] sm:$0xff]  ;;  %v1936_v5 = vrot.slane %v1935_v17, 4  ;;  %v14153_v8 = vld [vmem:[%s15242_s0 + $0x2c0] sm:$0xff]  ;;  %v2041_v42 = vshrl.u32 %v1816_v37, 16  ;;  %v12199_v55 = vld [vmem:[%s12585_s6 + $0x614] ss:$8 sps:$4 sm:$0xff]  }
 0x181   : > { %6806 = vmatmul.mubr.bf16.gmra.mrb[20].mxu0 %v10518_v7  ;;  %2953 = vmatpush1.bf16.msra.mxu1 %v12155_v28  ;;  %v1812_v28 = vld [vmem:[%s15242_s0 + $0xa8] sm:$0xff]  ;;  %v1988_v52 = vshll.u32 %v1808_v43, 16  ;;  %v1940_v6 = vrot.slane %v1938_v10, 5  ;;  %v1964_v32 = vrot.slane %v1963_v23, 4  ;;  %v12202_v56 = vld [vmem:[%s12585_s6 + $0xf14] ss:$8 sps:$4 sm:$0xff]  }
 0x182   : > { %7467 = vmatpush1.bf16.msra.mxu0 %v12158_v11  ;;  %2954 = vmatprep.subr.bf16.mxu1 %v12163_v16  ;;  %v12184_v7 = vld [vmem:[%s12585_s6 + $0xee4] ss:$8 sps:$4 sm:$0xff]   ;;  %v14093_v11 = vsel %vm12846_vm2, %v1908_v12, %v1912_v46  ;;  %v2013_v18 = vshrl.u32 %v1812_v28, 16  ;;  %v2016_v13 = vshll.u32 %v1812_v28, 16  ;;  %v2044_v12 = vshll.u32 %v1816_v37, 16 }
 0x183   : > { %7468 = vmatprep.subr.bf16.mxu0 %v12166_v62  ;;  %2911 = vmatprep.mubr.bf16.mxu1 %v9721_v0  ;;  %v14098_v16 = vld [vmem:[%s15242_s0 + $0x260] sm:$0xff]  ;;  %v1985_v62 = vshrl.u32 %v1808_v43, 16  ;;  %v12190_v0 = vld [vmem:[%s12585_s6 + $0xef4] ss:$8 sps:$4 sm:$0xff]   ;;  %v1990_v60 = vrot.slane %v1988_v52, 5  ;;  %v1820_v15 = vld [vmem:[%s15242_s0 + $0xe8] sm:$0xff]  ;;  %v9698_v38 = vcombine.low %v14089_v9, %v14093_v11  ;;  %v14148_v50 = vsel %vm12846_vm2, %v1964_v32, %v1968_v51 }
 0x184   : > { %6815 = vmatprep.mubr.bf16.mxu0 %v10523_v1  ;;  %v9699_v1 = vcombine.high %v14089_v9, %v14093_v11  ;;  %v10689_v2 = vcombine.high %v14098_v16, %v14103_v21  ;;  %v2015_v20 = vrot.slane %v2013_v18, 4  ;;  %v2018_v35 = vrot.slane %v2016_v13, 5  ;;  %v12191_v53 = vld [vmem:[%s12585_s6 + $0x600] ss:$8 sps:$4 sm:$0xff]   ;;  %v1818_v10 = vld [vmem:[%s15242_s0 + $0xd8] sm:$0x11] }
 0x185   : > { %2955 = vmatpush1.bf16.msra.mxu1 %v12161_v26  ;;  %v12182_v26 = vld [vmem:[%s12585_s6 + $0xee0] ss:$8 sps:$4 sm:$0xff]   ;;  %v2069_v46 = vshrl.u32 %v1820_v15, 16  ;;  %v2072_v59 = vshll.u32 %v1820_v15, 16  ;;  %v2024_v9 = vrot.slane %v2022_v22, 5  ;;  %v2043_v11 = vrot.slane %v2041_v42, 4 }
 0x186   : > { %7469 = vmatpush1.bf16.msra.mxu0 %v12164_v27  ;;  %2956 = vmatprep.subr.bf16.mxu1 %v12169_v33  ;;  %v12187_v27 = vld [vmem:[%s12585_s6 + $0x5f4] ss:$8 sps:$4 sm:$0xff]   ;;  %v12188_v33 = vld [vmem:[%s12585_s6 + $0xef0] ss:$8 sps:$4 sm:$0xff]   ;;  %v12194_v54 = vld [vmem:[%s12585_s6 + $0xf00] ss:$8 sps:$4 sm:$0xff]  }
 0x187   : > { %7470 = vmatprep.subr.bf16.mxu0 %v12172_v34  ;;  %v1987_v34 = vrot.slane %v1985_v62, 4  ;;  %v2074_v17 = vrot.slane %v2072_v59, 5  ;;  %v1822_v23 = vld [vmem:[%s15242_s0 + $0xf8] sm:$0x11]  ;;  %v12205_v13 = vld [vmem:[%s12585_s6 + $0x624] ss:$8 sps:$4 sm:$0xff]  }
 0x188   : > { %2912 = vmatmul.mubr.bf16.gmra.mrb[24].mxu1 %v9720_v45  ;;  %v14139_v45 = vsel %vm12846_vm2, %v1936_v5, %v1940_v6  ;;  %v14201_v6 = vld [vmem:[%s15242_s0 + $0x300] sm:$0xff]  ;;  %v12214_v63 = vld [vmem:[%s12585_s6 + $0xf34] ss:$8 sps:$4 sm:$0xff]   ;;  %v12209_v37 = vld [vmem:[%s12585_s6 + $0x630] ss:$8 sps:$4 sm:$0xff]  }
 0x189   : > { %6816 = vmatmul.mubr.bf16.gmra.mrb[24].mxu0 %v10522_v48  ;;  %2957 = vmatpush1.bf16.msra.mxu1 %v12167_v39  ;;  %v10688_v39 = vcombine.low %v14098_v16, %v14103_v21  ;;  %v14144_v48 = vld [vmem:[%s15242_s0 + $0x2a0] sm:$0xff]  ;;  %v1991_v47 = vor.u32 %v1990_v60, %v1987_v34  ;;  %v9703_v43 = vcombine.high %v14139_v45, %v14148_v50  ;;  %v2046_v16 = vrot.slane %v2044_v12, 5  ;;  %v12212_v15 = vld [vmem:[%s12585_s6 + $0xf30] ss:$8 sps:$4 sm:$0xff]  }
 0x18a   : > { %7471 = vmatpush1.bf16.msra.mxu0 %v12170_v41  ;;  %2958 = vmatprep.subr.bf16.mxu1 %v12175_v49  ;;  %v12196_v41 = vld [vmem:[%s12585_s6 + $0xf04] ss:$8 sps:$4 sm:$0xff]   ;;  %v1994_v49 = vshll.u32 %v1810_v3, 16  ;;  %v2071_v21 = vrot.slane %v2069_v46, 4  ;;  %v2078_v3 = vshll.u32 %v1822_v23, 16 }
 0x18b   : > { %7472 = vmatprep.subr.bf16.mxu0 %v12178_v14  ;;  %2921 = vmatprep.mubr.bf16.mxu1 %v9725_v31  ;;  %v2019_v14 = vor.u32 %v2018_v35, %v2015_v20  ;;  %v1824_v31 = vld [vmem:[%s15242_s0 + $0x128] sm:$0xff]  ;;  %v1992_v28 = vrot.slane %v1991_v47, 4  ;;  %v2047_v32 = vor.u32 %v2046_v16, %v2043_v11  ;;  %v12211_v35 = vld [vmem:[%s12585_s6 + $0x634] ss:$8 sps:$4 sm:$0xff]  }
 0x18c   : > { %6825 = vmatprep.mubr.bf16.mxu0 %v10527_v40  ;;  %v1828_v40 = vld [vmem:[%s15242_s0 + $0x148] sm:$0xff]  ;;  %v2097_v29 = vshrl.u32 %v1824_v31, 16  ;;  %v2100_v62 = vshll.u32 %v1824_v31, 16  ;;  %v2075_v51 = vor.u32 %v2074_v17, %v2071_v21  ;;  %v1834_v21 = vld [vmem:[%s15242_s0 + $0x178] sm:$0x11] }
 0x18d   : > { %2959 = vmatpush1.bf16.msra.mxu1 %v12173_v57  ;;  %v10693_v57 = vcombine.high %v14144_v48, %v14153_v8  ;;  %v2125_v52 = vshrl.u32 %v1828_v40, 16  ;;  %v2128_v18 = vshll.u32 %v1828_v40, 16  ;;  %v12220_v46 = vld [vmem:[%s12585_s6 + $0xf44] ss:$8 sps:$4 sm:$0xff]   ;;  %v12223_v40 = vld [vmem:[%s12585_s6 + $0x654] ss:$8 sps:$4 sm:$0xff]  }
 0x18e   : > { %7473 = vmatpush1.bf16.msra.mxu0 %v12176_v58  ;;  %2960 = vmatprep.subr.bf16.mxu1 %v12181_v4  ;;  %v1996_v58 = vrot.slane %v1994_v49, 5  ;;  %v12200_v4 = vld [vmem:[%s12585_s6 + $0xf10] ss:$8 sps:$4 sm:$0xff]   ;;  %v2102_v34 = vrot.slane %v2100_v62, 5  ;;  %v2048_v49 = vrot.slane %v2047_v32, 4 }
 0x18f   : > { %7474 = vmatprep.subr.bf16.mxu0 %v12184_v7  ;;  %v2020_v7 = vrot.slane %v2019_v14, 4  ;;  %v2127_v60 = vrot.slane %v2125_v52, 4  ;;  %v2130_v20 = vrot.slane %v2128_v18, 5  ;;  %v12217_v14 = vld [vmem:[%s12585_s6 + $0x644] ss:$8 sps:$4 sm:$0xff]  }
 0x190   : > { %2922 = vmatmul.mubr.bf16.gmra.mrb[28].mxu1 %v9724_v44  ;;  %v12208_v44 = vld [vmem:[%s12585_s6 + $0xf24] ss:$8 sps:$4 sm:$0xff]   ;;  %v1838_v17 = vld [vmem:[%s15242_s0 + $0x198] sm:$0x11] }
 0x191   : > { %6826 = vmatmul.mubr.bf16.gmra.mrb[28].mxu0 %v10526_v25  ;;  %2961 = vmatpush1.bf16.msra.mxu1 %v12179_v24  ;;  %v9702_v24 = vcombine.low %v14139_v45, %v14148_v50  ;;  %v12203_v25 = vld [vmem:[%s12585_s6 + $0x620] ss:$8 sps:$4 sm:$0xff]   ;;  %v14196_v5 = vsel %vm12846_vm2, %v2020_v7, %v2024_v9  ;;  %v2076_v50 = vrot.slane %v2075_v51, 4  ;;  %v2131_v42 = vor.u32 %v2130_v20, %v2127_v60  ;;  %v12221_v18 = vld [vmem:[%s12585_s6 + $0x650] ss:$8 sps:$4 sm:$0xff]  }
 0x192   : > { %7475 = vmatpush1.bf16.msra.mxu0 %v12182_v26  ;;  %2962 = vmatprep.subr.bf16.mxu1 %v12187_v27  ;;  %v10692_v26 = vcombine.low %v14144_v48, %v14153_v8  ;;  %v12206_v27 = vld [vmem:[%s12585_s6 + $0xf20] ss:$8 sps:$4 sm:$0xff]   ;;  %v2080_v8 = vrot.slane %v2078_v3, 5 }
 0x193   : > { %7476 = vmatprep.subr.bf16.mxu0 %v12190_v0  ;;  %2964 = vmatprep.mubr.bf16.mxu1 %v9699_v1  ;;  %v14187_v0 = vsel %vm12846_vm2, %v1992_v28, %v1996_v58  ;;  %v14192_v1 = vld [vmem:[%s15242_s0 + $0x2e0] sm:$0xff]  ;;  %v1832_v45 = vld [vmem:[%s15242_s0 + $0x168] sm:$0xff]  ;;  %v2132_v11 = vrot.slane %v2131_v42, 4 }
 0x194   : > { %7478 = vmatprep.mubr.bf16.mxu0 %v10689_v2  ;;  %v2050_v2 = vshll.u32 %v1818_v10, 16  ;;  %v1836_v48 = vld [vmem:[%s15242_s0 + $0x188] sm:$0xff]  ;;  %v2153_v59 = vshrl.u32 %v1832_v45, 16  ;;  %v9706_v31 = vcombine.low %v14187_v0, %v14196_v5  ;;  %v14244_v28 = vld [vmem:[%s15242_s0 + $0x320] sm:$0xff] }
 0x195   : > { %2963 = vmatpush1.bf16.msra.mxu1 %v12185_v30  ;;  %v1826_v30 = vld [vmem:[%s15242_s0 + $0x138] sm:$0x11]  ;;  %v12218_v58 = vld [vmem:[%s12585_s6 + $0xf40] ss:$8 sps:$4 sm:$0xff]  }
 0x196   : > { %7477 = vmatpush1.bf16.msra.mxu0 %v12188_v33  ;;  %3655 = vmatprep.subr.bf16.mxu1 %v12193_v36  ;;  %v2099_v33 = vrot.slane %v2097_v29, 4  ;;  %v1830_v36 = vld [vmem:[%s15242_s0 + $0x158] sm:$0x11]  ;;  %v2106_v47 = vshll.u32 %v1826_v30, 16  ;;  %v14249_v7 = vld [vmem:[%s15242_s0 + $0x340] sm:$0xff]  ;;  %v2155_v23 = vrot.slane %v2153_v59, 4 }
 0x197   : > { %7559 = vmatprep.subr.bf16.mxu0 %v12196_v41  ;;  %v2052_v41 = vrot.slane %v2050_v2, 5  ;;  %v2134_v12 = vshll.u32 %v1830_v36, 16  ;;  %v14278_v2 = vld [vmem:[%s15242_s0 + $0x380] sm:$0xff]  ;;  %v10700_v36 = vcombine.low %v14244_v28, %v14249_v7  ;;  %v12236_v59 = vld [vmem:[%s12585_s6 + $0xf70] ss:$8 sps:$4 sm:$0xff]  }
 0x198   : > { %2965 = vmatmul.mubr.bf16.vlgmr.msra.gmra.mrb[0].mxu1 %v9698_v38  ;;  %v9707_v38 = vcombine.high %v14187_v0, %v14196_v5  ;;  %v2103_v22 = vor.u32 %v2102_v34, %v2099_v33  ;;  %v2108_v9 = vrot.slane %v2106_v47, 5  ;;  %v12232_v0 = vld [vmem:[%s12585_s6 + $0xf64] ss:$8 sps:$4 sm:$0xff]   ;;  %v2162_v5 = vshll.u32 %v1834_v21, 16  ;;  %v1846_v47 = vld [vmem:[%s15242_s0 + $0x1d8] sm:$0x11] }
 0x199   : > { %7479 = vmatmul.mubr.bf16.vlgmr.msra.gmra.mrb[0].mxu0 %v10688_v39  ;;  %3656 = vmatpush1.bf16.msra.mxu1 %v12191_v53  ;;  %v10697_v39 = vcombine.high %v14192_v1, %v14201_v6  ;;  %v2156_v53 = vshll.u32 %v1832_v45, 16  ;;  %v2136_v16 = vrot.slane %v2134_v12, 5  ;;  %v14287_v51 = vld [vmem:[%s15242_s0 + $0x3a0] sm:$0xff]  ;;  %v1842_v45 = vld [vmem:[%s15242_s0 + $0x1b8] sm:$0x11] }
 0x19a   : > { %7560 = vmatpush1.bf16.msra.mxu0 %v12194_v54  ;;  %3657 = vmatprep.subr.bf16.mxu1 %v12199_v55  ;;  %v2181_v54 = vshrl.u32 %v1836_v48, 16  ;;  %v2184_v55 = vshll.u32 %v1836_v48, 16  ;;  %v2104_v10 = vrot.slane %v2103_v22, 4 }
 0x19b   : > { %7561 = vmatprep.subr.bf16.mxu0 %v12202_v56  ;;  %2974 = vmatprep.mubr.bf16.mxu1 %v9703_v43  ;;  %v12215_v56 = vld [vmem:[%s12585_s6 + $0x640] ss:$8 sps:$4 sm:$0xff]   ;;  %v14239_v43 = vsel %vm12846_vm2, %v2076_v50, %v2080_v8  ;;  %v2158_v29 = vrot.slane %v2156_v53, 5  ;;  %v14282_v32 = vsel %vm12846_vm2, %v2132_v11, %v2136_v16  ;;  %v12241_v53 = vld [vmem:[%s12585_s6 + $0x684] ss:$8 sps:$4 sm:$0xff]  }
 0x19c   : > { %7488 = vmatprep.mubr.bf16.mxu0 %v10693_v57  ;;  %v10696_v57 = vcombine.low %v14192_v1, %v14201_v6  ;;  %v2183_v62 = vrot.slane %v2181_v54, 4  ;;  %v2186_v52 = vrot.slane %v2184_v55, 5  ;;  %v14273_v1 = vsel %vm12846_vm2, %v2104_v10, %v2108_v9  ;;  %v1848_v55 = vld [vmem:[%s15242_s0 + $0x1e8] sm:$0xff]  ;;  %v10614_v10 = vld [vmem:[%s15242_s0 + $0x3e0] sm:$0xff] }
 0x19d   : > { %3658 = vmatpush1.bf16.msra.mxu1 %v12197_v61  ;;  %v12226_v61 = vld [vmem:[%s12585_s6 + $0xf54] ss:$8 sps:$4 sm:$0xff]   ;;  %v2190_v6 = vshll.u32 %v1838_v17, 16  ;;  %v2159_v3 = vor.u32 %v2158_v29, %v2155_v23  ;;  %v9715_v48 = vcombine.high %v14273_v1, %v14282_v32  ;;  %v10704_v54 = vcombine.low %v14278_v2, %v14287_v51  ;;  %v12242_v23 = vld [vmem:[%s12585_s6 + $0xf80] ss:$8 sps:$4 sm:$0xff]  }
 0x19e   : > { %7562 = vmatpush1.bf16.msra.mxu0 %v12200_v4  ;;  %3659 = vmatprep.subr.bf16.mxu1 %v12205_v13  ;;  %v14235_v4 = vsel %vm12846_vm2, %v2048_v49, %v2052_v41  ;;  %v12224_v13 = vld [vmem:[%s12585_s6 + $0xf50] ss:$8 sps:$4 sm:$0xff]   ;;  %v2187_v30 = vor.u32 %v2186_v52, %v2183_v62  ;;  %v10705_v49 = vcombine.high %v14278_v2, %v14287_v51  ;;  %v2265_v11 = vshrl.u32 %v1848_v55, 16  ;;  %v12247_v29 = vld [vmem:[%s12585_s6 + $0x694] ss:$8 sps:$4 sm:$0xff]  }
 0x19f   : > { %7563 = vmatprep.subr.bf16.mxu0 %v12208_v44  ;;  %v9711_v44 = vcombine.high %v14235_v4, %v14239_v43  ;;  %v2192_v41 = vrot.slane %v2190_v6, 5  ;;  %v2160_v50 = vrot.slane %v2159_v3, 4  ;;  %v2268_v16 = vshll.u32 %v1848_v55, 16  ;;  %v12250_v62 = vld [vmem:[%s12585_s6 + $0xf94] ss:$8 sps:$4 sm:$0xff]  }
 0x1a0   : > { %2975 = vmatmul.mubr.bf16.gmra.mrb[4].mxu1 %v9702_v24  ;;  %v10701_v24 = vcombine.high %v14244_v28, %v14249_v7  ;;  %v2188_v8 = vrot.slane %v2187_v30, 4  ;;  %v10612_v28 = vld [vmem:[%s15242_s0 + $0x3c0] sm:$0xff]  ;;  %v12248_v6 = vld [vmem:[%s12585_s6 + $0xf90] ss:$8 sps:$4 sm:$0xff]  }
 0x1a1   : > { %7489 = vmatmul.mubr.bf16.gmra.mrb[4].mxu0 %v10692_v26  ;;  %3660 = vmatpush1.bf16.msra.mxu1 %v12203_v25  ;;  %v12229_v25 = vld [vmem:[%s12585_s6 + $0x664] ss:$8 sps:$4 sm:$0xff]  }
 0x1a2   : > { %7564 = vmatpush1.bf16.msra.mxu0 %v12206_v27  ;;  %3661 = vmatprep.subr.bf16.mxu1 %v12211_v35  ;;  %v1840_v26 = vld [vmem:[%s15242_s0 + $0x1a8] sm:$0xff]  ;;  %v9710_v35 = vcombine.low %v14235_v4, %v14239_v43  ;;  %v2193_v43 = vsel %vm12846_vm2, %v2188_v8, %v2192_v41  ;;  %v12259_v41 = vld [vmem:[%s12585_s6 + $0x6b4] ss:$8 sps:$4 sm:$0xff]  }
 0x1a3   : > { %7565 = vmatprep.subr.bf16.mxu0 %v12214_v63  ;;  %2984 = vmatprep.mubr.bf16.mxu1 %v9707_v38  ;;  %v1844_v27 = vld [vmem:[%s15242_s0 + $0x1c8] sm:$0xff]  ;;  %v2209_v33 = vshrl.u32 %v1840_v26, 16  ;;  %v2212_v34 = vshll.u32 %v1840_v26, 16  ;;  %v12238_v38 = vld [vmem:[%s12585_s6 + $0xf74] ss:$8 sps:$4 sm:$0xff]  }
 0x1a4   : > { %7498 = vmatprep.mubr.bf16.mxu0 %v10697_v39  ;;  %v2237_v60 = vshrl.u32 %v1844_v27, 16  ;;  %v2240_v20 = vshll.u32 %v1844_v27, 16  ;;  %v12227_v63 = vld [vmem:[%s12585_s6 + $0x660] ss:$8 sps:$4 sm:$0xff]   ;;  %v2164_v39 = vrot.slane %v2162_v5, 5 }
 0x1a5   : > { %3662 = vmatpush1.bf16.msra.mxu1 %v12209_v37  ;;  %v12230_v37 = vld [vmem:[%s12585_s6 + $0xf60] ss:$8 sps:$4 sm:$0xff]   ;;  %v2211_v22 = vrot.slane %v2209_v33, 4  ;;  %v2214_v42 = vrot.slane %v2212_v34, 5  ;;  %v1850_v27 = vld [vmem:[%s15242_s0 + $0x1f8] sm:$0x11]  ;;  %v10708_v34 = vcombine.low %v10612_v28, %v10614_v10 }
 0x1a6   : > { %7566 = vmatpush1.bf16.msra.mxu0 %v12212_v15  ;;  %3663 = vmatprep.subr.bf16.mxu1 %v12217_v14  ;;  %v12235_v15 = vld [vmem:[%s12585_s6 + $0x674] ss:$8 sps:$4 sm:$0xff]   ;;  %v12233_v14 = vld [vmem:[%s12585_s6 + $0x670] ss:$8 sps:$4 sm:$0xff]   ;;  %v2239_v12 = vrot.slane %v2237_v60, 4 }
 0x1a7   : > { %7567 = vmatprep.subr.bf16.mxu0 %v12220_v46  ;;  %v2242_v46 = vrot.slane %v2240_v20, 5  ;;  %v12239_v4 = vld [vmem:[%s12585_s6 + $0x680] ss:$8 sps:$4 sm:$0xff]   ;;  %v2215_v7 = vor.u32 %v2214_v42, %v2211_v22  ;;  %v12253_v51 = vld [vmem:[%s12585_s6 + $0x6a4] ss:$8 sps:$4 sm:$0xff]   ;;  %v2274_v20 = vshll.u32 %v1850_v27, 16 }
 0x1a8   : > { %2985 = vmatmul.mubr.bf16.gmra.mrb[8].mxu1 %v9706_v31  ;;  %v14323_v31 = vsel %vm12846_vm2, %v2160_v50, %v2164_v39  ;;  %v12256_v3 = vld [vmem:[%s12585_s6 + $0xfa4] ss:$8 sps:$4 sm:$0xff]   ;;  %v12251_v33 = vld [vmem:[%s12585_s6 + $0x6a0] ss:$8 sps:$4 sm:$0xff]   ;;  %v12257_v22 = vld [vmem:[%s12585_s6 + $0x6b0] ss:$8 sps:$4 sm:$0xff]  }
 0x1a9   : > { %7499 = vmatmul.mubr.bf16.gmra.mrb[8].mxu0 %v10696_v57  ;;  %3664 = vmatpush1.bf16.msra.mxu1 %v12215_v56  ;;  %v1852_v56 = vld [vmem:[%s15242_s0 + $0x208] sm:$0xff]  ;;  %v9714_v57 = vcombine.low %v14273_v1, %v14282_v32  ;;  %v2243_v9 = vor.u32 %v2242_v46, %v2239_v12  ;;  %v2270_v1 = vrot.slane %v2268_v16, 5  ;;  %v1854_v32 = vld [vmem:[%s15242_s0 + $0x218] sm:$0x11]  ;;  %v9718_v30 = vcombine.low %v14323_v31, %v2193_v43  ;;  %v9794_v16 = vld [vmem:[%s15242_s0 + $0x4a0] sm:$0xff] }
 0x1aa   : > { %7568 = vmatpush1.bf16.msra.mxu0 %v12218_v58  ;;  %3665 = vmatprep.subr.bf16.mxu1 %v12223_v40  ;;  %v12244_v58 = vld [vmem:[%s12585_s6 + $0xf84] ss:$8 sps:$4 sm:$0xff]   ;;  %v2218_v40 = vshll.u32 %v1842_v45, 16  ;;  %v2293_v21 = vshrl.u32 %v1852_v56, 16  ;;  %v2296_v17 = vshll.u32 %v1852_v56, 16  ;;  %v2276_v8 = vrot.slane %v2274_v20, 5 }
 0x1ab   : > { %7569 = vmatprep.subr.bf16.mxu0 %v12226_v61  ;;  %2994 = vmatprep.mubr.bf16.mxu1 %v9711_v44  ;;  %v2246_v61 = vshll.u32 %v1846_v47, 16  ;;  %v9719_v44 = vcombine.high %v14323_v31, %v2193_v43  ;;  %v2244_v26 = vrot.slane %v2243_v9, 4  ;;  %v12254_v39 = vld [vmem:[%s12585_s6 + $0xfa0] ss:$8 sps:$4 sm:$0xff]   ;;  %v12262_v45 = vld [vmem:[%s12585_s6 + $0xfb4] ss:$8 sps:$4 sm:$0xff]  }
 0x1ac   : > { %7508 = vmatprep.mubr.bf16.mxu0 %v10701_v24  ;;  %v2220_v52 = vrot.slane %v2218_v40, 5  ;;  %v10709_v24 = vcombine.high %v10612_v28, %v10614_v10  ;;  %v2295_v2 = vrot.slane %v2293_v21, 4  ;;  %v2298_v5 = vrot.slane %v2296_v17, 5  ;;  %v12260_v42 = vld [vmem:[%s12585_s6 + $0xfb0] ss:$8 sps:$4 sm:$0xff]  }
 0x1ad   : > { %3666 = vmatpush1.bf16.msra.mxu1 %v12221_v18  ;;  %v2248_v18 = vrot.slane %v2246_v61, 5  ;;  %v12265_v12 = vld [vmem:[%s12585_s6 + $0x6c4] ss:$8 sps:$4 sm:$0xff]   ;;  %v12266_v31 = vld [vmem:[%s12585_s6 + $0xfc0] ss:$8 sps:$4 sm:$0xff]  }
 0x1ae   : > { %7570 = vmatpush1.bf16.msra.mxu0 %v12224_v13  ;;  %3667 = vmatprep.subr.bf16.mxu1 %v12229_v25  ;;  %v12245_v13 = vld [vmem:[%s12585_s6 + $0x690] ss:$8 sps:$4 sm:$0xff]   ;;  %v2216_v25 = vrot.slane %v2215_v7, 4  ;;  %v12268_v46 = vld [vmem:[%s12585_s6 + $0xfc4] ss:$8 sps:$4 sm:$0xff]  }
 0x1af   : > { %7571 = vmatprep.subr.bf16.mxu0 %v12232_v0  ;;  %v2267_v0 = vrot.slane %v2265_v11, 4  ;;  %v12271_v40 = vld [vmem:[%s12585_s6 + $0x6d4] ss:$8 sps:$4 sm:$0xff]   ;;  %v12269_v28 = vld [vmem:[%s12585_s6 + $0x6d0] ss:$8 sps:$4 sm:$0xff]   ;;  %v9792_v11 = vld [vmem:[%s15242_s0 + $0x480] sm:$0xff] }
 0x1b0   : > { %2995 = vmatmul.mubr.bf16.gmra.mrb[12].mxu1 %v9710_v35  ;;  %v2221_v60 = vsel %vm12846_vm2, %v2216_v25, %v2220_v52  ;;  %v2249_v35 = vsel %vm12846_vm2, %v2244_v26, %v2248_v18  ;;  %v12274_v61 = vld [vmem:[%s12585_s6 + $0xfd4] ss:$8 sps:$4 sm:$0xff]   ;;  %v12272_v7 = vld [vmem:[%s12585_s6 + $0xfd0] ss:$8 sps:$4 sm:$0xff]   ;;  %v12277_v9 = vld [vmem:[%s12585_s6 + $0x6e4] ss:$8 sps:$4 sm:$0xff]  }
 0x1b1   : > { %7509 = vmatmul.mubr.bf16.gmra.mrb[12].mxu0 %v10700_v36  ;;  %3668 = vmatpush1.bf16.msra.mxu1 %v12227_v63  ;;  %v10616_v63 = vld [vmem:[%s15242_s0 + $0x400] sm:$0xff]  ;;  %v12283_v18 = vld [vmem:[%s12585_s6 + $0x6f4] ss:$8 sps:$4 sm:$0xff]   ;;  %v12281_v25 = vld [vmem:[%s12585_s6 + $0x6f0] ss:$8 sps:$4 sm:$0xff]  }
 0x1b2   : > { %7572 = vmatpush1.bf16.msra.mxu0 %v12230_v37  ;;  %3669 = vmatprep.subr.bf16.mxu1 %v12235_v15  ;;  %v10618_v36 = vld [vmem:[%s15242_s0 + $0x420] sm:$0xff]  ;;  %v2271_v37 = vor.u32 %v2270_v1, %v2267_v0  ;;  %v2299_v15 = vor.u32 %v2298_v5, %v2295_v2  ;;  %v12284_v26 = vld [vmem:[%s12585_s6 + $0xff0] ss:$8 sps:$4 sm:$0xff]   ;;  %v9888_v2 = vcombine.low %v9792_v11, %v9794_v16 }
 0x1b3   : > { %7573 = vmatprep.subr.bf16.mxu0 %v12238_v38  ;;  %3004 = vmatprep.mubr.bf16.mxu1 %v9715_v48  ;;  %v2302_v38 = vshll.u32 %v1854_v32, 16  ;;  %v9723_v48 = vcombine.high %v2221_v60, %v2249_v35  ;;  %v12280_v10 = vld [vmem:[%s12585_s6 + $0xfe4] ss:$8 sps:$4 sm:$0xff]   ;;  %v12278_v52 = vld [vmem:[%s12585_s6 + $0xfe0] ss:$8 sps:$4 sm:$0xff]  }
 0x1b4   : > { %7518 = vmatprep.mubr.bf16.mxu0 %v10705_v49  ;;  %v10713_v49 = vcombine.high %v10616_v63, %v10618_v36  ;;  %v2272_v50 = vrot.slane %v2271_v37, 4  ;;  %v2300_v47 = vrot.slane %v2299_v15, 4  ;;  %v12289_v27 = vld [vmem:[%s12585_s6 + $0x704] ss:$8 sps:$4 sm:$0xff]  }
 0x1b5   : > { %3670 = vmatpush1.bf16.msra.mxu1 %v12233_v14  ;;  %v2304_v14 = vrot.slane %v2302_v38, 5  ;;  %v12292_v0 = vld [vmem:[%s12585_s6 + $0x1004] ss:$8 sps:$4 sm:$0xff]  }
 0x1b6   : > { %7574 = vmatpush1.bf16.msra.mxu0 %v12236_v59  ;;  %3671 = vmatprep.subr.bf16.mxu1 %v12241_v53  ;;  %v12263_v59 = vld [vmem:[%s12585_s6 + $0x6c0] ss:$8 sps:$4 sm:$0xff]   ;;  %v9722_v53 = vcombine.low %v2221_v60, %v2249_v35  ;;  %v2277_v55 = vsel %vm12846_vm2, %v2272_v50, %v2276_v8  ;;  %v12293_v35 = vld [vmem:[%s12585_s6 + $0x710] ss:$8 sps:$4 sm:$0xff]   ;;  %v12304_v37 = vld [vmem:[%s12585_s6 + $0x1024] ss:$8 sps:$4 sm:$0xff]  }
 0x1b7   : > { %7575 = vmatprep.subr.bf16.mxu0 %v12244_v58  ;;  %v2305_v56 = vsel %vm12846_vm2, %v2300_v47, %v2304_v14  ;;  %v10622_v58 = vld [vmem:[%s15242_s0 + $0x460] sm:$0xff]  ;;  %v10597_v32 = vld [vmem:[%s15242_s0 + $0x2a8] sm:$0xff]  ;;  %v12307_v8 = vld [vmem:[%s12585_s6 + $0x734] ss:$8 sps:$4 sm:$0xff]  }
 0x1b8   : > { %3005 = vmatmul.mubr.bf16.gmra.mrb[16].mxu1 %v9714_v57  ;;  %v10620_v57 = vld [vmem:[%s15242_s0 + $0x440] sm:$0xff]  ;;  %v9726_v21 = vcombine.low %v2277_v55, %v2305_v56  ;;  %v12310_v47 = vld [vmem:[%s12585_s6 + $0x1034] ss:$8 sps:$4 sm:$0xff]  }
 0x1b9   : > { %7519 = vmatmul.mubr.bf16.gmra.mrb[16].mxu0 %v10704_v54  ;;  %3672 = vmatpush1.bf16.msra.mxu1 %v12239_v4  ;;  %v10712_v54 = vcombine.low %v10616_v63, %v10618_v36  ;;  %v9727_v4 = vcombine.high %v2277_v55, %v2305_v56  ;;  %v10717_v43 = vcombine.high %v10620_v57, %v10622_v58  ;;  %v9796_v1 = vld [vmem:[%s15242_s0 + $0x4c0] sm:$0xff]  ;;  %v12296_v63 = vld [vmem:[%s12585_s6 + $0x1010] ss:$8 sps:$4 sm:$0xff]  }
 0x1ba   : > { %7576 = vmatpush1.bf16.msra.mxu0 %v12242_v23  ;;  %3673 = vmatprep.subr.bf16.mxu1 %v12247_v29  ;;  %v10716_v17 = vcombine.low %v10620_v57, %v10622_v58  ;;  %v10593_v23 = vld [vmem:[%s15242_s0 + $0x268] sm:$0xff]  ;;  %v9800_v15 = vld [vmem:[%s15242_s0 + $0x500] sm:$0xff] }
 0x1bb   : > { %7577 = vmatprep.subr.bf16.mxu0 %v12250_v62  ;;  %3014 = vmatprep.mubr.bf16.mxu1 %v9719_v44  ;;  %v10595_v29 = vld [vmem:[%s15242_s0 + $0x288] sm:$0xff]  ;;  %v9889_v44 = vcombine.high %v9792_v11, %v9794_v16  ;;  %v9806_v57 = vld [vmem:[%s15242_s0 + $0x560] sm:$0xff] }
 0x1bc   : > { %7528 = vmatprep.mubr.bf16.mxu0 %v10709_v24  ;;  %v12275_v62 = vld [vmem:[%s12585_s6 + $0x6e0] ss:$8 sps:$4 sm:$0xff]   ;;  %v10691_v24 = vcombine.high %v10593_v23, %v10595_v29  ;;  %v10690_v5 = vcombine.low %v10593_v23, %v10595_v29  ;;  %v12301_v36 = vld [vmem:[%s12585_s6 + $0x724] ss:$8 sps:$4 sm:$0xff]  }
 0x1bd   : > { %3674 = vmatpush1.bf16.msra.mxu1 %v12245_v13  ;;  %v12286_v13 = vld [vmem:[%s12585_s6 + $0xff4] ss:$8 sps:$4 sm:$0xff]   ;;  %v12302_v50 = vld [vmem:[%s12585_s6 + $0x1020] ss:$8 sps:$4 sm:$0xff]   ;;  %v12328_v11 = vld [vmem:[%s12585_s6 + $0x1064] ss:$8 sps:$4 sm:$0xff]  }
 0x1be   : > { %7578 = vmatpush1.bf16.msra.mxu0 %v12248_v6  ;;  %3675 = vmatprep.subr.bf16.mxu1 %v12253_v51  ;;  %v9798_v6 = vld [vmem:[%s15242_s0 + $0x4e0] sm:$0xff]  ;;  %v10599_v51 = vld [vmem:[%s15242_s0 + $0x2c8] sm:$0xff] }
 0x1bf   : > { %7579 = vmatprep.subr.bf16.mxu0 %v12256_v3  ;;  %v12287_v3 = vld [vmem:[%s12585_s6 + $0x700] ss:$8 sps:$4 sm:$0xff]   ;;  %v9893_v60 = vcombine.high %v9796_v1, %v9798_v6  ;;  %v10695_v20 = vcombine.high %v10597_v32, %v10599_v51  ;;  %v9892_v38 = vcombine.low %v9796_v1, %v9798_v6  ;;  %v12340_v1 = vld [vmem:[%s12585_s6 + $0x1084] ss:$8 sps:$4 sm:$0xff]  }
 0x1c0   : > { %3015 = vmatmul.mubr.bf16.gmra.mrb[20].mxu1 %v9718_v30  ;;  %v12290_v30 = vld [vmem:[%s12585_s6 + $0x1000] ss:$8 sps:$4 sm:$0xff]  }
 0x1c1   : > { %7529 = vmatmul.mubr.bf16.gmra.mrb[20].mxu0 %v10708_v34  ;;  %3676 = vmatpush1.bf16.msra.mxu1 %v12251_v33  ;;  %v12295_v33 = vld [vmem:[%s12585_s6 + $0x714] ss:$8 sps:$4 sm:$0xff]   ;;  %v10605_v58 = vld [vmem:[%s15242_s0 + $0x328] sm:$0xff]  ;;  %v9810_v29 = vld [vmem:[%s15242_s0 + $0x5c0] sm:$0xff] }
 0x1c2   : > { %7580 = vmatpush1.bf16.msra.mxu0 %v12254_v39  ;;  %3677 = vmatprep.subr.bf16.mxu1 %v12259_v41  ;;  %v12298_v34 = vld [vmem:[%s12585_s6 + $0x1014] ss:$8 sps:$4 sm:$0xff]   ;;  %v10694_v39 = vcombine.low %v10597_v32, %v10599_v51  ;;  %v9802_v41 = vld [vmem:[%s15242_s0 + $0x520] sm:$0xff]  ;;  %v10613_v51 = vld [vmem:[%s15242_s0 + $0x3c8] sm:$0xff] }
 0x1c3   : > { %7581 = vmatprep.subr.bf16.mxu0 %v12262_v45  ;;  %3024 = vmatprep.mubr.bf16.mxu1 %v9723_v48  ;;  %v10601_v45 = vld [vmem:[%s15242_s0 + $0x2e8] sm:$0xff]  ;;  %v9897_v14 = vcombine.high %v9800_v15, %v9802_v41  ;;  %v9896_v55 = vcombine.low %v9800_v15, %v9802_v41  ;;  %v9814_v32 = vld [vmem:[%s15242_s0 + $0x600] sm:$0xff] }
 0x1c4   : > { %7538 = vmatprep.mubr.bf16.mxu0 %v10713_v49  ;;  %v10603_v48 = vld [vmem:[%s15242_s0 + $0x308] sm:$0xff]  ;;  %v14514_v41 = vld [vmem:[%s15242_s0 + $0x620] sm:$0xff] }
 0x1c5   : > { %3678 = vmatpush1.bf16.msra.mxu1 %v12257_v22  ;;  %v12299_v49 = vld [vmem:[%s12585_s6 + $0x720] ss:$8 sps:$4 sm:$0xff]   ;;  %v10699_v22 = vcombine.high %v10601_v45, %v10603_v48  ;;  %v10698_v56 = vcombine.low %v10601_v45, %v10603_v48  ;;  %v12352_v15 = vld [vmem:[%s12585_s6 + $0x10a4] ss:$8 sps:$4 sm:$0xff]  }
 0x1c6   : > { %7582 = vmatpush1.bf16.msra.mxu0 %v12260_v42  ;;  %3679 = vmatprep.subr.bf16.mxu1 %v12265_v12  ;;  %v12305_v42 = vld [vmem:[%s12585_s6 + $0x730] ss:$8 sps:$4 sm:$0xff]   ;;  %v12323_v16 = vld [vmem:[%s12585_s6 + $0x760] ss:$8 sps:$4 sm:$0xff]  }
 0x1c7   : > { %7583 = vmatprep.subr.bf16.mxu0 %v12268_v46  ;;  %v12308_v12 = vld [vmem:[%s12585_s6 + $0x1030] ss:$8 sps:$4 sm:$0xff]   ;;  %v12313_v46 = vld [vmem:[%s12585_s6 + $0x744] ss:$8 sps:$4 sm:$0xff]  }
 0x1c8   : > { %3025 = vmatmul.mubr.bf16.gmra.mrb[24].mxu1 %v9722_v53  ;;  %v12311_v53 = vld [vmem:[%s12585_s6 + $0x740] ss:$8 sps:$4 sm:$0xff]  }
 0x1c9   : > { %7539 = vmatmul.mubr.bf16.gmra.mrb[24].mxu0 %v10712_v54  ;;  %3680 = vmatpush1.bf16.msra.mxu1 %v12263_v59  ;;  %v12316_v59 = vld [vmem:[%s12585_s6 + $0x1044] ss:$8 sps:$4 sm:$0xff]  }
 0x1ca   : > { %7584 = vmatpush1.bf16.msra.mxu0 %v12266_v31  ;;  %3681 = vmatprep.subr.bf16.mxu1 %v12271_v40  ;;  %v9804_v54 = vld [vmem:[%s15242_s0 + $0x540] sm:$0xff]  ;;  %v10607_v31 = vld [vmem:[%s15242_s0 + $0x348] sm:$0xff] }
 0x1cb   : > { %7585 = vmatprep.subr.bf16.mxu0 %v12274_v61  ;;  %3034 = vmatprep.mubr.bf16.mxu1 %v9727_v4  ;;  %v12314_v40 = vld [vmem:[%s12585_s6 + $0x1040] ss:$8 sps:$4 sm:$0xff]   ;;  %v12319_v61 = vld [vmem:[%s12585_s6 + $0x754] ss:$8 sps:$4 sm:$0xff]   ;;  %v10702_v23 = vcombine.low %v10605_v58, %v10607_v31 }
 0x1cc   : > { %7548 = vmatprep.mubr.bf16.mxu0 %v10717_v43  ;;  %v12322_v4 = vld [vmem:[%s12585_s6 + $0x1054] ss:$8 sps:$4 sm:$0xff]   ;;  %v9901_v43 = vcombine.high %v9804_v54, %v9806_v57 }
 0x1cd   : > { %3682 = vmatpush1.bf16.msra.mxu1 %v12269_v28  ;;  %v10703_v28 = vcombine.high %v10605_v58, %v10607_v31 }
 0x1ce   : > { %7586 = vmatpush1.bf16.msra.mxu0 %v12272_v7  ;;  %3683 = vmatprep.subr.bf16.mxu1 %v12277_v9  ;;  %v12317_v7 = vld [vmem:[%s12585_s6 + $0x750] ss:$8 sps:$4 sm:$0xff]  }
 0x1cf   : > { %7587 = vmatprep.subr.bf16.mxu0 %v12280_v10  ;;  %v12320_v9 = vld [vmem:[%s12585_s6 + $0x1050] ss:$8 sps:$4 sm:$0xff]   ;;  %v12325_v10 = vld [vmem:[%s12585_s6 + $0x764] ss:$8 sps:$4 sm:$0xff]  }
 0x1d0   : > { %3035 = vmatmul.mubr.bf16.gmra.mrb[28].mxu1 %v9726_v21  ;;  %v9808_v21 = vld [vmem:[%s15242_s0 + $0x5a0] sm:$0xff] }
 0x1d1   : > { %7549 = vmatmul.mubr.bf16.gmra.mrb[28].mxu0 %v10716_v17  ;;  %3684 = vmatpush1.bf16.msra.mxu1 %v12275_v62  ;;  %v9900_v17 = vcombine.low %v9804_v54, %v9806_v57  ;;  %v10609_v62 = vld [vmem:[%s15242_s0 + $0x388] sm:$0xff]  ;;  %v10792_v54 = vld [vmem:[%s15242_s0 + $0x60] sm:$0xff]  ;;  %v12356_v57 = vld [vmem:[%s12585_s6 + $0x10b0] ss:$8 sps:$4 sm:$0xff]  }
 0x1d2   : > { %7588 = vmatpush1.bf16.msra.mxu0 %v12278_v52  ;;  %3685 = vmatprep.subr.bf16.mxu1 %v12283_v18  ;;  %v10611_v52 = vld [vmem:[%s15242_s0 + $0x3a8] sm:$0xff] }
 0x1d3   : > { %7589 = vmatprep.subr.bf16.mxu0 %v12286_v13  ;;  %3687 = vmatprep.mubr.bf16.mxu1 %v9889_v44  ;;  %v12326_v18 = vld [vmem:[%s12585_s6 + $0x1060] ss:$8 sps:$4 sm:$0xff]   ;;  %v12331_v13 = vld [vmem:[%s12585_s6 + $0x774] ss:$8 sps:$4 sm:$0xff]   ;;  %v10706_v6 = vcombine.low %v10609_v62, %v10611_v52 }
 0x1d4   : > { %7591 = vmatprep.mubr.bf16.mxu0 %v10691_v24  ;;  %v12334_v44 = vld [vmem:[%s12585_s6 + $0x1074] ss:$8 sps:$4 sm:$0xff]   ;;  %v9905_v24 = vcombine.high %v9808_v21, %v9810_v29 }
 0x1d5   : > { %3686 = vmatpush1.bf16.msra.mxu1 %v12281_v25  ;;  %v10707_v25 = vcombine.high %v10609_v62, %v10611_v52  ;;  %v12362_v52 = vld [vmem:[%s12585_s6 + $0x10c0] ss:$8 sps:$4 sm:$0xff]  }
 0x1d6   : > { %7590 = vmatpush1.bf16.msra.mxu0 %v12284_v26  ;;  %3768 = vmatprep.subr.bf16.mxu1 %v12289_v27  ;;  %v12329_v26 = vld [vmem:[%s12585_s6 + $0x770] ss:$8 sps:$4 sm:$0xff]  }
 0x1d7   : > { %8729 = vmatprep.subr.bf16.mxu0 %v12292_v0  ;;  %v12332_v27 = vld [vmem:[%s12585_s6 + $0x1070] ss:$8 sps:$4 sm:$0xff]   ;;  %v12337_v0 = vld [vmem:[%s12585_s6 + $0x784] ss:$8 sps:$4 sm:$0xff]  }
 0x1d8   : > { %3688 = vmatmul.mubr.bf16.vlgmr.msra.gmra.mrb[0].mxu1 %v9888_v2  ;;  %v9812_v2 = vld [vmem:[%s15242_s0 + $0x5e0] sm:$0xff] }
 0x1d9   : > { %7592 = vmatmul.mubr.bf16.vlgmr.msra.gmra.mrb[0].mxu0 %v10690_v5  ;;  %3769 = vmatpush1.bf16.msra.mxu1 %v12287_v3  ;;  %v9904_v5 = vcombine.low %v9808_v21, %v9810_v29  ;;  %v10615_v3 = vld [vmem:[%s15242_s0 + $0x3e8] sm:$0xff]  ;;  %v9908_v45 = vcombine.low %v9812_v2, %v9814_v32 }
 0x1da   : > { %8730 = vmatpush1.bf16.msra.mxu0 %v12290_v30  ;;  %3770 = vmatprep.subr.bf16.mxu1 %v12295_v33  ;;  %v12335_v30 = vld [vmem:[%s12585_s6 + $0x780] ss:$8 sps:$4 sm:$0xff]   ;;  %v10710_v48 = vcombine.low %v10613_v51, %v10615_v3  ;;  %v12361_v21 = vld [vmem:[%s12585_s6 + $0x7c4] ss:$8 sps:$4 sm:$0xff]  }
 0x1db   : > { %8731 = vmatprep.subr.bf16.mxu0 %v12298_v34  ;;  %3697 = vmatprep.mubr.bf16.mxu1 %v9893_v60  ;;  %v12338_v33 = vld [vmem:[%s12585_s6 + $0x1080] ss:$8 sps:$4 sm:$0xff]   ;;  %v12343_v34 = vld [vmem:[%s12585_s6 + $0x794] ss:$8 sps:$4 sm:$0xff]  }
 0x1dc   : > { %7601 = vmatprep.mubr.bf16.mxu0 %v10695_v20  ;;  %v12346_v60 = vld [vmem:[%s12585_s6 + $0x1094] ss:$8 sps:$4 sm:$0xff]   ;;  %v12341_v20 = vld [vmem:[%s12585_s6 + $0x790] ss:$8 sps:$4 sm:$0xff]   ;;  %v12359_v29 = vld [vmem:[%s12585_s6 + $0x7c0] ss:$8 sps:$4 sm:$0xff]  }
 0x1dd   : > { %3771 = vmatpush1.bf16.msra.mxu1 %v12293_v35  ;;  %v12344_v35 = vld [vmem:[%s12585_s6 + $0x1090] ss:$8 sps:$4 sm:$0xff]  }
 0x1de   : > { %8732 = vmatpush1.bf16.msra.mxu0 %v12296_v63  ;;  %3772 = vmatprep.subr.bf16.mxu1 %v12301_v36  ;;  %v9909_v63 = vcombine.high %v9812_v2, %v9814_v32  ;;  %v10711_v36 = vcombine.high %v10613_v51, %v10615_v3 }
 0x1df   : > { %8733 = vmatprep.subr.bf16.mxu0 %v12304_v37  ;;  %v12349_v37 = vld [vmem:[%s12585_s6 + $0x7a4] ss:$8 sps:$4 sm:$0xff]  }
 0x1e0   : > { %3698 = vmatmul.mubr.bf16.gmra.mrb[4].mxu1 %v9892_v38  ;;  %v10784_v38 = vld [vmem:[%s15242_s0 + $0x20] sm:$0xff] }
 0x1e1   : > { %7602 = vmatmul.mubr.bf16.gmra.mrb[4].mxu0 %v10694_v39  ;;  %3773 = vmatpush1.bf16.msra.mxu1 %v12299_v49  ;;  %v10788_v39 = vld [vmem:[%s15242_s0 + $0x40] sm:$0xff] }
 0x1e2   : > { %8734 = vmatpush1.bf16.msra.mxu0 %v12302_v50  ;;  %3774 = vmatprep.subr.bf16.mxu1 %v12307_v8  ;;  %v14519_v49 = vld [vmem:[%s15242_s0 + $0x640] sm:$0xff]  ;;  %v14524_v50 = vld [vmem:[%s15242_s0 + $0x408] sm:$0xff] }
 0x1e3   : > { %8735 = vmatprep.subr.bf16.mxu0 %v12310_v47  ;;  %3707 = vmatprep.mubr.bf16.mxu1 %v9897_v14  ;;  %v14529_v8 = vld [vmem:[%s15242_s0 + $0x428] sm:$0xff]  ;;  %v7769_v47 = vshrl.u32 %v10784_v38, 16  ;;  %v7772_v14 = vshll.u32 %v10784_v38, 16  ;;  %v9913_v58 = vcombine.high %v14514_v41, %v14519_v49  ;;  %v12368_v38 = vld [vmem:[%s12585_s6 + $0x10d0] ss:$8 sps:$4 sm:$0xff]  }
 0x1e4   : > { %7611 = vmatprep.mubr.bf16.mxu0 %v10699_v22  ;;  %v7797_v22 = vshrl.u32 %v10788_v39, 16  ;;  %v10715_v31 = vcombine.high %v14524_v50, %v14529_v8  ;;  %v10714_v62 = vcombine.low %v14524_v50, %v14529_v8  ;;  %v12376_v50 = vld [vmem:[%s12585_s6 + $0x10e4] ss:$8 sps:$4 sm:$0xff]  }
 0x1e5   : > { %3775 = vmatpush1.bf16.msra.mxu1 %v12305_v42  ;;  %v7800_v42 = vshll.u32 %v10788_v39, 16  ;;  %v12373_v39 = vld [vmem:[%s12585_s6 + $0x7e4] ss:$8 sps:$4 sm:$0xff]  }
 0x1e6   : > { %8736 = vmatpush1.bf16.msra.mxu0 %v12308_v12  ;;  %3776 = vmatprep.subr.bf16.mxu1 %v12313_v46  ;;  %v12347_v12 = vld [vmem:[%s12585_s6 + $0x7a0] ss:$8 sps:$4 sm:$0xff]  }
 0x1e7   : > { %8737 = vmatprep.subr.bf16.mxu0 %v12316_v59  ;;  %v12350_v46 = vld [vmem:[%s12585_s6 + $0x10a0] ss:$8 sps:$4 sm:$0xff]   ;;  %v12355_v59 = vld [vmem:[%s12585_s6 + $0x7b4] ss:$8 sps:$4 sm:$0xff]  }
 0x1e8   : > { %3708 = vmatmul.mubr.bf16.gmra.mrb[8].mxu1 %v9896_v55  ;;  %v10796_v55 = vld [vmem:[%s15242_s0 + $0x80] sm:$0xff] }
 0x1e9   : > { %7612 = vmatmul.mubr.bf16.gmra.mrb[8].mxu0 %v10698_v56  ;;  %3777 = vmatpush1.bf16.msra.mxu1 %v12311_v53  ;;  %v12358_v53 = vld [vmem:[%s12585_s6 + $0x10b4] ss:$8 sps:$4 sm:$0xff]   ;;  %v12353_v56 = vld [vmem:[%s12585_s6 + $0x7b0] ss:$8 sps:$4 sm:$0xff]  }
 0x1ea   : > { %8738 = vmatpush1.bf16.msra.mxu0 %v12314_v40  ;;  %3778 = vmatprep.subr.bf16.mxu1 %v12319_v61  ;;  %v10786_v40 = vld [vmem:[%s15242_s0 + $0x30] sm:$0x11] }
 0x1eb   : > { %8739 = vmatprep.subr.bf16.mxu0 %v12322_v4  ;;  %3717 = vmatprep.mubr.bf16.mxu1 %v9901_v43  ;;  %v10790_v61 = vld [vmem:[%s15242_s0 + $0x50] sm:$0x11]  ;;  %v7771_v4 = vrot.slane %v7769_v47, 4  ;;  %v7774_v43 = vrot.slane %v7772_v14, 5 }
 0x1ec   : > { %7621 = vmatprep.mubr.bf16.mxu0 %v10703_v28  ;;  %v7799_v28 = vrot.slane %v7797_v22, 4  ;;  %v7806_v2 = vshll.u32 %v10790_v61, 16 }
 0x1ed   : > { %3779 = vmatpush1.bf16.msra.mxu1 %v12317_v7  ;;  %v7802_v7 = vrot.slane %v7800_v42, 5  ;;  %v12371_v42 = vld [vmem:[%s12585_s6 + $0x7e0] ss:$8 sps:$4 sm:$0xff]  }
 0x1ee   : > { %8740 = vmatpush1.bf16.msra.mxu0 %v12320_v9  ;;  %3780 = vmatprep.subr.bf16.mxu1 %v12325_v10  ;;  %v7825_v9 = vshrl.u32 %v10792_v54, 16  ;;  %v7828_v10 = vshll.u32 %v10792_v54, 16  ;;  %v12379_v54 = vld [vmem:[%s12585_s6 + $0x7f4] ss:$8 sps:$4 sm:$0xff]  }
 0x1ef   : > { %8741 = vmatprep.subr.bf16.mxu0 %v12328_v11  ;;  %v7853_v11 = vshrl.u32 %v10796_v55, 16 }
 0x1f0   : > { %3718 = vmatmul.mubr.bf16.gmra.mrb[12].mxu1 %v9900_v17  ;;  %v12364_v17 = vld [vmem:[%s12585_s6 + $0x10c4] ss:$8 sps:$4 sm:$0xff]   ;;  %v7830_v32 = vrot.slane %v7828_v10, 5 }
 0x1f1   : > { %7622 = vmatmul.mubr.bf16.gmra.mrb[12].mxu0 %v10702_v23  ;;  %3781 = vmatpush1.bf16.msra.mxu1 %v12323_v16  ;;  %v7856_v16 = vshll.u32 %v10796_v55, 16  ;;  %v9912_v23 = vcombine.low %v14514_v41, %v14519_v49  ;;  %v7855_v51 = vrot.slane %v7853_v11, 4  ;;  %v14618_v55 = vld [vmem:[%s15242_s0 + $0x4a8] sm:$0xff]  ;;  %v12377_v11 = vld [vmem:[%s12585_s6 + $0x7f0] ss:$8 sps:$4 sm:$0xff]  }
 0x1f2   : > { %8742 = vmatpush1.bf16.msra.mxu0 %v12326_v18  ;;  %3782 = vmatprep.subr.bf16.mxu1 %v12331_v13  ;;  %v14564_v18 = vld [vmem:[%s15242_s0 + $0x660] sm:$0xff] }
 0x1f3   : > { %8743 = vmatprep.subr.bf16.mxu0 %v12334_v44  ;;  %3727 = vmatprep.mubr.bf16.mxu1 %v9905_v24  ;;  %v14569_v13 = vld [vmem:[%s15242_s0 + $0x680] sm:$0xff]  ;;  %v12367_v44 = vld [vmem:[%s12585_s6 + $0x7d4] ss:$8 sps:$4 sm:$0xff]   ;;  %v7858_v3 = vrot.slane %v7856_v16, 5  ;;  %v12380_v16 = vld [vmem:[%s12585_s6 + $0x10f0] ss:$8 sps:$4 sm:$0xff]  }
 0x1f4   : > { %7631 = vmatprep.mubr.bf16.mxu0 %v10707_v25  ;;  %v12370_v24 = vld [vmem:[%s12585_s6 + $0x10d4] ss:$8 sps:$4 sm:$0xff]   ;;  %v14576_v25 = vld [vmem:[%s15242_s0 + $0x448] sm:$0xff] }
 0x1f5   : > { %3783 = vmatpush1.bf16.msra.mxu1 %v12329_v26  ;;  %v14581_v26 = vld [vmem:[%s15242_s0 + $0x468] sm:$0xff] }
 0x1f6   : > { %8744 = vmatpush1.bf16.msra.mxu0 %v12332_v27  ;;  %3784 = vmatprep.subr.bf16.mxu1 %v12337_v0  ;;  %v7775_v27 = vor.u32 %v7774_v43, %v7771_v4  ;;  %v7778_v0 = vshll.u32 %v10786_v40, 16  ;;  %v10802_v43 = vld [vmem:[%s15242_s0 + $0xb0] sm:$0x11] }
 0x1f7   : > { %8745 = vmatprep.subr.bf16.mxu0 %v12340_v1  ;;  %v7803_v1 = vor.u32 %v7802_v7, %v7799_v28 }
 0x1f8   : > { %3728 = vmatmul.mubr.bf16.gmra.mrb[16].mxu1 %v9904_v5  ;;  %v10794_v5 = vld [vmem:[%s15242_s0 + $0x70] sm:$0x11] }
 0x1f9   : > { %7632 = vmatmul.mubr.bf16.gmra.mrb[16].mxu0 %v10706_v6  ;;  %3785 = vmatpush1.bf16.msra.mxu1 %v12335_v30  ;;  %v7827_v6 = vrot.slane %v7825_v9, 4  ;;  %v10798_v30 = vld [vmem:[%s15242_s0 + $0x90] sm:$0x11] }
 0x1fa   : > { %8746 = vmatpush1.bf16.msra.mxu0 %v12338_v33  ;;  %3786 = vmatprep.subr.bf16.mxu1 %v12343_v34  ;;  %v10800_v33 = vld [vmem:[%s15242_s0 + $0xa0] sm:$0xff]  ;;  %v7862_v49 = vshll.u32 %v10798_v30, 16 }
 0x1fb   : > { %8747 = vmatprep.subr.bf16.mxu0 %v12346_v60  ;;  %3737 = vmatprep.mubr.bf16.mxu1 %v9909_v63  ;;  %v10804_v34 = vld [vmem:[%s15242_s0 + $0xc0] sm:$0xff]  ;;  %v12365_v60 = vld [vmem:[%s12585_s6 + $0x7d0] ss:$8 sps:$4 sm:$0xff]   ;;  %v7776_v63 = vrot.slane %v7775_v27, 4  ;;  %v7831_v41 = vor.u32 %v7830_v32, %v7827_v6  ;;  %v7881_v8 = vshrl.u32 %v10800_v33, 16  ;;  %v7884_v47 = vshll.u32 %v10800_v33, 16 }
 0x1fc   : > { %7641 = vmatprep.mubr.bf16.mxu0 %v10711_v36  ;;  %v7780_v36 = vrot.slane %v7778_v0, 5  ;;  %v7909_v14 = vshrl.u32 %v10804_v34, 16  ;;  %v7912_v22 = vshll.u32 %v10804_v34, 16  ;;  %v7864_v4 = vrot.slane %v7862_v49, 5  ;;  %v12383_v30 = vld [vmem:[%s12585_s6 + $0x800] ss:$8 sps:$4 sm:$0xff]  }
 0x1fd   : > { %3787 = vmatpush1.bf16.msra.mxu1 %v12341_v20  ;;  %v9917_v20 = vcombine.high %v14564_v18, %v14569_v13  ;;  %v7883_v28 = vrot.slane %v7881_v8, 4  ;;  %v7886_v7 = vrot.slane %v7884_v47, 5  ;;  %v12386_v33 = vld [vmem:[%s12585_s6 + $0x1100] ss:$8 sps:$4 sm:$0xff]   ;;  %v12391_v34 = vld [vmem:[%s12585_s6 + $0x814] ss:$8 sps:$4 sm:$0xff]  }
 0x1fe   : > { %8748 = vmatpush1.bf16.msra.mxu0 %v12344_v35  ;;  %3788 = vmatprep.subr.bf16.mxu1 %v12349_v37  ;;  %v10719_v35 = vcombine.high %v14576_v25, %v14581_v26  ;;  %v7804_v37 = vrot.slane %v7803_v1, 4  ;;  %v7911_v9 = vrot.slane %v7909_v14, 4  ;;  %v7914_v10 = vrot.slane %v7912_v22, 5  ;;  %v12397_v14 = vld [vmem:[%s12585_s6 + $0x824] ss:$8 sps:$4 sm:$0xff]  }
 0x1ff   : > { %8749 = vmatprep.subr.bf16.mxu0 %v12352_v15  ;;  %v7808_v15 = vrot.slane %v7806_v2, 5  ;;  %v7887_v27 = vor.u32 %v7886_v7, %v7883_v28  ;;  %v10816_v22 = vld [vmem:[%s15242_s0 + $0x140] sm:$0xff] }
 0x200   : > { %3738 = vmatmul.mubr.bf16.gmra.mrb[20].mxu1 %v9908_v45  ;;  %v7834_v45 = vshll.u32 %v10794_v5, 16  ;;  %v7915_v0 = vor.u32 %v7914_v10, %v7911_v9  ;;  %v12398_v7 = vld [vmem:[%s12585_s6 + $0x1120] ss:$8 sps:$4 sm:$0xff]   ;;  %v12403_v9 = vld [vmem:[%s12585_s6 + $0x834] ss:$8 sps:$4 sm:$0xff]  }
 0x201   : > { %7642 = vmatmul.mubr.bf16.gmra.mrb[20].mxu0 %v10710_v48  ;;  %3789 = vmatpush1.bf16.msra.mxu1 %v12347_v12  ;;  %v7859_v48 = vor.u32 %v7858_v3, %v7855_v51  ;;  %v12374_v12 = vld [vmem:[%s12585_s6 + $0x10e0] ss:$8 sps:$4 sm:$0xff]   ;;  %v12406_v10 = vld [vmem:[%s12585_s6 + $0x1134] ss:$8 sps:$4 sm:$0xff]  }
 0x202   : > { %8750 = vmatpush1.bf16.msra.mxu0 %v12350_v46  ;;  %3790 = vmatprep.subr.bf16.mxu1 %v12355_v59  ;;  %v14608_v46 = vld [vmem:[%s15242_s0 + $0x488] sm:$0xff]  ;;  %v9916_v59 = vcombine.low %v14564_v18, %v14569_v13  ;;  %v7836_v40 = vrot.slane %v7834_v45, 5  ;;  %v7890_v13 = vshll.u32 %v10802_v43, 16  ;;  %v10814_v45 = vld [vmem:[%s15242_s0 + $0x110] sm:$0x11] }
 0x203   : > { %8751 = vmatprep.subr.bf16.mxu0 %v12358_v53  ;;  %3747 = vmatprep.mubr.bf16.mxu1 %v9913_v58  ;;  %v10718_v53 = vcombine.low %v14576_v25, %v14581_v26  ;;  %v12382_v58 = vld [vmem:[%s12585_s6 + $0x10f4] ss:$8 sps:$4 sm:$0xff]   ;;  %v7860_v61 = vrot.slane %v7859_v48, 4  ;;  %v14661_v25 = vld [vmem:[%s15242_s0 + $0x4e8] sm:$0xff]  ;;  %v9890_v51 = vcombine.low %v14608_v46, %v14618_v55 }
 0x204   : > { %7651 = vmatprep.mubr.bf16.mxu0 %v10715_v31  ;;  %v7832_v31 = vrot.slane %v7831_v41, 4  ;;  %v12392_v41 = vld [vmem:[%s12585_s6 + $0x1110] ss:$8 sps:$4 sm:$0xff]  }
 0x205   : > { %3791 = vmatpush1.bf16.msra.mxu1 %v12353_v56  ;;  %v14622_v56 = vsel %vm12846_vm2, %v7776_v63, %v7780_v36  ;;  %v14665_v26 = vsel %vm12846_vm2, %v7860_v61, %v7864_v4  ;;  %v7888_v63 = vrot.slane %v7887_v27, 4  ;;  %v7892_v36 = vrot.slane %v7890_v13, 5 }
 0x206   : > { %8752 = vmatpush1.bf16.msra.mxu0 %v12356_v57  ;;  %3792 = vmatprep.subr.bf16.mxu1 %v12361_v21  ;;  %v14626_v57 = vsel %vm12846_vm2, %v7804_v37, %v7808_v15  ;;  %v9891_v21 = vcombine.high %v14608_v46, %v14618_v55  ;;  %v14650_v18 = vsel %vm12846_vm2, %v7832_v31, %v7836_v40  ;;  %v7916_v37 = vrot.slane %v7915_v0, 4  ;;  %v12400_v46 = vld [vmem:[%s12585_s6 + $0x1124] ss:$8 sps:$4 sm:$0xff]   ;;  %v10822_v0 = vld [vmem:[%s15242_s0 + $0x170] sm:$0x11] }
 0x207   : > { %8753 = vmatprep.subr.bf16.mxu0 %v12364_v17  ;;  %v10913_v17 = vcombine.high %v14622_v56, %v14626_v57  ;;  %v10912_v3 = vcombine.low %v14622_v56, %v14626_v57  ;;  %v14711_v55 = vld [vmem:[%s15242_s0 + $0x508] sm:$0xff]  ;;  %v7974_v40 = vshll.u32 %v10814_v45, 16  ;;  %v7993_v61 = vshrl.u32 %v10816_v22, 16 }
 0x208   : > { %3748 = vmatmul.mubr.bf16.gmra.mrb[24].mxu1 %v9912_v23  ;;  %v10806_v23 = vld [vmem:[%s15242_s0 + $0xd0] sm:$0x11]  ;;  %v14716_v56 = vld [vmem:[%s15242_s0 + $0x528] sm:$0xff]  ;;  %v7996_v4 = vshll.u32 %v10816_v22, 16 }
 0x209   : > { %7652 = vmatmul.mubr.bf16.gmra.mrb[24].mxu0 %v10714_v62  ;;  %3793 = vmatpush1.bf16.msra.mxu1 %v12359_v29  ;;  %v10808_v29 = vld [vmem:[%s15242_s0 + $0xe0] sm:$0xff]  ;;  %v7918_v1 = vshll.u32 %v10806_v23, 16  ;;  %v12401_v23 = vld [vmem:[%s12585_s6 + $0x830] ss:$8 sps:$4 sm:$0xff]   ;;  %v7976_v13 = vrot.slane %v7974_v40, 5 }
 0x20a   : > { %8754 = vmatpush1.bf16.msra.mxu0 %v12362_v52  ;;  %3794 = vmatprep.subr.bf16.mxu1 %v12367_v44  ;;  %v10812_v62 = vld [vmem:[%s15242_s0 + $0x100] sm:$0xff]  ;;  %v7937_v2 = vshrl.u32 %v10808_v29, 16  ;;  %v7940_v5 = vshll.u32 %v10808_v29, 16  ;;  %v12404_v29 = vld [vmem:[%s12585_s6 + $0x1130] ss:$8 sps:$4 sm:$0xff]  }
 0x20b   : > { %8755 = vmatprep.subr.bf16.mxu0 %v12370_v24  ;;  %3757 = vmatprep.mubr.bf16.mxu1 %v9917_v20  ;;  %v12385_v52 = vld [vmem:[%s12585_s6 + $0x804] ss:$8 sps:$4 sm:$0xff]   ;;  %v7965_v6 = vshrl.u32 %v10812_v62, 16  ;;  %v7968_v32 = vshll.u32 %v10812_v62, 16  ;;  %v7920_v15 = vrot.slane %v7918_v1, 5 }
 0x20c   : > { %7661 = vmatprep.mubr.bf16.mxu0 %v10719_v35  ;;  %v12388_v44 = vld [vmem:[%s12585_s6 + $0x1104] ss:$8 sps:$4 sm:$0xff]   ;;  %v10917_v35 = vcombine.high %v14650_v18, %v14665_v26  ;;  %v7939_v48 = vrot.slane %v7937_v2, 4  ;;  %v7942_v49 = vrot.slane %v7940_v5, 5 }
 0x20d   : > { %3795 = vmatpush1.bf16.msra.mxu1 %v12365_v60  ;;  %v14656_v24 = vld [vmem:[%s15242_s0 + $0x4c8] sm:$0xff]  ;;  %v12394_v60 = vld [vmem:[%s12585_s6 + $0x1114] ss:$8 sps:$4 sm:$0xff]   ;;  %v7970_v8 = vrot.slane %v7968_v32, 5  ;;  %v9898_v32 = vcombine.low %v14711_v55, %v14716_v56 }
 0x20e   : > { %8756 = vmatpush1.bf16.msra.mxu0 %v12368_v38  ;;  %3796 = vmatprep.subr.bf16.mxu1 %v12373_v39  ;;  %v9895_v20 = vcombine.high %v14656_v24, %v14661_v25  ;;  %v10810_v38 = vld [vmem:[%s15242_s0 + $0xf0] sm:$0x11]  ;;  %v9894_v47 = vcombine.low %v14656_v24, %v14661_v25  ;;  %v7943_v57 = vor.u32 %v7942_v49, %v7939_v48  ;;  %v7995_v24 = vrot.slane %v7993_v61, 4 }
 0x20f   : > { %8757 = vmatprep.subr.bf16.mxu0 %v12376_v50  ;;  %v12389_v39 = vld [vmem:[%s12585_s6 + $0x810] ss:$8 sps:$4 sm:$0xff]   ;;  %v7967_v50 = vrot.slane %v7965_v6, 4  ;;  %v7998_v25 = vrot.slane %v7996_v4, 5  ;;  %v12424_v4 = vld [vmem:[%s12585_s6 + $0x1164] ss:$8 sps:$4 sm:$0xff]  }
 0x210   : > { %3758 = vmatmul.mubr.bf16.gmra.mrb[28].mxu1 %v9916_v59  ;;  %v14701_v59 = vsel %vm12846_vm2, %v7888_v63, %v7892_v36  ;;  %v7944_v62 = vrot.slane %v7943_v57, 4  ;;  %v14763_v63 = vld [vmem:[%s15242_s0 + $0x568] sm:$0xff] }
 0x211   : > { %7662 = vmatmul.mubr.bf16.gmra.mrb[28].mxu0 %v10718_v53  ;;  %3797 = vmatpush1.bf16.msra.mxu1 %v12371_v42  ;;  %v10820_v42 = vld [vmem:[%s15242_s0 + $0x160] sm:$0xff]  ;;  %v14705_v53 = vsel %vm12846_vm2, %v7916_v37, %v7920_v15  ;;  %v7971_v31 = vor.u32 %v7970_v8, %v7967_v50  ;;  %v7999_v36 = vor.u32 %v7998_v25, %v7995_v24  ;;  %v12418_v50 = vld [vmem:[%s12585_s6 + $0x1154] ss:$8 sps:$4 sm:$0xff]  }
 0x212   : > { %8758 = vmatpush1.bf16.msra.mxu0 %v12374_v12  ;;  %3798 = vmatprep.subr.bf16.mxu1 %v12379_v54  ;;  %v10916_v12 = vcombine.low %v14650_v18, %v14665_v26  ;;  %v12395_v54 = vld [vmem:[%s12585_s6 + $0x820] ss:$8 sps:$4 sm:$0xff]   ;;  %v8021_v43 = vshrl.u32 %v10820_v42, 16  ;;  %v8024_v28 = vshll.u32 %v10820_v42, 16  ;;  %v10826_v8 = vld [vmem:[%s15242_s0 + $0x190] sm:$0x11] }
 0x213   : > { %8759 = vmatprep.subr.bf16.mxu0 %v12382_v58  ;;  %3800 = vmatprep.mubr.bf16.mxu1 %v9891_v21  ;;  %v7946_v58 = vshll.u32 %v10810_v38, 16  ;;  %v10824_v21 = vld [vmem:[%s15242_s0 + $0x180] sm:$0xff]  ;;  %v7972_v18 = vrot.slane %v7971_v31, 4  ;;  %v8030_v38 = vshll.u32 %v10822_v0, 16  ;;  %v8058_v31 = vshll.u32 %v10826_v8, 16 }
 0x214   : > { %8761 = vmatprep.mubr.bf16.mxu0 %v10913_v17  ;;  %v10828_v17 = vld [vmem:[%s15242_s0 + $0x1a0] sm:$0xff]  ;;  %v8023_v26 = vrot.slane %v8021_v43, 4  ;;  %v8026_v27 = vrot.slane %v8024_v28, 5  ;;  %v8049_v1 = vshrl.u32 %v10824_v21, 16  ;;  %v8052_v2 = vshll.u32 %v10824_v21, 16 }
 0x215   : > { %3799 = vmatpush1.bf16.msra.mxu1 %v12377_v11  ;;  %v9899_v11 = vcombine.high %v14711_v55, %v14716_v56  ;;  %v8077_v5 = vshrl.u32 %v10828_v17, 16  ;;  %v8080_v6 = vshll.u32 %v10828_v17, 16  ;;  %v10832_v42 = vld [vmem:[%s15242_s0 + $0x1c0] sm:$0xff]  ;;  %v8032_v55 = vrot.slane %v8030_v38, 5  ;;  %v12416_v56 = vld [vmem:[%s12585_s6 + $0x1150] ss:$8 sps:$4 sm:$0xff]  }
 0x216   : > { %8760 = vmatpush1.bf16.msra.mxu0 %v12380_v16  ;;  %4491 = vmatprep.subr.bf16.mxu1 %v12385_v52  ;;  %v10921_v16 = vcombine.high %v14701_v59, %v14705_v53  ;;  %v7948_v52 = vrot.slane %v7946_v58, 5  ;;  %v8027_v15 = vor.u32 %v8026_v27, %v8023_v26  ;;  %v8054_v45 = vrot.slane %v8052_v2, 5  ;;  %v12421_v57 = vld [vmem:[%s12585_s6 + $0x864] ss:$8 sps:$4 sm:$0xff]   ;;  %v12422_v21 = vld [vmem:[%s12585_s6 + $0x1160] ss:$8 sps:$4 sm:$0xff]  }
 0x217   : > { %8842 = vmatprep.subr.bf16.mxu0 %v12388_v44  ;;  %v10818_v44 = vld [vmem:[%s15242_s0 + $0x150] sm:$0x11]  ;;  %v8079_v48 = vrot.slane %v8077_v5, 4  ;;  %v8082_v49 = vrot.slane %v8080_v6, 5  ;;  %v8105_v43 = vshrl.u32 %v10832_v42, 16  ;;  %v8108_v28 = vshll.u32 %v10832_v42, 16 }
 0x218   : > { %3801 = vmatmul.mubr.bf16.vlgmr.msra.gmra.mrb[0].mxu1 %v9890_v51  ;;  %v12409_v51 = vld [vmem:[%s12585_s6 + $0x844] ss:$8 sps:$4 sm:$0xff]   ;;  %v8002_v37 = vshll.u32 %v10818_v44, 16  ;;  %v12430_v25 = vld [vmem:[%s12585_s6 + $0x1174] ss:$8 sps:$4 sm:$0xff]  }
 0x219   : > { %8762 = vmatmul.mubr.bf16.vlgmr.msra.gmra.mrb[0].mxu0 %v10912_v3  ;;  %4492 = vmatpush1.bf16.msra.mxu1 %v12383_v30  ;;  %v12412_v3 = vld [vmem:[%s12585_s6 + $0x1144] ss:$8 sps:$4 sm:$0xff]   ;;  %v12407_v30 = vld [vmem:[%s12585_s6 + $0x840] ss:$8 sps:$4 sm:$0xff]   ;;  %v8083_v40 = vor.u32 %v8082_v49, %v8079_v48  ;;  %v8107_v26 = vrot.slane %v8105_v43, 4  ;;  %v8110_v27 = vrot.slane %v8108_v28, 5 }
 0x21a   : > { %8843 = vmatpush1.bf16.msra.mxu0 %v12386_v33  ;;  %4493 = vmatprep.subr.bf16.mxu1 %v12391_v34  ;;  %v10920_v33 = vcombine.low %v14701_v59, %v14705_v53  ;;  %v14748_v34 = vsel %vm12846_vm2, %v7944_v62, %v7948_v52  ;;  %v8000_v59 = vrot.slane %v7999_v36, 4  ;;  %v8004_v53 = vrot.slane %v8002_v37, 5  ;;  %v14796_v17 = vld [vmem:[%s15242_s0 + $0x5a8] sm:$0xff]  ;;  %v12427_v52 = vld [vmem:[%s12585_s6 + $0x874] ss:$8 sps:$4 sm:$0xff]  }
 0x21b   : > { %8844 = vmatprep.subr.bf16.mxu0 %v12394_v60  ;;  %3810 = vmatprep.mubr.bf16.mxu1 %v9895_v20  ;;  %v14752_v60 = vsel %vm12846_vm2, %v7972_v18, %v7976_v13  ;;  %v12410_v20 = vld [vmem:[%s12585_s6 + $0x1140] ss:$8 sps:$4 sm:$0xff]   ;;  %v8060_v13 = vrot.slane %v8058_v31, 5  ;;  %v8084_v44 = vrot.slane %v8083_v40, 4  ;;  %v10834_v6 = vld [vmem:[%s15242_s0 + $0x1d0] sm:$0x11]  ;;  %v8111_v37 = vor.u32 %v8110_v27, %v8107_v26 }
 0x21c   : > { %8771 = vmatprep.mubr.bf16.mxu0 %v10917_v35  ;;  %v14758_v35 = vld [vmem:[%s15242_s0 + $0x548] sm:$0xff]  ;;  %v10925_v22 = vcombine.high %v14748_v34, %v14752_v60  ;;  %v12437_v40 = vld [vmem:[%s12585_s6 + $0x890] ss:$8 sps:$4 sm:$0xff]  }
 0x21d   : > { %4494 = vmatpush1.bf16.msra.mxu1 %v12389_v39  ;;  %v12415_v39 = vld [vmem:[%s12585_s6 + $0x854] ss:$8 sps:$4 sm:$0xff]   ;;  %v14849_v36 = vld [vmem:[%s15242_s0 + $0x608] sm:$0xff]  ;;  %v12440_v43 = vld [vmem:[%s12585_s6 + $0x1190] ss:$8 sps:$4 sm:$0xff]  }
 0x21e   : > { %8845 = vmatpush1.bf16.msra.mxu0 %v12392_v41  ;;  %4495 = vmatprep.subr.bf16.mxu1 %v12397_v14  ;;  %v8051_v41 = vrot.slane %v8049_v1, 4  ;;  %v9903_v14 = vcombine.high %v14758_v35, %v14763_v63  ;;  %v12443_v27 = vld [vmem:[%s12585_s6 + $0x8a0] ss:$8 sps:$4 sm:$0xff]  }
 0x21f   : > { %8846 = vmatprep.subr.bf16.mxu0 %v12400_v46  ;;  %v12413_v46 = vld [vmem:[%s12585_s6 + $0x850] ss:$8 sps:$4 sm:$0xff]  }
 0x220   : > { %3811 = vmatmul.mubr.bf16.gmra.mrb[4].mxu1 %v9894_v47  ;;  %v10830_v47 = vld [vmem:[%s15242_s0 + $0x1b0] sm:$0x11]  ;;  %v8055_v58 = vor.u32 %v8054_v45, %v8051_v41 }
 0x221   : > { %8772 = vmatmul.mubr.bf16.gmra.mrb[4].mxu0 %v10916_v12  ;;  %4496 = vmatpush1.bf16.msra.mxu1 %v12395_v54  ;;  %v10836_v12 = vld [vmem:[%s15242_s0 + $0x1e0] sm:$0xff]  ;;  %v8028_v54 = vrot.slane %v8027_v15, 4  ;;  %v8086_v61 = vshll.u32 %v10830_v47, 16  ;;  %v8114_v15 = vshll.u32 %v10834_v6, 16 }
 0x222   : > { %8847 = vmatpush1.bf16.msra.mxu0 %v12398_v7  ;;  %4497 = vmatprep.subr.bf16.mxu1 %v12403_v9  ;;  %v8133_v7 = vshrl.u32 %v10836_v12, 16  ;;  %v8136_v9 = vshll.u32 %v10836_v12, 16  ;;  %v8056_v18 = vrot.slane %v8055_v58, 4  ;;  %v12431_v47 = vld [vmem:[%s12585_s6 + $0x880] ss:$8 sps:$4 sm:$0xff]  }
 0x223   : > { %8848 = vmatprep.subr.bf16.mxu0 %v12406_v10  ;;  %3820 = vmatprep.mubr.bf16.mxu1 %v9899_v11  ;;  %v12419_v10 = vld [vmem:[%s12585_s6 + $0x860] ss:$8 sps:$4 sm:$0xff]   ;;  %v9902_v11 = vcombine.low %v14758_v35, %v14763_v63  ;;  %v14809_v62 = vsel %vm12846_vm2, %v8028_v54, %v8032_v55  ;;  %v8088_v24 = vrot.slane %v8086_v61, 5  ;;  %v12436_v35 = vld [vmem:[%s12585_s6 + $0x1184] ss:$8 sps:$4 sm:$0xff]  }
 0x224   : > { %8781 = vmatprep.mubr.bf16.mxu0 %v10921_v16  ;;  %v10924_v16 = vcombine.low %v14748_v34, %v14752_v60  ;;  %v8135_v0 = vrot.slane %v8133_v7, 4  ;;  %v8138_v1 = vrot.slane %v8136_v9, 5  ;;  %v12433_v34 = vld [vmem:[%s12585_s6 + $0x884] ss:$8 sps:$4 sm:$0xff]   ;;  %v14834_v60 = vsel %vm12846_vm2, %v8056_v18, %v8060_v13  ;;  %v10842_v61 = vld [vmem:[%s15242_s0 + $0x210] sm:$0x11] }
 0x225   : > { %4498 = vmatpush1.bf16.msra.mxu1 %v12401_v23  ;;  %v14801_v23 = vld [vmem:[%s15242_s0 + $0x5c8] sm:$0xff] }
 0x226   : > { %8849 = vmatpush1.bf16.msra.mxu0 %v12404_v29  ;;  %4499 = vmatprep.subr.bf16.mxu1 %v12409_v51  ;;  %v14805_v29 = vsel %vm12846_vm2, %v8000_v59, %v8004_v53  ;;  %v9907_v2 = vcombine.high %v14796_v17, %v14801_v23  ;;  %v10840_v51 = vld [vmem:[%s15242_s0 + $0x200] sm:$0xff]  ;;  %v14844_v63 = vld [vmem:[%s15242_s0 + $0x5e8] sm:$0xff]  ;;  %v8139_v38 = vor.u32 %v8138_v1, %v8135_v0  ;;  %v8112_v59 = vrot.slane %v8111_v37, 4  ;;  %v12451_v1 = vld [vmem:[%s12585_s6 + $0x8b4] ss:$8 sps:$4 sm:$0xff]  }
 0x227   : > { %8850 = vmatprep.subr.bf16.mxu0 %v12412_v3  ;;  %v10929_v5 = vcombine.high %v14805_v29, %v14809_v62  ;;  %v10844_v3 = vld [vmem:[%s15242_s0 + $0x220] sm:$0xff]  ;;  %v8161_v41 = vshrl.u32 %v10840_v51, 16  ;;  %v8164_v45 = vshll.u32 %v10840_v51, 16  ;;  %v10928_v8 = vcombine.low %v14805_v29, %v14809_v62  ;;  %v10785_v7 = vld [vmem:[%s15242_s0 + $0x28] sm:$0xff] }
 0x228   : > { %3821 = vmatmul.mubr.bf16.gmra.mrb[8].mxu1 %v9898_v32  ;;  %v10838_v32 = vld [vmem:[%s15242_s0 + $0x1f0] sm:$0x11]  ;;  %v8189_v48 = vshrl.u32 %v10844_v3, 16  ;;  %v8192_v49 = vshll.u32 %v10844_v3, 16  ;;  %v9911_v42 = vcombine.high %v14844_v63, %v14849_v36  ;;  %v8116_v53 = vrot.slane %v8114_v15, 5  ;;  %v10789_v9 = vld [vmem:[%s15242_s0 + $0x48] sm:$0xff] }
 0x229   : > { %8782 = vmatmul.mubr.bf16.gmra.mrb[8].mxu0 %v10920_v33  ;;  %4500 = vmatpush1.bf16.msra.mxu1 %v12407_v30  ;;  %v12425_v30 = vld [vmem:[%s12585_s6 + $0x870] ss:$8 sps:$4 sm:$0xff]   ;;  %v8140_v54 = vrot.slane %v8139_v38, 4  ;;  %v9910_v28 = vcombine.low %v14844_v63, %v14849_v36  ;;  %v14899_v29 = vld [vmem:[%s15242_s0 + $0x648] sm:$0xff]  ;;  %v7814_v26 = vshll.u32 %v10789_v9, 16 }
 0x22a   : > { %8851 = vmatpush1.bf16.msra.mxu0 %v12410_v20  ;;  %4501 = vmatprep.subr.bf16.mxu1 %v12415_v39  ;;  %v12428_v33 = vld [vmem:[%s12585_s6 + $0x1170] ss:$8 sps:$4 sm:$0xff]   ;;  %v14838_v20 = vsel %vm12846_vm2, %v8084_v44, %v8088_v24  ;;  %v8142_v39 = vshll.u32 %v10838_v32, 16  ;;  %v8191_v58 = vrot.slane %v8189_v48, 4  ;;  %v8194_v31 = vrot.slane %v8192_v49, 5  ;;  %v10793_v32 = vld [vmem:[%s15242_s0 + $0x68] sm:$0xff] }
 0x22b   : > { %8852 = vmatprep.subr.bf16.mxu0 %v12418_v50  ;;  %3830 = vmatprep.mubr.bf16.mxu1 %v9903_v14  ;;  %v9906_v50 = vcombine.low %v14796_v17, %v14801_v23  ;;  %v12434_v14 = vld [vmem:[%s12585_s6 + $0x1180] ss:$8 sps:$4 sm:$0xff]   ;;  %v10933_v12 = vcombine.high %v14834_v60, %v14838_v20  ;;  %v7783_v44 = vshrl.u32 %v10785_v7, 16  ;;  %v7786_v24 = vshll.u32 %v10785_v7, 16  ;;  %v12449_v3 = vld [vmem:[%s12585_s6 + $0x8b0] ss:$8 sps:$4 sm:$0xff]  }
 0x22c   : > { %8791 = vmatprep.mubr.bf16.mxu0 %v10925_v22  ;;  %v12439_v22 = vld [vmem:[%s12585_s6 + $0x894] ss:$8 sps:$4 sm:$0xff]   ;;  %v8144_v55 = vrot.slane %v8142_v39, 5  ;;  %v14894_v23 = vld [vmem:[%s15242_s0 + $0x628] sm:$0xff]  ;;  %v8195_v18 = vor.u32 %v8194_v31, %v8191_v58  ;;  %v7816_v15 = vrot.slane %v7814_v26, 5  ;;  %v7839_v39 = vshrl.u32 %v10793_v32, 16 }
 0x22d   : > { %4502 = vmatpush1.bf16.msra.mxu1 %v12413_v46  ;;  %v12442_v46 = vld [vmem:[%s12585_s6 + $0x1194] ss:$8 sps:$4 sm:$0xff]   ;;  %v12446_v0 = vld [vmem:[%s12585_s6 + $0x11a0] ss:$8 sps:$4 sm:$0xff]   ;;  %v7785_v63 = vrot.slane %v7783_v44, 4  ;;  %v7788_v36 = vrot.slane %v7786_v24, 5 }
 0x22e   : > { %8853 = vmatpush1.bf16.msra.mxu0 %v12416_v56  ;;  %4503 = vmatprep.subr.bf16.mxu1 %v12421_v57  ;;  %v8163_v56 = vrot.slane %v8161_v41, 4  ;;  %v8166_v57 = vrot.slane %v8164_v45, 5  ;;  %v14889_v17 = vsel %vm12846_vm2, %v8140_v54, %v8144_v55  ;;  %v10797_v51 = vld [vmem:[%s15242_s0 + $0x88] sm:$0xff]  ;;  %v10791_v38 = vld [vmem:[%s15242_s0 + $0x58] sm:$0x11]  ;;  %v7842_v41 = vshll.u32 %v10793_v32, 16 }
 0x22f   : > { %8854 = vmatprep.subr.bf16.mxu0 %v12424_v4  ;;  %v10846_v4 = vld [vmem:[%s15242_s0 + $0x230] sm:$0x11]  ;;  %v7867_v45 = vshrl.u32 %v10797_v51, 16  ;;  %v7870_v48 = vshll.u32 %v10797_v51, 16  ;;  %v12457_v49 = vld [vmem:[%s12585_s6 + $0x8c4] ss:$8 sps:$4 sm:$0xff]   ;;  %v7789_v54 = vor.u32 %v7788_v36, %v7785_v63 }
 0x230   : > { %3831 = vmatmul.mubr.bf16.gmra.mrb[12].mxu1 %v9902_v11  ;;  %v10932_v11 = vcombine.low %v14834_v60, %v14838_v20  ;;  %v8167_v62 = vor.u32 %v8166_v57, %v8163_v56  ;;  %v8198_v13 = vshll.u32 %v10846_v4, 16  ;;  %v8196_v60 = vrot.slane %v8195_v18, 4  ;;  %v12463_v57 = vld [vmem:[%s12585_s6 + $0x8d4] ss:$8 sps:$4 sm:$0xff]  }
 0x231   : > { %8792 = vmatmul.mubr.bf16.gmra.mrb[12].mxu0 %v10924_v16  ;;  %4504 = vmatpush1.bf16.msra.mxu1 %v12419_v10  ;;  %v12445_v10 = vld [vmem:[%s12585_s6 + $0x8a4] ss:$8 sps:$4 sm:$0xff]   ;;  %v7820_v56 = vshll.u32 %v10791_v38, 16  ;;  %v7841_v58 = vrot.slane %v7839_v39, 4  ;;  %v7844_v31 = vrot.slane %v7842_v41, 5 }
 0x232   : > { %8855 = vmatpush1.bf16.msra.mxu0 %v12422_v21  ;;  %4505 = vmatprep.subr.bf16.mxu1 %v12427_v52  ;;  %v12448_v16 = vld [vmem:[%s12585_s6 + $0x11a4] ss:$8 sps:$4 sm:$0xff]   ;;  %v14885_v21 = vsel %vm12846_vm2, %v8112_v59, %v8116_v53  ;;  %v8170_v52 = vshll.u32 %v10842_v61, 16  ;;  %v8200_v20 = vrot.slane %v8198_v13, 5  ;;  %v7872_v61 = vrot.slane %v7870_v48, 5 }
 0x233   : > { %8856 = vmatprep.subr.bf16.mxu0 %v12430_v25  ;;  %3840 = vmatprep.mubr.bf16.mxu1 %v9907_v2  ;;  %v7811_v25 = vshrl.u32 %v10789_v9, 16  ;;  %v12454_v2 = vld [vmem:[%s12585_s6 + $0x11b4] ss:$8 sps:$4 sm:$0xff]   ;;  %v10937_v6 = vcombine.high %v14885_v21, %v14889_v17  ;;  %v14943_v59 = vld [vmem:[%s15242_s0 + $0x688] sm:$0xff]  ;;  %v7845_v18 = vor.u32 %v7844_v31, %v7841_v58 }
 0x234   : > { %8801 = vmatprep.mubr.bf16.mxu0 %v10929_v5  ;;  %v9915_v5 = vcombine.high %v14894_v23, %v14899_v29  ;;  %v14947_v53 = vsel %vm12846_vm2, %v8196_v60, %v8200_v20  ;;  %v12466_v4 = vld [vmem:[%s12585_s6 + $0x11d4] ss:$8 sps:$4 sm:$0xff]   ;;  %v10809_v20 = vld [vmem:[%s15242_s0 + $0xe8] sm:$0xff] }
 0x235   : > { %4506 = vmatpush1.bf16.msra.mxu1 %v12425_v30  ;;  %v12452_v30 = vld [vmem:[%s12585_s6 + $0x11b0] ss:$8 sps:$4 sm:$0xff]   ;;  %v7813_v37 = vrot.slane %v7811_v25, 4  ;;  %v12472_v25 = vld [vmem:[%s12585_s6 + $0x11e4] ss:$8 sps:$4 sm:$0xff]  }
 0x236   : > { %8857 = vmatpush1.bf16.msra.mxu0 %v12428_v33  ;;  %4507 = vmatprep.subr.bf16.mxu1 %v12433_v34  ;;  %v8168_v33 = vrot.slane %v8167_v62, 4  ;;  %v8172_v34 = vrot.slane %v8170_v52, 5  ;;  %v12464_v62 = vld [vmem:[%s12585_s6 + $0x11d0] ss:$8 sps:$4 sm:$0xff]   ;;  %v12469_v52 = vld [vmem:[%s12585_s6 + $0x8e4] ss:$8 sps:$4 sm:$0xff]  }
 0x237   : > { %8858 = vmatprep.subr.bf16.mxu0 %v12436_v35  ;;  %v10787_v35 = vld [vmem:[%s15242_s0 + $0x38] sm:$0x11]  ;;  %v7817_v55 = vor.u32 %v7816_v15, %v7813_v37  ;;  %v10813_v15 = vld [vmem:[%s15242_s0 + $0x108] sm:$0xff] }
 0x238   : > { %3841 = vmatmul.mubr.bf16.gmra.mrb[16].mxu1 %v9906_v50  ;;  %v12460_v50 = vld [vmem:[%s12585_s6 + $0x11c4] ss:$8 sps:$4 sm:$0xff]   ;;  %v12475_v51 = vld [vmem:[%s12585_s6 + $0x8f4] ss:$8 sps:$4 sm:$0xff]  }
 0x239   : > { %8802 = vmatmul.mubr.bf16.gmra.mrb[16].mxu0 %v10928_v8  ;;  %4508 = vmatpush1.bf16.msra.mxu1 %v12431_v47  ;;  %v9914_v8 = vcombine.low %v14894_v23, %v14899_v29  ;;  %v12455_v47 = vld [vmem:[%s12585_s6 + $0x8c0] ss:$8 sps:$4 sm:$0xff]   ;;  %v7818_v23 = vrot.slane %v7817_v55, 4  ;;  %v7822_v29 = vrot.slane %v7820_v56, 5  ;;  %v10803_v38 = vld [vmem:[%s15242_s0 + $0xb8] sm:$0x11] }
 0x23a   : > { %8859 = vmatpush1.bf16.msra.mxu0 %v12434_v14  ;;  %4509 = vmatprep.subr.bf16.mxu1 %v12439_v22  ;;  %v10936_v14 = vcombine.low %v14885_v21, %v14889_v17  ;;  %v14932_v22 = vsel %vm12846_vm2, %v8168_v33, %v8172_v34  ;;  %v7790_v21 = vrot.slane %v7789_v54, 4  ;;  %v14987_v33 = vld [vmem:[%s15242_s0 + $0x6e0] sm:$0xff] }
 0x23b   : > { %8860 = vmatprep.subr.bf16.mxu0 %v12442_v46  ;;  %3850 = vmatprep.mubr.bf16.mxu1 %v9911_v42  ;;  %v7792_v42 = vshll.u32 %v10787_v35, 16  ;;  %v14938_v46 = vld [vmem:[%s15242_s0 + $0x668] sm:$0xff]  ;;  %v10941_v9 = vcombine.high %v14932_v22, %v14947_v53  ;;  %v10940_v32 = vcombine.low %v14932_v22, %v14947_v53  ;;  %v14995_v60 = vsel %vm12846_vm2, %v7818_v23, %v7822_v29  ;;  %v9988_v54 = vld [vmem:[%s15242_s0 + $0x700] sm:$0xff] }
 0x23c   : > { %8811 = vmatprep.mubr.bf16.mxu0 %v10933_v12  ;;  %v12458_v12 = vld [vmem:[%s12585_s6 + $0x11c0] ss:$8 sps:$4 sm:$0xff]   ;;  %v9919_v7 = vcombine.high %v14938_v46, %v14943_v59  ;;  %v7846_v35 = vrot.slane %v7845_v18, 4  ;;  %v7979_v22 = vshrl.u32 %v10813_v15, 16  ;;  %v7904_v53 = vshll.u32 %v10803_v38, 16 }
 0x23d   : > { %4510 = vmatpush1.bf16.msra.mxu1 %v12437_v40  ;;  %v7869_v40 = vrot.slane %v7867_v45, 4  ;;  %v7794_v17 = vrot.slane %v7792_v42, 5  ;;  %v7982_v42 = vshll.u32 %v10813_v15, 16  ;;  %v9990_v55 = vld [vmem:[%s15242_s0 + $0x720] sm:$0xff]  ;;  %v10823_v38 = vld [vmem:[%s15242_s0 + $0x178] sm:$0x11] }
 0x23e   : > { %8861 = vmatpush1.bf16.msra.mxu0 %v12440_v43  ;;  %4511 = vmatprep.subr.bf16.mxu1 %v12445_v10  ;;  %v10795_v43 = vld [vmem:[%s15242_s0 + $0x78] sm:$0x11]  ;;  %v10801_v10 = vld [vmem:[%s15242_s0 + $0xa8] sm:$0xff]  ;;  %v7906_v29 = vrot.slane %v7904_v53, 5 }
 0x23f   : > { %8862 = vmatprep.subr.bf16.mxu0 %v12448_v16  ;;  %v12461_v16 = vld [vmem:[%s12585_s6 + $0x8d0] ss:$8 sps:$4 sm:$0xff]   ;;  %v7848_v13 = vshll.u32 %v10795_v43, 16  ;;  %v7873_v44 = vor.u32 %v7872_v61, %v7869_v40  ;;  %v7895_v26 = vshrl.u32 %v10801_v10, 16  ;;  %v14991_v34 = vsel %vm12846_vm2, %v7790_v21, %v7794_v17  ;;  %v10821_v17 = vld [vmem:[%s15242_s0 + $0x168] sm:$0xff] }
 0x240   : > { %3851 = vmatmul.mubr.bf16.gmra.mrb[20].mxu1 %v9910_v28  ;;  %v10799_v28 = vld [vmem:[%s15242_s0 + $0x98] sm:$0x11] }
 0x241   : > { %8812 = vmatmul.mubr.bf16.gmra.mrb[20].mxu0 %v10932_v11  ;;  %4512 = vmatpush1.bf16.msra.mxu1 %v12443_v27  ;;  %v10805_v11 = vld [vmem:[%s15242_s0 + $0xc8] sm:$0xff]  ;;  %v7876_v24 = vshll.u32 %v10799_v28, 16  ;;  %v7898_v27 = vshll.u32 %v10801_v10, 16  ;;  %v7850_v63 = vrot.slane %v7848_v13, 5  ;;  %v7874_v36 = vrot.slane %v7873_v44, 4 }
 0x242   : > { %8863 = vmatpush1.bf16.msra.mxu0 %v12446_v0  ;;  %4513 = vmatprep.subr.bf16.mxu1 %v12451_v1  ;;  %v7923_v0 = vshrl.u32 %v10805_v11, 16  ;;  %v7926_v1 = vshll.u32 %v10805_v11, 16  ;;  %v7897_v39 = vrot.slane %v7895_v26, 4  ;;  %v10811_v40 = vld [vmem:[%s15242_s0 + $0xf8] sm:$0x11]  ;;  %v10914_v28 = vcombine.low %v14991_v34, %v14995_v60  ;;  %v10817_v11 = vld [vmem:[%s15242_s0 + $0x148] sm:$0xff] }
 0x243   : > { %8864 = vmatprep.subr.bf16.mxu0 %v12454_v2  ;;  %3860 = vmatprep.mubr.bf16.mxu1 %v9915_v5  ;;  %v12467_v2 = vld [vmem:[%s12585_s6 + $0x8e0] ss:$8 sps:$4 sm:$0xff]   ;;  %v7878_v37 = vrot.slane %v7876_v24, 5  ;;  %v7900_v41 = vrot.slane %v7898_v27, 5  ;;  %v7984_v10 = vrot.slane %v7982_v42, 5  ;;  %v7960_v13 = vshll.u32 %v10811_v40, 16 }
 0x244   : > { %8821 = vmatprep.mubr.bf16.mxu0 %v10937_v6  ;;  %v12470_v5 = vld [vmem:[%s12585_s6 + $0x11e0] ss:$8 sps:$4 sm:$0xff]   ;;  %v9918_v6 = vcombine.low %v14938_v46, %v14943_v59  ;;  %v7925_v45 = vrot.slane %v7923_v0, 4  ;;  %v7928_v48 = vrot.slane %v7926_v1, 5  ;;  %v12476_v46 = vld [vmem:[%s12585_s6 + $0x11f0] ss:$8 sps:$4 sm:$0xff]   ;;  %v15017_v59 = vsel %vm12846_vm2, %v7846_v35, %v7850_v63 }
 0x245   : > { %4514 = vmatpush1.bf16.msra.mxu1 %v12449_v3  ;;  %v12478_v3 = vld [vmem:[%s12585_s6 + $0x11f4] ss:$8 sps:$4 sm:$0xff]   ;;  %v7879_v56 = vsel %vm12846_vm2, %v7874_v36, %v7878_v37  ;;  %v8007_v24 = vshrl.u32 %v10817_v11, 16  ;;  %v8010_v26 = vshll.u32 %v10817_v11, 16  ;;  %v8035_v27 = vshrl.u32 %v10821_v17, 16  ;;  %v10837_v11 = vld [vmem:[%s15242_s0 + $0x1e8] sm:$0xff] }
 0x246   : > { %8865 = vmatpush1.bf16.msra.mxu0 %v12452_v30  ;;  %4515 = vmatprep.subr.bf16.mxu1 %v12457_v49  ;;  %v14982_v30 = vld [vmem:[%s15242_s0 + $0x6c0] sm:$0xff]  ;;  %v7929_v58 = vor.u32 %v7928_v48, %v7925_v45  ;;  %v10919_v21 = vcombine.high %v15017_v59, %v7879_v56  ;;  %v8038_v0 = vshll.u32 %v10821_v17, 16  ;;  %v10084_v1 = vcombine.low %v9988_v54, %v9990_v55 }
 0x247   : > { %8866 = vmatprep.subr.bf16.mxu0 %v12460_v50  ;;  %v10081_v49 = vcombine.high %v14982_v30, %v14987_v33  ;;  %v10915_v50 = vcombine.high %v14991_v34, %v14995_v60  ;;  %v10080_v43 = vcombine.low %v14982_v30, %v14987_v33  ;;  %v7962_v30 = vrot.slane %v7960_v13, 5 }
 0x248   : > { %3861 = vmatmul.mubr.bf16.gmra.mrb[24].mxu1 %v9914_v8  ;;  %v10807_v8 = vld [vmem:[%s15242_s0 + $0xd8] sm:$0x11]  ;;  %v8009_v34 = vrot.slane %v8007_v24, 4  ;;  %v8012_v35 = vrot.slane %v8010_v26, 5  ;;  %v8037_v63 = vrot.slane %v8035_v27, 4  ;;  %v8040_v36 = vrot.slane %v8038_v0, 5 }
 0x249   : > { %8822 = vmatmul.mubr.bf16.gmra.mrb[24].mxu0 %v10936_v14  ;;  %4516 = vmatpush1.bf16.msra.mxu1 %v12455_v47  ;;  %v7951_v47 = vshrl.u32 %v10809_v20, 16  ;;  %v7954_v14 = vshll.u32 %v10809_v20, 16  ;;  %v7932_v31 = vshll.u32 %v10807_v8, 16  ;;  %v10819_v20 = vld [vmem:[%s15242_s0 + $0x158] sm:$0x11]  ;;  %v8147_v24 = vshrl.u32 %v10837_v11, 16 }
 0x24a   : > { %8867 = vmatpush1.bf16.msra.mxu0 %v12458_v12  ;;  %4517 = vmatprep.subr.bf16.mxu1 %v12463_v57  ;;  %v12473_v12 = vld [vmem:[%s12585_s6 + $0x8f0] ss:$8 sps:$4 sm:$0xff]   ;;  %v7901_v57 = vor.u32 %v7900_v41, %v7897_v39  ;;  %v10825_v39 = vld [vmem:[%s15242_s0 + $0x188] sm:$0xff]  ;;  %v8016_v48 = vshll.u32 %v10819_v20, 16  ;;  %s182_s6 = scalar_lea.vmem %s15244_s2, %s15253_s8 }
 0x24b   : > { %8868 = vmatprep.subr.bf16.mxu0 %v12466_v4  ;;  %3870 = vmatprep.mubr.bf16.mxu1 %v9919_v7  ;;  %v7953_v61 = vrot.slane %v7951_v47, 4  ;;  %v7956_v4 = vrot.slane %v7954_v14, 5  ;;  %v10815_v7 = vld [vmem:[%s15242_s0 + $0x118] sm:$0x11]  ;;  %v10829_v41 = vld [vmem:[%s15242_s0 + $0x1a8] sm:$0xff]  ;;  %v8013_v47 = vor.u32 %v8012_v35, %v8009_v34  ;;  %v8041_v14 = vor.u32 %v8040_v36, %v8037_v63 }
 0x24c   : > { %8831 = vmatprep.mubr.bf16.mxu0 %v10941_v9  ;;  %v7981_v9 = vrot.slane %v7979_v22, 4  ;;  %v7902_v23 = vrot.slane %v7901_v57, 4  ;;  %v7988_v44 = vshll.u32 %v10815_v7, 16  ;;  %v8044_v22 = vshll.u32 %v10823_v38, 16  ;;  %v10841_v20 = vld [vmem:[%s15242_s0 + $0x208] sm:$0xff] }
 0x24d   : > { %4518 = vmatpush1.bf16.msra.mxu1 %v12461_v16  ;;  %v10085_v16 = vcombine.high %v9988_v54, %v9990_v55  ;;  %v7957_v18 = vor.u32 %v7956_v4, %v7953_v61  ;;  %v8063_v42 = vshrl.u32 %v10825_v39, 16  ;;  %v10827_v61 = vld [vmem:[%s15242_s0 + $0x198] sm:$0x11]  ;;  %v8149_v34 = vrot.slane %v8147_v24, 4  ;;  %v10845_v35 = vld [vmem:[%s15242_s0 + $0x228] sm:$0xff] }
 0x24e   : > { %8869 = vmatpush1.bf16.msra.mxu0 %v12464_v62  ;;  %4519 = vmatprep.subr.bf16.mxu1 %v12469_v52  ;;  %v7930_v62 = vrot.slane %v7929_v58, 4  ;;  %v7934_v52 = vrot.slane %v7932_v31, 5  ;;  %v7990_v33 = vrot.slane %v7988_v44, 5  ;;  %v8014_v58 = vrot.slane %v8013_v47, 4  ;;  %v10831_v4 = vld [vmem:[%s15242_s0 + $0x1b8] sm:$0x11] }
 0x24f   : > { %8870 = vmatprep.subr.bf16.mxu0 %v12472_v25  ;;  %v7985_v25 = vor.u32 %v7984_v10, %v7981_v9  ;;  %v8042_v31 = vrot.slane %v8041_v14, 4  ;;  %v8046_v40 = vrot.slane %v8044_v22, 5  ;;  %v10833_v10 = vld [vmem:[%s15242_s0 + $0x1c8] sm:$0xff] }
 0x250   : > { %3871 = vmatmul.mubr.bf16.gmra.mrb[28].mxu1 %v9918_v6  ;;  %v9994_v6 = vld [vmem:[%s15242_s0 + $0x760] sm:$0xff]  ;;  %v8119_v13 = vshrl.u32 %v10833_v10, 16  ;;  %v8122_v44 = vshll.u32 %v10833_v10, 16 }
 0x251   : > { %8832 = vmatmul.mubr.bf16.gmra.mrb[28].mxu0 %v10940_v32  ;;  %4520 = vmatpush1.bf16.msra.mxu1 %v12467_v2  ;;  %v10918_v2 = vcombine.low %v15017_v59, %v7879_v56  ;;  %v7907_v32 = vsel %vm12846_vm2, %v7902_v23, %v7906_v29  ;;  %v7986_v60 = vrot.slane %v7985_v25, 4  ;;  %v8094_v59 = vshll.u32 %v10829_v41, 16 }
 0x252   : > { %8871 = vmatpush1.bf16.msra.mxu0 %v12470_v5  ;;  %4521 = vmatprep.subr.bf16.mxu1 %v12475_v51  ;;  %v9992_v5 = vld [vmem:[%s15242_s0 + $0x740] sm:$0xff]  ;;  %v7935_v51 = vsel %vm12846_vm2, %v7930_v62, %v7934_v52  ;;  %v8018_v56 = vrot.slane %v8016_v48, 5  ;;  %v8047_v23 = vsel %vm12846_vm2, %v8042_v31, %v8046_v40  ;;  %v8072_v29 = vshll.u32 %v10827_v61, 16  ;;  %v10847_v31 = vld [vmem:[%s15242_s0 + $0x238] sm:$0x11] }
 0x253   : > { %8872 = vmatprep.subr.bf16.mxu0 %v12478_v3  ;;  %4523 = vmatprep.mubr.bf16.mxu1 %v10081_v49  ;;  %v7958_v3 = vrot.slane %v7957_v18, 4  ;;  %v10089_v37 = vcombine.high %v9992_v5, %v9994_v6  ;;  %v10923_v15 = vcombine.high %v7907_v32, %v7935_v51  ;;  %v9996_v49 = vld [vmem:[%s15242_s0 + $0x780] sm:$0xff]  ;;  %v7991_v8 = vsel %vm12846_vm2, %v7986_v60, %v7990_v33 }
 0x254   : > { %8874 = vmatprep.mubr.bf16.mxu0 %v10915_v50  ;;  %v9998_v50 = vld [vmem:[%s15242_s0 + $0x7a0] sm:$0xff]  ;;  %v10088_v53 = vcombine.low %v9992_v5, %v9994_v6  ;;  %v10922_v54 = vcombine.low %v7907_v32, %v7935_v51  ;;  %v8096_v9 = vrot.slane %v8094_v59, 5  ;;  %v8019_v17 = vsel %vm12846_vm2, %v8014_v58, %v8018_v56  ;;  %v10835_v6 = vld [vmem:[%s15242_s0 + $0x1d8] sm:$0x11] }
 0x255   : > { %4522 = vmatpush1.bf16.msra.mxu1 %v12473_v12  ;;  %v15069_v45 = vsel %vm12846_vm2, %v7958_v3, %v7962_v30  ;;  %v8066_v12 = vshll.u32 %v10825_v39, 16  ;;  %v10093_v55 = vcombine.high %v9996_v49, %v9998_v50  ;;  %v8100_v62 = vshll.u32 %v10831_v4, 16  ;;  %v10839_v3 = vld [vmem:[%s15242_s0 + $0x1f8] sm:$0x11]  ;;  %v10008_v4 = vld [vmem:[%s15242_s0 + $0x860] sm:$0xff] }
 0x256   : > { %8873 = vmatpush1.bf16.msra.mxu0 %v12476_v46  ;;  %v8091_v46 = vshrl.u32 %v10829_v41, 16  ;;  %v10927_v57 = vcombine.high %v15069_v45, %v7991_v8  ;;  %v8150_v25 = vshll.u32 %v10837_v11, 16  ;;  %v10092_v26 = vcombine.low %v9996_v49, %v9998_v50 }
 0x257   : > { %v10926_v0 = vcombine.low %v15069_v45, %v7991_v8  ;;  %v8102_v5 = vrot.slane %v8100_v62, 5  ;;  %v8121_v30 = vrot.slane %v8119_v13, 4  ;;  %v8124_v33 = vrot.slane %v8122_v44, 5  ;;  %v10014_v13 = vld [vmem:[%s15242_s0 + $0x8c0] sm:$0xff] }
 0x258   : > { %4524 = vmatmul.mubr.bf16.vlgmr.msra.gmra.mrb[0].mxu1 %v10080_v43  ;;  %v8065_v43 = vrot.slane %v8063_v42, 4  ;;  %v8093_v7 = vrot.slane %v8091_v46, 4  ;;  %v8152_v60 = vrot.slane %v8150_v25, 5  ;;  %v8128_v63 = vshll.u32 %v10835_v6, 16 }
 0x259   : > { %8875 = vmatmul.mubr.bf16.vlgmr.msra.gmra.mrb[0].mxu0 %v10914_v28  ;;  %4533 = vmatprep.mubr.bf16.mxu1 %v10085_v16  ;;  %v8068_v28 = vrot.slane %v8066_v12, 5  ;;  %v10000_v16 = vld [vmem:[%s15242_s0 + $0x7e0] sm:$0xff]  ;;  %v8156_v36 = vshll.u32 %v10839_v3, 16  ;;  %v8125_v41 = vor.u32 %v8124_v33, %v8121_v30  ;;  %v8175_v45 = vshrl.u32 %v10841_v20, 16 }
 0x25a   : > { %8884 = vmatprep.mubr.bf16.mxu0 %v10919_v21  ;;  %v10002_v21 = vld [vmem:[%s15242_s0 + $0x800] sm:$0xff]  ;;  %v8097_v18 = vor.u32 %v8096_v9, %v8093_v7  ;;  %v8153_v48 = vor.u32 %v8152_v60, %v8149_v34  ;;  %v8178_v49 = vshll.u32 %v10841_v20, 16  ;;  %v8203_v50 = vshrl.u32 %v10845_v35, 16 }
 0x25b   : > { %v8069_v52 = vor.u32 %v8068_v28, %v8065_v43  ;;  %v10097_v27 = vcombine.high %v10000_v16, %v10002_v21  ;;  %v8206_v8 = vshll.u32 %v10845_v35, 16  ;;  %v10096_v47 = vcombine.low %v10000_v16, %v10002_v21  ;;  %v10010_v43 = vld [vmem:[%s15242_s0 + $0x880] sm:$0xff] }
 0x25c   : > { %v8098_v51 = vrot.slane %v8097_v18, 4  ;;  %v10930_v14 = vcombine.low %v8019_v17, %v8047_v23  ;;  %v8130_v42 = vrot.slane %v8128_v63, 5  ;;  %v8126_v46 = vrot.slane %v8125_v41, 4  ;;  %v10012_v18 = vld [vmem:[%s15242_s0 + $0x8a0] sm:$0xff] }
 0x25d   : > { %v8070_v32 = vrot.slane %v8069_v52, 4  ;;  %v8158_v59 = vrot.slane %v8156_v36, 5  ;;  %v8180_v56 = vrot.slane %v8178_v49, 5  ;;  %v8208_v58 = vrot.slane %v8206_v8, 5 }
 0x25e   : > { %v8103_v39 = vsel %vm12846_vm2, %v8098_v51, %v8102_v5  ;;  %v8131_v40 = vsel %vm12846_vm2, %v8126_v46, %v8130_v42  ;;  %v8212_v10 = vshll.u32 %v10847_v31, 16  ;;  %v10105_v21 = vcombine.high %v10008_v4, %v10010_v43 }
 0x25f   : > { %v10104_v25 = vcombine.low %v10008_v4, %v10010_v43  ;;  %v8989_v5 = vlaneseq }
 0x260   : > { %4534 = vmatmul.mubr.bf16.gmra.mrb[4].mxu1 %v10084_v1  ;;  %v10931_v1 = vcombine.high %v8019_v17, %v8047_v23  ;;  %v8214_v52 = vrot.slane %v8212_v10, 5 }
 0x261   : > { %8885 = vmatmul.mubr.bf16.gmra.mrb[4].mxu0 %v10918_v2  ;;  %4543 = vmatprep.mubr.bf16.mxu1 %v10089_v37  ;;  %v8074_v2 = vrot.slane %v8072_v29, 5  ;;  %v10004_v37 = vld [vmem:[%s15242_s0 + $0x820] sm:$0xff]  ;;  %v8990_v6 = vshrl.u32 %v8989_v5, 7 }
 0x262   : > { %8894 = vmatprep.mubr.bf16.mxu0 %v10923_v15  ;;  %v10006_v15 = vld [vmem:[%s15242_s0 + $0x840] sm:$0xff] }
 0x263   : > { %v8075_v38 = vsel %vm12846_vm2, %v8070_v32, %v8074_v2  ;;  %v10101_v22 = vcombine.high %v10004_v37, %v10006_v15  ;;  %v10100_v11 = vcombine.low %v10004_v37, %v10006_v15  ;;  %v8991_v19 = vsub.s32 0, %v8990_v6  ;;  %v8987_v32 = vld [vmem:[%s182_s6] sm:$0x3] }
 0x264   : > { %v10935_v12 = vcombine.high %v8075_v38, %v8103_v39  ;;  %v10934_v16 = vcombine.low %v8075_v38, %v8103_v39  ;;  %v8995_v51 = vsub.s32 1, %v8990_v6 }
 0x265   : > { %v15155_v3 = vrot.slane %v8987_v32, %v8991_v19 }
 0x266   : > { %v15157_v34 = vrot.slane %v8987_v32, %v8995_v51 }
 0x268   : > { %4544 = vmatmul.mubr.bf16.gmra.mrb[8].mxu1 %v10088_v53  ;;  %v8177_v53 = vrot.slane %v8175_v45, 4 }
 0x269   : > { %8895 = vmatmul.mubr.bf16.gmra.mrb[8].mxu0 %v10922_v54  ;;  %4553 = vmatprep.mubr.bf16.mxu1 %v10093_v55  ;;  %v8154_v54 = vrot.slane %v8153_v48, 4  ;;  %v10843_v55 = vld [vmem:[%s15242_s0 + $0x218] sm:$0x11] }
 0x26a   : > { %8904 = vmatprep.mubr.bf16.mxu0 %v10927_v57  ;;  %v8205_v57 = vrot.slane %v8203_v50, 4  ;;  %v8184_v61 = vshll.u32 %v10843_v55, 16  ;;  %v8181_v7 = vor.u32 %v8180_v56, %v8177_v53 }
 0x26b   : > { %v8159_v28 = vsel %vm12846_vm2, %v8154_v54, %v8158_v59 }
 0x26c   : > { %v8209_v9 = vor.u32 %v8208_v58, %v8205_v57  ;;  %v10939_v17 = vcombine.high %v8131_v40, %v8159_v28  ;;  %v8182_v23 = vrot.slane %v8181_v7, 4  ;;  %v8186_v29 = vrot.slane %v8184_v61, 5 }
 0x26e   : > { %v8210_v62 = vrot.slane %v8209_v9, 4  ;;  %v8187_v44 = vsel %vm12846_vm2, %v8182_v23, %v8186_v29 }
 0x270   : > { %4554 = vmatmul.mubr.bf16.gmra.mrb[12].mxu1 %v10092_v26  ;;  %v8215_v24 = vsel %vm12846_vm2, %v8210_v62, %v8214_v52  ;;  %v10938_v26 = vcombine.low %v8131_v40, %v8159_v28 }
 0x271   : > { %8905 = vmatmul.mubr.bf16.gmra.mrb[12].mxu0 %v10926_v0  ;;  %4563 = vmatprep.mubr.bf16.mxu1 %v10097_v27  ;;  %v10109_v27 = vcombine.high %v10012_v18, %v10014_v13  ;;  %v10943_v0 = vcombine.high %v8187_v44, %v8215_v24  ;;  %v10942_v2 = vcombine.low %v8187_v44, %v8215_v24 }
 0x272   : > { %8914 = vmatprep.mubr.bf16.mxu0 %v10931_v1  ;;  %v10108_v1 = vcombine.low %v10012_v18, %v10014_v13 }
 0x278   : > { %4564 = vmatmul.mubr.bf16.gmra.mrb[16].mxu1 %v10096_v47 }
 0x279   : > { %8915 = vmatmul.mubr.bf16.gmra.mrb[16].mxu0 %v10930_v14  ;;  %4573 = vmatprep.mubr.bf16.mxu1 %v10101_v22 }
 0x27a   : > { %8924 = vmatprep.mubr.bf16.mxu0 %v10935_v12 }
 0x280   : > { %4574 = vmatmul.mubr.bf16.gmra.mrb[20].mxu1 %v10100_v11 }
 0x281   : > { %8925 = vmatmul.mubr.bf16.gmra.mrb[20].mxu0 %v10934_v16  ;;  %4583 = vmatprep.mubr.bf16.mxu1 %v10105_v21 }
 0x282   : > { %8934 = vmatprep.mubr.bf16.mxu0 %v10939_v17 }
 0x288   : > { %4584 = vmatmul.mubr.bf16.gmra.mrb[24].mxu1 %v10104_v25 }
 0x289   : > { %8935 = vmatmul.mubr.bf16.gmra.mrb[24].mxu0 %v10938_v26  ;;  %4593 = vmatprep.mubr.bf16.mxu1 %v10109_v27 }
 0x28a   : > { %8944 = vmatprep.mubr.bf16.mxu0 %v10943_v0 }
 0x290   : > { %4594 = vmatmul.mubr.bf16.gmra.mrb[28].mxu1 %v10108_v1 }
 0x291   : > { %8945 = vmatmul.mubr.bf16.gmra.mrb[28].mxu0 %v10942_v2 }
 0x32b   : > { %v4525_v30 = vpop.f32.mrb[0].mxu1 }
 0x32c   : > { %v8876_v33 = vpop.f32.mrb[0].mxu0  ;;  %v4527_v20 = vpop.f32.mrb[1].mxu1 }
 0x32d   : > { %v11046_v60 = vadd.f32 %v8876_v33, %v4525_v30  ;;  %v8878_v35 = vpop.f32.mrb[1].mxu0  ;;  %v4529_v36 = vpop.f32.mrb[2].mxu1 }
 0x32e   : > { %v11047_v63 = vadd.f32 %v8878_v35, %v4527_v20  ;;  %v8880_v37 = vpop.f32.mrb[2].mxu0  ;;  %v4531_v39 = vpop.f32.mrb[3].mxu1 }
 0x32f   : > { %v8999_v15 = vadd.f32 %v11046_v60, %v15155_v3  ;;  %v11048_v38 = vadd.f32 %v8880_v37, %v4529_v36  ;;  %v8882_v41 = vpop.f32.mrb[3].mxu0 }
 0x330   : > { %v9000_v45 = vadd.f32 %v11047_v63, %v15157_v34  ;;  %v11049_v48 = vadd.f32 %v8882_v41, %v4531_v39 }
 0x331   : > { %v9031_v49 = vmax.f32 %v8999_v15, 0.0  ;;  %v9001_v50 = vadd.f32 %v11048_v38, %v15155_v3 }
 0x332   : > { %v9032_v8 = vmax.f32 %v9000_v45, 0.0  ;;  %v9002_v47 = vadd.f32 %v11049_v48, %v15157_v34 }
 0x333   : > { %v9033_v14 = vmax.f32 %v9001_v50, 0.0  ;;  %v4535_v12 = vpop.f32.mrb[4].mxu1 }
 0x334   : > { %v11029_v22 = vpack.c.bf16 %v9032_v8, %v9031_v49  ;;  %v9034_v42 = vmax.f32 %v9002_v47, 0.0  ;;  %v8886_v46 = vpop.f32.mrb[4].mxu0  ;;  %v4537_v53 = vpop.f32.mrb[5].mxu1 }
 0x335   : > { %v11050_v59 = vadd.f32 %v8886_v46, %v4535_v12  ;;  %v8888_v54 = vpop.f32.mrb[5].mxu0  ;;  %v4539_v57 = vpop.f32.mrb[6].mxu1 }
 0x336   : > { %9159 = vst [vmem:[%s15164_s12] sm:$0xff] %v11029_v22  ;;  %v11030_v55 = vpack.c.bf16 %v9034_v42, %v9033_v14  ;;  %v11051_v56 = vadd.f32 %v8888_v54, %v4537_v53  ;;  %v8890_v58 = vpop.f32.mrb[6].mxu0  ;;  %v4541_v61 = vpop.f32.mrb[7].mxu1 }
 0x337   : > { %v9003_v31 = vadd.f32 %v11050_v59, %v15155_v3  ;;  %v11052_v40 = vadd.f32 %v8890_v58, %v4539_v57  ;;  %v8892_v4 = vpop.f32.mrb[7].mxu0 }
 0x338   : > { %9160 = vst [vmem:[%s15164_s12 + $0x8] sm:$0xff] %v11030_v55  ;;  %v9004_v43 = vadd.f32 %v11051_v56, %v15157_v34  ;;  %v11053_v28 = vadd.f32 %v8892_v4, %v4541_v61 }
 0x339   : > { %v9035_v7 = vmax.f32 %v9003_v31, 0.0  ;;  %v9005_v9 = vadd.f32 %v11052_v40, %v15155_v3 }
 0x33a   : > { %v9036_v10 = vmax.f32 %v9004_v43, 0.0  ;;  %v9006_v11 = vadd.f32 %v11053_v28, %v15157_v34 }
 0x33b   : > { %v9037_v16 = vmax.f32 %v9005_v9, 0.0  ;;  %v4545_v23 = vpop.f32.mrb[8].mxu1 }
 0x33c   : > { %v11031_v21 = vpack.c.bf16 %v9036_v10, %v9035_v7  ;;  %v9038_v17 = vmax.f32 %v9006_v11, 0.0  ;;  %v8896_v29 = vpop.f32.mrb[8].mxu0  ;;  %v4547_v52 = vpop.f32.mrb[9].mxu1 }
 0x33d   : > { %v11054_v62 = vadd.f32 %v8896_v29, %v4545_v23  ;;  %v8898_v18 = vpop.f32.mrb[9].mxu0  ;;  %v4549_v24 = vpop.f32.mrb[10].mxu1 }
 0x33e   : > { %9161 = vst [vmem:[%s15164_s12 + $0x10] sm:$0xff] %v11031_v21  ;;  %v11032_v13 = vpack.c.bf16 %v9038_v17, %v9037_v16  ;;  %v11055_v44 = vadd.f32 %v8898_v18, %v4547_v52  ;;  %v8900_v25 = vpop.f32.mrb[10].mxu0  ;;  %v4551_v0 = vpop.f32.mrb[11].mxu1 }
 0x33f   : > { %v9007_v26 = vadd.f32 %v11054_v62, %v15155_v3  ;;  %v11056_v27 = vadd.f32 %v8900_v25, %v4549_v24  ;;  %v8902_v1 = vpop.f32.mrb[11].mxu0 }
 0x340   : > { %9162 = vst [vmem:[%s15164_s12 + $0x18] sm:$0xff] %v11032_v13  ;;  %v9008_v2 = vadd.f32 %v11055_v44, %v15157_v34  ;;  %v11057_v5 = vadd.f32 %v8902_v1, %v4551_v0 }
 0x341   : > { %v9039_v6 = vmax.f32 %v9007_v26, 0.0  ;;  %v9009_v19 = vadd.f32 %v11056_v27, %v15155_v3 }
 0x342   : > { %v9040_v32 = vmax.f32 %v9008_v2, 0.0  ;;  %v9010_v51 = vadd.f32 %v11057_v5, %v15157_v34 }
 0x343   : > { %v9041_v30 = vmax.f32 %v9009_v19, 0.0  ;;  %v4555_v20 = vpop.f32.mrb[12].mxu1 }
 0x344   : > { %v11033_v33 = vpack.c.bf16 %v9040_v32, %v9039_v6  ;;  %v9042_v60 = vmax.f32 %v9010_v51, 0.0  ;;  %v8906_v35 = vpop.f32.mrb[12].mxu0  ;;  %v4557_v36 = vpop.f32.mrb[13].mxu1 }
 0x345   : > { %v11058_v63 = vadd.f32 %v8906_v35, %v4555_v20  ;;  %v8908_v37 = vpop.f32.mrb[13].mxu0  ;;  %v4559_v39 = vpop.f32.mrb[14].mxu1 }
 0x346   : > { %9163 = vst [vmem:[%s15164_s12 + $0x20] sm:$0xff] %v11033_v33  ;;  %v11034_v15 = vpack.c.bf16 %v9042_v60, %v9041_v30  ;;  %v11059_v38 = vadd.f32 %v8908_v37, %v4557_v36  ;;  %v8910_v41 = vpop.f32.mrb[14].mxu0  ;;  %v4561_v49 = vpop.f32.mrb[15].mxu1 }
 0x347   : > { %v9011_v45 = vadd.f32 %v11058_v63, %v15155_v3  ;;  %v11060_v48 = vadd.f32 %v8910_v41, %v4559_v39  ;;  %v8912_v50 = vpop.f32.mrb[15].mxu0 }
 0x348   : > { %9164 = vst [vmem:[%s15164_s12 + $0x28] sm:$0xff] %v11034_v15  ;;  %v9012_v8 = vadd.f32 %v11059_v38, %v15157_v34  ;;  %v11061_v47 = vadd.f32 %v8912_v50, %v4561_v49 }
 0x349   : > { %v9043_v14 = vmax.f32 %v9011_v45, 0.0  ;;  %v9013_v22 = vadd.f32 %v11060_v48, %v15155_v3 }
 0x34a   : > { %v9044_v42 = vmax.f32 %v9012_v8, 0.0  ;;  %v9014_v12 = vadd.f32 %v11061_v47, %v15157_v34 }
 0x34b   : > { %v9045_v46 = vmax.f32 %v9013_v22, 0.0  ;;  %v4565_v54 = vpop.f32.mrb[16].mxu1 }
 0x34c   : > { %v11035_v59 = vpack.c.bf16 %v9044_v42, %v9043_v14  ;;  %v9046_v53 = vmax.f32 %v9014_v12, 0.0  ;;  %v8916_v55 = vpop.f32.mrb[16].mxu0  ;;  %v4567_v57 = vpop.f32.mrb[17].mxu1 }
 0x34d   : > { %v11062_v56 = vadd.f32 %v8916_v55, %v4565_v54  ;;  %v8918_v58 = vpop.f32.mrb[17].mxu0  ;;  %v4569_v61 = vpop.f32.mrb[18].mxu1 }
 0x34e   : > { %9165 = vst [vmem:[%s15164_s12 + $0x30] sm:$0xff] %v11035_v59  ;;  %v11036_v31 = vpack.c.bf16 %v9046_v53, %v9045_v46  ;;  %v11063_v40 = vadd.f32 %v8918_v58, %v4567_v57  ;;  %v8920_v4 = vpop.f32.mrb[18].mxu0  ;;  %v4571_v7 = vpop.f32.mrb[19].mxu1 }
 0x34f   : > { %v9015_v43 = vadd.f32 %v11062_v56, %v15155_v3  ;;  %v11064_v28 = vadd.f32 %v8920_v4, %v4569_v61  ;;  %v8922_v9 = vpop.f32.mrb[19].mxu0 }
 0x350   : > { %9166 = vst [vmem:[%s15164_s12 + $0x38] sm:$0xff] %v11036_v31  ;;  %v9016_v10 = vadd.f32 %v11063_v40, %v15157_v34  ;;  %v11065_v11 = vadd.f32 %v8922_v9, %v4571_v7 }
 0x351   : > { %v9047_v16 = vmax.f32 %v9015_v43, 0.0  ;;  %v9017_v21 = vadd.f32 %v11064_v28, %v15155_v3 }
 0x352   : > { %v9048_v17 = vmax.f32 %v9016_v10, 0.0  ;;  %v9018_v23 = vadd.f32 %v11065_v11, %v15157_v34 }
 0x353   : > { %v9049_v29 = vmax.f32 %v9017_v21, 0.0  ;;  %v4575_v18 = vpop.f32.mrb[20].mxu1 }
 0x354   : > { %v11037_v62 = vpack.c.bf16 %v9048_v17, %v9047_v16  ;;  %v9050_v52 = vmax.f32 %v9018_v23, 0.0  ;;  %v8926_v13 = vpop.f32.mrb[20].mxu0  ;;  %v4577_v24 = vpop.f32.mrb[21].mxu1 }
 0x355   : > { %v11066_v44 = vadd.f32 %v8926_v13, %v4575_v18  ;;  %v8928_v25 = vpop.f32.mrb[21].mxu0  ;;  %v4579_v0 = vpop.f32.mrb[22].mxu1 }
 0x356   : > { %9167 = vst [vmem:[%s15164_s12 + $0x40] sm:$0xff] %v11037_v62  ;;  %v11038_v26 = vpack.c.bf16 %v9050_v52, %v9049_v29  ;;  %v11067_v27 = vadd.f32 %v8928_v25, %v4577_v24  ;;  %v8930_v1 = vpop.f32.mrb[22].mxu0  ;;  %v4581_v6 = vpop.f32.mrb[23].mxu1 }
 0x357   : > { %v9019_v2 = vadd.f32 %v11066_v44, %v15155_v3  ;;  %v11068_v5 = vadd.f32 %v8930_v1, %v4579_v0  ;;  %v8932_v19 = vpop.f32.mrb[23].mxu0  ;;  %v9250_v0 = vld [vmem:[%s15164_s12 + $0x20] sm:$0xff] (%p12548_p4)  ;;  %v9252_v1 = vld [vmem:[%s15164_s12 + $0x28] sm:$0xff] (%p12548_p4) }
 0x358   : > { %9168 = vst [vmem:[%s15164_s12 + $0x48] sm:$0xff] %v11038_v26  ;;  %v9020_v32 = vadd.f32 %v11067_v27, %v15157_v34  ;;  %v11069_v51 = vadd.f32 %v8932_v19, %v4581_v6  ;;  %v9246_v26 = vld [vmem:[%s15164_s12 + $0x10] sm:$0xff] (%p12548_p4)  ;;  %v9248_v27 = vld [vmem:[%s15164_s12 + $0x18] sm:$0xff] (%p12548_p4)  ;;  %9251 = vst [vmem:[%s9184_s22 + $0x40] sm:$0xff] (%p12548_p4), %v9250_v0 }
 0x359   : > { %v9051_v30 = vmax.f32 %v9019_v2, 0.0  ;;  %v9021_v33 = vadd.f32 %v11068_v5, %v15155_v3  ;;  %9247 = vst [vmem:[%s9184_s22 + $0x20] sm:$0xff] (%p12548_p4), %v9246_v26  ;;  %9249 = vst [vmem:[%s9184_s22 + $0x30] sm:$0xff] (%p12548_p4), %v9248_v27  ;;  %v9254_v2 = vld [vmem:[%s15164_s12 + $0x30] sm:$0xff] (%p12548_p4)  ;;  %v9256_v5 = vld [vmem:[%s15164_s12 + $0x38] sm:$0xff] (%p12548_p4) }
 0x35a   : > { %v9052_v60 = vmax.f32 %v9020_v32, 0.0  ;;  %v9022_v20 = vadd.f32 %v11069_v51, %v15157_v34  ;;  %9253 = vst [vmem:[%s9184_s22 + $0x50] sm:$0xff] (%p12548_p4), %v9252_v1  ;;  %9255 = vst [vmem:[%s9184_s22 + $0x60] sm:$0xff] (%p12548_p4), %v9254_v2 }
 0x35b   : > { %v9053_v35 = vmax.f32 %v9021_v33, 0.0  ;;  %v4585_v37 = vpop.f32.mrb[24].mxu1  ;;  %9257 = vst [vmem:[%s9184_s22 + $0x70] sm:$0xff] (%p12548_p4), %v9256_v5 }
 0x35c   : > { %v11039_v63 = vpack.c.bf16 %v9052_v60, %v9051_v30  ;;  %v9054_v36 = vmax.f32 %v9022_v20, 0.0  ;;  %v8936_v15 = vpop.f32.mrb[24].mxu0  ;;  %v4587_v39 = vpop.f32.mrb[25].mxu1 }
 0x35d   : > { %v11070_v38 = vadd.f32 %v8936_v15, %v4585_v37  ;;  %v8938_v41 = vpop.f32.mrb[25].mxu0  ;;  %v4589_v49 = vpop.f32.mrb[26].mxu1  ;;  %v9258_v6 = vld [vmem:[%s15164_s12 + $0x40] sm:$0xff] (%p12548_p4) }
 0x35e   : > { %9169 = vst [vmem:[%s15164_s12 + $0x50] sm:$0xff] %v11039_v63  ;;  %v11040_v45 = vpack.c.bf16 %v9054_v36, %v9053_v35  ;;  %v11071_v48 = vadd.f32 %v8938_v41, %v4587_v39  ;;  %v8940_v50 = vpop.f32.mrb[26].mxu0  ;;  %v4591_v14 = vpop.f32.mrb[27].mxu1  ;;  %9259 = vst [vmem:[%s9184_s22 + $0x80] sm:$0xff] (%p12548_p4), %v9258_v6 }
 0x35f   : > { %v9023_v8 = vadd.f32 %v11070_v38, %v15155_v3  ;;  %v11072_v47 = vadd.f32 %v8940_v50, %v4589_v49  ;;  %v8942_v22 = vpop.f32.mrb[27].mxu0  ;;  %v9260_v19 = vld [vmem:[%s15164_s12 + $0x48] sm:$0xff] (%p12548_p4) }
 0x360   : > { %9170 = vst [vmem:[%s15164_s12 + $0x58] sm:$0xff] %v11040_v45  ;;  %v9024_v42 = vadd.f32 %v11071_v48, %v15157_v34  ;;  %v11073_v12 = vadd.f32 %v8942_v22, %v4591_v14  ;;  %9261 = vst [vmem:[%s9184_s22 + $0x90] sm:$0xff] (%p12548_p4), %v9260_v19 }
 0x361   : > { %v9055_v46 = vmax.f32 %v9023_v8, 0.0  ;;  %v9025_v59 = vadd.f32 %v11072_v47, %v15155_v3 }
 0x362   : > { %v9056_v53 = vmax.f32 %v9024_v42, 0.0  ;;  %v9026_v54 = vadd.f32 %v11073_v12, %v15157_v34 }
 0x363   : > { %v9057_v55 = vmax.f32 %v9025_v59, 0.0  ;;  %v4595_v58 = vpop.f32.mrb[28].mxu1 }
 0x364   : > { %v11041_v56 = vpack.c.bf16 %v9056_v53, %v9055_v46  ;;  %v9058_v57 = vmax.f32 %v9026_v54, 0.0  ;;  %v8946_v31 = vpop.f32.mrb[28].mxu0  ;;  %v4597_v61 = vpop.f32.mrb[29].mxu1 }
 0x365   : > { %v11074_v40 = vadd.f32 %v8946_v31, %v4595_v58  ;;  %v8948_v4 = vpop.f32.mrb[29].mxu0  ;;  %v4599_v7 = vpop.f32.mrb[30].mxu1  ;;  %v9262_v32 = vld [vmem:[%s15164_s12 + $0x50] sm:$0xff] (%p12548_p4) }
 0x366   : > { %9171 = vst [vmem:[%s15164_s12 + $0x60] sm:$0xff] %v11041_v56  ;;  %v11042_v43 = vpack.c.bf16 %v9058_v57, %v9057_v55  ;;  %v11075_v28 = vadd.f32 %v8948_v4, %v4597_v61  ;;  %v8950_v9 = vpop.f32.mrb[30].mxu0  ;;  %v4601_v16 = vpop.f32.mrb[31].mxu1  ;;  %9263 = vst [vmem:[%s9184_s22 + $0xa0] sm:$0xff] (%p12548_p4), %v9262_v32 }
 0x367   : > { %v9027_v10 = vadd.f32 %v11074_v40, %v15155_v3  ;;  %v11076_v11 = vadd.f32 %v8950_v9, %v4599_v7  ;;  %v8952_v21 = vpop.f32.mrb[31].mxu0  ;;  %v9264_v51 = vld [vmem:[%s15164_s12 + $0x58] sm:$0xff] (%p12548_p4) }
 0x368   : > { %9172 = vst [vmem:[%s15164_s12 + $0x68] sm:$0xff] %v11042_v43  ;;  %v9028_v17 = vadd.f32 %v11075_v28, %v15157_v34  ;;  %v11077_v23 = vadd.f32 %v8952_v21, %v4601_v16  ;;  %9265 = vst [vmem:[%s9184_s22 + $0xb0] sm:$0xff] (%p12548_p4), %v9264_v51 }
 0x369   : > { %v9059_v29 = vmax.f32 %v9027_v10, 0.0  ;;  %v9029_v62 = vadd.f32 %v11076_v11, %v15155_v3  ;;  %v9242_v3 = vld [vmem:[%s15164_s12] sm:$0xff] (%p12548_p4) }
 0x36a   : > { %v9060_v52 = vmax.f32 %v9028_v17, 0.0  ;;  %v9030_v18 = vadd.f32 %v11077_v23, %v15157_v34  ;;  %9181 = sbr.rel (!%p12548_p4) target bundleno = 889 (0x379), region = 36  ;;  %v9244_v34 = vld [vmem:[%s15164_s12 + $0x8] sm:$0xff] (%p12548_p4)  ;;  %9243 = vst [vmem:[%s9184_s22] sm:$0xff] (%p12548_p4), %v9242_v3 }
 0x36b   : > { %v9061_v13 = vmax.f32 %v9029_v62, 0.0  ;;  %9245 = vst [vmem:[%s9184_s22 + $0x10] sm:$0xff] (%p12548_p4), %v9244_v34 }
 0x36c   : > { %v11043_v44 = vpack.c.bf16 %v9060_v52, %v9059_v29  ;;  %v9062_v24 = vmax.f32 %v9030_v18, 0.0 }
 0x36d   : > { %v9266_v30 = vld [vmem:[%s15164_s12 + $0x60] sm:$0xff] (%p12548_p4) }
 0x36e   : > { %9173 = vst [vmem:[%s15164_s12 + $0x70] sm:$0xff] %v11043_v44  ;;  %v11044_v25 = vpack.c.bf16 %v9062_v24, %v9061_v13  ;;  %9267 = vst [vmem:[%s9184_s22 + $0xc0] sm:$0xff] (%p12548_p4), %v9266_v30 }
 0x36f   : > { %v9268_v33 = vld [vmem:[%s15164_s12 + $0x68] sm:$0xff] (%p12548_p4) }
 0x370   : > { %9174 = vst [vmem:[%s15164_s12 + $0x78] sm:$0xff] %v11044_v25  ;;  %9269 = vst [vmem:[%s9184_s22 + $0xd0] sm:$0xff] (%p12548_p4), %v9268_v33 }
 0x375   : > { %v9270_v60 = vld [vmem:[%s15164_s12 + $0x70] sm:$0xff] }
 0x376   : > { %9271 = vst [vmem:[%s9184_s22 + $0xe0] sm:$0xff] %v9270_v60 }
 0x377   : > { %v9272_v20 = vld [vmem:[%s15164_s12 + $0x78] sm:$0xff] }
 0x378   : > { %9273 = vst [vmem:[%s9184_s22 + $0xf0] sm:$0xff] %v9272_v20 }
 0x379 PF: > { %p10_p9 = scmp.ge.s32.totalorder %s12538_s16, 4   ;;  %s15249_s12 = smov %s12497_s13 }
 0x37a   : > { %s15250_s13 = smov %s12546_s19  ;;  %s15251_s14 = smov %s12538_s16 }
 0x37b   :  { %12 = sbr.rel (!%p10_p9) target bundleno = 2 (0x2), region = 116 }

// kernel: discriminator_forward.4
= control target key start
LH: loop header
LB: loop body
LE: loop exit
PB: predicated region body
PF: predicated region fallthrough
CT: control target
= control target key end

     0   :  { %s9773_s12 = smov 0   ;;  %s9775_s13 = smov 0   ;;  %s11301_s0 = inlined_call_operand.vmem [shape: bf16[2,2,2,5,5,512], index: 0, kind: input, shape index: {}]   ;;  %s11302_s1 = inlined_call_operand.vmem [shape: bf16[2,9,512,256], index: 1, kind: input, shape index: {}]   ;;  %s11303_s2 = inlined_call_operand.vmem [shape: f32[1,512], index: 2, kind: input, shape index: {}]   ;;  %s11304_s3 = inlined_call_operand.vmem [shape: bf16[32,512], index: 3, kind: output, shape index: {}]  }
   0x1   :  { %s9777_s14 = smov 0  }
   0x2 LB: > { %s9786_s15 = sadd.s32 4294967295, %s9750_s14   ;;  %s9788_s16 = sadd.s32 1, %s9750_s14   ;;  %s9750_s14 = sphi %s9777_s14, %s11314_s14   ;;  %s9746_s13 = sphi %s9775_s13, %s11313_s13   ;;  %s9742_s12 = sphi %s9773_s12, %s11312_s12  }
   0x3   : > { %s90_s17 = ssub.s32 %s9750_s14, %s9788_s16  ;;  %s93_s18 = sadd.s32 1, %s9746_s13 }
   0x4   : > { %p91_p0 = scmp.eq.s32.totalorder %s90_s17, 0  ;;  %p103_p1 = scmp.ne.s32.totalorder %s9746_s13, %s9742_s12 }
   0x5   : > { %p104_p2 = scmp.eq.s32.totalorder %s9786_s15, 1  ;;  %p7292_p3 = scmp.ge.s32.totalorder %s9750_s14, 1 }
   0x6   : > { %s9796_s19 = scalar_select %p91_p0, %s9746_s13, %s93_s18  }
   0x7   : > { %p9798_p4 = por %p104_p2, %p103_p1  ;;  %p147_p5 = scmp.lt.s32.totalorder %s9750_s14, 3 }
   0x9   : > { %p148_p6 = pnand %p7292_p3, %p147_p5 }
   0xa   : > { %p174_p7 = scmp.lt.s32.totalorder (!%p148_p6), %s9786_s15, 1  ;;  %v7328_v0 = vld.sshfl [vmem:[%s11301_s0 + $0xa0] sm:$0xf pattern:$0x76325410] (!%p148_p6)  ;;  %v626_v1 = vlaneseq (!%p148_p6)  ;;  %s171_s5 = sand.u32 (!%p148_p6), 1, %s9742_s12  }
   0xb   : > { %151 = sbr.rel (%p148_p6) target bundleno = 841 (0x349), region = 32  ;;  %v7330_v2 = vld.sshfl [vmem:[%s11301_s0 + $0xb0] sm:$0xf pattern:$0x76325410] (!%p148_p6)  ;;  %s7293_s7 = sshll.u32 (!%p148_p6), %s171_s5, 5 }
   0xc   : > { %v7332_v3 = vld.sshfl [vmem:[%s11301_s0 + $0xc0] sm:$0xf pattern:$0x76325410] (!%p148_p6)  ;;  %v9752_v4 = vmov (!%p148_p6), 1983009808   ;;  %v7408_v8 = vcombine.low (!%p148_p6), %v7328_v0, %v7330_v2 }
   0xd   : > { %v624_v5 = vunpack.c.l.s4 (!%p148_p6), %v9752_v4  ;;  %v9813_v6 = vshrl.u32 (!%p148_p6), %v626_v1, 7  ;;  %v7334_v7 = vld.sshfl [vmem:[%s11301_s0 + $0xd0] sm:$0xf pattern:$0x76325410] (!%p148_p6)  ;;  %s11275_s12 = scalar_lea.vmem (!%p148_p6), [#allocation2], %s7293_s7 }
   0xe   : > { %v7410_v9 = vcombine.low (!%p148_p6), %v7332_v3, %v7334_v7  ;;  %v7881_v56 = vld.sshfl [vmem:[%s11301_s0 + $0x1e8] sm:$0xf pattern:$0x76325410] (!%p148_p6)  ;;  %vm1791_vm0 = vsmask.f32 (!%p148_p6), 1280 }
   0xf   : > { %v625_v10 = vunpack.c.0.s8 (!%p148_p6), %v624_v5  ;;  %v7883_v58 = vld.sshfl [vmem:[%s11301_s0 + $0x1f8] sm:$0xf pattern:$0x76325410] (!%p148_p6)  ;;  %vm1792_vm1 = vsmask.f32 (!%p148_p6), 3336 }
  0x10   : > { %v7961_v63 = vcombine.low (!%p148_p6), %v7881_v56, %v7883_v58  ;;  %v7885_v0 = vld.sshfl [vmem:[%s11301_s0 + $0x208] sm:$0xf pattern:$0x76325410] (!%p148_p6)  ;;  %vm1794_vm2 = vsmask.f32 (!%p148_p6), 5392  ;;  %vm10024_vm4 = vmor (!%p148_p6), %vm1791_vm0, %vm1792_vm1 }
  0x11   : > { %v9824_v11 = vsub.s32 (!%p148_p6), %v625_v10, %v9813_v6  ;;  %v7887_v3 = vld.sshfl [vmem:[%s11301_s0 + $0x218] sm:$0xf pattern:$0x76325410] (!%p148_p6)  ;;  %vm1796_vm3 = vsmask.f32 (!%p148_p6), 7448  ;;  %vm10040_vm5 = vmor (!%p148_p6), %vm10024_vm4, %vm1794_vm2 }
  0x12   : > { %s175_s25 = scalar_select %p174_p7, %s9786_s15, 1  ;;  %v7963_v7 = vcombine.low %v7885_v0, %v7887_v3  ;;  %v7893_v0 = vld.sshfl [vmem:[%s11301_s0 + $0x258] sm:$0xf pattern:$0x76325410]  ;;  %vm10049_vm6 = vmor %vm10040_vm5, %vm1796_vm3 }
  0x13   : > { %v9829_v14 = vrot.slane %v7408_v8, %v9824_v11  ;;  %v9832_v15 = vrot.slane %v7410_v9, %v9824_v11  ;;  %v3456_v8 = vrot.slane %v7961_v63, %v9824_v11  ;;  %s8701_s8 = sshll.u32 (%p9798_p4), %s9786_s15, 3 }
  0x14   : > { %s8838_s30 = smul.u32 4608, %s175_s25  ;;  %v3470_v10 = vrot.slane %v7963_v7, %v9824_v11  ;;  %s7184_s11 = scalar_lea.vmem (%p9798_p4), %s11304_s3, %s8701_s8 }
  0x15   : > { %v652_v19 = vcombine.high %v9829_v14, %v9832_v15 }
  0x16   : > { %s9821_s6 = scalar_lea.vmem %s11302_s1, %s8838_s30 }
  0x17   : > { %v8864_v12 = vld [vmem:[%s9821_s6 + $0x204] ss:$8 sps:$4 sm:$0xff]   ;;  %v8868_v16 = vld [vmem:[%s9821_s6 + $0x200] ss:$8 sps:$4 sm:$0xff]   ;;  %v8870_v18 = vld [vmem:[%s9821_s6 + $0x214] ss:$8 sps:$4 sm:$0xff]   ;;  %1051 = vmatprep.mubr.bf16.mxu1 %v652_v19 }
  0x18   : > { %v8866_v13 = vld [vmem:[%s9821_s6 + $0x904] ss:$8 sps:$4 sm:$0xff]   ;;  %1019 = vmatprep.subr.bf16.mxu1 %v8864_v12  ;;  %v8869_v17 = vld [vmem:[%s9821_s6 + $0x900] ss:$8 sps:$4 sm:$0xff]   ;;  %v8872_v20 = vld [vmem:[%s9821_s6 + $0x914] ss:$8 sps:$4 sm:$0xff]  }
  0x19   : > { %3892 = vmatprep.subr.bf16.mxu0 %v8866_v13  ;;  %1020 = vmatpush1.bf16.msra.mxu1 %v8868_v16  ;;  %v8874_v21 = vld [vmem:[%s9821_s6 + $0x210] ss:$8 sps:$4 sm:$0xff]   ;;  %v8876_v23 = vld [vmem:[%s9821_s6 + $0x224] ss:$8 sps:$4 sm:$0xff]   ;;  %v8880_v25 = vld [vmem:[%s9821_s6 + $0x220] ss:$8 sps:$4 sm:$0xff]  }
  0x1a   : > { %3893 = vmatpush1.bf16.msra.mxu0 %v8869_v17  ;;  %1021 = vmatprep.subr.bf16.mxu1 %v8870_v18  ;;  %v8875_v22 = vld [vmem:[%s9821_s6 + $0x910] ss:$8 sps:$4 sm:$0xff]   ;;  %v8878_v24 = vld [vmem:[%s9821_s6 + $0x924] ss:$8 sps:$4 sm:$0xff]   ;;  %v8881_v26 = vld [vmem:[%s9821_s6 + $0x920] ss:$8 sps:$4 sm:$0xff]   ;;  %v3474_v17 = vcombine.high %v3456_v8, %v3470_v10 }
  0x1b   : > { %3894 = vmatprep.subr.bf16.mxu0 %v8872_v20  ;;  %v8882_v27 = vld [vmem:[%s9821_s6 + $0x234] ss:$8 sps:$4 sm:$0xff]   ;;  %v8886_v29 = vld [vmem:[%s9821_s6 + $0x230] ss:$8 sps:$4 sm:$0xff]   ;;  %v8888_v31 = vld [vmem:[%s9821_s6 + $0x244] ss:$8 sps:$4 sm:$0xff]  }
  0x1c   : > { %v8884_v28 = vld [vmem:[%s9821_s6 + $0x934] ss:$8 sps:$4 sm:$0xff]   ;;  %v8887_v30 = vld [vmem:[%s9821_s6 + $0x930] ss:$8 sps:$4 sm:$0xff]   ;;  %v8890_v32 = vld [vmem:[%s9821_s6 + $0x944] ss:$8 sps:$4 sm:$0xff]   ;;  %3924 = vmatprep.mubr.bf16.mxu0 %v3474_v17 }
  0x1d   : > { %1022 = vmatpush1.bf16.msra.mxu1 %v8874_v21  ;;  %v8892_v33 = vld [vmem:[%s9821_s6 + $0x240] ss:$8 sps:$4 sm:$0xff]   ;;  %v8894_v35 = vld [vmem:[%s9821_s6 + $0x254] ss:$8 sps:$4 sm:$0xff]   ;;  %v8898_v37 = vld [vmem:[%s9821_s6 + $0x250] ss:$8 sps:$4 sm:$0xff]  }
  0x1e   : > { %3895 = vmatpush1.bf16.msra.mxu0 %v8875_v22  ;;  %1023 = vmatprep.subr.bf16.mxu1 %v8876_v23  ;;  %v8893_v34 = vld [vmem:[%s9821_s6 + $0x940] ss:$8 sps:$4 sm:$0xff]   ;;  %v8896_v36 = vld [vmem:[%s9821_s6 + $0x954] ss:$8 sps:$4 sm:$0xff]   ;;  %v8899_v38 = vld [vmem:[%s9821_s6 + $0x950] ss:$8 sps:$4 sm:$0xff]  }
  0x1f   : > { %3896 = vmatprep.subr.bf16.mxu0 %v8878_v24  ;;  %v8900_v39 = vld [vmem:[%s9821_s6 + $0x264] ss:$8 sps:$4 sm:$0xff]   ;;  %v8904_v41 = vld [vmem:[%s9821_s6 + $0x260] ss:$8 sps:$4 sm:$0xff]   ;;  %v8906_v43 = vld [vmem:[%s9821_s6 + $0x274] ss:$8 sps:$4 sm:$0xff]  }
  0x20   : > { %v8902_v40 = vld [vmem:[%s9821_s6 + $0x964] ss:$8 sps:$4 sm:$0xff]   ;;  %v8905_v42 = vld [vmem:[%s9821_s6 + $0x960] ss:$8 sps:$4 sm:$0xff]   ;;  %v8908_v44 = vld [vmem:[%s9821_s6 + $0x974] ss:$8 sps:$4 sm:$0xff]  }
  0x21   : > { %1024 = vmatpush1.bf16.msra.mxu1 %v8880_v25  ;;  %v8910_v45 = vld [vmem:[%s9821_s6 + $0x270] ss:$8 sps:$4 sm:$0xff]   ;;  %v8912_v47 = vld [vmem:[%s9821_s6 + $0x284] ss:$8 sps:$4 sm:$0xff]   ;;  %v8916_v49 = vld [vmem:[%s9821_s6 + $0x280] ss:$8 sps:$4 sm:$0xff]  }
  0x22   : > { %3897 = vmatpush1.bf16.msra.mxu0 %v8881_v26  ;;  %1025 = vmatprep.subr.bf16.mxu1 %v8882_v27  ;;  %v8911_v46 = vld [vmem:[%s9821_s6 + $0x970] ss:$8 sps:$4 sm:$0xff]   ;;  %v8914_v48 = vld [vmem:[%s9821_s6 + $0x984] ss:$8 sps:$4 sm:$0xff]   ;;  %v8917_v50 = vld [vmem:[%s9821_s6 + $0x980] ss:$8 sps:$4 sm:$0xff]  }
  0x23   : > { %3898 = vmatprep.subr.bf16.mxu0 %v8884_v28  ;;  %v8918_v51 = vld [vmem:[%s9821_s6 + $0x294] ss:$8 sps:$4 sm:$0xff]   ;;  %v8922_v53 = vld [vmem:[%s9821_s6 + $0x290] ss:$8 sps:$4 sm:$0xff]   ;;  %v8924_v55 = vld [vmem:[%s9821_s6 + $0x2a4] ss:$8 sps:$4 sm:$0xff]  }
  0x24   : > { %v8920_v52 = vld [vmem:[%s9821_s6 + $0x994] ss:$8 sps:$4 sm:$0xff]   ;;  %v8923_v54 = vld [vmem:[%s9821_s6 + $0x990] ss:$8 sps:$4 sm:$0xff]   ;;  %v8926_v57 = vld [vmem:[%s9821_s6 + $0x9a4] ss:$8 sps:$4 sm:$0xff]  }
  0x25   : > { %1026 = vmatpush1.bf16.msra.mxu1 %v8886_v29  ;;  %v8928_v59 = vld [vmem:[%s9821_s6 + $0x2a0] ss:$8 sps:$4 sm:$0xff]   ;;  %v8930_v61 = vld [vmem:[%s9821_s6 + $0x2b4] ss:$8 sps:$4 sm:$0xff]   ;;  %v8934_v1 = vld [vmem:[%s9821_s6 + $0x2b0] ss:$8 sps:$4 sm:$0xff]  }
  0x26   : > { %3899 = vmatpush1.bf16.msra.mxu0 %v8887_v30  ;;  %1027 = vmatprep.subr.bf16.mxu1 %v8888_v31  ;;  %v8929_v60 = vld [vmem:[%s9821_s6 + $0x9a0] ss:$8 sps:$4 sm:$0xff]   ;;  %v8932_v62 = vld [vmem:[%s9821_s6 + $0x9b4] ss:$8 sps:$4 sm:$0xff]   ;;  %v8935_v2 = vld [vmem:[%s9821_s6 + $0x9b0] ss:$8 sps:$4 sm:$0xff]   ;;  %v651_v31 = vcombine.low %v9829_v14, %v9832_v15 }
  0x27   : > { %3900 = vmatprep.subr.bf16.mxu0 %v8890_v32  ;;  %v8936_v4 = vld [vmem:[%s9821_s6 + $0x2c4] ss:$8 sps:$4 sm:$0xff]   ;;  %v8940_v9 = vld [vmem:[%s9821_s6 + $0x2c0] ss:$8 sps:$4 sm:$0xff]   ;;  %v8942_v13 = vld [vmem:[%s9821_s6 + $0x2d4] ss:$8 sps:$4 sm:$0xff]   ;;  %v3473_v32 = vcombine.low %v3456_v8, %v3470_v10 }
  0x28   : > { %v8938_v5 = vld [vmem:[%s9821_s6 + $0x9c4] ss:$8 sps:$4 sm:$0xff]   ;;  %v8941_v12 = vld [vmem:[%s9821_s6 + $0x9c0] ss:$8 sps:$4 sm:$0xff]   ;;  %v8944_v16 = vld [vmem:[%s9821_s6 + $0x9d4] ss:$8 sps:$4 sm:$0xff]  }
  0x29   : > { %1028 = vmatpush1.bf16.msra.mxu1 %v8892_v33  ;;  %v8946_v18 = vld [vmem:[%s9821_s6 + $0x2d0] ss:$8 sps:$4 sm:$0xff]   ;;  %v8948_v20 = vld [vmem:[%s9821_s6 + $0x2e4] ss:$8 sps:$4 sm:$0xff]   ;;  %v8952_v22 = vld [vmem:[%s9821_s6 + $0x2e0] ss:$8 sps:$4 sm:$0xff]  }
  0x2a   : > { %3901 = vmatpush1.bf16.msra.mxu0 %v8893_v34  ;;  %1029 = vmatprep.subr.bf16.mxu1 %v8894_v35  ;;  %v8947_v19 = vld [vmem:[%s9821_s6 + $0x9d0] ss:$8 sps:$4 sm:$0xff]   ;;  %v8950_v21 = vld [vmem:[%s9821_s6 + $0x9e4] ss:$8 sps:$4 sm:$0xff]   ;;  %v8953_v23 = vld [vmem:[%s9821_s6 + $0x9e0] ss:$8 sps:$4 sm:$0xff]  }
  0x2b   : > { %3902 = vmatprep.subr.bf16.mxu0 %v8896_v36  ;;  %v8954_v24 = vld [vmem:[%s9821_s6 + $0x2f4] ss:$8 sps:$4 sm:$0xff]   ;;  %v8958_v26 = vld [vmem:[%s9821_s6 + $0x2f0] ss:$8 sps:$4 sm:$0xff]   ;;  %v8962_v28 = vld [vmem:[%s9821_s6 + $0x304] ss:$8 sps:$4 sm:$0xff]  }
  0x2c   : > { %v8956_v25 = vld [vmem:[%s9821_s6 + $0x9f4] ss:$8 sps:$4 sm:$0xff]   ;;  %v8959_v27 = vld [vmem:[%s9821_s6 + $0x9f0] ss:$8 sps:$4 sm:$0xff]   ;;  %v8965_v29 = vld [vmem:[%s9821_s6 + $0xa04] ss:$8 sps:$4 sm:$0xff]  }
  0x2d   : > { %1030 = vmatpush1.bf16.msra.mxu1 %v8898_v37  ;;  %v8960_v30 = vld [vmem:[%s9821_s6 + $0x300] ss:$8 sps:$4 sm:$0xff]   ;;  %v8968_v34 = vld [vmem:[%s9821_s6 + $0x314] ss:$8 sps:$4 sm:$0xff]   ;;  %v8966_v36 = vld [vmem:[%s9821_s6 + $0x310] ss:$8 sps:$4 sm:$0xff]  }
  0x2e   : > { %3903 = vmatpush1.bf16.msra.mxu0 %v8899_v38  ;;  %1031 = vmatprep.subr.bf16.mxu1 %v8900_v39  ;;  %v8963_v33 = vld [vmem:[%s9821_s6 + $0xa00] ss:$8 sps:$4 sm:$0xff]   ;;  %v8971_v35 = vld [vmem:[%s9821_s6 + $0xa14] ss:$8 sps:$4 sm:$0xff]   ;;  %v8969_v14 = vld [vmem:[%s9821_s6 + $0xa10] ss:$8 sps:$4 sm:$0xff]  }
  0x2f   : > { %3904 = vmatprep.subr.bf16.mxu0 %v8902_v40  ;;  %v8974_v15 = vld [vmem:[%s9821_s6 + $0x324] ss:$8 sps:$4 sm:$0xff]   ;;  %v8972_v38 = vld [vmem:[%s9821_s6 + $0x320] ss:$8 sps:$4 sm:$0xff]   ;;  %v8980_v40 = vld [vmem:[%s9821_s6 + $0x334] ss:$8 sps:$4 sm:$0xff]  }
  0x30   : > { %v8977_v37 = vld [vmem:[%s9821_s6 + $0xa24] ss:$8 sps:$4 sm:$0xff]   ;;  %v8975_v39 = vld [vmem:[%s9821_s6 + $0xa20] ss:$8 sps:$4 sm:$0xff]   ;;  %v9007_v10 = vld [vmem:[%s9821_s6 + $0xa74] ss:$8 sps:$4 sm:$0xff]  }
  0x31   : > { %1032 = vmatpush1.bf16.msra.mxu1 %v8904_v41  ;;  %v8983_v41 = vld [vmem:[%s9821_s6 + $0xa34] ss:$8 sps:$4 sm:$0xff]   ;;  %v8998_v56 = vld [vmem:[%s9821_s6 + $0x364] ss:$8 sps:$4 sm:$0xff]   ;;  %v8996_v3 = vld [vmem:[%s9821_s6 + $0x360] ss:$8 sps:$4 sm:$0xff]  }
  0x32   : > { %3905 = vmatpush1.bf16.msra.mxu0 %v8905_v42  ;;  %1033 = vmatprep.subr.bf16.mxu1 %v8906_v43  ;;  %v8978_v42 = vld [vmem:[%s9821_s6 + $0x330] ss:$8 sps:$4 sm:$0xff]  }
  0x33   : > { %3906 = vmatprep.subr.bf16.mxu0 %v8908_v44  ;;  %v8981_v43 = vld [vmem:[%s9821_s6 + $0xa30] ss:$8 sps:$4 sm:$0xff]   ;;  %v8986_v44 = vld [vmem:[%s9821_s6 + $0x344] ss:$8 sps:$4 sm:$0xff]  }
  0x35   : > { %1034 = vmatpush1.bf16.msra.mxu1 %v8910_v45  ;;  %v8989_v45 = vld [vmem:[%s9821_s6 + $0xa44] ss:$8 sps:$4 sm:$0xff]  }
  0x36   : > { %3907 = vmatpush1.bf16.msra.mxu0 %v8911_v46  ;;  %1035 = vmatprep.subr.bf16.mxu1 %v8912_v47  ;;  %v8984_v46 = vld [vmem:[%s9821_s6 + $0x340] ss:$8 sps:$4 sm:$0xff]  }
  0x37   : > { %3908 = vmatprep.subr.bf16.mxu0 %v8914_v48  ;;  %v8987_v47 = vld [vmem:[%s9821_s6 + $0xa40] ss:$8 sps:$4 sm:$0xff]   ;;  %v8992_v48 = vld [vmem:[%s9821_s6 + $0x354] ss:$8 sps:$4 sm:$0xff]  }
  0x39   : > { %1036 = vmatpush1.bf16.msra.mxu1 %v8916_v49  ;;  %v8995_v49 = vld [vmem:[%s9821_s6 + $0xa54] ss:$8 sps:$4 sm:$0xff]  }
  0x3a   : > { %3909 = vmatpush1.bf16.msra.mxu0 %v8917_v50  ;;  %1037 = vmatprep.subr.bf16.mxu1 %v8918_v51  ;;  %v7336_v50 = vld.sshfl [vmem:[%s11301_s0 + $0xf0] sm:$0xf pattern:$0x76325410] }
  0x3b   : > { %3910 = vmatprep.subr.bf16.mxu0 %v8920_v52  ;;  %v7338_v51 = vld.sshfl [vmem:[%s11301_s0 + $0x100] sm:$0xf pattern:$0x76325410]  ;;  %v8990_v52 = vld [vmem:[%s9821_s6 + $0x350] ss:$8 sps:$4 sm:$0xff]  }
  0x3d   : > { %1038 = vmatpush1.bf16.msra.mxu1 %v8922_v53  ;;  %v8993_v53 = vld [vmem:[%s9821_s6 + $0xa50] ss:$8 sps:$4 sm:$0xff]  }
  0x3e   : > { %3911 = vmatpush1.bf16.msra.mxu0 %v8923_v54  ;;  %1039 = vmatprep.subr.bf16.mxu1 %v8924_v55  ;;  %v7340_v54 = vld.sshfl [vmem:[%s11301_s0 + $0x110] sm:$0xf pattern:$0x76325410]  ;;  %v7412_v55 = vcombine.low %v7336_v50, %v7338_v51 }
  0x3f   : > { %3912 = vmatprep.subr.bf16.mxu0 %v8926_v57  ;;  %v7342_v57 = vld.sshfl [vmem:[%s11301_s0 + $0x120] sm:$0xf pattern:$0x76325410] }
  0x40   : > { %v7414_v58 = vcombine.low %v7340_v54, %v7342_v57  ;;  %v8054_v50 = vld.sshfl [vmem:[%s11301_s0 + $0x170] sm:$0x5f pattern:$0x76325410] }
  0x41   : > { %1040 = vmatpush1.bf16.msra.mxu1 %v8928_v59  ;;  %v665_v59 = vrot.slane %v7412_v55, %v9824_v11  ;;  %v8055_v55 = vld.sshfl [vmem:[%s11301_s0 + $0x178] sm:$0x5f pattern:$0x76325410] }
  0x42   : > { %3913 = vmatpush1.bf16.msra.mxu0 %v8929_v60  ;;  %1041 = vmatprep.subr.bf16.mxu1 %v8930_v61  ;;  %v7889_v60 = vld.sshfl [vmem:[%s11301_s0 + $0x238] sm:$0xf pattern:$0x76325410]  ;;  %v9001_v61 = vld [vmem:[%s9821_s6 + $0xa64] ss:$8 sps:$4 sm:$0xff]   ;;  %v679_v63 = vrot.slane %v7414_v58, %v9824_v11 }
  0x43   : > { %3914 = vmatprep.subr.bf16.mxu0 %v8932_v62  ;;  %v7891_v62 = vld.sshfl [vmem:[%s11301_s0 + $0x248] sm:$0xf pattern:$0x76325410] }
  0x44   : > { %v9020_v58 = vld [vmem:[%s9821_s6 + $0x3a0] ss:$8 sps:$4 sm:$0xff]  }
  0x45   : > { %1042 = vmatpush1.bf16.msra.mxu1 %v8934_v1  ;;  %v7965_v1 = vcombine.low %v7889_v60, %v7891_v62  ;;  %v4047_v60 = vcombine.low %v8054_v50, %v8055_v55 }
  0x46   : > { %3915 = vmatpush1.bf16.msra.mxu0 %v8935_v2  ;;  %1043 = vmatprep.subr.bf16.mxu1 %v8936_v4  ;;  %v7895_v2 = vld.sshfl [vmem:[%s11301_s0 + $0x268] sm:$0xf pattern:$0x76325410] }
  0x47   : > { %3916 = vmatprep.subr.bf16.mxu0 %v8938_v5  ;;  %v8999_v4 = vld [vmem:[%s9821_s6 + $0xa60] ss:$8 sps:$4 sm:$0xff]   ;;  %v688_v5 = vcombine.high %v665_v59, %v679_v63  ;;  %v7967_v7 = vcombine.low %v7893_v0, %v7895_v2  ;;  %v3492_v8 = vrot.slane %v7965_v1, %v9824_v11 }
  0x48   : > { %v9059_v0 = vld [vmem:[%s9821_s6 + $0xb00] ss:$8 sps:$4 sm:$0xff]  }
  0x49   : > { %1044 = vmatpush1.bf16.msra.mxu1 %v8940_v9  ;;  %v9004_v9 = vld [vmem:[%s9821_s6 + $0x374] ss:$8 sps:$4 sm:$0xff]   ;;  %v3506_v17 = vrot.slane %v7967_v7, %v9824_v11 }
  0x4a   : > { %3917 = vmatpush1.bf16.msra.mxu0 %v8941_v12  ;;  %1045 = vmatprep.subr.bf16.mxu1 %v8942_v13  ;;  %v687_v12 = vcombine.low %v665_v59, %v679_v63  ;;  %v9002_v13 = vld [vmem:[%s9821_s6 + $0x370] ss:$8 sps:$4 sm:$0xff]   ;;  %v9023_v59 = vld [vmem:[%s9821_s6 + $0xaa0] ss:$8 sps:$4 sm:$0xff]   ;;  %v9028_v63 = vld [vmem:[%s9821_s6 + $0x3b4] ss:$8 sps:$4 sm:$0xff]  }
  0x4b   : > { %3918 = vmatprep.subr.bf16.mxu0 %v8944_v16  ;;  %v9005_v16 = vld [vmem:[%s9821_s6 + $0xa70] ss:$8 sps:$4 sm:$0xff]  }
  0x4d   : > { %1046 = vmatpush1.bf16.msra.mxu1 %v8946_v18  ;;  %v7329_v18 = vld.sshfl [vmem:[%s11301_s0 + $0xa8] sm:$0xf pattern:$0x76325410] }
  0x4e   : > { %3919 = vmatpush1.bf16.msra.mxu0 %v8947_v19  ;;  %1047 = vmatprep.subr.bf16.mxu1 %v8948_v20  ;;  %v9010_v19 = vld [vmem:[%s9821_s6 + $0x384] ss:$8 sps:$4 sm:$0xff]   ;;  %v7331_v20 = vld.sshfl [vmem:[%s11301_s0 + $0xb8] sm:$0xf pattern:$0x76325410] }
  0x4f   : > { %3920 = vmatprep.subr.bf16.mxu0 %v8950_v21  ;;  %v9013_v21 = vld [vmem:[%s9821_s6 + $0xa84] ss:$8 sps:$4 sm:$0xff]  }
  0x51   : > { %1048 = vmatpush1.bf16.msra.mxu1 %v8952_v22  ;;  %v3510_v22 = vcombine.high %v3492_v8, %v3506_v17 }
  0x52   : > { %3921 = vmatpush1.bf16.msra.mxu0 %v8953_v23  ;;  %1049 = vmatprep.subr.bf16.mxu1 %v8954_v24  ;;  %v3509_v23 = vcombine.low %v3492_v8, %v3506_v17  ;;  %v7333_v24 = vld.sshfl [vmem:[%s11301_s0 + $0xc8] sm:$0xf pattern:$0x76325410]  ;;  %v4156_v8 = vshrl.u32 %v4047_v60, 16 }
  0x53   : > { %3922 = vmatprep.subr.bf16.mxu0 %v8956_v25  ;;  %v7409_v25 = vcombine.low %v7329_v18, %v7331_v20  ;;  %v9026_v18 = vld [vmem:[%s9821_s6 + $0x3b0] ss:$8 sps:$4 sm:$0xff]  }
  0x55   : > { %1050 = vmatpush1.bf16.msra.mxu1 %v8958_v26  ;;  %v7335_v26 = vld.sshfl [vmem:[%s11301_s0 + $0xd8] sm:$0xf pattern:$0x76325410] }
  0x56   : > { %3923 = vmatpush1.bf16.msra.mxu0 %v8959_v27  ;;  %1072 = vmatprep.subr.bf16.mxu1 %v8962_v28  ;;  %v9008_v27 = vld [vmem:[%s9821_s6 + $0x380] ss:$8 sps:$4 sm:$0xff]  }
  0x57   : > { %4690 = vmatprep.subr.bf16.mxu0 %v8965_v29  ;;  %v9011_v28 = vld [vmem:[%s9821_s6 + $0xa80] ss:$8 sps:$4 sm:$0xff]   ;;  %v7411_v29 = vcombine.low %v7333_v24, %v7335_v26 }
  0x58   : > { %1052 = vmatmul.mubr.bf16.vlgmr.msra.gmra.mrb[0].mxu1 %v651_v31  ;;  %v8048_v31 = vld.sshfl [vmem:[%s11301_s0 + $0x140] sm:$0x5f pattern:$0x76325410] }
  0x59   : > { %3925 = vmatmul.mubr.bf16.vlgmr.msra.gmra.mrb[0].mxu0 %v3473_v32  ;;  %1073 = vmatpush1.bf16.msra.mxu1 %v8960_v30  ;;  %v9991_v30 = vrot.slane %v7409_v25, %v9824_v11  ;;  %v9016_v32 = vld [vmem:[%s9821_s6 + $0x394] ss:$8 sps:$4 sm:$0xff]  }
  0x5a   : > { %4691 = vmatpush1.bf16.msra.mxu0 %v8963_v33  ;;  %1074 = vmatprep.subr.bf16.mxu1 %v8968_v34  ;;  %v8049_v33 = vld.sshfl [vmem:[%s11301_s0 + $0x148] sm:$0x5f pattern:$0x76325410]  ;;  %v10001_v34 = vrot.slane %v7411_v29, %v9824_v11 }
  0x5b   : > { %4692 = vmatprep.subr.bf16.mxu0 %v8971_v35  ;;  %1061 = vmatprep.mubr.bf16.mxu1 %v688_v5  ;;  %v8050_v35 = vld.sshfl [vmem:[%s11301_s0 + $0x150] sm:$0x5f pattern:$0x76325410] }
  0x5c   : > { %3934 = vmatprep.mubr.bf16.mxu0 %v3510_v22 }
  0x5d   : > { %1075 = vmatpush1.bf16.msra.mxu1 %v8966_v36  ;;  %v3999_v36 = vcombine.low %v8048_v31, %v8049_v33 }
  0x5e   : > { %4693 = vmatpush1.bf16.msra.mxu0 %v8969_v14  ;;  %1076 = vmatprep.subr.bf16.mxu1 %v8974_v15  ;;  %v4000_v14 = vcombine.high %v8048_v31, %v8049_v33  ;;  %v9019_v15 = vld [vmem:[%s9821_s6 + $0xa94] ss:$8 sps:$4 sm:$0xff]  }
  0x5f   : > { %4694 = vmatprep.subr.bf16.mxu0 %v8977_v37  ;;  %v8051_v37 = vld.sshfl [vmem:[%s11301_s0 + $0x158] sm:$0x5f pattern:$0x76325410] }
  0x60   : > { %1062 = vmatmul.mubr.bf16.gmra.mrb[4].mxu1 %v687_v12 }
  0x61   : > { %1077 = vmatpush1.bf16.msra.mxu1 %v8972_v38  ;;  %3935 = vmatmul.mubr.bf16.gmra.mrb[4].mxu0 %v3509_v23  ;;  %v9014_v38 = vld [vmem:[%s9821_s6 + $0x390] ss:$8 sps:$4 sm:$0xff]  }
  0x62   : > { %4695 = vmatpush1.bf16.msra.mxu0 %v8975_v39  ;;  %1078 = vmatprep.subr.bf16.mxu1 %v8980_v40  ;;  %v9017_v39 = vld [vmem:[%s9821_s6 + $0xa90] ss:$8 sps:$4 sm:$0xff]   ;;  %v654_v40 = vcombine.high %v9991_v30, %v10001_v34 }
  0x63   : > { %4696 = vmatprep.subr.bf16.mxu0 %v8983_v41  ;;  %v8052_v41 = vld.sshfl [vmem:[%s11301_s0 + $0x160] sm:$0x5f pattern:$0x76325410]  ;;  %v9029_v23 = vld [vmem:[%s9821_s6 + $0xab0] ss:$8 sps:$4 sm:$0xff]  }
  0x64   : > { %1104 = vmatprep.mubr.bf16.mxu1 %v654_v40 }
  0x65   : > { %1079 = vmatpush1.bf16.msra.mxu1 %v8978_v42  ;;  %v4015_v42 = vcombine.low %v8050_v35, %v8051_v37 }
  0x66   : > { %4697 = vmatpush1.bf16.msra.mxu0 %v8981_v43  ;;  %1080 = vmatprep.subr.bf16.mxu1 %v8986_v44  ;;  %v9022_v43 = vld [vmem:[%s9821_s6 + $0x3a4] ss:$8 sps:$4 sm:$0xff]  }
  0x67   : > { %4698 = vmatprep.subr.bf16.mxu0 %v8989_v45  ;;  %v9025_v44 = vld [vmem:[%s9821_s6 + $0xaa4] ss:$8 sps:$4 sm:$0xff]   ;;  %v4128_v54 = vshrl.u32 %v4015_v42, 16  ;;  %v4131_v2 = vshll.u32 %v4015_v42, 16 }
  0x68   : > { %v8053_v45 = vld.sshfl [vmem:[%s11301_s0 + $0x168] sm:$0x5f pattern:$0x76325410] }
  0x69   : > { %1081 = vmatpush1.bf16.msra.mxu1 %v8984_v46  ;;  %v4016_v46 = vcombine.high %v8050_v35, %v8051_v37  ;;  %v4031_v51 = vcombine.low %v8052_v41, %v8053_v45  ;;  %v4130_v62 = vrot.slane %v4128_v54, 6  ;;  %v9032_v37 = vld [vmem:[%s9821_s6 + $0x3c0] ss:$8 sps:$4 sm:$0xff]  }
  0x6a   : > { %4699 = vmatpush1.bf16.msra.mxu0 %v8987_v47  ;;  %1082 = vmatprep.subr.bf16.mxu1 %v8992_v48  ;;  %v4114_v47 = vshrl.u32 %v3999_v36, 16  ;;  %v4117_v48 = vshll.u32 %v3999_v36, 16  ;;  %v9047_v54 = vld [vmem:[%s9821_s6 + $0xae0] ss:$8 sps:$4 sm:$0xff]  }
  0x6b   : > { %4700 = vmatprep.subr.bf16.mxu0 %v8995_v49  ;;  %v4145_v5 = vshll.u32 %v4031_v51, 16  ;;  %v9041_v49 = vld [vmem:[%s9821_s6 + $0xad0] ss:$8 sps:$4 sm:$0xff]  }
  0x6c   : > { %v4119_v57 = vrot.slane %v4117_v48, 7 }
  0x6d   : > { %1083 = vmatpush1.bf16.msra.mxu1 %v8990_v52  ;;  %v4032_v52 = vcombine.high %v8052_v41, %v8053_v45  ;;  %v4147_v20 = vrot.slane %v4145_v5, 7  ;;  %v9068_v5 = vld [vmem:[%s9821_s6 + $0x20] ss:$8 sps:$4 sm:$0xff]  }
  0x6e   : > { %4701 = vmatpush1.bf16.msra.mxu0 %v8993_v53  ;;  %1084 = vmatprep.subr.bf16.mxu1 %v8998_v56  ;;  %v4123_v53 = vshll.u32 %v4000_v14, 16  ;;  %v4116_v56 = vrot.slane %v4114_v47, 6  ;;  %v9038_v47 = vld [vmem:[%s9821_s6 + $0x3d0] ss:$8 sps:$4 sm:$0xff]  }
  0x6f   : > { %4702 = vmatprep.subr.bf16.mxu0 %v9001_v61  ;;  %v4048_v61 = vcombine.high %v8054_v50, %v8055_v55  ;;  %v4151_v7 = vshll.u32 %v4032_v52, 16  ;;  %v9046_v50 = vld [vmem:[%s9821_s6 + $0x3e4] ss:$8 sps:$4 sm:$0xff]   ;;  %v9052_v55 = vld [vmem:[%s9821_s6 + $0x3f4] ss:$8 sps:$4 sm:$0xff]  }
  0x70   : > { %v4120_v1 = vor.u32 %v4119_v57, %v4116_v56  ;;  %v9055_v56 = vld [vmem:[%s9821_s6 + $0xaf4] ss:$8 sps:$4 sm:$0xff]   ;;  %v9050_v57 = vld [vmem:[%s9821_s6 + $0x3f0] ss:$8 sps:$4 sm:$0xff]  }
  0x71   : > { %1085 = vmatpush1.bf16.msra.mxu1 %v8996_v3  ;;  %v4137_v3 = vshll.u32 %v4016_v46, 16  ;;  %v4165_v26 = vshll.u32 %v4048_v61, 16  ;;  %v4153_v29 = vrot.slane %v4151_v7, 7  ;;  %v653_v61 = vcombine.low %v9991_v30, %v10001_v34  ;;  %v9065_v30 = vld [vmem:[%s9821_s6 + $0xb10] ss:$8 sps:$4 sm:$0xff]  }
  0x72   : > { %4703 = vmatpush1.bf16.msra.mxu0 %v8999_v4  ;;  %1086 = vmatprep.subr.bf16.mxu1 %v9004_v9  ;;  %v4142_v4 = vshrl.u32 %v4031_v51, 16  ;;  %v4159_v9 = vshll.u32 %v4047_v60, 16  ;;  %v4121_v12 = vrot.slane %v4120_v1, 2  ;;  %v9049_v51 = vld [vmem:[%s9821_s6 + $0xae4] ss:$8 sps:$4 sm:$0xff]  }
  0x73   : > { %4704 = vmatprep.subr.bf16.mxu0 %v9007_v10  ;;  %v9031_v10 = vld [vmem:[%s9821_s6 + $0xab4] ss:$8 sps:$4 sm:$0xff]   ;;  %v4139_v25 = vrot.slane %v4137_v3, 7  ;;  %v4167_v36 = vrot.slane %v4165_v26, 7  ;;  %v9061_v60 = vld [vmem:[%s9821_s6 + $0xb04] ss:$8 sps:$4 sm:$0xff]  }
  0x74   : > { %v4144_v17 = vrot.slane %v4142_v4, 6  ;;  %v4161_v22 = vrot.slane %v4159_v9, 7  ;;  %v9064_v1 = vld [vmem:[%s9821_s6 + $0x14] ss:$8 sps:$4 sm:$0xff]   ;;  %v9062_v3 = vld [vmem:[%s9821_s6 + $0x10] ss:$8 sps:$4 sm:$0xff]  }
  0x75   : > { %1087 = vmatpush1.bf16.msra.mxu1 %v9002_v13  ;;  %v4125_v13 = vrot.slane %v4123_v53, 7  ;;  %v9044_v53 = vld [vmem:[%s9821_s6 + $0x3e0] ss:$8 sps:$4 sm:$0xff]   ;;  %v9070_v34 = vld [vmem:[%s9821_s6 + $0x24] ss:$8 sps:$4 sm:$0xff]  }
  0x76   : > { %4705 = vmatpush1.bf16.msra.mxu0 %v9005_v16  ;;  %1088 = vmatprep.subr.bf16.mxu1 %v9010_v19  ;;  %v4133_v16 = vrot.slane %v4131_v2, 7  ;;  %v9067_v2 = vld [vmem:[%s9821_s6 + $0xb14] ss:$8 sps:$4 sm:$0xff]   ;;  %v9073_v4 = vld [vmem:[%s9821_s6 + $0xb24] ss:$8 sps:$4 sm:$0xff]  }
  0x77   : > { %4706 = vmatprep.subr.bf16.mxu0 %v9013_v21  ;;  %v4158_v21 = vrot.slane %v4156_v8, 6  ;;  %v10058_v33 = vsel %vm10049_vm6, %v4121_v12, %v4125_v13  ;;  %v9071_v7 = vld [vmem:[%s9821_s6 + $0xb20] ss:$8 sps:$4 sm:$0xff]   ;;  %v9076_v8 = vld [vmem:[%s9821_s6 + $0x34] ss:$8 sps:$4 sm:$0xff]  }
  0x78   : > { %v4134_v24 = vor.u32 %v4133_v16, %v4130_v62  ;;  %v9056_v62 = vld [vmem:[%s9821_s6] ss:$8 sps:$4 sm:$0xff]   ;;  %v9079_v9 = vld [vmem:[%s9821_s6 + $0xb34] ss:$8 sps:$4 sm:$0xff]   ;;  %v9077_v12 = vld [vmem:[%s9821_s6 + $0xb30] ss:$8 sps:$4 sm:$0xff]  }
  0x79   : > { %1089 = vmatpush1.bf16.msra.mxu1 %v9008_v27  ;;  %v9034_v27 = vld [vmem:[%s9821_s6 + $0x3c4] ss:$8 sps:$4 sm:$0xff]   ;;  %v4162_v31 = vor.u32 %v4161_v22, %v4158_v21  ;;  %v7337_v13 = vld.sshfl [vmem:[%s11301_s0 + $0xf8] sm:$0xf pattern:$0x76325410] }
  0x7a   : > { %4707 = vmatpush1.bf16.msra.mxu0 %v9011_v28  ;;  %1090 = vmatprep.subr.bf16.mxu1 %v9016_v32  ;;  %v4148_v28 = vor.u32 %v4147_v20, %v4144_v17  ;;  %v9037_v32 = vld [vmem:[%s9821_s6 + $0xac4] ss:$8 sps:$4 sm:$0xff]   ;;  %v4135_v35 = vrot.slane %v4134_v24, 2  ;;  %v9083_v24 = vld [vmem:[%s9821_s6 + $0xb40] ss:$8 sps:$4 sm:$0xff]  }
  0x7b   : > { %4708 = vmatprep.subr.bf16.mxu0 %v9019_v15  ;;  %v4163_v15 = vrot.slane %v4162_v31, 2  ;;  %v9082_v16 = vld [vmem:[%s9821_s6 + $0x44] ss:$8 sps:$4 sm:$0xff]  }
  0x7c   : > { %v4149_v14 = vrot.slane %v4148_v28, 2  ;;  %v7339_v17 = vld.sshfl [vmem:[%s11301_s0 + $0x108] sm:$0xf pattern:$0x76325410] }
  0x7d   : > { %1091 = vmatpush1.bf16.msra.mxu1 %v9014_v38  ;;  %v10063_v38 = vsel %vm10049_vm6, %v4135_v35, %v4139_v25  ;;  %v10072_v41 = vsel %vm10049_vm6, %v4163_v15, %v4167_v36  ;;  %v7341_v20 = vld.sshfl [vmem:[%s11301_s0 + $0x118] sm:$0xf pattern:$0x76325410]  ;;  %v7413_v21 = vcombine.low %v7337_v13, %v7339_v17 }
  0x7e   : > { %4709 = vmatpush1.bf16.msra.mxu0 %v9017_v39  ;;  %1092 = vmatprep.subr.bf16.mxu1 %v9022_v43  ;;  %v9035_v39 = vld [vmem:[%s9821_s6 + $0xac0] ss:$8 sps:$4 sm:$0xff]   ;;  %v10068_v40 = vsel %vm10049_vm6, %v4149_v14, %v4153_v29  ;;  %v4290_v42 = vcombine.low %v10058_v33, %v10063_v38  ;;  %v9040_v43 = vld [vmem:[%s9821_s6 + $0x3d4] ss:$8 sps:$4 sm:$0xff]  }
  0x7f   : > { %4710 = vmatprep.subr.bf16.mxu0 %v9025_v44  ;;  %v9043_v44 = vld [vmem:[%s9821_s6 + $0xad4] ss:$8 sps:$4 sm:$0xff]   ;;  %v4292_v45 = vcombine.low %v10068_v40, %v10072_v41  ;;  %v7343_v22 = vld.sshfl [vmem:[%s11301_s0 + $0x128] sm:$0xf pattern:$0x76325410]  ;;  %v672_v26 = vrot.slane %v7413_v21, %v9824_v11 }
  0x80   : > { %v4300_v46 = vrot.slane %v4290_v42, %v9824_v11  ;;  %v7415_v25 = vcombine.low %v7341_v20, %v7343_v22  ;;  %v9088_v28 = vld [vmem:[%s9821_s6 + $0x54] ss:$8 sps:$4 sm:$0xff]   ;;  %v8059_v15 = vld.sshfl [vmem:[%s11301_s0 + $0x1a8] sm:$0x5f pattern:$0x76325410] }
  0x81   : > { %1093 = vmatpush1.bf16.msra.mxu1 %v9020_v58  ;;  %v4314_v48 = vrot.slane %v4292_v45, %v9824_v11  ;;  %v9053_v58 = vld [vmem:[%s9821_s6 + $0xaf0] ss:$8 sps:$4 sm:$0xff]   ;;  %v9091_v14 = vld [vmem:[%s9821_s6 + $0xb54] ss:$8 sps:$4 sm:$0xff]  }
  0x82   : > { %4711 = vmatpush1.bf16.msra.mxu0 %v9023_v59  ;;  %1094 = vmatprep.subr.bf16.mxu1 %v9028_v63  ;;  %v9058_v59 = vld [vmem:[%s9821_s6 + $0x4] ss:$8 sps:$4 sm:$0xff]   ;;  %v8057_v29 = vld.sshfl [vmem:[%s11301_s0 + $0x198] sm:$0x5f pattern:$0x76325410]  ;;  %v686_v31 = vrot.slane %v7415_v25, %v9824_v11 }
  0x83   : > { %4712 = vmatprep.subr.bf16.mxu0 %v9031_v10  ;;  %v4323_v52 = vcombine.high %v4300_v46, %v4314_v48  ;;  %v4322_v63 = vcombine.low %v4300_v46, %v4314_v48  ;;  %v9074_v10 = vld [vmem:[%s9821_s6 + $0x30] ss:$8 sps:$4 sm:$0xff]   ;;  %v9094_v46 = vld [vmem:[%s9821_s6 + $0x64] ss:$8 sps:$4 sm:$0xff]  }
  0x84   : > { %v690_v42 = vcombine.high %v672_v26, %v686_v31  ;;  %v8061_v48 = vld.sshfl [vmem:[%s11301_s0 + $0x1b8] sm:$0x5f pattern:$0x76325410] }
  0x85   : > { %1095 = vmatpush1.bf16.msra.mxu1 %v9026_v18  ;;  %4722 = vmatprep.mubr.bf16.mxu0 %v4323_v52  ;;  %v9085_v18 = vld [vmem:[%s9821_s6 + $0xb44] ss:$8 sps:$4 sm:$0xff]   ;;  %v689_v52 = vcombine.low %v672_v26, %v686_v31  ;;  %v9098_v20 = vld [vmem:[%s9821_s6 + $0x70] ss:$8 sps:$4 sm:$0xff]  }
  0x86   : > { %4713 = vmatpush1.bf16.msra.mxu0 %v9029_v23  ;;  %1096 = vmatprep.subr.bf16.mxu1 %v9034_v27  ;;  %v9080_v23 = vld [vmem:[%s9821_s6 + $0x40] ss:$8 sps:$4 sm:$0xff]   ;;  %v8056_v27 = vld.sshfl [vmem:[%s11301_s0 + $0x190] sm:$0x5f pattern:$0x76325410] }
  0x87   : > { %4714 = vmatprep.subr.bf16.mxu0 %v9037_v32  ;;  %v8058_v32 = vld.sshfl [vmem:[%s11301_s0 + $0x1a0] sm:$0x5f pattern:$0x76325410]  ;;  %v4063_v35 = vcombine.low %v8056_v27, %v8057_v29  ;;  %v4064_v36 = vcombine.high %v8056_v27, %v8057_v29  ;;  %v9101_v21 = vld [vmem:[%s9821_s6 + $0xb70] ss:$8 sps:$4 sm:$0xff]  }
  0x88   : > { %v9106_v26 = vld [vmem:[%s9821_s6 + $0x84] ss:$8 sps:$4 sm:$0xff]  }
  0x89   : > { %1097 = vmatpush1.bf16.msra.mxu1 %v9032_v37  ;;  %v9086_v37 = vld [vmem:[%s9821_s6 + $0x50] ss:$8 sps:$4 sm:$0xff]   ;;  %v4170_v45 = vshrl.u32 %v4063_v35, 16  ;;  %v9109_v27 = vld [vmem:[%s9821_s6 + $0xb84] ss:$8 sps:$4 sm:$0xff]  }
  0x8a   : > { %4715 = vmatpush1.bf16.msra.mxu0 %v9035_v39  ;;  %1098 = vmatprep.subr.bf16.mxu1 %v9040_v43  ;;  %v9089_v39 = vld [vmem:[%s9821_s6 + $0xb50] ss:$8 sps:$4 sm:$0xff]   ;;  %v7296_v31 = vld.sshfl [vmem:[%s11301_s0] sm:$0xf pattern:$0x76325410] }
  0x8b   : > { %4716 = vmatprep.subr.bf16.mxu0 %v9043_v44  ;;  %v8060_v43 = vld.sshfl [vmem:[%s11301_s0 + $0x1b0] sm:$0x5f pattern:$0x76325410]  ;;  %v4079_v44 = vcombine.low %v8058_v32, %v8059_v15 }
  0x8d   : > { %1099 = vmatpush1.bf16.msra.mxu1 %v9038_v47  ;;  %v9097_v47 = vld [vmem:[%s9821_s6 + $0xb64] ss:$8 sps:$4 sm:$0xff]  }
  0x8e   : > { %4717 = vmatpush1.bf16.msra.mxu0 %v9041_v49  ;;  %1100 = vmatprep.subr.bf16.mxu1 %v9046_v50  ;;  %v4080_v49 = vcombine.high %v8058_v32, %v8059_v15  ;;  %v4173_v50 = vshll.u32 %v4063_v35, 16 }
  0x8f   : > { %4718 = vmatprep.subr.bf16.mxu0 %v9049_v51  ;;  %v4179_v51 = vshll.u32 %v4064_v36, 16 }
  0x91   : > { %1101 = vmatpush1.bf16.msra.mxu1 %v9044_v53  ;;  %v8062_v53 = vld.sshfl [vmem:[%s11301_s0 + $0x1c0] sm:$0x5f pattern:$0x76325410] }
  0x92   : > { %4719 = vmatpush1.bf16.msra.mxu0 %v9047_v54  ;;  %1102 = vmatprep.subr.bf16.mxu1 %v9052_v55  ;;  %v4095_v54 = vcombine.low %v8060_v43, %v8061_v48  ;;  %v4096_v55 = vcombine.high %v8060_v43, %v8061_v48  ;;  %v9104_v48 = vld [vmem:[%s9821_s6 + $0x80] ss:$8 sps:$4 sm:$0xff]  }
  0x93   : > { %4720 = vmatprep.subr.bf16.mxu0 %v9055_v56  ;;  %v4172_v56 = vrot.slane %v4170_v45, 6  ;;  %v10191_v45 = vld.sshfl [vmem:[%s11301_s0 + $0x30] sm:$0xf pattern:$0x76325410] }
  0x95   : > { %1103 = vmatpush1.bf16.msra.mxu1 %v9050_v57  ;;  %v4184_v57 = vshrl.u32 %v4079_v44, 16 }
  0x96   : > { %4721 = vmatpush1.bf16.msra.mxu0 %v9053_v58  ;;  %1525 = vmatprep.subr.bf16.mxu1 %v9058_v59  ;;  %v8063_v58 = vld.sshfl [vmem:[%s11301_s0 + $0x1c8] sm:$0x5f pattern:$0x76325410]  ;;  %v4175_v59 = vrot.slane %v4173_v50, 7 }
  0x97   : > { %4743 = vmatprep.subr.bf16.mxu0 %v9061_v60  ;;  %v4181_v60 = vrot.slane %v4179_v51, 7 }
  0x98   : > { %1105 = vmatmul.mubr.bf16.vlgmr.msra.gmra.mrb[0].mxu1 %v653_v61  ;;  %v9092_v61 = vld [vmem:[%s9821_s6 + $0x60] ss:$8 sps:$4 sm:$0xff]  }
  0x99   : > { %4723 = vmatmul.mubr.bf16.vlgmr.msra.gmra.mrb[0].mxu0 %v4322_v63  ;;  %1526 = vmatpush1.bf16.msra.mxu1 %v9056_v62  ;;  %v9095_v62 = vld [vmem:[%s9821_s6 + $0xb60] ss:$8 sps:$4 sm:$0xff]   ;;  %v4111_v63 = vcombine.low %v8062_v53, %v8063_v58 }
  0x9a   : > { %4744 = vmatpush1.bf16.msra.mxu0 %v9059_v0  ;;  %1527 = vmatprep.subr.bf16.mxu1 %v9064_v1  ;;  %v4112_v0 = vcombine.high %v8062_v53, %v8063_v58  ;;  %v4186_v1 = vrot.slane %v4184_v57, 6  ;;  %v9113_v57 = vld [vmem:[%s9821_s6 + $0xb90] ss:$8 sps:$4 sm:$0xff]  }
  0x9b   : > { %4745 = vmatprep.subr.bf16.mxu0 %v9067_v2  ;;  %1114 = vmatprep.mubr.bf16.mxu1 %v690_v42  ;;  %v4187_v2 = vshll.u32 %v4079_v44, 16 }
  0x9c   : > { %v4221_v29 = vshll.u32 %v4112_v0, 16 }
  0x9d   : > { %1528 = vmatpush1.bf16.msra.mxu1 %v9062_v3  ;;  %v9100_v3 = vld [vmem:[%s9821_s6 + $0x74] ss:$8 sps:$4 sm:$0xff]  }
  0x9e   : > { %4746 = vmatpush1.bf16.msra.mxu0 %v9065_v30  ;;  %1529 = vmatprep.subr.bf16.mxu1 %v9070_v34  ;;  %v4176_v30 = vor.u32 %v4175_v59, %v4172_v56  ;;  %v4193_v34 = vshll.u32 %v4080_v49, 16  ;;  %v9110_v56 = vld [vmem:[%s9821_s6 + $0x90] ss:$8 sps:$4 sm:$0xff]  }
  0x9f   : > { %4747 = vmatprep.subr.bf16.mxu0 %v9073_v4  ;;  %v4198_v4 = vshrl.u32 %v4095_v54, 16 }
  0xa0   : > { %1115 = vmatmul.mubr.bf16.gmra.mrb[4].mxu1 %v689_v52  ;;  %v4177_v13 = vrot.slane %v4176_v30, 2 }
  0xa1   : > { %1530 = vmatpush1.bf16.msra.mxu1 %v9068_v5  ;;  %v4201_v5 = vshll.u32 %v4095_v54, 16  ;;  %v4200_v17 = vrot.slane %v4198_v4, 6  ;;  %v9127_v4 = vld [vmem:[%s9821_s6 + $0xbb4] ss:$8 sps:$4 sm:$0xff]  }
  0xa2   : > { %4748 = vmatpush1.bf16.msra.mxu0 %v9071_v7  ;;  %1531 = vmatprep.subr.bf16.mxu1 %v9076_v8  ;;  %v4189_v7 = vrot.slane %v4187_v2, 7  ;;  %v4207_v8 = vshll.u32 %v4096_v55, 16  ;;  %v10171_v32 = vsel %vm10049_vm6, %v4177_v13, %v4181_v60  ;;  %v9116_v2 = vld [vmem:[%s9821_s6 + $0xa0] ss:$8 sps:$4 sm:$0xff]   ;;  %v9136_v13 = vld [vmem:[%s9821_s6 + $0xd4] ss:$8 sps:$4 sm:$0xff]  }
  0xa3   : > { %4749 = vmatprep.subr.bf16.mxu0 %v9079_v9  ;;  %v4212_v9 = vshrl.u32 %v4111_v63, 16 }
  0xa4   : > { %v4190_v22 = vor.u32 %v4189_v7, %v4186_v1  ;;  %v9125_v7 = vld [vmem:[%s9821_s6 + $0xbb0] ss:$8 sps:$4 sm:$0xff]  }
  0xa5   : > { %1532 = vmatpush1.bf16.msra.mxu1 %v9074_v10  ;;  %v4215_v10 = vshll.u32 %v4111_v63, 16  ;;  %v9121_v63 = vld [vmem:[%s9821_s6 + $0xba4] ss:$8 sps:$4 sm:$0xff]  }
  0xa6   : > { %4750 = vmatpush1.bf16.msra.mxu0 %v9077_v12  ;;  %1533 = vmatprep.subr.bf16.mxu1 %v9082_v16  ;;  %v9103_v12 = vld [vmem:[%s9821_s6 + $0xb74] ss:$8 sps:$4 sm:$0xff]   ;;  %v4195_v16 = vrot.slane %v4193_v34, 7  ;;  %v4191_v35 = vrot.slane %v4190_v22, 2  ;;  %v9140_v22 = vld [vmem:[%s9821_s6 + $0xe0] ss:$8 sps:$4 sm:$0xff]  }
  0xa7   : > { %4751 = vmatprep.subr.bf16.mxu0 %v9085_v18  ;;  %v4203_v18 = vrot.slane %v4201_v5, 7  ;;  %v4217_v25 = vrot.slane %v4215_v10, 7  ;;  %v9124_v34 = vld [vmem:[%s9821_s6 + $0xb4] ss:$8 sps:$4 sm:$0xff]   ;;  %v9122_v5 = vld [vmem:[%s9821_s6 + $0xb0] ss:$8 sps:$4 sm:$0xff]  }
  0xa8   : > { %v10186_v43 = vsel %vm10049_vm6, %v4191_v35, %v4195_v16  ;;  %v9128_v10 = vld [vmem:[%s9821_s6 + $0xc0] ss:$8 sps:$4 sm:$0xff]   ;;  %v9139_v16 = vld [vmem:[%s9821_s6 + $0xbd4] ss:$8 sps:$4 sm:$0xff]   ;;  %v9157_v35 = vld [vmem:[%s9821_s6 + $0xc04] ss:$8 sps:$4 sm:$0xff]  }
  0xa9   : > { %1534 = vmatpush1.bf16.msra.mxu1 %v9080_v23  ;;  %v4209_v23 = vrot.slane %v4207_v8, 7  ;;  %v4326_v50 = vcombine.low %v10171_v32, %v10186_v43  ;;  %v9130_v8 = vld [vmem:[%s9821_s6 + $0xc4] ss:$8 sps:$4 sm:$0xff]  }
  0xaa   : > { %4752 = vmatpush1.bf16.msra.mxu0 %v9083_v24  ;;  %1535 = vmatprep.subr.bf16.mxu1 %v9088_v28  ;;  %v4214_v24 = vrot.slane %v4212_v9, 6  ;;  %v4204_v28 = vor.u32 %v4203_v18, %v4200_v17  ;;  %v9133_v9 = vld [vmem:[%s9821_s6 + $0xbc4] ss:$8 sps:$4 sm:$0xff]   ;;  %v9134_v17 = vld [vmem:[%s9821_s6 + $0xd0] ss:$8 sps:$4 sm:$0xff]  }
  0xab   : > { %4753 = vmatprep.subr.bf16.mxu0 %v9091_v14  ;;  %v10176_v14 = vld.sshfl [vmem:[%s11301_s0 + $0x10] sm:$0xf pattern:$0x76325410]  ;;  %v4336_v54 = vrot.slane %v4326_v50, %v9824_v11 }
  0xac   : > { %v4218_v36 = vor.u32 %v4217_v25, %v4214_v24  ;;  %v4205_v15 = vrot.slane %v4204_v28, 2  ;;  %v7480_v42 = vcombine.low %v7296_v31, %v10176_v14  ;;  %v9137_v18 = vld [vmem:[%s9821_s6 + $0xbd0] ss:$8 sps:$4 sm:$0xff]   ;;  %v9148_v24 = vld [vmem:[%s9821_s6 + $0xf4] ss:$8 sps:$4 sm:$0xff]  }
  0xad   : > { %1536 = vmatpush1.bf16.msra.mxu1 %v9086_v37  ;;  %v4223_v37 = vrot.slane %v4221_v29, 7  ;;  %v9151_v25 = vld [vmem:[%s9821_s6 + $0xbf4] ss:$8 sps:$4 sm:$0xff]   ;;  %v9146_v28 = vld [vmem:[%s9821_s6 + $0xf0] ss:$8 sps:$4 sm:$0xff]  }
  0xae   : > { %4754 = vmatpush1.bf16.msra.mxu0 %v9089_v39  ;;  %1537 = vmatprep.subr.bf16.mxu1 %v9094_v46  ;;  %v10181_v39 = vld.sshfl [vmem:[%s11301_s0 + $0x20] sm:$0xf pattern:$0x76325410]  ;;  %v4219_v44 = vrot.slane %v4218_v36, 2  ;;  %v4291_v46 = vcombine.high %v10058_v33, %v10063_v38  ;;  %v10200_v49 = vsel %vm10049_vm6, %v4205_v15, %v4209_v23  ;;  %v10207_v52 = vrot.slane %v7480_v42, %v9824_v11 }
  0xaf   : > { %4755 = vmatprep.subr.bf16.mxu0 %v9097_v47  ;;  %v4293_v47 = vcombine.high %v10068_v40, %v10072_v41  ;;  %v7482_v51 = vcombine.low %v10181_v39, %v10191_v45  ;;  %v9107_v33 = vld [vmem:[%s9821_s6 + $0xb80] ss:$8 sps:$4 sm:$0xff]   ;;  %v9112_v38 = vld [vmem:[%s9821_s6 + $0x94] ss:$8 sps:$4 sm:$0xff]   ;;  %v9149_v29 = vld [vmem:[%s9821_s6 + $0xbf0] ss:$8 sps:$4 sm:$0xff]  }
  0xb0   : > { %v10213_v40 = vsel %vm10049_vm6, %v4219_v44, %v4223_v37  ;;  %v9115_v41 = vld [vmem:[%s9821_s6 + $0xb94] ss:$8 sps:$4 sm:$0xff]   ;;  %v10228_v60 = vrot.slane %v4291_v46, %v9824_v11  ;;  %v9143_v23 = vld [vmem:[%s9821_s6 + $0xbe0] ss:$8 sps:$4 sm:$0xff]   ;;  %v9154_v31 = vld [vmem:[%s9821_s6 + $0x104] ss:$8 sps:$4 sm:$0xff]  }
  0xb1   : > { %1538 = vmatpush1.bf16.msra.mxu1 %v9092_v61  ;;  %v4328_v53 = vcombine.low %v10200_v49, %v10213_v40  ;;  %v10220_v55 = vrot.slane %v7482_v51, %v9824_v11  ;;  %v10231_v61 = vrot.slane %v4293_v47, %v9824_v11  ;;  %v9152_v37 = vld [vmem:[%s9821_s6 + $0x100] ss:$8 sps:$4 sm:$0xff]   ;;  %v9160_v44 = vld [vmem:[%s9821_s6 + $0x114] ss:$8 sps:$4 sm:$0xff]   ;;  %v9161_v51 = vld [vmem:[%s9821_s6 + $0xc10] ss:$8 sps:$4 sm:$0xff]  }
  0xb2   : > { %4756 = vmatpush1.bf16.msra.mxu0 %v9095_v62  ;;  %1539 = vmatprep.subr.bf16.mxu1 %v9100_v3  ;;  %v9118_v62 = vld [vmem:[%s9821_s6 + $0xa4] ss:$8 sps:$4 sm:$0xff]   ;;  %v9119_v3 = vld [vmem:[%s9821_s6 + $0xba0] ss:$8 sps:$4 sm:$0xff]   ;;  %v9163_v46 = vld [vmem:[%s9821_s6 + $0xc14] ss:$8 sps:$4 sm:$0xff]  }
  0xb3   : > { %4757 = vmatprep.subr.bf16.mxu0 %v9103_v12  ;;  %v4350_v58 = vrot.slane %v4328_v53, %v9824_v11  ;;  %v1158_v59 = vcombine.high %v10207_v52, %v10220_v55  ;;  %v4325_v30 = vcombine.high %v10228_v60, %v10231_v61  ;;  %v9131_v12 = vld [vmem:[%s9821_s6 + $0xbc0] ss:$8 sps:$4 sm:$0xff]   ;;  %v4324_v42 = vcombine.low %v10228_v60, %v10231_v61  ;;  %v7304_v47 = vld.sshfl [vmem:[%s11301_s0 + $0x50] sm:$0xf pattern:$0x76325410] }
  0xb4   : > { %v9175_v60 = vld [vmem:[%s9821_s6 + $0xc34] ss:$8 sps:$4 sm:$0xff]  }
  0xb5   : > { %1540 = vmatpush1.bf16.msra.mxu1 %v9098_v20  ;;  %v4359_v0 = vcombine.high %v4336_v54, %v4350_v58  ;;  %v4358_v1 = vcombine.low %v4336_v54, %v4350_v58  ;;  %1557 = vmatprep.mubr.bf16.mxu1 %v1158_v59  ;;  %v9142_v20 = vld [vmem:[%s9821_s6 + $0xe4] ss:$8 sps:$4 sm:$0xff]   ;;  %v9172_v59 = vld [vmem:[%s9821_s6 + $0x134] ss:$8 sps:$4 sm:$0xff]  }
  0xb6   : > { %4758 = vmatpush1.bf16.msra.mxu0 %v9101_v21  ;;  %1541 = vmatprep.subr.bf16.mxu1 %v9106_v26  ;;  %v9145_v21 = vld [vmem:[%s9821_s6 + $0xbe4] ss:$8 sps:$4 sm:$0xff]   ;;  %v4327_v26 = vcombine.high %v10171_v32, %v10186_v43  ;;  %v1157_v32 = vcombine.low %v10207_v52, %v10220_v55  ;;  %v9155_v43 = vld [vmem:[%s9821_s6 + $0xc00] ss:$8 sps:$4 sm:$0xff]  }
  0xb7   : > { %4759 = vmatprep.subr.bf16.mxu0 %v9109_v27  ;;  %4732 = vmatprep.mubr.bf16.mxu0 %v4359_v0  ;;  %v4329_v27 = vcombine.high %v10200_v49, %v10213_v40  ;;  %v10282_v49 = vld.sshfl [vmem:[%s11301_s0 + $0x60] sm:$0xf pattern:$0x76325410]  ;;  %v9173_v0 = vld [vmem:[%s9821_s6 + $0xc30] ss:$8 sps:$4 sm:$0xff]  }
  0xb8   : > { %4733 = vmatmul.mubr.bf16.gmra.mrb[4].mxu0 %v4358_v1  ;;  %v4343_v36 = vrot.slane %v4327_v26, %v9824_v11  ;;  %v10288_v52 = vld.sshfl [vmem:[%s11301_s0 + $0x70] sm:$0xf pattern:$0x76325410]  ;;  %v9164_v55 = vld [vmem:[%s9821_s6 + $0x120] ss:$8 sps:$4 sm:$0xff]  }
  0xb9   : > { %1542 = vmatpush1.bf16.msra.mxu1 %v9104_v48  ;;  %4775 = vmatprep.mubr.bf16.mxu0 %v4325_v30  ;;  %v4357_v15 = vrot.slane %v4329_v27, %v9824_v11  ;;  %v9158_v48 = vld [vmem:[%s9821_s6 + $0x110] ss:$8 sps:$4 sm:$0xff]   ;;  %v10295_v40 = vld.sshfl [vmem:[%s11301_s0 + $0x80] sm:$0xf pattern:$0x76325410] }
  0xba   : > { %4760 = vmatpush1.bf16.msra.mxu0 %v9107_v33  ;;  %1543 = vmatprep.subr.bf16.mxu1 %v9112_v38  ;;  %v7484_v33 = vcombine.low %v7304_v47, %v10282_v49  ;;  %v9166_v38 = vld [vmem:[%s9821_s6 + $0x124] ss:$8 sps:$4 sm:$0xff]   ;;  %v7486_v53 = vcombine.low %v10288_v52, %v10295_v40  ;;  %v9188_v26 = vld [vmem:[%s9821_s6 + $0x160] ss:$8 sps:$4 sm:$0xff]  }
  0xbb   : > { %4761 = vmatprep.subr.bf16.mxu0 %v9115_v41  ;;  %v4361_v50 = vcombine.high %v4343_v36, %v4357_v15  ;;  %v9169_v41 = vld [vmem:[%s9821_s6 + $0xc24] ss:$8 sps:$4 sm:$0xff]   ;;  %v4360_v58 = vcombine.low %v4343_v36, %v4357_v15  ;;  %v9191_v27 = vld [vmem:[%s9821_s6 + $0xc60] ss:$8 sps:$4 sm:$0xff]  }
  0xbc   : > { %v1171_v54 = vrot.slane %v7484_v33, %v9824_v11  ;;  %v9178_v30 = vld [vmem:[%s9821_s6 + $0x144] ss:$8 sps:$4 sm:$0xff]   ;;  %v9220_v33 = vld [vmem:[%s9821_s6 + $0x1b4] ss:$8 sps:$4 sm:$0xff]  }
  0xbd   : > { %1544 = vmatpush1.bf16.msra.mxu1 %v9110_v56  ;;  %v9167_v56 = vld [vmem:[%s9821_s6 + $0xc20] ss:$8 sps:$4 sm:$0xff]   ;;  %v9202_v36 = vld [vmem:[%s9821_s6 + $0x184] ss:$8 sps:$4 sm:$0xff]  }
  0xbe   : > { %4762 = vmatpush1.bf16.msra.mxu0 %v9113_v57  ;;  %1545 = vmatprep.subr.bf16.mxu1 %v9118_v62  ;;  %v1185_v57 = vrot.slane %v7486_v53, %v9824_v11  ;;  %v7297_v62 = vld.sshfl [vmem:[%s11301_s0 + $0x8] sm:$0xf pattern:$0x76325410]  ;;  %v9221_v53 = vld [vmem:[%s9821_s6 + $0xcb0] ss:$8 sps:$4 sm:$0xff]  }
  0xbf   : > { %4763 = vmatprep.subr.bf16.mxu0 %v9121_v63  ;;  %v9170_v63 = vld [vmem:[%s9821_s6 + $0x130] ss:$8 sps:$4 sm:$0xff]   ;;  %v9205_v15 = vld [vmem:[%s9821_s6 + $0xc84] ss:$8 sps:$4 sm:$0xff]  }
  0xc0   : > { %v1194_v61 = vcombine.high %v1171_v54, %v1185_v57  ;;  %v1193_v1 = vcombine.low %v1171_v54, %v1185_v57  ;;  %v9214_v47 = vld [vmem:[%s9821_s6 + $0x1a4] ss:$8 sps:$4 sm:$0xff]   ;;  %v9227_v57 = vld [vmem:[%s9821_s6 + $0xcc0] ss:$8 sps:$4 sm:$0xff]  }
  0xc1   : > { %1546 = vmatpush1.bf16.msra.mxu1 %v9116_v2  ;;  %v10314_v2 = vld.sshfl [vmem:[%s11301_s0 + $0x18] sm:$0xf pattern:$0x76325410]  ;;  %v9226_v54 = vld [vmem:[%s9821_s6 + $0x1c4] ss:$8 sps:$4 sm:$0xff]  }
  0xc2   : > { %4764 = vmatpush1.bf16.msra.mxu0 %v9119_v3  ;;  %1547 = vmatprep.subr.bf16.mxu1 %v9124_v34  ;;  %v8288_v3 = vcombine.low %v10176_v14, %v10181_v39  ;;  %v10322_v34 = vld.sshfl [vmem:[%s11301_s0 + $0x28] sm:$0xf pattern:$0x76325410] }
  0xc3   : > { %4765 = vmatprep.subr.bf16.mxu0 %v9127_v4  ;;  %v7481_v4 = vcombine.low %v7297_v62, %v10314_v2  ;;  %v9181_v14 = vld [vmem:[%s9821_s6 + $0xc44] ss:$8 sps:$4 sm:$0xff]  }
  0xc4   : > { %v10394_v62 = vld.sshfl [vmem:[%s11301_s0 + $0x68] sm:$0xf pattern:$0x76325410] }
  0xc5   : > { %1548 = vmatpush1.bf16.msra.mxu1 %v9122_v5  ;;  %v10328_v5 = vld.sshfl [vmem:[%s11301_s0 + $0x38] sm:$0xf pattern:$0x76325410] }
  0xc6   : > { %4766 = vmatpush1.bf16.msra.mxu0 %v9125_v7  ;;  %1549 = vmatprep.subr.bf16.mxu1 %v9130_v8  ;;  %v7483_v39 = vcombine.low %v10322_v34, %v10328_v5  ;;  %v10334_v7 = vrot.slane %v7481_v4, %v9824_v11  ;;  %v8214_v8 = vld.sshfl [vmem:[%s11301_s0 + $0x40] sm:$0xf pattern:$0x76325410] }
  0xc7   : > { %4767 = vmatprep.subr.bf16.mxu0 %v9133_v9  ;;  %v8290_v9 = vcombine.low %v10191_v45, %v8214_v8  ;;  %v9187_v45 = vld [vmem:[%s9821_s6 + $0xc54] ss:$8 sps:$4 sm:$0xff]   ;;  %v9239_v8 = vld [vmem:[%s9821_s6 + $0xce0] ss:$8 sps:$4 sm:$0xff]  }
  0xc8   : > { %v8222_v4 = vld.sshfl [vmem:[%s11301_s0 + $0x90] sm:$0xf pattern:$0x76325410] }
  0xc9   : > { %1550 = vmatpush1.bf16.msra.mxu1 %v9128_v10  ;;  %v10341_v10 = vrot.slane %v8288_v3, %v9824_v11  ;;  %v10408_v3 = vld.sshfl [vmem:[%s11301_s0 + $0x88] sm:$0xf pattern:$0x76325410] }
  0xca   : > { %4768 = vmatpush1.bf16.msra.mxu0 %v9131_v12  ;;  %1551 = vmatprep.subr.bf16.mxu1 %v9136_v13  ;;  %v9176_v12 = vld [vmem:[%s9821_s6 + $0x140] ss:$8 sps:$4 sm:$0xff]   ;;  %v10345_v13 = vrot.slane %v7483_v39, %v9824_v11 }
  0xcb   : > { %4769 = vmatprep.subr.bf16.mxu0 %v9139_v16  ;;  %v9179_v16 = vld [vmem:[%s9821_s6 + $0xc40] ss:$8 sps:$4 sm:$0xff]  }
  0xcc   : > { %v9236_v39 = vld [vmem:[%s9821_s6 + $0x1e0] ss:$8 sps:$4 sm:$0xff]  }
  0xcd   : > { %1552 = vmatpush1.bf16.msra.mxu1 %v9134_v17  ;;  %v9184_v17 = vld [vmem:[%s9821_s6 + $0x154] ss:$8 sps:$4 sm:$0xff]  }
  0xce   : > { %4770 = vmatpush1.bf16.msra.mxu0 %v9137_v18  ;;  %1553 = vmatprep.subr.bf16.mxu1 %v9142_v20  ;;  %v10350_v18 = vrot.slane %v8290_v9, %v9824_v11  ;;  %v1160_v20 = vcombine.high %v10334_v7, %v10345_v13  ;;  %v8292_v9 = vcombine.low %v10282_v49, %v10288_v52  ;;  %v7553_v49 = vld.sshfl [vmem:[%s11301_s0 + $0x8] sm:$0x5f pattern:$0x76325410] }
  0xcf   : > { %4771 = vmatprep.subr.bf16.mxu0 %v9145_v21  ;;  %v9250_v52 = vld [vmem:[%s9821_s6 + $0x404] ss:$8 sps:$4 sm:$0xff]  }
  0xd0   : > { %v5055_v21 = vcombine.high %v10341_v10, %v10350_v18 }
  0xd1   : > { %1554 = vmatpush1.bf16.msra.mxu1 %v9140_v22  ;;  %v9182_v22 = vld [vmem:[%s9821_s6 + $0x150] ss:$8 sps:$4 sm:$0xff]  }
  0xd2   : > { %4772 = vmatpush1.bf16.msra.mxu0 %v9143_v23  ;;  %1555 = vmatprep.subr.bf16.mxu1 %v9148_v24  ;;  %v9185_v23 = vld [vmem:[%s9821_s6 + $0xc50] ss:$8 sps:$4 sm:$0xff]   ;;  %v9190_v24 = vld [vmem:[%s9821_s6 + $0x164] ss:$8 sps:$4 sm:$0xff]  }
  0xd3   : > { %4773 = vmatprep.subr.bf16.mxu0 %v9151_v25  ;;  %v9193_v25 = vld [vmem:[%s9821_s6 + $0xc64] ss:$8 sps:$4 sm:$0xff]  }
  0xd5   : > { %1556 = vmatpush1.bf16.msra.mxu1 %v9146_v28  ;;  %v9196_v28 = vld [vmem:[%s9821_s6 + $0x174] ss:$8 sps:$4 sm:$0xff]  }
  0xd6   : > { %4774 = vmatpush1.bf16.msra.mxu0 %v9149_v29  ;;  %1578 = vmatprep.subr.bf16.mxu1 %v9154_v31  ;;  %v9199_v29 = vld [vmem:[%s9821_s6 + $0xc74] ss:$8 sps:$4 sm:$0xff]   ;;  %v9194_v31 = vld [vmem:[%s9821_s6 + $0x170] ss:$8 sps:$4 sm:$0xff]  }
  0xd7   : > { %5422 = vmatprep.subr.bf16.mxu0 %v9157_v35  ;;  %v9197_v35 = vld [vmem:[%s9821_s6 + $0xc70] ss:$8 sps:$4 sm:$0xff]  }
  0xd8   : > { %1558 = vmatmul.mubr.bf16.vlgmr.msra.gmra.mrb[0].mxu1 %v1157_v32  ;;  %v9200_v32 = vld [vmem:[%s9821_s6 + $0x180] ss:$8 sps:$4 sm:$0xff]  }
  0xd9   : > { %4776 = vmatmul.mubr.bf16.vlgmr.msra.gmra.mrb[0].mxu0 %v4324_v42  ;;  %1579 = vmatpush1.bf16.msra.mxu1 %v9152_v37  ;;  %v9203_v37 = vld [vmem:[%s9821_s6 + $0xc80] ss:$8 sps:$4 sm:$0xff]   ;;  %v9208_v42 = vld [vmem:[%s9821_s6 + $0x194] ss:$8 sps:$4 sm:$0xff]  }
  0xda   : > { %5423 = vmatpush1.bf16.msra.mxu0 %v9155_v43  ;;  %1580 = vmatprep.subr.bf16.mxu1 %v9160_v44  ;;  %v9211_v43 = vld [vmem:[%s9821_s6 + $0xc94] ss:$8 sps:$4 sm:$0xff]   ;;  %v9206_v44 = vld [vmem:[%s9821_s6 + $0x190] ss:$8 sps:$4 sm:$0xff]  }
  0xdb   : > { %5424 = vmatprep.subr.bf16.mxu0 %v9163_v46  ;;  %4785 = vmatprep.mubr.bf16.mxu0 %v4361_v50  ;;  %v9209_v46 = vld [vmem:[%s9821_s6 + $0xc90] ss:$8 sps:$4 sm:$0xff]   ;;  %v9212_v50 = vld [vmem:[%s9821_s6 + $0x1a0] ss:$8 sps:$4 sm:$0xff]  }
  0xdc   : > { %1567 = vmatprep.mubr.bf16.mxu1 %v1194_v61  ;;  %v9233_v61 = vld [vmem:[%s9821_s6 + $0xcd0] ss:$8 sps:$4 sm:$0xff]  }
  0xdd   : > { %1581 = vmatpush1.bf16.msra.mxu1 %v9158_v48  ;;  %v9217_v48 = vld [vmem:[%s9821_s6 + $0xca4] ss:$8 sps:$4 sm:$0xff]  }
  0xde   : > { %5425 = vmatpush1.bf16.msra.mxu0 %v9161_v51  ;;  %1582 = vmatprep.subr.bf16.mxu1 %v9166_v38  ;;  %v9215_v51 = vld [vmem:[%s9821_s6 + $0xca0] ss:$8 sps:$4 sm:$0xff]   ;;  %v9223_v38 = vld [vmem:[%s9821_s6 + $0xcb4] ss:$8 sps:$4 sm:$0xff]  }
  0xdf   : > { %5426 = vmatprep.subr.bf16.mxu0 %v9169_v41  ;;  %v9218_v41 = vld [vmem:[%s9821_s6 + $0x1b0] ss:$8 sps:$4 sm:$0xff]  }
  0xe0   : > { %1568 = vmatmul.mubr.bf16.gmra.mrb[4].mxu1 %v1193_v1  ;;  %v10403_v1 = vld.sshfl [vmem:[%s11301_s0 + $0x78] sm:$0xf pattern:$0x76325410] }
  0xe1   : > { %4786 = vmatmul.mubr.bf16.gmra.mrb[4].mxu0 %v4360_v58  ;;  %1583 = vmatpush1.bf16.msra.mxu1 %v9164_v55  ;;  %v9229_v55 = vld [vmem:[%s9821_s6 + $0xcc4] ss:$8 sps:$4 sm:$0xff]   ;;  %v9232_v58 = vld [vmem:[%s9821_s6 + $0x1d4] ss:$8 sps:$4 sm:$0xff]  }
  0xe2   : > { %5427 = vmatpush1.bf16.msra.mxu0 %v9167_v56  ;;  %1584 = vmatprep.subr.bf16.mxu1 %v9172_v59  ;;  %v9224_v56 = vld [vmem:[%s9821_s6 + $0x1c0] ss:$8 sps:$4 sm:$0xff]   ;;  %v9235_v59 = vld [vmem:[%s9821_s6 + $0xcd4] ss:$8 sps:$4 sm:$0xff]  }
  0xe3   : > { %5428 = vmatprep.subr.bf16.mxu0 %v9175_v60  ;;  %1610 = vmatprep.mubr.bf16.mxu1 %v1160_v20  ;;  %v9230_v60 = vld [vmem:[%s9821_s6 + $0x1d0] ss:$8 sps:$4 sm:$0xff]   ;;  %v8294_v20 = vcombine.low %v10295_v40, %v8222_v4 }
  0xe4   : > { %5454 = vmatprep.mubr.bf16.mxu0 %v5055_v21  ;;  %v7552_v21 = vld.sshfl [vmem:[%s11301_s0] sm:$0x5f pattern:$0x76325410] }
  0xe5   : > { %1585 = vmatpush1.bf16.msra.mxu1 %v9170_v63  ;;  %v9238_v63 = vld [vmem:[%s9821_s6 + $0x1e4] ss:$8 sps:$4 sm:$0xff]   ;;  %v7554_v40 = vld.sshfl [vmem:[%s11301_s0 + $0x10] sm:$0x5f pattern:$0x76325410] }
  0xe6   : > { %5429 = vmatpush1.bf16.msra.mxu0 %v9173_v0  ;;  %1586 = vmatprep.subr.bf16.mxu1 %v9178_v30  ;;  %v7305_v0 = vld.sshfl [vmem:[%s11301_s0 + $0x58] sm:$0xf pattern:$0x76325410]  ;;  %v9241_v30 = vld [vmem:[%s9821_s6 + $0xce4] ss:$8 sps:$4 sm:$0xff]  }
  0xe7   : > { %5430 = vmatprep.subr.bf16.mxu0 %v9181_v14  ;;  %v8293_v14 = vcombine.low %v10394_v62, %v10403_v1 }
  0xe9   : > { %1587 = vmatpush1.bf16.msra.mxu1 %v9176_v12  ;;  %v9244_v12 = vld [vmem:[%s9821_s6 + $0x1f4] ss:$8 sps:$4 sm:$0xff]  }
  0xea   : > { %5431 = vmatpush1.bf16.msra.mxu0 %v9179_v16  ;;  %1588 = vmatprep.subr.bf16.mxu1 %v9184_v17  ;;  %v9247_v16 = vld [vmem:[%s9821_s6 + $0xcf4] ss:$8 sps:$4 sm:$0xff]   ;;  %v7485_v17 = vcombine.low %v7305_v0, %v10394_v62 }
  0xeb   : > { %5432 = vmatprep.subr.bf16.mxu0 %v9187_v45  ;;  %v7487_v45 = vcombine.low %v10403_v1, %v10408_v3  ;;  %v9331_v62 = vld [vmem:[%s9821_s6 + $0xdd4] ss:$8 sps:$4 sm:$0xff]  }
  0xed   : > { %1589 = vmatpush1.bf16.msra.mxu1 %v9182_v22  ;;  %v9242_v22 = vld [vmem:[%s9821_s6 + $0x1f0] ss:$8 sps:$4 sm:$0xff]  }
  0xee   : > { %5433 = vmatpush1.bf16.msra.mxu0 %v9185_v23  ;;  %1590 = vmatprep.subr.bf16.mxu1 %v9190_v24  ;;  %v9245_v23 = vld [vmem:[%s9821_s6 + $0xcf0] ss:$8 sps:$4 sm:$0xff]   ;;  %v9253_v24 = vld [vmem:[%s9821_s6 + $0xd04] ss:$8 sps:$4 sm:$0xff]  }
  0xef   : > { %5434 = vmatprep.subr.bf16.mxu0 %v9193_v25  ;;  %v10437_v25 = vrot.slane %v8292_v9, %v9824_v11 }
  0xf1   : > { %1591 = vmatpush1.bf16.msra.mxu1 %v9188_v26  ;;  %v1677_v26 = vcombine.low %v7552_v21, %v7553_v49 }
  0xf2   : > { %5435 = vmatpush1.bf16.msra.mxu0 %v9191_v27  ;;  %1592 = vmatprep.subr.bf16.mxu1 %v9196_v28  ;;  %v1678_v27 = vcombine.high %v7552_v21, %v7553_v49  ;;  %v10443_v28 = vrot.slane %v7485_v17, %v9824_v11 }
  0xf3   : > { %5436 = vmatprep.subr.bf16.mxu0 %v9199_v29  ;;  %v10446_v29 = vrot.slane %v7487_v45, %v9824_v11  ;;  %v9265_v45 = vld [vmem:[%s9821_s6 + $0xd24] ss:$8 sps:$4 sm:$0xff]  }
  0xf5   : > { %1593 = vmatpush1.bf16.msra.mxu1 %v9194_v31  ;;  %v10449_v31 = vrot.slane %v8294_v20, %v9824_v11 }
  0xf6   : > { %5437 = vmatpush1.bf16.msra.mxu0 %v9197_v35  ;;  %1594 = vmatprep.subr.bf16.mxu1 %v9202_v36  ;;  %v7555_v35 = vld.sshfl [vmem:[%s11301_s0 + $0x18] sm:$0x5f pattern:$0x76325410] }
  0xf7   : > { %5438 = vmatprep.subr.bf16.mxu0 %v9205_v15  ;;  %v7556_v36 = vld.sshfl [vmem:[%s11301_s0 + $0x20] sm:$0x5f pattern:$0x76325410]  ;;  %v1693_v15 = vcombine.low %v7554_v40, %v7555_v35 }
  0xf9   : > { %1595 = vmatpush1.bf16.msra.mxu1 %v9200_v32  ;;  %v1799_v32 = vshrl.u32 %v1677_v26, 16 }
  0xfa   : > { %5439 = vmatpush1.bf16.msra.mxu0 %v9203_v37  ;;  %1596 = vmatprep.subr.bf16.mxu1 %v9208_v42  ;;  %v1802_v37 = vshll.u32 %v1677_v26, 16  ;;  %v8289_v42 = vcombine.low %v10314_v2, %v10322_v34  ;;  %v7558_v2 = vld.sshfl [vmem:[%s11301_s0 + $0x30] sm:$0x5f pattern:$0x76325410] }
  0xfb   : > { %5440 = vmatprep.subr.bf16.mxu0 %v9211_v43  ;;  %v1159_v43 = vcombine.low %v10334_v7, %v10345_v13  ;;  %v1801_v7 = vrot.slane %v1799_v32, 6  ;;  %v1195_v32 = vcombine.low %v10443_v28, %v10446_v29 }
  0xfc   : > { %v1804_v13 = vrot.slane %v1802_v37, 7  ;;  %v5090_v37 = vcombine.low %v10437_v25, %v10449_v31 }
  0xfd   : > { %1597 = vmatpush1.bf16.msra.mxu1 %v9206_v44  ;;  %v9248_v44 = vld [vmem:[%s9821_s6 + $0x400] ss:$8 sps:$4 sm:$0xff]  }
  0xfe   : > { %5441 = vmatpush1.bf16.msra.mxu0 %v9209_v46  ;;  %1598 = vmatprep.subr.bf16.mxu1 %v9214_v47  ;;  %v5054_v46 = vcombine.low %v10341_v10, %v10350_v18  ;;  %v9251_v47 = vld [vmem:[%s9821_s6 + $0xd00] ss:$8 sps:$4 sm:$0xff]   ;;  %v1196_v10 = vcombine.high %v10443_v28, %v10446_v29  ;;  %v5091_v18 = vcombine.high %v10437_v25, %v10449_v31  ;;  %v9268_v28 = vld [vmem:[%s9821_s6 + $0x434] ss:$8 sps:$4 sm:$0xff]  }
  0xff   : > { %5442 = vmatprep.subr.bf16.mxu0 %v9217_v48  ;;  %v7557_v48 = vld.sshfl [vmem:[%s11301_s0 + $0x28] sm:$0x5f pattern:$0x76325410]  ;;  %v9271_v25 = vld [vmem:[%s9821_s6 + $0xd34] ss:$8 sps:$4 sm:$0xff]  }
 0x100   : > { %v1709_v34 = vcombine.low %v7556_v36, %v7557_v48 }
 0x101   : > { %1599 = vmatpush1.bf16.msra.mxu1 %v9212_v50  ;;  %v1694_v50 = vcombine.high %v7554_v40, %v7555_v35 }
 0x102   : > { %5443 = vmatpush1.bf16.msra.mxu0 %v9215_v51  ;;  %1600 = vmatprep.subr.bf16.mxu1 %v9220_v33  ;;  %v1808_v51 = vshll.u32 %v1678_v27, 16  ;;  %v9256_v33 = vld [vmem:[%s9821_s6 + $0x414] ss:$8 sps:$4 sm:$0xff]   ;;  %v1827_v4 = vshrl.u32 %v1709_v34, 16 }
 0x103   : > { %5444 = vmatprep.subr.bf16.mxu0 %v9223_v38  ;;  %v9259_v38 = vld [vmem:[%s9821_s6 + $0xd14] ss:$8 sps:$4 sm:$0xff]  }
 0x104   : > { %v1829_v20 = vrot.slane %v1827_v4, 6  ;;  %v9295_v4 = vld [vmem:[%s9821_s6 + $0xd74] ss:$8 sps:$4 sm:$0xff]  }
 0x105   : > { %1601 = vmatpush1.bf16.msra.mxu1 %v9218_v41  ;;  %v1710_v41 = vcombine.high %v7556_v36, %v7557_v48 }
 0x106   : > { %5445 = vmatpush1.bf16.msra.mxu0 %v9221_v53  ;;  %1602 = vmatprep.subr.bf16.mxu1 %v9226_v54  ;;  %v7559_v53 = vld.sshfl [vmem:[%s11301_s0 + $0x38] sm:$0x5f pattern:$0x76325410]  ;;  %v1810_v54 = vrot.slane %v1808_v51, 7 }
 0x107   : > { %5446 = vmatprep.subr.bf16.mxu0 %v9229_v55  ;;  %v1813_v55 = vshrl.u32 %v1693_v15, 16 }
 0x109   : > { %1603 = vmatpush1.bf16.msra.mxu1 %v9224_v56  ;;  %v1725_v56 = vcombine.low %v7558_v2, %v7559_v53  ;;  %v1815_v0 = vrot.slane %v1813_v55, 6  ;;  %v9280_v55 = vld [vmem:[%s9821_s6 + $0x454] ss:$8 sps:$4 sm:$0xff]  }
 0x10a   : > { %5447 = vmatpush1.bf16.msra.mxu0 %v9227_v57  ;;  %1604 = vmatprep.subr.bf16.mxu1 %v9232_v58  ;;  %v1726_v57 = vcombine.high %v7558_v2, %v7559_v53  ;;  %v1805_v58 = vor.u32 %v1804_v13, %v1801_v7  ;;  %v9269_v2 = vld [vmem:[%s9821_s6 + $0xd30] ss:$8 sps:$4 sm:$0xff]   ;;  %v9277_v7 = vld [vmem:[%s9821_s6 + $0xd44] ss:$8 sps:$4 sm:$0xff]  }
 0x10b   : > { %5448 = vmatprep.subr.bf16.mxu0 %v9235_v59  ;;  %v1816_v59 = vshll.u32 %v1693_v15, 16  ;;  %v1841_v17 = vshrl.u32 %v1725_v56, 16  ;;  %v9260_v15 = vld [vmem:[%s9821_s6 + $0x420] ss:$8 sps:$4 sm:$0xff]  }
 0x10c   : > { %v1806_v9 = vrot.slane %v1805_v58, 2  ;;  %v1850_v35 = vshll.u32 %v1726_v57, 16  ;;  %v9278_v58 = vld [vmem:[%s9821_s6 + $0x450] ss:$8 sps:$4 sm:$0xff]  }
 0x10d   : > { %1605 = vmatpush1.bf16.msra.mxu1 %v9230_v60  ;;  %v8215_v60 = vld.sshfl [vmem:[%s11301_s0 + $0x48] sm:$0xf pattern:$0x76325410]  ;;  %v1843_v40 = vrot.slane %v1841_v17, 6 }
 0x10e   : > { %5449 = vmatpush1.bf16.msra.mxu0 %v9233_v61  ;;  %1606 = vmatprep.subr.bf16.mxu1 %v9238_v63  ;;  %v9254_v61 = vld [vmem:[%s9821_s6 + $0x410] ss:$8 sps:$4 sm:$0xff]   ;;  %v8291_v36 = vcombine.low %v10328_v5, %v8215_v60  ;;  %v1852_v5 = vrot.slane %v1850_v35, 7  ;;  %v9286_v60 = vld [vmem:[%s9821_s6 + $0x464] ss:$8 sps:$4 sm:$0xff]  }
 0x10f   : > { %5450 = vmatprep.subr.bf16.mxu0 %v9241_v30  ;;  %v9257_v63 = vld [vmem:[%s9821_s6 + $0xd10] ss:$8 sps:$4 sm:$0xff]   ;;  %v1822_v30 = vshll.u32 %v1694_v50, 16  ;;  %v9299_v17 = vld [vmem:[%s9821_s6 + $0xd80] ss:$8 sps:$4 sm:$0xff]  }
 0x110   : > { %v10502_v48 = vrot.slane %v8291_v36, %v9824_v11  ;;  %v7561_v35 = vld.sshfl [vmem:[%s11301_s0 + $0x58] sm:$0x5f pattern:$0x76325410] }
 0x111   : > { %1607 = vmatpush1.bf16.msra.mxu1 %v9236_v39  ;;  %v1830_v39 = vshll.u32 %v1709_v34, 16  ;;  %v9319_v36 = vld [vmem:[%s9821_s6 + $0xdb4] ss:$8 sps:$4 sm:$0xff]  }
 0x112   : > { %5451 = vmatpush1.bf16.msra.mxu0 %v9239_v8  ;;  %1608 = vmatprep.subr.bf16.mxu1 %v9244_v12  ;;  %v9262_v8 = vld [vmem:[%s9821_s6 + $0x424] ss:$8 sps:$4 sm:$0xff]   ;;  %v1818_v12 = vrot.slane %v1816_v59, 7  ;;  %v9281_v59 = vld [vmem:[%s9821_s6 + $0xd50] ss:$8 sps:$4 sm:$0xff]  }
 0x113   : > { %5452 = vmatprep.subr.bf16.mxu0 %v9247_v16  ;;  %v1836_v16 = vshll.u32 %v1710_v41, 16  ;;  %v1832_v21 = vrot.slane %v1830_v39, 7  ;;  %v9274_v41 = vld [vmem:[%s9821_s6 + $0x444] ss:$8 sps:$4 sm:$0xff]   ;;  %v9290_v39 = vld [vmem:[%s9821_s6 + $0x470] ss:$8 sps:$4 sm:$0xff]  }
 0x114   : > { %v1819_v49 = vor.u32 %v1818_v12, %v1815_v0  ;;  %v9287_v0 = vld [vmem:[%s9821_s6 + $0xd60] ss:$8 sps:$4 sm:$0xff]   ;;  %v9301_v12 = vld [vmem:[%s9821_s6 + $0xd84] ss:$8 sps:$4 sm:$0xff]  }
 0x115   : > { %1609 = vmatpush1.bf16.msra.mxu1 %v9242_v22  ;;  %v1844_v22 = vshll.u32 %v1725_v56, 16  ;;  %v1833_v26 = vor.u32 %v1832_v21, %v1829_v20  ;;  %v9283_v56 = vld [vmem:[%s9821_s6 + $0xd54] ss:$8 sps:$4 sm:$0xff]   ;;  %v9302_v21 = vld [vmem:[%s9821_s6 + $0x490] ss:$8 sps:$4 sm:$0xff]  }
 0x116   : > { %5453 = vmatpush1.bf16.msra.mxu0 %v9245_v23  ;;  %2375 = vmatprep.subr.bf16.mxu1 %v9250_v52  ;;  %v10488_v23 = vrot.slane %v8289_v42, %v9824_v11  ;;  %v1824_v52 = vrot.slane %v1822_v30, 7  ;;  %v10498_v42 = vsel %vm10049_vm6, %v1806_v9, %v1810_v54  ;;  %v9275_v54 = vld [vmem:[%s9821_s6 + $0xd40] ss:$8 sps:$4 sm:$0xff]   ;;  %v9292_v30 = vld [vmem:[%s9821_s6 + $0x474] ss:$8 sps:$4 sm:$0xff]  }
 0x117   : > { %5475 = vmatprep.subr.bf16.mxu0 %v9253_v24  ;;  %v1838_v24 = vrot.slane %v1836_v16, 7  ;;  %v1846_v27 = vrot.slane %v1844_v22, 7  ;;  %v9298_v9 = vld [vmem:[%s9821_s6 + $0x484] ss:$8 sps:$4 sm:$0xff]   ;;  %v9296_v16 = vld [vmem:[%s9821_s6 + $0x480] ss:$8 sps:$4 sm:$0xff]  }
 0x118   : > { %1611 = vmatmul.mubr.bf16.vlgmr.msra.gmra.mrb[0].mxu1 %v1159_v43  ;;  %v1820_v43 = vrot.slane %v1819_v49, 2  ;;  %v9307_v20 = vld [vmem:[%s9821_s6 + $0xd94] ss:$8 sps:$4 sm:$0xff]   ;;  %v9305_v22 = vld [vmem:[%s9821_s6 + $0xd90] ss:$8 sps:$4 sm:$0xff]  }
 0x119   : > { %5455 = vmatmul.mubr.bf16.vlgmr.msra.gmra.mrb[0].mxu0 %v5054_v46  ;;  %2376 = vmatpush1.bf16.msra.mxu1 %v9248_v44  ;;  %v9263_v44 = vld [vmem:[%s9821_s6 + $0xd20] ss:$8 sps:$4 sm:$0xff]   ;;  %v1834_v46 = vrot.slane %v1833_v26, 2  ;;  %v9310_v49 = vld [vmem:[%s9821_s6 + $0x4a4] ss:$8 sps:$4 sm:$0xff]  }
 0x11a   : > { %5476 = vmatpush1.bf16.msra.mxu0 %v9251_v47  ;;  %2377 = vmatprep.subr.bf16.mxu1 %v9256_v33  ;;  %v1847_v47 = vor.u32 %v1846_v27, %v1843_v40  ;;  %v10508_v29 = vsel %vm10049_vm6, %v1820_v43, %v1824_v52  ;;  %v9266_v33 = vld [vmem:[%s9821_s6 + $0x430] ss:$8 sps:$4 sm:$0xff]   ;;  %v9313_v52 = vld [vmem:[%s9821_s6 + $0xda4] ss:$8 sps:$4 sm:$0xff]   ;;  %v9311_v40 = vld [vmem:[%s9821_s6 + $0xda0] ss:$8 sps:$4 sm:$0xff]  }
 0x11b   : > { %5477 = vmatprep.subr.bf16.mxu0 %v9259_v38  ;;  %1620 = vmatprep.mubr.bf16.mxu1 %v1196_v10  ;;  %v10512_v31 = vsel %vm10049_vm6, %v1834_v46, %v1838_v24  ;;  %v1975_v51 = vcombine.low %v10498_v42, %v10508_v29  ;;  %v5057_v38 = vcombine.high %v10488_v23, %v10502_v48  ;;  %v9308_v24 = vld [vmem:[%s9821_s6 + $0x4a0] ss:$8 sps:$4 sm:$0xff]   ;;  %v7560_v26 = vld.sshfl [vmem:[%s11301_s0 + $0x50] sm:$0x5f pattern:$0x76325410] }
 0x11c   : > { %5464 = vmatprep.mubr.bf16.mxu0 %v5091_v18  ;;  %v1848_v50 = vrot.slane %v1847_v47, 2  ;;  %v9272_v18 = vld [vmem:[%s9821_s6 + $0x440] ss:$8 sps:$4 sm:$0xff]   ;;  %v9316_v27 = vld [vmem:[%s9821_s6 + $0x4b4] ss:$8 sps:$4 sm:$0xff]  }
 0x11d   : > { %2378 = vmatpush1.bf16.msra.mxu1 %v9254_v61  ;;  %v10529_v10 = vrot.slane %v1975_v51, %v9824_v11  ;;  %v9289_v61 = vld [vmem:[%s9821_s6 + $0xd64] ss:$8 sps:$4 sm:$0xff]   ;;  %v9314_v43 = vld [vmem:[%s9821_s6 + $0x4b0] ss:$8 sps:$4 sm:$0xff]  }
 0x11e   : > { %5478 = vmatpush1.bf16.msra.mxu0 %v9257_v63  ;;  %2379 = vmatprep.subr.bf16.mxu1 %v9262_v8  ;;  %v10522_v34 = vsel %vm10049_vm6, %v1848_v50, %v1852_v5  ;;  %v9284_v63 = vld [vmem:[%s9821_s6 + $0x460] ss:$8 sps:$4 sm:$0xff]   ;;  %v9293_v8 = vld [vmem:[%s9821_s6 + $0xd70] ss:$8 sps:$4 sm:$0xff]   ;;  %v9322_v47 = vld [vmem:[%s9821_s6 + $0x4c4] ss:$8 sps:$4 sm:$0xff]  }
 0x11f   : > { %5479 = vmatprep.subr.bf16.mxu0 %v9265_v45  ;;  %v1977_v13 = vcombine.low %v10512_v31, %v10522_v34  ;;  %v9304_v45 = vld [vmem:[%s9821_s6 + $0x494] ss:$8 sps:$4 sm:$0xff]   ;;  %v7563_v46 = vld.sshfl [vmem:[%s11301_s0 + $0x68] sm:$0x5f pattern:$0x76325410] }
 0x120   : > { %1621 = vmatmul.mubr.bf16.gmra.mrb[4].mxu1 %v1195_v32  ;;  %v1741_v32 = vcombine.low %v7560_v26, %v7561_v35  ;;  %v9325_v5 = vld [vmem:[%s9821_s6 + $0xdc4] ss:$8 sps:$4 sm:$0xff]  }
 0x121   : > { %5465 = vmatmul.mubr.bf16.gmra.mrb[4].mxu0 %v5090_v37  ;;  %2380 = vmatpush1.bf16.msra.mxu1 %v9260_v15  ;;  %v10533_v53 = vrot.slane %v1977_v13, %v9824_v11  ;;  %v7562_v15 = vld.sshfl [vmem:[%s11301_s0 + $0x60] sm:$0x5f pattern:$0x76325410]  ;;  %v1742_v37 = vcombine.high %v7560_v26, %v7561_v35 }
 0x122   : > { %5480 = vmatpush1.bf16.msra.mxu0 %v9263_v44  ;;  %2381 = vmatprep.subr.bf16.mxu1 %v9268_v28  ;;  %v9317_v44 = vld [vmem:[%s9821_s6 + $0xdb0] ss:$8 sps:$4 sm:$0xff]   ;;  %v1855_v50 = vshrl.u32 %v1741_v32, 16  ;;  %v1858_v51 = vshll.u32 %v1741_v32, 16  ;;  %v9334_v35 = vld [vmem:[%s9821_s6 + $0x4e4] ss:$8 sps:$4 sm:$0xff]  }
 0x123   : > { %5481 = vmatprep.subr.bf16.mxu0 %v9271_v25  ;;  %5507 = vmatprep.mubr.bf16.mxu0 %v5057_v38  ;;  %v2008_v57 = vcombine.high %v10529_v10, %v10533_v53  ;;  %v7564_v28 = vld.sshfl [vmem:[%s11301_s0 + $0x70] sm:$0x5f pattern:$0x76325410]  ;;  %v1757_v25 = vcombine.low %v7562_v15, %v7563_v46  ;;  %v1758_v38 = vcombine.high %v7562_v15, %v7563_v46 }
 0x125   : > { %2382 = vmatpush1.bf16.msra.mxu1 %v9266_v33  ;;  %2407 = vmatprep.mubr.bf16.mxu1 %v2008_v57  ;;  %v7565_v33 = vld.sshfl [vmem:[%s11301_s0 + $0x78] sm:$0x5f pattern:$0x76325410] }
 0x126   : > { %5482 = vmatpush1.bf16.msra.mxu0 %v9269_v2  ;;  %2383 = vmatprep.subr.bf16.mxu1 %v9274_v41  ;;  %v1864_v2 = vshll.u32 %v1742_v37, 16  ;;  %v7566_v41 = vld.sshfl [vmem:[%s11301_s0 + $0x80] sm:$0x5f pattern:$0x76325410]  ;;  %v1774_v13 = vcombine.high %v7564_v28, %v7565_v33 }
 0x127   : > { %5483 = vmatprep.subr.bf16.mxu0 %v9277_v7  ;;  %v1773_v7 = vcombine.low %v7564_v28, %v7565_v33  ;;  %v7567_v57 = vld.sshfl [vmem:[%s11301_s0 + $0x88] sm:$0x5f pattern:$0x76325410] }
 0x128   : > { %v1866_v1 = vrot.slane %v1864_v2, 7 }
 0x129   : > { %2384 = vmatpush1.bf16.msra.mxu1 %v9272_v18  ;;  %v1857_v18 = vrot.slane %v1855_v50, 6 }
 0x12a   : > { %5484 = vmatpush1.bf16.msra.mxu0 %v9275_v54  ;;  %2385 = vmatprep.subr.bf16.mxu1 %v9280_v55  ;;  %v1860_v54 = vrot.slane %v1858_v51, 7  ;;  %v9320_v55 = vld [vmem:[%s9821_s6 + $0x4c0] ss:$8 sps:$4 sm:$0xff]  }
 0x12b   : > { %5485 = vmatprep.subr.bf16.mxu0 %v9283_v56  ;;  %v9323_v56 = vld [vmem:[%s9821_s6 + $0xdc0] ss:$8 sps:$4 sm:$0xff]  }
 0x12c   : > { %v9335_v51 = vld [vmem:[%s9821_s6 + $0xde0] ss:$8 sps:$4 sm:$0xff]  }
 0x12d   : > { %2386 = vmatpush1.bf16.msra.mxu1 %v9278_v58  ;;  %v1869_v58 = vshrl.u32 %v1757_v25, 16 }
 0x12e   : > { %5486 = vmatpush1.bf16.msra.mxu0 %v9281_v59  ;;  %2387 = vmatprep.subr.bf16.mxu1 %v9286_v60  ;;  %v10598_v59 = vrot.slane %v8293_v14, %v9824_v11  ;;  %v1789_v60 = vcombine.low %v7566_v41, %v7567_v57 }
 0x12f   : > { %5487 = vmatprep.subr.bf16.mxu0 %v9289_v61  ;;  %v1790_v61 = vcombine.high %v7566_v41, %v7567_v57  ;;  %v9340_v41 = vld [vmem:[%s9821_s6 + $0x4f4] ss:$8 sps:$4 sm:$0xff]   ;;  %v9341_v57 = vld [vmem:[%s9821_s6 + $0xdf0] ss:$8 sps:$4 sm:$0xff]  }
 0x131   : > { %2388 = vmatpush1.bf16.msra.mxu1 %v9284_v63  ;;  %v1861_v63 = vor.u32 %v1860_v54, %v1857_v18  ;;  %v1906_v32 = vshll.u32 %v1790_v61, 16  ;;  %v9346_v61 = vld [vmem:[%s9821_s6 + $0x504] ss:$8 sps:$4 sm:$0xff]  }
 0x132   : > { %5488 = vmatpush1.bf16.msra.mxu0 %v9287_v0  ;;  %2389 = vmatprep.subr.bf16.mxu1 %v9292_v30  ;;  %v1872_v0 = vshll.u32 %v1757_v25, 16  ;;  %v8223_v30 = vld.sshfl [vmem:[%s11301_s0 + $0x98] sm:$0xf pattern:$0x76325410] }
 0x133   : > { %5489 = vmatprep.subr.bf16.mxu0 %v9295_v4  ;;  %v9328_v4 = vld [vmem:[%s9821_s6 + $0x4d4] ss:$8 sps:$4 sm:$0xff]   ;;  %v8295_v37 = vcombine.low %v10408_v3, %v8223_v30  ;;  %v9332_v3 = vld [vmem:[%s9821_s6 + $0x4e0] ss:$8 sps:$4 sm:$0xff]  }
 0x134   : > { %v1874_v14 = vrot.slane %v1872_v0, 7  ;;  %v8376_v30 = vld.sshfl [vmem:[%s11301_s0 + $0xb0] sm:$0xf pattern:$0x76325410] }
 0x135   : > { %2390 = vmatpush1.bf16.msra.mxu1 %v9290_v39  ;;  %v1871_v39 = vrot.slane %v1869_v58, 6  ;;  %v10611_v28 = vrot.slane %v8295_v37, %v9824_v11 }
 0x136   : > { %5490 = vmatpush1.bf16.msra.mxu0 %v9293_v8  ;;  %2391 = vmatprep.subr.bf16.mxu1 %v9298_v9  ;;  %v1878_v8 = vshll.u32 %v1758_v38, 16  ;;  %v1883_v9 = vshrl.u32 %v1773_v7, 16 }
 0x137   : > { %5491 = vmatprep.subr.bf16.mxu0 %v9301_v12  ;;  %v1886_v12 = vshll.u32 %v1773_v7, 16  ;;  %v5093_v2 = vcombine.high %v10598_v59, %v10611_v28  ;;  %v9343_v7 = vld [vmem:[%s9821_s6 + $0xdf4] ss:$8 sps:$4 sm:$0xff]  }
 0x139   : > { %2392 = vmatpush1.bf16.msra.mxu1 %v9296_v16  ;;  %v1892_v16 = vshll.u32 %v1774_v13, 16  ;;  %v5092_v13 = vcombine.low %v10598_v59, %v10611_v28  ;;  %v9368_v59 = vld [vmem:[%s9821_s6 + $0x540] ss:$8 sps:$4 sm:$0xff]  }
 0x13a   : > { %5492 = vmatpush1.bf16.msra.mxu0 %v9299_v17  ;;  %2393 = vmatprep.subr.bf16.mxu1 %v9304_v45  ;;  %v1897_v17 = vshrl.u32 %v1789_v60, 16  ;;  %v9326_v45 = vld [vmem:[%s9821_s6 + $0x4d0] ss:$8 sps:$4 sm:$0xff]   ;;  %v9371_v28 = vld [vmem:[%s9821_s6 + $0xe40] ss:$8 sps:$4 sm:$0xff]  }
 0x13b   : > { %5493 = vmatprep.subr.bf16.mxu0 %v9307_v20  ;;  %v1862_v20 = vrot.slane %v1861_v63, 2  ;;  %v9349_v63 = vld [vmem:[%s9821_s6 + $0xe04] ss:$8 sps:$4 sm:$0xff]  }
 0x13c   : > { %v1899_v26 = vrot.slane %v1897_v17, 6  ;;  %v9347_v17 = vld [vmem:[%s9821_s6 + $0xe00] ss:$8 sps:$4 sm:$0xff]  }
 0x13d   : > { %2394 = vmatpush1.bf16.msra.mxu1 %v9302_v21  ;;  %v1885_v21 = vrot.slane %v1883_v9, 6  ;;  %v1867_v25 = vsel %vm10049_vm6, %v1862_v20, %v1866_v1  ;;  %v5056_v1 = vcombine.low %v10488_v23, %v10502_v48  ;;  %v9352_v23 = vld [vmem:[%s9821_s6 + $0x514] ss:$8 sps:$4 sm:$0xff]  }
 0x13e   : > { %5494 = vmatpush1.bf16.msra.mxu0 %v9305_v22  ;;  %2395 = vmatprep.subr.bf16.mxu1 %v9310_v49  ;;  %v1888_v22 = vrot.slane %v1886_v12, 7  ;;  %v1900_v49 = vshll.u32 %v1789_v60, 16  ;;  %v8380_v12 = vld.sshfl [vmem:[%s11301_s0 + $0xd0] sm:$0xf pattern:$0x76325410] }
 0x13f   : > { %5495 = vmatprep.subr.bf16.mxu0 %v9313_v52  ;;  %v1875_v52 = vor.u32 %v1874_v14, %v1871_v39  ;;  %v8382_v14 = vld.sshfl [vmem:[%s11301_s0 + $0xe0] sm:$0xf pattern:$0x76325410]  ;;  %v9355_v48 = vld [vmem:[%s9821_s6 + $0xe14] ss:$8 sps:$4 sm:$0xff]  }
 0x140   : > { %v1902_v15 = vrot.slane %v1900_v49, 7  ;;  %v8458_v49 = vcombine.low %v8380_v12, %v8382_v14  ;;  %v9407_v12 = vld [vmem:[%s9821_s6 + $0xea0] ss:$8 sps:$4 sm:$0xff]   ;;  %v9410_v14 = vld [vmem:[%s9821_s6 + $0x5b0] ss:$8 sps:$4 sm:$0xff]  }
 0x141   : > { %2396 = vmatpush1.bf16.msra.mxu1 %v9308_v24  ;;  %v1880_v24 = vrot.slane %v1878_v8, 7 }
 0x142   : > { %5496 = vmatpush1.bf16.msra.mxu0 %v9311_v40  ;;  %2397 = vmatprep.subr.bf16.mxu1 %v9316_v27  ;;  %v1894_v40 = vrot.slane %v1892_v16, 7  ;;  %v9329_v27 = vld [vmem:[%s9821_s6 + $0xdd0] ss:$8 sps:$4 sm:$0xff]   ;;  %v9344_v16 = vld [vmem:[%s9821_s6 + $0x500] ss:$8 sps:$4 sm:$0xff]  }
 0x143   : > { %5497 = vmatprep.subr.bf16.mxu0 %v9319_v36  ;;  %v1889_v36 = vor.u32 %v1888_v22, %v1885_v21  ;;  %v1978_v21 = vcombine.high %v10512_v31, %v10522_v34 }
 0x145   : > { %2398 = vmatpush1.bf16.msra.mxu1 %v9314_v43  ;;  %v9337_v43 = vld [vmem:[%s9821_s6 + $0xde4] ss:$8 sps:$4 sm:$0xff]   ;;  %v1890_v46 = vrot.slane %v1889_v36, 2  ;;  %v10677_v31 = vrot.slane %v1978_v21, %v9824_v11  ;;  %v9359_v36 = vld [vmem:[%s9821_s6 + $0xe20] ss:$8 sps:$4 sm:$0xff]  }
 0x146   : > { %5498 = vmatpush1.bf16.msra.mxu0 %v9317_v44  ;;  %2399 = vmatprep.subr.bf16.mxu1 %v9322_v47  ;;  %v1876_v44 = vrot.slane %v1875_v52, 2  ;;  %v1903_v47 = vor.u32 %v1902_v15, %v1899_v26  ;;  %v9350_v52 = vld [vmem:[%s9821_s6 + $0x510] ss:$8 sps:$4 sm:$0xff]   ;;  %v10683_v26 = vrot.slane %v8458_v49, %v9824_v11  ;;  %v9364_v15 = vld [vmem:[%s9821_s6 + $0x534] ss:$8 sps:$4 sm:$0xff]  }
 0x147   : > { %5499 = vmatprep.subr.bf16.mxu0 %v9325_v5  ;;  %v1908_v5 = vrot.slane %v1906_v32, 7  ;;  %v1895_v33 = vsel %vm10049_vm6, %v1890_v46, %v1894_v40  ;;  %v9358_v40 = vld [vmem:[%s9821_s6 + $0x524] ss:$8 sps:$4 sm:$0xff]   ;;  %v9367_v32 = vld [vmem:[%s9821_s6 + $0xe34] ss:$8 sps:$4 sm:$0xff]  }
 0x148   : > { %v1881_v50 = vsel %vm10049_vm6, %v1876_v44, %v1880_v24  ;;  %v1904_v38 = vrot.slane %v1903_v47, 2  ;;  %v9353_v24 = vld [vmem:[%s9821_s6 + $0xe10] ss:$8 sps:$4 sm:$0xff]   ;;  %v9370_v47 = vld [vmem:[%s9821_s6 + $0x544] ss:$8 sps:$4 sm:$0xff]  }
 0x149   : > { %2400 = vmatpush1.bf16.msra.mxu1 %v9320_v55  ;;  %v2012_v18 = vcombine.high %v1867_v25, %v1881_v50  ;;  %v2011_v55 = vcombine.low %v1867_v25, %v1881_v50  ;;  %v9362_v44 = vld [vmem:[%s9821_s6 + $0x530] ss:$8 sps:$4 sm:$0xff]   ;;  %v9376_v25 = vld [vmem:[%s9821_s6 + $0x554] ss:$8 sps:$4 sm:$0xff]  }
 0x14a   : > { %5500 = vmatpush1.bf16.msra.mxu0 %v9323_v56  ;;  %2401 = vmatprep.subr.bf16.mxu1 %v9328_v4  ;;  %v1909_v54 = vsel %vm10049_vm6, %v1904_v38, %v1908_v5  ;;  %v9338_v56 = vld [vmem:[%s9821_s6 + $0x4f0] ss:$8 sps:$4 sm:$0xff]   ;;  %v8378_v4 = vld.sshfl [vmem:[%s11301_s0 + $0xc0] sm:$0xf pattern:$0x76325410] }
 0x14b   : > { %5501 = vmatprep.subr.bf16.mxu0 %v9331_v62  ;;  %v2013_v58 = vcombine.low %v1895_v33, %v1909_v54  ;;  %v2014_v60 = vcombine.high %v1895_v33, %v1909_v54  ;;  %v10634_v0 = vrot.slane %v2012_v18, %v9824_v11  ;;  %v2021_v8 = vrot.slane %v2011_v55, %v9824_v11  ;;  %v9365_v46 = vld [vmem:[%s9821_s6 + $0xe30] ss:$8 sps:$4 sm:$0xff]   ;;  %v9373_v5 = vld [vmem:[%s9821_s6 + $0xe44] ss:$8 sps:$4 sm:$0xff]   ;;  %v9379_v50 = vld [vmem:[%s9821_s6 + $0xe54] ss:$8 sps:$4 sm:$0xff]  }
 0x14c   : > { %v2007_v62 = vcombine.low %v10529_v10, %v10533_v53  ;;  %v1976_v10 = vcombine.high %v10498_v42, %v10508_v29  ;;  %v8456_v22 = vcombine.low %v8376_v30, %v8378_v4  ;;  %v9361_v42 = vld [vmem:[%s9821_s6 + $0xe24] ss:$8 sps:$4 sm:$0xff]   ;;  %v9386_v18 = vld [vmem:[%s9821_s6 + $0x570] ss:$8 sps:$4 sm:$0xff]   ;;  %v9427_v21 = vld [vmem:[%s9821_s6 + $0xed4] ss:$8 sps:$4 sm:$0xff]  }
 0x14d   : > { %2402 = vmatpush1.bf16.msra.mxu1 %v9326_v45  ;;  %v10643_v39 = vrot.slane %v2014_v60, %v9824_v11  ;;  %v2035_v9 = vrot.slane %v2013_v58, %v9824_v11  ;;  %v9382_v33 = vld [vmem:[%s9821_s6 + $0x564] ss:$8 sps:$4 sm:$0xff]   ;;  %v9389_v54 = vld [vmem:[%s9821_s6 + $0xe70] ss:$8 sps:$4 sm:$0xff]   ;;  %v9395_v58 = vld [vmem:[%s9821_s6 + $0xe80] ss:$8 sps:$4 sm:$0xff]  }
 0x14e   : > { %5502 = vmatpush1.bf16.msra.mxu0 %v9329_v27  ;;  %2403 = vmatprep.subr.bf16.mxu1 %v9334_v35  ;;  %v10674_v29 = vrot.slane %v1976_v10, %v9824_v11  ;;  %v10680_v34 = vrot.slane %v8456_v22, %v9824_v11  ;;  %v9356_v35 = vld [vmem:[%s9821_s6 + $0x520] ss:$8 sps:$4 sm:$0xff]   ;;  %v9385_v38 = vld [vmem:[%s9821_s6 + $0xe64] ss:$8 sps:$4 sm:$0xff]   ;;  %v9400_v60 = vld [vmem:[%s9821_s6 + $0x594] ss:$8 sps:$4 sm:$0xff]  }
 0x14f   : > { %5503 = vmatprep.subr.bf16.mxu0 %v9337_v43  ;;  %v2046_v45 = vcombine.high %v10634_v0, %v10643_v39  ;;  %v2045_v20 = vcombine.low %v10634_v0, %v10643_v39  ;;  %v2044_v53 = vcombine.high %v2021_v8, %v2035_v9  ;;  %v2043_v27 = vcombine.low %v2021_v8, %v2035_v9  ;;  %v9394_v55 = vld [vmem:[%s9821_s6 + $0x584] ss:$8 sps:$4 sm:$0xff]   ;;  %v9401_v30 = vld [vmem:[%s9821_s6 + $0xe90] ss:$8 sps:$4 sm:$0xff]   ;;  %v9404_v9 = vld [vmem:[%s9821_s6 + $0x5a0] ss:$8 sps:$4 sm:$0xff]  }
 0x150   : > { %v2010_v37 = vcombine.high %v10674_v29, %v10677_v31  ;;  %v5787_v43 = vcombine.high %v10680_v34, %v10683_v26  ;;  %v9406_v4 = vld [vmem:[%s9821_s6 + $0x5a4] ss:$8 sps:$4 sm:$0xff]   ;;  %v9419_v10 = vld [vmem:[%s9821_s6 + $0xec0] ss:$8 sps:$4 sm:$0xff]   ;;  %v9422_v22 = vld [vmem:[%s9821_s6 + $0x5d0] ss:$8 sps:$4 sm:$0xff]  }
 0x151   : > { %2404 = vmatpush1.bf16.msra.mxu1 %v9332_v3  ;;  %v9374_v3 = vld [vmem:[%s9821_s6 + $0x550] ss:$8 sps:$4 sm:$0xff]   ;;  %v9409_v8 = vld [vmem:[%s9821_s6 + $0xea4] ss:$8 sps:$4 sm:$0xff]   ;;  %v9464_v0 = vld [vmem:[%s9821_s6 + $0x640] ss:$8 sps:$4 sm:$0xff]  }
 0x152   : > { %5504 = vmatpush1.bf16.msra.mxu0 %v9335_v51  ;;  %2405 = vmatprep.subr.bf16.mxu1 %v9340_v41  ;;  %v9377_v51 = vld [vmem:[%s9821_s6 + $0xe50] ss:$8 sps:$4 sm:$0xff]   ;;  %v9383_v41 = vld [vmem:[%s9821_s6 + $0xe60] ss:$8 sps:$4 sm:$0xff]  }
 0x153   : > { %5505 = vmatprep.subr.bf16.mxu0 %v9343_v7  ;;  %v9388_v7 = vld [vmem:[%s9821_s6 + $0x574] ss:$8 sps:$4 sm:$0xff]   ;;  %v9425_v49 = vld [vmem:[%s9821_s6 + $0xed0] ss:$8 sps:$4 sm:$0xff]   ;;  %v9467_v39 = vld [vmem:[%s9821_s6 + $0xf40] ss:$8 sps:$4 sm:$0xff]  }
 0x155   : > { %2406 = vmatpush1.bf16.msra.mxu1 %v9338_v56  ;;  %v9397_v56 = vld [vmem:[%s9821_s6 + $0xe84] ss:$8 sps:$4 sm:$0xff]  }
 0x156   : > { %5506 = vmatpush1.bf16.msra.mxu0 %v9341_v57  ;;  %2428 = vmatprep.subr.bf16.mxu1 %v9346_v61  ;;  %v9392_v57 = vld [vmem:[%s9821_s6 + $0x580] ss:$8 sps:$4 sm:$0xff]   ;;  %v9403_v61 = vld [vmem:[%s9821_s6 + $0xe94] ss:$8 sps:$4 sm:$0xff]  }
 0x157   : > { %6154 = vmatprep.subr.bf16.mxu0 %v9349_v63  ;;  %v9398_v63 = vld [vmem:[%s9821_s6 + $0x590] ss:$8 sps:$4 sm:$0xff]  }
 0x158   : > { %2408 = vmatmul.mubr.bf16.vlgmr.msra.gmra.mrb[0].mxu1 %v2007_v62  ;;  %v9412_v62 = vld [vmem:[%s9821_s6 + $0x5b4] ss:$8 sps:$4 sm:$0xff]  }
 0x159   : > { %5508 = vmatmul.mubr.bf16.vlgmr.msra.gmra.mrb[0].mxu0 %v5056_v1  ;;  %2429 = vmatpush1.bf16.msra.mxu1 %v9344_v16  ;;  %v9415_v1 = vld [vmem:[%s9821_s6 + $0xeb4] ss:$8 sps:$4 sm:$0xff]   ;;  %v9413_v16 = vld [vmem:[%s9821_s6 + $0xeb0] ss:$8 sps:$4 sm:$0xff]  }
 0x15a   : > { %6155 = vmatpush1.bf16.msra.mxu0 %v9347_v17  ;;  %2430 = vmatprep.subr.bf16.mxu1 %v9352_v23  ;;  %v9418_v17 = vld [vmem:[%s9821_s6 + $0x5c4] ss:$8 sps:$4 sm:$0xff]  }
 0x15b   : > { %6156 = vmatprep.subr.bf16.mxu0 %v9355_v48  ;;  %2417 = vmatprep.mubr.bf16.mxu1 %v2044_v53  ;;  %v9421_v23 = vld [vmem:[%s9821_s6 + $0xec4] ss:$8 sps:$4 sm:$0xff]   ;;  %v9416_v48 = vld [vmem:[%s9821_s6 + $0x5c0] ss:$8 sps:$4 sm:$0xff]   ;;  %v9424_v53 = vld [vmem:[%s9821_s6 + $0x5d4] ss:$8 sps:$4 sm:$0xff]  }
 0x15c   : > { %5517 = vmatprep.mubr.bf16.mxu0 %v5093_v2  ;;  %v9380_v2 = vld [vmem:[%s9821_s6 + $0x560] ss:$8 sps:$4 sm:$0xff]  }
 0x15d   : > { %2431 = vmatpush1.bf16.msra.mxu1 %v9350_v52  ;;  %v9430_v52 = vld [vmem:[%s9821_s6 + $0x5e4] ss:$8 sps:$4 sm:$0xff]  }
 0x15e   : > { %6157 = vmatpush1.bf16.msra.mxu0 %v9353_v24  ;;  %2432 = vmatprep.subr.bf16.mxu1 %v9358_v40  ;;  %v9433_v24 = vld [vmem:[%s9821_s6 + $0xee4] ss:$8 sps:$4 sm:$0xff]  }
 0x15f   : > { %6158 = vmatprep.subr.bf16.mxu0 %v9361_v42  ;;  %v8384_v40 = vld.sshfl [vmem:[%s11301_s0 + $0x100] sm:$0xf pattern:$0x76325410] }
 0x160   : > { %2418 = vmatmul.mubr.bf16.gmra.mrb[4].mxu1 %v2043_v27  ;;  %v8386_v42 = vld.sshfl [vmem:[%s11301_s0 + $0x110] sm:$0xf pattern:$0x76325410]  ;;  %v9428_v27 = vld [vmem:[%s9821_s6 + $0x5e0] ss:$8 sps:$4 sm:$0xff]  }
 0x161   : > { %5518 = vmatmul.mubr.bf16.gmra.mrb[4].mxu0 %v5092_v13  ;;  %2433 = vmatpush1.bf16.msra.mxu1 %v9356_v35  ;;  %v9391_v13 = vld [vmem:[%s9821_s6 + $0xe74] ss:$8 sps:$4 sm:$0xff]   ;;  %v8388_v35 = vld.sshfl [vmem:[%s11301_s0 + $0x120] sm:$0xf pattern:$0x76325410] }
 0x162   : > { %6159 = vmatpush1.bf16.msra.mxu0 %v9359_v36  ;;  %2434 = vmatprep.subr.bf16.mxu1 %v9364_v15  ;;  %v8390_v36 = vld.sshfl [vmem:[%s11301_s0 + $0x130] sm:$0xf pattern:$0x76325410]  ;;  %v9431_v15 = vld [vmem:[%s9821_s6 + $0xee0] ss:$8 sps:$4 sm:$0xff]  }
 0x163   : > { %6160 = vmatprep.subr.bf16.mxu0 %v9367_v32  ;;  %2460 = vmatprep.mubr.bf16.mxu1 %v2010_v37  ;;  %v9436_v32 = vld [vmem:[%s9821_s6 + $0x5f4] ss:$8 sps:$4 sm:$0xff]  }
 0x164   : > { %6186 = vmatprep.mubr.bf16.mxu0 %v5787_v43  ;;  %v9439_v37 = vld [vmem:[%s9821_s6 + $0xef4] ss:$8 sps:$4 sm:$0xff]   ;;  %v9434_v43 = vld [vmem:[%s9821_s6 + $0x5f0] ss:$8 sps:$4 sm:$0xff]  }
 0x165   : > { %2435 = vmatpush1.bf16.msra.mxu1 %v9362_v44  ;;  %v9437_v44 = vld [vmem:[%s9821_s6 + $0xef0] ss:$8 sps:$4 sm:$0xff]  }
 0x166   : > { %6161 = vmatpush1.bf16.msra.mxu0 %v9365_v46  ;;  %2436 = vmatprep.subr.bf16.mxu1 %v9370_v47  ;;  %v8460_v46 = vcombine.low %v8384_v40, %v8386_v42  ;;  %v8462_v47 = vcombine.low %v8388_v35, %v8390_v36  ;;  %v9481_v40 = vld [vmem:[%s9821_s6 + $0xf64] ss:$8 sps:$4 sm:$0xff]   ;;  %v9476_v42 = vld [vmem:[%s9821_s6 + $0x660] ss:$8 sps:$4 sm:$0xff]   ;;  %v9484_v35 = vld [vmem:[%s9821_s6 + $0x674] ss:$8 sps:$4 sm:$0xff]  }
 0x167   : > { %6162 = vmatprep.subr.bf16.mxu0 %v9373_v5  ;;  %v9442_v5 = vld [vmem:[%s9821_s6 + $0x604] ss:$8 sps:$4 sm:$0xff]   ;;  %v9487_v36 = vld [vmem:[%s9821_s6 + $0xf74] ss:$8 sps:$4 sm:$0xff]  }
 0x169   : > { %2437 = vmatpush1.bf16.msra.mxu1 %v9368_v59  ;;  %v9445_v59 = vld [vmem:[%s9821_s6 + $0xf04] ss:$8 sps:$4 sm:$0xff]  }
 0x16a   : > { %6163 = vmatpush1.bf16.msra.mxu0 %v9371_v28  ;;  %2438 = vmatprep.subr.bf16.mxu1 %v9376_v25  ;;  %v7712_v28 = vld.sshfl [vmem:[%s11301_s0 + $0x140] sm:$0xf pattern:$0x76325410] }
 0x16b   : > { %6164 = vmatprep.subr.bf16.mxu0 %v9379_v50  ;;  %v7714_v25 = vld.sshfl [vmem:[%s11301_s0 + $0x150] sm:$0xf pattern:$0x76325410] }
 0x16c   : > { %v7716_v50 = vld.sshfl [vmem:[%s11301_s0 + $0x160] sm:$0xf pattern:$0x76325410] }
 0x16d   : > { %2439 = vmatpush1.bf16.msra.mxu1 %v9374_v3  ;;  %v7718_v3 = vld.sshfl [vmem:[%s11301_s0 + $0x170] sm:$0xf pattern:$0x76325410] }
 0x16e   : > { %6165 = vmatpush1.bf16.msra.mxu0 %v9377_v51  ;;  %2440 = vmatprep.subr.bf16.mxu1 %v9382_v33  ;;  %v8377_v51 = vld.sshfl [vmem:[%s11301_s0 + $0xb8] sm:$0xf pattern:$0x76325410] }
 0x16f   : > { %6166 = vmatprep.subr.bf16.mxu0 %v9385_v38  ;;  %v8379_v33 = vld.sshfl [vmem:[%s11301_s0 + $0xc8] sm:$0xf pattern:$0x76325410] }
 0x170   : > { %v9440_v38 = vld [vmem:[%s9821_s6 + $0x600] ss:$8 sps:$4 sm:$0xff]  }
 0x171   : > { %2441 = vmatpush1.bf16.msra.mxu1 %v9380_v2  ;;  %v5800_v2 = vrot.slane %v8460_v46, %v9824_v11  ;;  %v9491_v46 = vld [vmem:[%s9821_s6 + $0xf80] ss:$8 sps:$4 sm:$0xff]  }
 0x172   : > { %6167 = vmatpush1.bf16.msra.mxu0 %v9383_v41  ;;  %2442 = vmatprep.subr.bf16.mxu1 %v9388_v7  ;;  %v5814_v41 = vrot.slane %v8462_v47, %v9824_v11  ;;  %v8381_v7 = vld.sshfl [vmem:[%s11301_s0 + $0xd8] sm:$0xf pattern:$0x76325410] }
 0x173   : > { %6168 = vmatprep.subr.bf16.mxu0 %v9391_v13  ;;  %v2009_v13 = vcombine.low %v10674_v29, %v10677_v31  ;;  %v7794_v31 = vcombine.low %v7716_v50, %v7718_v3  ;;  %v9496_v47 = vld [vmem:[%s9821_s6 + $0x694] ss:$8 sps:$4 sm:$0xff]   ;;  %v10866_v50 = vld.sshfl [vmem:[%s11301_s0 + $0x28] sm:$0x5f pattern:$0x76325410] }
 0x174   : > { %v5823_v29 = vcombine.high %v5800_v2, %v5814_v41  ;;  %v9494_v3 = vld [vmem:[%s9821_s6 + $0x690] ss:$8 sps:$4 sm:$0xff]  }
 0x175   : > { %2443 = vmatpush1.bf16.msra.mxu1 %v9386_v18  ;;  %v5786_v18 = vcombine.low %v10680_v34, %v10683_v26  ;;  %v9446_v26 = vld [vmem:[%s9821_s6 + $0x610] ss:$8 sps:$4 sm:$0xff]  }
 0x176   : > { %6169 = vmatpush1.bf16.msra.mxu0 %v9389_v54  ;;  %2444 = vmatprep.subr.bf16.mxu1 %v9394_v55  ;;  %v8383_v54 = vld.sshfl [vmem:[%s11301_s0 + $0xe8] sm:$0xf pattern:$0x76325410] }
 0x177   : > { %6170 = vmatprep.subr.bf16.mxu0 %v9397_v56  ;;  %v9443_v55 = vld [vmem:[%s9821_s6 + $0xf00] ss:$8 sps:$4 sm:$0xff]   ;;  %v9448_v56 = vld [vmem:[%s9821_s6 + $0x614] ss:$8 sps:$4 sm:$0xff]   ;;  %v8459_v34 = vcombine.low %v8381_v7, %v8383_v54  ;;  %v9502_v7 = vld [vmem:[%s9821_s6 + $0x6a4] ss:$8 sps:$4 sm:$0xff]  }
 0x179   : > { %2445 = vmatpush1.bf16.msra.mxu1 %v9392_v57  ;;  %v9451_v57 = vld [vmem:[%s9821_s6 + $0xf14] ss:$8 sps:$4 sm:$0xff]  }
 0x17a   : > { %6171 = vmatpush1.bf16.msra.mxu0 %v9395_v58  ;;  %2446 = vmatprep.subr.bf16.mxu1 %v9400_v60  ;;  %v7792_v58 = vcombine.low %v7712_v28, %v7714_v25  ;;  %v8457_v60 = vcombine.low %v8377_v51, %v8379_v33  ;;  %v9499_v28 = vld [vmem:[%s9821_s6 + $0xf94] ss:$8 sps:$4 sm:$0xff]   ;;  %v10861_v25 = vld.sshfl [vmem:[%s11301_s0 + $0x20] sm:$0x5f pattern:$0x76325410] }
 0x17b   : > { %6172 = vmatprep.subr.bf16.mxu0 %v9403_v61  ;;  %v9449_v61 = vld [vmem:[%s9821_s6 + $0xf10] ss:$8 sps:$4 sm:$0xff]   ;;  %v6330_v54 = vcombine.low %v10861_v25, %v10866_v50 }
 0x17c   : > { %v9497_v51 = vld [vmem:[%s9821_s6 + $0xf90] ss:$8 sps:$4 sm:$0xff]  }
 0x17d   : > { %2447 = vmatpush1.bf16.msra.mxu1 %v9398_v63  ;;  %v9454_v63 = vld [vmem:[%s9821_s6 + $0x624] ss:$8 sps:$4 sm:$0xff]   ;;  %v10873_v33 = vld.sshfl [vmem:[%s11301_s0 + $0x30] sm:$0x5f pattern:$0x76325410] }
 0x17e   : > { %6173 = vmatpush1.bf16.msra.mxu0 %v9401_v30  ;;  %2448 = vmatprep.subr.bf16.mxu1 %v9406_v4  ;;  %v9457_v30 = vld [vmem:[%s9821_s6 + $0xf24] ss:$8 sps:$4 sm:$0xff]   ;;  %v10799_v4 = vrot.slane %v7792_v58, %v9824_v11  ;;  %v9503_v58 = vld [vmem:[%s9821_s6 + $0xfa0] ss:$8 sps:$4 sm:$0xff]  }
 0x17f   : > { %6174 = vmatprep.subr.bf16.mxu0 %v9409_v8  ;;  %v10805_v8 = vrot.slane %v7794_v31, %v9824_v11  ;;  %v9511_v31 = vld [vmem:[%s9821_s6 + $0xfb4] ss:$8 sps:$4 sm:$0xff]  }
 0x181   : > { %2449 = vmatpush1.bf16.msra.mxu1 %v9404_v9  ;;  %v10808_v9 = vrot.slane %v8457_v60, %v9824_v11 }
 0x182   : > { %6175 = vmatpush1.bf16.msra.mxu0 %v9407_v12  ;;  %2450 = vmatprep.subr.bf16.mxu1 %v9412_v62  ;;  %v10811_v12 = vrot.slane %v8459_v34, %v9824_v11  ;;  %v9452_v62 = vld [vmem:[%s9821_s6 + $0x620] ss:$8 sps:$4 sm:$0xff]   ;;  %v9506_v34 = vld [vmem:[%s9821_s6 + $0x6b0] ss:$8 sps:$4 sm:$0xff]  }
 0x183   : > { %6176 = vmatprep.subr.bf16.mxu0 %v9415_v1  ;;  %v5822_v1 = vcombine.low %v5800_v2, %v5814_v41  ;;  %v10881_v2 = vld.sshfl [vmem:[%s11301_s0 + $0x40] sm:$0x5f pattern:$0x76325410] }
 0x184   : > { %v10886_v41 = vld.sshfl [vmem:[%s11301_s0 + $0x48] sm:$0x5f pattern:$0x76325410] }
 0x185   : > { %2451 = vmatpush1.bf16.msra.mxu1 %v9410_v14  ;;  %v9455_v14 = vld [vmem:[%s9821_s6 + $0xf20] ss:$8 sps:$4 sm:$0xff]  }
 0x186   : > { %6177 = vmatpush1.bf16.msra.mxu0 %v9413_v16  ;;  %2452 = vmatprep.subr.bf16.mxu1 %v9418_v17  ;;  %v9463_v16 = vld [vmem:[%s9821_s6 + $0xf34] ss:$8 sps:$4 sm:$0xff]   ;;  %v2740_v17 = vcombine.high %v10799_v4, %v10805_v8 }
 0x187   : > { %6178 = vmatprep.subr.bf16.mxu0 %v9421_v23  ;;  %v5789_v23 = vcombine.high %v10808_v9, %v10811_v12 }
 0x189   : > { %2453 = vmatpush1.bf16.msra.mxu1 %v9416_v48  ;;  %v9458_v48 = vld [vmem:[%s9821_s6 + $0x630] ss:$8 sps:$4 sm:$0xff]  }
 0x18a   : > { %6179 = vmatpush1.bf16.msra.mxu0 %v9419_v10  ;;  %2454 = vmatprep.subr.bf16.mxu1 %v9424_v53  ;;  %v9461_v10 = vld [vmem:[%s9821_s6 + $0xf30] ss:$8 sps:$4 sm:$0xff]   ;;  %v9466_v53 = vld [vmem:[%s9821_s6 + $0x644] ss:$8 sps:$4 sm:$0xff]  }
 0x18b   : > { %6180 = vmatprep.subr.bf16.mxu0 %v9427_v21  ;;  %v9469_v21 = vld [vmem:[%s9821_s6 + $0xf44] ss:$8 sps:$4 sm:$0xff]  }
 0x18d   : > { %2455 = vmatpush1.bf16.msra.mxu1 %v9422_v22  ;;  %v9475_v22 = vld [vmem:[%s9821_s6 + $0xf54] ss:$8 sps:$4 sm:$0xff]  }
 0x18e   : > { %6181 = vmatpush1.bf16.msra.mxu0 %v9425_v49  ;;  %2456 = vmatprep.subr.bf16.mxu1 %v9430_v52  ;;  %v9470_v49 = vld [vmem:[%s9821_s6 + $0x650] ss:$8 sps:$4 sm:$0xff]  }
 0x18f   : > { %6182 = vmatprep.subr.bf16.mxu0 %v9433_v24  ;;  %v9473_v52 = vld [vmem:[%s9821_s6 + $0xf50] ss:$8 sps:$4 sm:$0xff]   ;;  %v9478_v24 = vld [vmem:[%s9821_s6 + $0x664] ss:$8 sps:$4 sm:$0xff]  }
 0x191   : > { %2457 = vmatpush1.bf16.msra.mxu1 %v9428_v27  ;;  %v9479_v27 = vld [vmem:[%s9821_s6 + $0xf60] ss:$8 sps:$4 sm:$0xff]  }
 0x192   : > { %6183 = vmatpush1.bf16.msra.mxu0 %v9431_v15  ;;  %2458 = vmatprep.subr.bf16.mxu1 %v9436_v32  ;;  %v9482_v15 = vld [vmem:[%s9821_s6 + $0x670] ss:$8 sps:$4 sm:$0xff]  }
 0x193   : > { %6184 = vmatprep.subr.bf16.mxu0 %v9439_v37  ;;  %v9485_v32 = vld [vmem:[%s9821_s6 + $0xf70] ss:$8 sps:$4 sm:$0xff]   ;;  %v9490_v37 = vld [vmem:[%s9821_s6 + $0x684] ss:$8 sps:$4 sm:$0xff]  }
 0x195   : > { %2459 = vmatpush1.bf16.msra.mxu1 %v9434_v43  ;;  %v9493_v43 = vld [vmem:[%s9821_s6 + $0xf84] ss:$8 sps:$4 sm:$0xff]  }
 0x196   : > { %6185 = vmatpush1.bf16.msra.mxu0 %v9437_v44  ;;  %3107 = vmatprep.subr.bf16.mxu1 %v9442_v5  ;;  %v9488_v44 = vld [vmem:[%s9821_s6 + $0x680] ss:$8 sps:$4 sm:$0xff]   ;;  %v10850_v5 = vld.sshfl [vmem:[%s11301_s0 + $0x10] sm:$0x5f pattern:$0x76325410] }
 0x197   : > { %6207 = vmatprep.subr.bf16.mxu0 %v9445_v59  ;;  %v10855_v59 = vld.sshfl [vmem:[%s11301_s0 + $0x18] sm:$0x5f pattern:$0x76325410] }
 0x198   : > { %2461 = vmatmul.mubr.bf16.vlgmr.msra.gmra.mrb[0].mxu1 %v2009_v13  ;;  %v9505_v13 = vld [vmem:[%s9821_s6 + $0xfa4] ss:$8 sps:$4 sm:$0xff]  }
 0x199   : > { %6187 = vmatmul.mubr.bf16.vlgmr.msra.gmra.mrb[0].mxu0 %v5786_v18  ;;  %3108 = vmatpush1.bf16.msra.mxu1 %v9440_v38  ;;  %v8549_v38 = vld.sshfl [vmem:[%s11301_s0 + $0x38] sm:$0x5f pattern:$0x76325410]  ;;  %v6314_v18 = vcombine.low %v10850_v5, %v10855_v59 }
 0x19a   : > { %6208 = vmatpush1.bf16.msra.mxu0 %v9443_v55  ;;  %3109 = vmatprep.subr.bf16.mxu1 %v9448_v56  ;;  %v9500_v55 = vld [vmem:[%s9821_s6 + $0x6a0] ss:$8 sps:$4 sm:$0xff]   ;;  %v6346_v56 = vcombine.low %v10873_v33, %v8549_v38 }
 0x19b   : > { %6209 = vmatprep.subr.bf16.mxu0 %v9451_v57  ;;  %2470 = vmatprep.mubr.bf16.mxu1 %v2046_v45  ;;  %v9460_v45 = vld [vmem:[%s9821_s6 + $0x634] ss:$8 sps:$4 sm:$0xff]   ;;  %v6362_v57 = vcombine.low %v10881_v2, %v10886_v41  ;;  %v6429_v60 = vshrl.u32 %v6314_v18, 16 }
 0x19c   : > { %6196 = vmatprep.mubr.bf16.mxu0 %v5823_v29  ;;  %v9508_v29 = vld [vmem:[%s9821_s6 + $0x6b4] ss:$8 sps:$4 sm:$0xff]  }
 0x19d   : > { %3110 = vmatpush1.bf16.msra.mxu1 %v9446_v26  ;;  %v6432_v26 = vshll.u32 %v6314_v18, 16 }
 0x19e   : > { %6210 = vmatpush1.bf16.msra.mxu0 %v9449_v61  ;;  %3111 = vmatprep.subr.bf16.mxu1 %v9454_v63  ;;  %v6443_v61 = vshrl.u32 %v6330_v54, 16  ;;  %v6446_v63 = vshll.u32 %v6330_v54, 16 }
 0x19f   : > { %6211 = vmatprep.subr.bf16.mxu0 %v9457_v30  ;;  %v6457_v30 = vshrl.u32 %v6346_v56, 16 }
 0x1a0   : > { %2471 = vmatmul.mubr.bf16.gmra.mrb[4].mxu1 %v2045_v20  ;;  %v9472_v20 = vld [vmem:[%s9821_s6 + $0x654] ss:$8 sps:$4 sm:$0xff]  }
 0x1a1   : > { %6197 = vmatmul.mubr.bf16.gmra.mrb[4].mxu0 %v5822_v1  ;;  %3112 = vmatpush1.bf16.msra.mxu1 %v9452_v62  ;;  %v6460_v62 = vshll.u32 %v6346_v56, 16  ;;  %v6471_v1 = vshrl.u32 %v6362_v57, 16 }
 0x1a2   : > { %6212 = vmatpush1.bf16.msra.mxu0 %v9455_v14  ;;  %3113 = vmatprep.subr.bf16.mxu1 %v9460_v45  ;;  %v6474_v14 = vshll.u32 %v6362_v57, 16  ;;  %v9509_v45 = vld [vmem:[%s9821_s6 + $0xfb0] ss:$8 sps:$4 sm:$0xff]  }
 0x1a3   : > { %6213 = vmatprep.subr.bf16.mxu0 %v9463_v16  ;;  %3139 = vmatprep.mubr.bf16.mxu1 %v2740_v17  ;;  %v9514_v16 = vld [vmem:[%s9821_s6 + $0x6c4] ss:$8 sps:$4 sm:$0xff]  }
 0x1a4   : > { %6239 = vmatprep.mubr.bf16.mxu0 %v5789_v23  ;;  %v9517_v17 = vld [vmem:[%s9821_s6 + $0xfc4] ss:$8 sps:$4 sm:$0xff]   ;;  %v6315_v23 = vcombine.high %v10850_v5, %v10855_v59 }
 0x1a5   : > { %3114 = vmatpush1.bf16.msra.mxu1 %v9458_v48  ;;  %v6331_v48 = vcombine.high %v10861_v25, %v10866_v50  ;;  %v7720_v50 = vld.sshfl [vmem:[%s11301_s0 + $0x190] sm:$0xf pattern:$0x76325410] }
 0x1a6   : > { %6214 = vmatpush1.bf16.msra.mxu0 %v9461_v10  ;;  %3115 = vmatprep.subr.bf16.mxu1 %v9466_v53  ;;  %v6347_v10 = vcombine.high %v10873_v33, %v8549_v38  ;;  %v6431_v53 = vrot.slane %v6429_v60, 6  ;;  %v7726_v33 = vld.sshfl [vmem:[%s11301_s0 + $0x1c0] sm:$0xf pattern:$0x76325410] }
 0x1a7   : > { %6215 = vmatprep.subr.bf16.mxu0 %v9469_v21  ;;  %v9512_v21 = vld [vmem:[%s9821_s6 + $0x6c0] ss:$8 sps:$4 sm:$0xff]  }
 0x1a8   : > { %v8385_v38 = vld.sshfl [vmem:[%s11301_s0 + $0x108] sm:$0xf pattern:$0x76325410] }
 0x1a9   : > { %3116 = vmatpush1.bf16.msra.mxu1 %v9464_v0  ;;  %v6363_v0 = vcombine.high %v10881_v2, %v10886_v41  ;;  %v8387_v2 = vld.sshfl [vmem:[%s11301_s0 + $0x118] sm:$0xf pattern:$0x76325410]  ;;  %v9527_v60 = vld [vmem:[%s9821_s6 + $0xfe0] ss:$8 sps:$4 sm:$0xff]  }
 0x1aa   : > { %6216 = vmatpush1.bf16.msra.mxu0 %v9467_v39  ;;  %3117 = vmatprep.subr.bf16.mxu1 %v9472_v20  ;;  %v6434_v39 = vrot.slane %v6432_v26, 7  ;;  %v6445_v20 = vrot.slane %v6443_v61, 6  ;;  %v8389_v41 = vld.sshfl [vmem:[%s11301_s0 + $0x128] sm:$0xf pattern:$0x76325410] }
 0x1ab   : > { %6217 = vmatprep.subr.bf16.mxu0 %v9475_v22  ;;  %v6448_v22 = vrot.slane %v6446_v63, 7  ;;  %v6480_v25 = vshll.u32 %v6363_v0, 16  ;;  %v9535_v26 = vld [vmem:[%s9821_s6 + $0xff4] ss:$8 sps:$4 sm:$0xff]  }
 0x1ad   : > { %3118 = vmatpush1.bf16.msra.mxu1 %v9470_v49  ;;  %v6459_v49 = vrot.slane %v6457_v30, 6  ;;  %v6449_v5 = vor.u32 %v6448_v22, %v6445_v20  ;;  %v9530_v30 = vld [vmem:[%s9821_s6 + $0x6f0] ss:$8 sps:$4 sm:$0xff]  }
 0x1ae   : > { %6218 = vmatpush1.bf16.msra.mxu0 %v9473_v52  ;;  %3119 = vmatprep.subr.bf16.mxu1 %v9478_v24  ;;  %v6462_v52 = vrot.slane %v6460_v62, 7  ;;  %v6473_v24 = vrot.slane %v6471_v1, 6  ;;  %v9533_v62 = vld [vmem:[%s9821_s6 + $0xff0] ss:$8 sps:$4 sm:$0xff]   ;;  %v8461_v1 = vcombine.low %v8385_v38, %v8387_v2 }
 0x1af   : > { %6219 = vmatprep.subr.bf16.mxu0 %v9481_v40  ;;  %v6476_v40 = vrot.slane %v6474_v14, 7  ;;  %v6450_v57 = vrot.slane %v6449_v5, 2  ;;  %v7715_v22 = vld.sshfl [vmem:[%s11301_s0 + $0x158] sm:$0xf pattern:$0x76325410] }
 0x1b0   : > { %v6463_v59 = vor.u32 %v6462_v52, %v6459_v49  ;;  %v9536_v49 = vld [vmem:[%s9821_s6 + $0x700] ss:$8 sps:$4 sm:$0xff]   ;;  %v5807_v52 = vrot.slane %v8461_v1, %v9824_v11  ;;  %v9577_v1 = vld [vmem:[%s9821_s6 + $0x1064] ss:$8 sps:$4 sm:$0xff]  }
 0x1b1   : > { %3120 = vmatpush1.bf16.msra.mxu1 %v9476_v42  ;;  %v9515_v42 = vld [vmem:[%s9821_s6 + $0xfc0] ss:$8 sps:$4 sm:$0xff]  }
 0x1b2   : > { %6220 = vmatpush1.bf16.msra.mxu0 %v9479_v27  ;;  %3121 = vmatprep.subr.bf16.mxu1 %v9484_v35  ;;  %v9520_v27 = vld [vmem:[%s9821_s6 + $0x6d4] ss:$8 sps:$4 sm:$0xff]  }
 0x1b3   : > { %6221 = vmatprep.subr.bf16.mxu0 %v9487_v36  ;;  %v9523_v35 = vld [vmem:[%s9821_s6 + $0xfd4] ss:$8 sps:$4 sm:$0xff]   ;;  %v9518_v36 = vld [vmem:[%s9821_s6 + $0x6d0] ss:$8 sps:$4 sm:$0xff]  }
 0x1b5   : > { %3122 = vmatpush1.bf16.msra.mxu1 %v9482_v15  ;;  %v9521_v15 = vld [vmem:[%s9821_s6 + $0xfd0] ss:$8 sps:$4 sm:$0xff]  }
 0x1b6   : > { %6222 = vmatpush1.bf16.msra.mxu0 %v9485_v32  ;;  %3123 = vmatprep.subr.bf16.mxu1 %v9490_v37  ;;  %v6435_v32 = vor.u32 %v6434_v39, %v6431_v53  ;;  %v6438_v37 = vshll.u32 %v6315_v23, 16  ;;  %v7713_v53 = vld.sshfl [vmem:[%s11301_s0 + $0x148] sm:$0xf pattern:$0x76325410] }
 0x1b7   : > { %6223 = vmatprep.subr.bf16.mxu0 %v9493_v43  ;;  %v6452_v43 = vshll.u32 %v6331_v48, 16 }
 0x1b8   : > { %v6436_v18 = vrot.slane %v6435_v32, 2  ;;  %v6440_v54 = vrot.slane %v6438_v37, 7  ;;  %v9539_v32 = vld [vmem:[%s9821_s6 + $0x1000] ss:$8 sps:$4 sm:$0xff]  }
 0x1b9   : > { %3124 = vmatpush1.bf16.msra.mxu1 %v9488_v44  ;;  %v6466_v44 = vshll.u32 %v6347_v10, 16 }
 0x1ba   : > { %6224 = vmatpush1.bf16.msra.mxu0 %v9491_v46  ;;  %3125 = vmatprep.subr.bf16.mxu1 %v9496_v47  ;;  %v9526_v46 = vld [vmem:[%s9821_s6 + $0x6e4] ss:$8 sps:$4 sm:$0xff]  }
 0x1bb   : > { %6225 = vmatprep.subr.bf16.mxu0 %v9499_v28  ;;  %v9529_v47 = vld [vmem:[%s9821_s6 + $0xfe4] ss:$8 sps:$4 sm:$0xff]   ;;  %v6477_v28 = vor.u32 %v6476_v40, %v6473_v24  ;;  %v6468_v56 = vrot.slane %v6466_v44, 7 }
 0x1bc   : > { %v7717_v40 = vld.sshfl [vmem:[%s11301_s0 + $0x168] sm:$0xf pattern:$0x76325410] }
 0x1bd   : > { %3126 = vmatpush1.bf16.msra.mxu1 %v9494_v3  ;;  %v7722_v3 = vld.sshfl [vmem:[%s11301_s0 + $0x1a0] sm:$0xf pattern:$0x76325410] }
 0x1be   : > { %6226 = vmatpush1.bf16.msra.mxu0 %v9497_v51  ;;  %3127 = vmatprep.subr.bf16.mxu1 %v9502_v7  ;;  %v7724_v51 = vld.sshfl [vmem:[%s11301_s0 + $0x1b0] sm:$0xf pattern:$0x76325410]  ;;  %v7796_v61 = vcombine.low %v7720_v50, %v7722_v3  ;;  %v9553_v50 = vld [vmem:[%s9821_s6 + $0x1024] ss:$8 sps:$4 sm:$0xff]  }
 0x1bf   : > { %6227 = vmatprep.subr.bf16.mxu0 %v9505_v13  ;;  %v8391_v7 = vld.sshfl [vmem:[%s11301_s0 + $0x138] sm:$0xf pattern:$0x76325410]  ;;  %v9524_v13 = vld [vmem:[%s9821_s6 + $0x6e0] ss:$8 sps:$4 sm:$0xff]   ;;  %v7798_v63 = vcombine.low %v7724_v51, %v7726_v33 }
 0x1c0   : > { %v8463_v14 = vcombine.low %v8389_v41, %v8391_v7  ;;  %v2753_v39 = vrot.slane %v7796_v61, %v9824_v11  ;;  %v9548_v7 = vld [vmem:[%s9821_s6 + $0x720] ss:$8 sps:$4 sm:$0xff]   ;;  %v9571_v61 = vld [vmem:[%s9821_s6 + $0x1054] ss:$8 sps:$4 sm:$0xff]  }
 0x1c1   : > { %3128 = vmatpush1.bf16.msra.mxu1 %v9500_v55  ;;  %v6454_v55 = vrot.slane %v6452_v43, 7  ;;  %v2767_v20 = vrot.slane %v7798_v63, %v9824_v11  ;;  %v9566_v63 = vld [vmem:[%s9821_s6 + $0x750] ss:$8 sps:$4 sm:$0xff]  }
 0x1c2   : > { %6228 = vmatpush1.bf16.msra.mxu0 %v9503_v58  ;;  %3129 = vmatprep.subr.bf16.mxu1 %v9508_v29  ;;  %v6464_v58 = vrot.slane %v6463_v59, 2  ;;  %v6478_v29 = vrot.slane %v6477_v28, 2  ;;  %v5821_v24 = vrot.slane %v8463_v14, %v9824_v11  ;;  %v9542_v59 = vld [vmem:[%s9821_s6 + $0x710] ss:$8 sps:$4 sm:$0xff]   ;;  %v9572_v14 = vld [vmem:[%s9821_s6 + $0x760] ss:$8 sps:$4 sm:$0xff]  }
 0x1c3   : > { %6229 = vmatprep.subr.bf16.mxu0 %v9511_v31  ;;  %v6482_v31 = vrot.slane %v6480_v25, 7  ;;  %v6455_v23 = vsel %vm10049_vm6, %v6450_v57, %v6454_v55  ;;  %v9545_v28 = vld [vmem:[%s9821_s6 + $0x1010] ss:$8 sps:$4 sm:$0xff]   ;;  %v9550_v25 = vld [vmem:[%s9821_s6 + $0x724] ss:$8 sps:$4 sm:$0xff]   ;;  %v2775_v2 = vcombine.low %v2753_v39, %v2767_v20 }
 0x1c4   : > { %v6469_v48 = vsel %vm10049_vm6, %v6464_v58, %v6468_v56  ;;  %v5825_v44 = vcombine.high %v5807_v52, %v5821_v24  ;;  %v5824_v41 = vcombine.low %v5807_v52, %v5821_v24  ;;  %v9554_v57 = vld [vmem:[%s9821_s6 + $0x730] ss:$8 sps:$4 sm:$0xff]   ;;  %v9584_v52 = vld [vmem:[%s9821_s6 + $0x780] ss:$8 sps:$4 sm:$0xff]  }
 0x1c5   : > { %3130 = vmatpush1.bf16.msra.mxu1 %v9506_v34  ;;  %v9532_v34 = vld [vmem:[%s9821_s6 + $0x6f4] ss:$8 sps:$4 sm:$0xff]   ;;  %v6483_v10 = vsel %vm10049_vm6, %v6478_v29, %v6482_v31  ;;  %v9557_v58 = vld [vmem:[%s9821_s6 + $0x1030] ss:$8 sps:$4 sm:$0xff]   ;;  %v9562_v29 = vld [vmem:[%s9821_s6 + $0x744] ss:$8 sps:$4 sm:$0xff]  }
 0x1c6   : > { %6230 = vmatpush1.bf16.msra.mxu0 %v9509_v45  ;;  %3131 = vmatprep.subr.bf16.mxu1 %v9514_v16  ;;  %v9538_v45 = vld [vmem:[%s9821_s6 + $0x704] ss:$8 sps:$4 sm:$0xff]   ;;  %v6608_v0 = vcombine.high %v6469_v48, %v6483_v10  ;;  %v6607_v5 = vcombine.low %v6469_v48, %v6483_v10  ;;  %v9581_v48 = vld [vmem:[%s9821_s6 + $0x1070] ss:$8 sps:$4 sm:$0xff]  }
 0x1c7   : > { %6231 = vmatprep.subr.bf16.mxu0 %v9517_v17  ;;  %v9541_v16 = vld [vmem:[%s9821_s6 + $0x1004] ss:$8 sps:$4 sm:$0xff]   ;;  %v6441_v17 = vsel %vm10049_vm6, %v6436_v18, %v6440_v54  ;;  %v9556_v18 = vld [vmem:[%s9821_s6 + $0x734] ss:$8 sps:$4 sm:$0xff]  }
 0x1c8   : > { %v11008_v38 = vrot.slane %v6607_v5, %v9824_v11  ;;  %v9559_v54 = vld [vmem:[%s9821_s6 + $0x1034] ss:$8 sps:$4 sm:$0xff]   ;;  %v9565_v31 = vld [vmem:[%s9821_s6 + $0x1044] ss:$8 sps:$4 sm:$0xff]  }
 0x1c9   : > { %3132 = vmatpush1.bf16.msra.mxu1 %v9512_v21  ;;  %v6606_v21 = vcombine.high %v6441_v17, %v6455_v23  ;;  %v9586_v10 = vld [vmem:[%s9821_s6 + $0x784] ss:$8 sps:$4 sm:$0xff]   ;;  %v11070_v24 = vld.sshfl [vmem:[%s11301_s0 + $0x90] sm:$0x5f pattern:$0x76325410] }
 0x1ca   : > { %6232 = vmatpush1.bf16.msra.mxu0 %v9515_v42  ;;  %3133 = vmatprep.subr.bf16.mxu1 %v9520_v27  ;;  %v10978_v27 = vrot.slane %v6608_v0, %v9824_v11  ;;  %v9589_v0 = vld [vmem:[%s9821_s6 + $0x1084] ss:$8 sps:$4 sm:$0xff]  }
 0x1cb   : > { %6233 = vmatprep.subr.bf16.mxu0 %v9523_v35  ;;  %v10975_v42 = vrot.slane %v6606_v21, %v9824_v11  ;;  %v2739_v35 = vcombine.low %v10799_v4, %v10805_v8  ;;  %v9544_v4 = vld [vmem:[%s9821_s6 + $0x714] ss:$8 sps:$4 sm:$0xff]   ;;  %v11045_v21 = vld.sshfl [vmem:[%s11301_s0 + $0x68] sm:$0x5f pattern:$0x76325410] }
 0x1cc   : > { %v9547_v8 = vld [vmem:[%s9821_s6 + $0x1014] ss:$8 sps:$4 sm:$0xff]  }
 0x1cd   : > { %3134 = vmatpush1.bf16.msra.mxu1 %v9518_v36  ;;  %v5788_v36 = vcombine.low %v10808_v9, %v10811_v12  ;;  %v6639_v37 = vcombine.low %v10975_v42, %v10978_v27  ;;  %v6640_v43 = vcombine.high %v10975_v42, %v10978_v27  ;;  %v2776_v9 = vcombine.high %v2753_v39, %v2767_v20  ;;  %v11051_v39 = vld.sshfl [vmem:[%s11301_s0 + $0x70] sm:$0x5f pattern:$0x76325410] }
 0x1ce   : > { %6234 = vmatpush1.bf16.msra.mxu0 %v9521_v15  ;;  %3135 = vmatprep.subr.bf16.mxu1 %v9526_v46  ;;  %v7719_v15 = vld.sshfl [vmem:[%s11301_s0 + $0x178] sm:$0xf pattern:$0x76325410]  ;;  %v7793_v12 = vcombine.low %v7713_v53, %v7715_v22  ;;  %v7127_v42 = vsub.s32 1, %v9813_v6 }
 0x1cf   : > { %6235 = vmatprep.subr.bf16.mxu0 %v9529_v47  ;;  %v7795_v46 = vcombine.low %v7717_v40, %v7719_v15  ;;  %v6605_v47 = vcombine.low %v6441_v17, %v6455_v23  ;;  %v9583_v17 = vld [vmem:[%s9821_s6 + $0x1074] ss:$8 sps:$4 sm:$0xff]   ;;  %v9578_v23 = vld [vmem:[%s9821_s6 + $0x770] ss:$8 sps:$4 sm:$0xff]   ;;  %v9587_v40 = vld [vmem:[%s9821_s6 + $0x1080] ss:$8 sps:$4 sm:$0xff]  }
 0x1d0   : > { %v10999_v3 = vrot.slane %v7793_v12, %v9824_v11  ;;  %v11040_v53 = vld.sshfl [vmem:[%s11301_s0 + $0x60] sm:$0x5f pattern:$0x76325410]  ;;  %v9595_v15 = vld [vmem:[%s9821_s6 + $0x1094] ss:$8 sps:$4 sm:$0xff]  }
 0x1d1   : > { %3136 = vmatpush1.bf16.msra.mxu1 %v9524_v13  ;;  %v11002_v51 = vrot.slane %v7795_v46, %v9824_v11  ;;  %v11005_v33 = vrot.slane %v6605_v47, %v9824_v11  ;;  %v9551_v13 = vld [vmem:[%s9821_s6 + $0x1020] ss:$8 sps:$4 sm:$0xff]   ;;  %v11056_v20 = vld.sshfl [vmem:[%s11301_s0 + $0x78] sm:$0x5f pattern:$0x76325410] }
 0x1d2   : > { %6236 = vmatpush1.bf16.msra.mxu0 %v9527_v60  ;;  %3137 = vmatprep.subr.bf16.mxu1 %v9532_v34  ;;  %v9560_v60 = vld [vmem:[%s9821_s6 + $0x740] ss:$8 sps:$4 sm:$0xff]   ;;  %v9590_v12 = vld [vmem:[%s9821_s6 + $0x790] ss:$8 sps:$4 sm:$0xff]   ;;  %v9598_v46 = vld [vmem:[%s9821_s6 + $0x7a4] ss:$8 sps:$4 sm:$0xff]  }
 0x1d3   : > { %6237 = vmatprep.subr.bf16.mxu0 %v9535_v26  ;;  %v2742_v55 = vcombine.high %v10999_v3, %v11002_v51  ;;  %v6638_v56 = vcombine.high %v11005_v33, %v11008_v38  ;;  %v9563_v34 = vld [vmem:[%s9821_s6 + $0x1040] ss:$8 sps:$4 sm:$0xff]   ;;  %v9568_v26 = vld [vmem:[%s9821_s6 + $0x754] ss:$8 sps:$4 sm:$0xff]   ;;  %v9601_v47 = vld [vmem:[%s9821_s6 + $0x10a4] ss:$8 sps:$4 sm:$0xff]  }
 0x1d4   : > { %v11061_v22 = vld.sshfl [vmem:[%s11301_s0 + $0x80] sm:$0x5f pattern:$0x76325410] }
 0x1d5   : > { %3138 = vmatpush1.bf16.msra.mxu1 %v9530_v30  ;;  %v9569_v30 = vld [vmem:[%s9821_s6 + $0x1050] ss:$8 sps:$4 sm:$0xff]  }
 0x1d6   : > { %6238 = vmatpush1.bf16.msra.mxu0 %v9533_v62  ;;  %3160 = vmatprep.subr.bf16.mxu1 %v9538_v45  ;;  %v9574_v62 = vld [vmem:[%s9821_s6 + $0x764] ss:$8 sps:$4 sm:$0xff]   ;;  %v9575_v45 = vld [vmem:[%s9821_s6 + $0x1060] ss:$8 sps:$4 sm:$0xff]  }
 0x1d7   : > { %7005 = vmatprep.subr.bf16.mxu0 %v9541_v16  ;;  %v9580_v16 = vld [vmem:[%s9821_s6 + $0x774] ss:$8 sps:$4 sm:$0xff]  }
 0x1d8   : > { %3140 = vmatmul.mubr.bf16.vlgmr.msra.gmra.mrb[0].mxu1 %v2739_v35  ;;  %v8559_v35 = vld.sshfl [vmem:[%s11301_s0 + $0x98] sm:$0x5f pattern:$0x76325410] }
 0x1d9   : > { %6240 = vmatmul.mubr.bf16.vlgmr.msra.gmra.mrb[0].mxu0 %v5788_v36  ;;  %3161 = vmatpush1.bf16.msra.mxu1 %v9536_v49  ;;  %v8557_v49 = vld.sshfl [vmem:[%s11301_s0 + $0x88] sm:$0x5f pattern:$0x76325410]  ;;  %v9592_v36 = vld [vmem:[%s9821_s6 + $0x794] ss:$8 sps:$4 sm:$0xff]  }
 0x1da   : > { %7006 = vmatpush1.bf16.msra.mxu0 %v9539_v32  ;;  %3162 = vmatprep.subr.bf16.mxu1 %v9544_v4  ;;  %v6378_v32 = vcombine.low %v11040_v53, %v11045_v21  ;;  %v6394_v4 = vcombine.low %v11051_v39, %v11056_v20 }
 0x1db   : > { %7007 = vmatprep.subr.bf16.mxu0 %v9547_v8  ;;  %3149 = vmatprep.mubr.bf16.mxu1 %v2776_v9  ;;  %v6410_v8 = vcombine.low %v11061_v22, %v8557_v49  ;;  %v6426_v9 = vcombine.low %v11070_v24, %v8559_v35 }
 0x1dc   : > { %6249 = vmatprep.mubr.bf16.mxu0 %v5825_v44  ;;  %v9593_v44 = vld [vmem:[%s9821_s6 + $0x1090] ss:$8 sps:$4 sm:$0xff]   ;;  %v6485_v5 = vshrl.u32 %v6378_v32, 16 }
 0x1dd   : > { %3163 = vmatpush1.bf16.msra.mxu1 %v9542_v59  ;;  %v6488_v59 = vshll.u32 %v6378_v32, 16 }
 0x1de   : > { %7008 = vmatpush1.bf16.msra.mxu0 %v9545_v28  ;;  %3164 = vmatprep.subr.bf16.mxu1 %v9550_v25  ;;  %v6499_v28 = vshrl.u32 %v6394_v4, 16  ;;  %v6502_v25 = vshll.u32 %v6394_v4, 16 }
 0x1df   : > { %7009 = vmatprep.subr.bf16.mxu0 %v9553_v50  ;;  %v6513_v50 = vshrl.u32 %v6410_v8, 16 }
 0x1e0   : > { %3150 = vmatmul.mubr.bf16.gmra.mrb[4].mxu1 %v2775_v2  ;;  %v6516_v2 = vshll.u32 %v6410_v8, 16 }
 0x1e1   : > { %6250 = vmatmul.mubr.bf16.gmra.mrb[4].mxu0 %v5824_v41  ;;  %3165 = vmatpush1.bf16.msra.mxu1 %v9548_v7  ;;  %v6527_v41 = vshrl.u32 %v6426_v9, 16  ;;  %v6530_v7 = vshll.u32 %v6426_v9, 16  ;;  %v9614_v9 = vld [vmem:[%s9821_s6 + $0x7d0] ss:$8 sps:$4 sm:$0xff]  }
 0x1e2   : > { %7010 = vmatpush1.bf16.msra.mxu0 %v9551_v13  ;;  %3166 = vmatprep.subr.bf16.mxu1 %v9556_v18  ;;  %v9596_v13 = vld [vmem:[%s9821_s6 + $0x7a0] ss:$8 sps:$4 sm:$0xff]  }
 0x1e3   : > { %7011 = vmatprep.subr.bf16.mxu0 %v9559_v54  ;;  %3192 = vmatprep.mubr.bf16.mxu1 %v2742_v55  ;;  %v9599_v18 = vld [vmem:[%s9821_s6 + $0x10a0] ss:$8 sps:$4 sm:$0xff]   ;;  %v9604_v54 = vld [vmem:[%s9821_s6 + $0x7b4] ss:$8 sps:$4 sm:$0xff]  }
 0x1e4   : > { %7037 = vmatprep.mubr.bf16.mxu0 %v6638_v56  ;;  %v9607_v55 = vld [vmem:[%s9821_s6 + $0x10b4] ss:$8 sps:$4 sm:$0xff]   ;;  %v6379_v56 = vcombine.high %v11040_v53, %v11045_v21 }
 0x1e5   : > { %3167 = vmatpush1.bf16.msra.mxu1 %v9554_v57  ;;  %v6395_v57 = vcombine.high %v11051_v39, %v11056_v20  ;;  %v9608_v20 = vld [vmem:[%s9821_s6 + $0x7c0] ss:$8 sps:$4 sm:$0xff]  }
 0x1e6   : > { %7012 = vmatpush1.bf16.msra.mxu0 %v9557_v58  ;;  %3168 = vmatprep.subr.bf16.mxu1 %v9562_v29  ;;  %v6411_v58 = vcombine.high %v11061_v22, %v8557_v49  ;;  %v6487_v29 = vrot.slane %v6485_v5, 6  ;;  %v9611_v22 = vld [vmem:[%s9821_s6 + $0x10c0] ss:$8 sps:$4 sm:$0xff]   ;;  %v9616_v49 = vld [vmem:[%s9821_s6 + $0x7d4] ss:$8 sps:$4 sm:$0xff]  }
 0x1e7   : > { %7013 = vmatprep.subr.bf16.mxu0 %v9565_v31  ;;  %v6427_v31 = vcombine.high %v11070_v24, %v8559_v35  ;;  %v7723_v5 = vld.sshfl [vmem:[%s11301_s0 + $0x1a8] sm:$0xf pattern:$0x76325410] }
 0x1e9   : > { %3169 = vmatpush1.bf16.msra.mxu1 %v9560_v60  ;;  %v6490_v60 = vrot.slane %v6488_v59, 7  ;;  %v6536_v39 = vshll.u32 %v6427_v31, 16  ;;  %v7725_v59 = vld.sshfl [vmem:[%s11301_s0 + $0x1b8] sm:$0xf pattern:$0x76325410] }
 0x1ea   : > { %7014 = vmatpush1.bf16.msra.mxu0 %v9563_v34  ;;  %3170 = vmatprep.subr.bf16.mxu1 %v9568_v26  ;;  %v6501_v34 = vrot.slane %v6499_v28, 6  ;;  %v6504_v26 = vrot.slane %v6502_v25, 7  ;;  %v7727_v28 = vld.sshfl [vmem:[%s11301_s0 + $0x1c8] sm:$0xf pattern:$0x76325410] }
 0x1eb   : > { %7015 = vmatprep.subr.bf16.mxu0 %v9571_v61  ;;  %v6515_v61 = vrot.slane %v6513_v50, 6  ;;  %v6538_v8 = vrot.slane %v6536_v39, 7  ;;  %v9634_v31 = vld [vmem:[%s9821_s6 + $0x804] ss:$8 sps:$4 sm:$0xff]  }
 0x1ec   : > { %v6505_v53 = vor.u32 %v6504_v26, %v6501_v34  ;;  %v7880_v34 = vld.sshfl [vmem:[%s11301_s0 + $0x1e0] sm:$0xf pattern:$0x76325410] }
 0x1ed   : > { %3171 = vmatpush1.bf16.msra.mxu1 %v9566_v63  ;;  %v6518_v63 = vrot.slane %v6516_v2, 7  ;;  %v7882_v26 = vld.sshfl [vmem:[%s11301_s0 + $0x1f0] sm:$0xf pattern:$0x76325410] }
 0x1ee   : > { %7016 = vmatpush1.bf16.msra.mxu0 %v9569_v30  ;;  %3172 = vmatprep.subr.bf16.mxu1 %v9574_v62  ;;  %v6529_v30 = vrot.slane %v6527_v41, 6  ;;  %v6532_v62 = vrot.slane %v6530_v7, 7  ;;  %v9620_v7 = vld [vmem:[%s9821_s6 + $0x7e0] ss:$8 sps:$4 sm:$0xff]   ;;  %v9649_v39 = vld [vmem:[%s9821_s6 + $0x1124] ss:$8 sps:$4 sm:$0xff]  }
 0x1ef   : > { %7017 = vmatprep.subr.bf16.mxu0 %v9577_v1  ;;  %v9602_v1 = vld [vmem:[%s9821_s6 + $0x7b0] ss:$8 sps:$4 sm:$0xff]   ;;  %v6519_v21 = vor.u32 %v6518_v63, %v6515_v61 }
 0x1f1   : > { %3173 = vmatpush1.bf16.msra.mxu1 %v9572_v14  ;;  %v9605_v14 = vld [vmem:[%s9821_s6 + $0x10b0] ss:$8 sps:$4 sm:$0xff]   ;;  %v6520_v32 = vrot.slane %v6519_v21, 2 }
 0x1f2   : > { %7018 = vmatpush1.bf16.msra.mxu0 %v9575_v45  ;;  %3174 = vmatprep.subr.bf16.mxu1 %v9580_v16  ;;  %v9610_v45 = vld [vmem:[%s9821_s6 + $0x7c4] ss:$8 sps:$4 sm:$0xff]   ;;  %v9641_v21 = vld [vmem:[%s9821_s6 + $0x1110] ss:$8 sps:$4 sm:$0xff]  }
 0x1f3   : > { %7019 = vmatprep.subr.bf16.mxu0 %v9583_v17  ;;  %v9613_v16 = vld [vmem:[%s9821_s6 + $0x10c4] ss:$8 sps:$4 sm:$0xff]   ;;  %v6491_v17 = vor.u32 %v6490_v60, %v6487_v29  ;;  %v9629_v29 = vld [vmem:[%s9821_s6 + $0x10f0] ss:$8 sps:$4 sm:$0xff]  }
 0x1f4   : > { %v9637_v60 = vld [vmem:[%s9821_s6 + $0x1104] ss:$8 sps:$4 sm:$0xff]  }
 0x1f5   : > { %3175 = vmatpush1.bf16.msra.mxu1 %v9578_v23  ;;  %v6494_v23 = vshll.u32 %v6379_v56, 16  ;;  %v6492_v24 = vrot.slane %v6491_v17, 2  ;;  %v7799_v56 = vcombine.low %v7725_v59, %v7727_v28  ;;  %v9632_v17 = vld [vmem:[%s9821_s6 + $0x800] ss:$8 sps:$4 sm:$0xff]   ;;  %v9665_v59 = vld [vmem:[%s9821_s6 + $0x1150] ss:$8 sps:$4 sm:$0xff]  }
 0x1f6   : > { %7020 = vmatpush1.bf16.msra.mxu0 %v9581_v48  ;;  %3176 = vmatprep.subr.bf16.mxu1 %v9586_v10  ;;  %v6508_v48 = vshll.u32 %v6395_v57, 16  ;;  %v6522_v10 = vshll.u32 %v6411_v58, 16  ;;  %v9626_v58 = vld [vmem:[%s9821_s6 + $0x7f0] ss:$8 sps:$4 sm:$0xff]   ;;  %v9673_v28 = vld [vmem:[%s9821_s6 + $0x1164] ss:$8 sps:$4 sm:$0xff]  }
 0x1f7   : > { %7021 = vmatprep.subr.bf16.mxu0 %v9589_v0  ;;  %v6533_v0 = vor.u32 %v6532_v62, %v6529_v30  ;;  %v2774_v63 = vrot.slane %v7799_v56, %v9824_v11  ;;  %v9677_v56 = vld [vmem:[%s9821_s6 + $0x1170] ss:$8 sps:$4 sm:$0xff]  }
 0x1f8   : > { %v6510_v35 = vrot.slane %v6508_v48, 7  ;;  %v9640_v48 = vld [vmem:[%s9821_s6 + $0x814] ss:$8 sps:$4 sm:$0xff]  }
 0x1f9   : > { %3177 = vmatpush1.bf16.msra.mxu1 %v9584_v52  ;;  %v9619_v52 = vld [vmem:[%s9821_s6 + $0x10d4] ss:$8 sps:$4 sm:$0xff]   ;;  %v6534_v4 = vrot.slane %v6533_v0, 2  ;;  %v9646_v0 = vld [vmem:[%s9821_s6 + $0x824] ss:$8 sps:$4 sm:$0xff]  }
 0x1fa   : > { %7022 = vmatpush1.bf16.msra.mxu0 %v9587_v40  ;;  %3178 = vmatprep.subr.bf16.mxu1 %v9592_v36  ;;  %v6496_v40 = vrot.slane %v6494_v23, 7  ;;  %v6524_v36 = vrot.slane %v6522_v10, 7  ;;  %v9635_v23 = vld [vmem:[%s9821_s6 + $0x1100] ss:$8 sps:$4 sm:$0xff]   ;;  %v9643_v10 = vld [vmem:[%s9821_s6 + $0x1114] ss:$8 sps:$4 sm:$0xff]  }
 0x1fb   : > { %7023 = vmatprep.subr.bf16.mxu0 %v9595_v15  ;;  %v6506_v15 = vrot.slane %v6505_v53, 2  ;;  %v11136_v41 = vsel %vm10049_vm6, %v6534_v4, %v6538_v8  ;;  %v7960_v53 = vcombine.low %v7880_v34, %v7882_v26  ;;  %v9653_v4 = vld [vmem:[%s9821_s6 + $0x1130] ss:$8 sps:$4 sm:$0xff]   ;;  %v9658_v8 = vld [vmem:[%s9821_s6 + $0x844] ss:$8 sps:$4 sm:$0xff]  }
 0x1fc   : > { %v11124_v25 = vsel %vm10049_vm6, %v6492_v24, %v6496_v40  ;;  %v11132_v2 = vsel %vm10049_vm6, %v6520_v32, %v6524_v36  ;;  %v9644_v24 = vld [vmem:[%s9821_s6 + $0x820] ss:$8 sps:$4 sm:$0xff]   ;;  %v9655_v36 = vld [vmem:[%s9821_s6 + $0x1134] ss:$8 sps:$4 sm:$0xff]   ;;  %v9650_v32 = vld [vmem:[%s9821_s6 + $0x830] ss:$8 sps:$4 sm:$0xff]  }
 0x1fd   : > { %3179 = vmatpush1.bf16.msra.mxu1 %v9590_v12  ;;  %v9617_v12 = vld [vmem:[%s9821_s6 + $0x10d0] ss:$8 sps:$4 sm:$0xff]   ;;  %v11128_v50 = vsel %vm10049_vm6, %v6506_v15, %v6510_v35  ;;  %v6643_v19 = vcombine.low %v11132_v2, %v11136_v41  ;;  %v9647_v40 = vld [vmem:[%s9821_s6 + $0x1120] ss:$8 sps:$4 sm:$0xff]   ;;  %v9652_v35 = vld [vmem:[%s9821_s6 + $0x834] ss:$8 sps:$4 sm:$0xff]  }
 0x1fe   : > { %7024 = vmatpush1.bf16.msra.mxu0 %v9593_v44  ;;  %3180 = vmatprep.subr.bf16.mxu1 %v9598_v46  ;;  %v9622_v44 = vld [vmem:[%s9821_s6 + $0x7e4] ss:$8 sps:$4 sm:$0xff]   ;;  %v6641_v57 = vcombine.low %v11124_v25, %v11128_v50  ;;  %v9686_v34 = vld [vmem:[%s9821_s6 + $0x890] ss:$8 sps:$4 sm:$0xff]  }
 0x1ff   : > { %7025 = vmatprep.subr.bf16.mxu0 %v9601_v47  ;;  %v9625_v46 = vld [vmem:[%s9821_s6 + $0x10e4] ss:$8 sps:$4 sm:$0xff]   ;;  %v7721_v47 = vld.sshfl [vmem:[%s11301_s0 + $0x198] sm:$0xf pattern:$0x76325410]  ;;  %v6665_v62 = vrot.slane %v6643_v19, %v9824_v11 }
 0x200   : > { %v6651_v30 = vrot.slane %v6641_v57, %v9824_v11  ;;  %v9682_v57 = vld [vmem:[%s9821_s6 + $0x884] ss:$8 sps:$4 sm:$0xff]   ;;  %v9689_v26 = vld [vmem:[%s9821_s6 + $0x1190] ss:$8 sps:$4 sm:$0xff]  }
 0x201   : > { %3181 = vmatpush1.bf16.msra.mxu1 %v9596_v13  ;;  %v9623_v13 = vld [vmem:[%s9821_s6 + $0x10e0] ss:$8 sps:$4 sm:$0xff]   ;;  %v9685_v19 = vld [vmem:[%s9821_s6 + $0x1184] ss:$8 sps:$4 sm:$0xff]  }
 0x202   : > { %7026 = vmatpush1.bf16.msra.mxu0 %v9599_v18  ;;  %3182 = vmatprep.subr.bf16.mxu1 %v9604_v54  ;;  %v9628_v18 = vld [vmem:[%s9821_s6 + $0x7f4] ss:$8 sps:$4 sm:$0xff]  }
 0x203   : > { %7027 = vmatprep.subr.bf16.mxu0 %v9607_v55  ;;  %v9631_v54 = vld [vmem:[%s9821_s6 + $0x10f4] ss:$8 sps:$4 sm:$0xff]   ;;  %v7797_v55 = vcombine.low %v7721_v47, %v7723_v5  ;;  %v9662_v5 = vld [vmem:[%s9821_s6 + $0x850] ss:$8 sps:$4 sm:$0xff]  }
 0x204   : > { %v9667_v47 = vld [vmem:[%s9821_s6 + $0x1154] ss:$8 sps:$4 sm:$0xff]  }
 0x205   : > { %3183 = vmatpush1.bf16.msra.mxu1 %v9602_v1  ;;  %v2760_v61 = vrot.slane %v7797_v55, %v9824_v11  ;;  %v7884_v1 = vld.sshfl [vmem:[%s11301_s0 + $0x200] sm:$0xf pattern:$0x76325410]  ;;  %v9674_v55 = vld [vmem:[%s9821_s6 + $0x870] ss:$8 sps:$4 sm:$0xff]  }
 0x206   : > { %7028 = vmatpush1.bf16.msra.mxu0 %v9605_v14  ;;  %3184 = vmatprep.subr.bf16.mxu1 %v9610_v45  ;;  %v2741_v14 = vcombine.low %v10999_v3, %v11002_v51  ;;  %v6637_v45 = vcombine.low %v11005_v33, %v11008_v38  ;;  %v6674_v51 = vcombine.high %v6651_v30, %v6665_v62  ;;  %v9638_v38 = vld [vmem:[%s9821_s6 + $0x810] ss:$8 sps:$4 sm:$0xff]  }
 0x207   : > { %7029 = vmatprep.subr.bf16.mxu0 %v9613_v16  ;;  %v7886_v16 = vld.sshfl [vmem:[%s11301_s0 + $0x210] sm:$0xf pattern:$0x76325410]  ;;  %v2778_v3 = vcombine.high %v2760_v61, %v2774_v63 }
 0x208   : > { %v7962_v33 = vcombine.low %v7884_v1, %v7886_v16  ;;  %v9700_v1 = vld [vmem:[%s9821_s6 + $0x8b4] ss:$8 sps:$4 sm:$0xff]   ;;  %v9701_v16 = vld [vmem:[%s9821_s6 + $0x11b0] ss:$8 sps:$4 sm:$0xff]  }
 0x209   : > { %3185 = vmatpush1.bf16.msra.mxu1 %v9608_v20  ;;  %v11179_v20 = vrot.slane %v7960_v53, %v9824_v11  ;;  %v9710_v53 = vld [vmem:[%s9821_s6 + $0x8d0] ss:$8 sps:$4 sm:$0xff]  }
 0x20a   : > { %7030 = vmatpush1.bf16.msra.mxu0 %v9611_v22  ;;  %3186 = vmatprep.subr.bf16.mxu1 %v9616_v49  ;;  %v11182_v22 = vrot.slane %v7962_v33, %v9824_v11  ;;  %v2777_v49 = vcombine.low %v2760_v61, %v2774_v63  ;;  %v9694_v61 = vld [vmem:[%s9821_s6 + $0x8a4] ss:$8 sps:$4 sm:$0xff]   ;;  %v9713_v33 = vld [vmem:[%s9821_s6 + $0x11d0] ss:$8 sps:$4 sm:$0xff]  }
 0x20b   : > { %7031 = vmatprep.subr.bf16.mxu0 %v9619_v52  ;;  %v6673_v52 = vcombine.low %v6651_v30, %v6665_v62  ;;  %v9697_v63 = vld [vmem:[%s9821_s6 + $0x11a4] ss:$8 sps:$4 sm:$0xff]   ;;  %v9692_v30 = vld [vmem:[%s9821_s6 + $0x8a0] ss:$8 sps:$4 sm:$0xff]  }
 0x20c   : > { %v3472_v15 = vcombine.high %v11179_v20, %v11182_v22  ;;  %v9695_v62 = vld [vmem:[%s9821_s6 + $0x11a0] ss:$8 sps:$4 sm:$0xff]  }
 0x20d   : > { %3187 = vmatpush1.bf16.msra.mxu1 %v9614_v9  ;;  %v9661_v9 = vld [vmem:[%s9821_s6 + $0x1144] ss:$8 sps:$4 sm:$0xff]  }
 0x20e   : > { %7032 = vmatpush1.bf16.msra.mxu0 %v9617_v12  ;;  %3188 = vmatprep.subr.bf16.mxu1 %v9622_v44  ;;  %v9656_v12 = vld [vmem:[%s9821_s6 + $0x840] ss:$8 sps:$4 sm:$0xff]  }
 0x20f   : > { %7033 = vmatprep.subr.bf16.mxu0 %v9625_v46  ;;  %v9659_v44 = vld [vmem:[%s9821_s6 + $0x1140] ss:$8 sps:$4 sm:$0xff]   ;;  %v9664_v46 = vld [vmem:[%s9821_s6 + $0x854] ss:$8 sps:$4 sm:$0xff]  }
 0x211   : > { %3189 = vmatpush1.bf16.msra.mxu1 %v9620_v7  ;;  %v9668_v7 = vld [vmem:[%s9821_s6 + $0x860] ss:$8 sps:$4 sm:$0xff]  }
 0x212   : > { %7034 = vmatpush1.bf16.msra.mxu0 %v9623_v13  ;;  %3190 = vmatprep.subr.bf16.mxu1 %v9628_v18  ;;  %v9671_v13 = vld [vmem:[%s9821_s6 + $0x1160] ss:$8 sps:$4 sm:$0xff]   ;;  %v9676_v18 = vld [vmem:[%s9821_s6 + $0x874] ss:$8 sps:$4 sm:$0xff]  }
 0x213   : > { %7035 = vmatprep.subr.bf16.mxu0 %v9631_v54  ;;  %v9679_v54 = vld [vmem:[%s9821_s6 + $0x1174] ss:$8 sps:$4 sm:$0xff]  }
 0x215   : > { %3191 = vmatpush1.bf16.msra.mxu1 %v9626_v58  ;;  %v9680_v58 = vld [vmem:[%s9821_s6 + $0x880] ss:$8 sps:$4 sm:$0xff]  }
 0x216   : > { %7036 = vmatpush1.bf16.msra.mxu0 %v9629_v29  ;;  %3839 = vmatprep.subr.bf16.mxu1 %v9634_v31  ;;  %v9683_v29 = vld [vmem:[%s9821_s6 + $0x1180] ss:$8 sps:$4 sm:$0xff]   ;;  %v9688_v31 = vld [vmem:[%s9821_s6 + $0x894] ss:$8 sps:$4 sm:$0xff]  }
 0x217   : > { %7058 = vmatprep.subr.bf16.mxu0 %v9637_v60  ;;  %v9691_v60 = vld [vmem:[%s9821_s6 + $0x1194] ss:$8 sps:$4 sm:$0xff]  }
 0x218   : > { %3193 = vmatmul.mubr.bf16.vlgmr.msra.gmra.mrb[0].mxu1 %v2741_v14  ;;  %v9703_v14 = vld [vmem:[%s9821_s6 + $0x11b4] ss:$8 sps:$4 sm:$0xff]  }
 0x219   : > { %7038 = vmatmul.mubr.bf16.vlgmr.msra.gmra.mrb[0].mxu0 %v6637_v45  ;;  %3840 = vmatpush1.bf16.msra.mxu1 %v9632_v17  ;;  %v9698_v45 = vld [vmem:[%s9821_s6 + $0x8b0] ss:$8 sps:$4 sm:$0xff]   ;;  %v9706_v17 = vld [vmem:[%s9821_s6 + $0x8c4] ss:$8 sps:$4 sm:$0xff]  }
 0x21a   : > { %7059 = vmatpush1.bf16.msra.mxu0 %v9635_v23  ;;  %3841 = vmatprep.subr.bf16.mxu1 %v9640_v48  ;;  %v9709_v23 = vld [vmem:[%s9821_s6 + $0x11c4] ss:$8 sps:$4 sm:$0xff]   ;;  %v9704_v48 = vld [vmem:[%s9821_s6 + $0x8c0] ss:$8 sps:$4 sm:$0xff]  }
 0x21b   : > { %7060 = vmatprep.subr.bf16.mxu0 %v9643_v10  ;;  %3202 = vmatprep.mubr.bf16.mxu1 %v2778_v3  ;;  %v9707_v10 = vld [vmem:[%s9821_s6 + $0x11c0] ss:$8 sps:$4 sm:$0xff]   ;;  %v9712_v3 = vld [vmem:[%s9821_s6 + $0x8d4] ss:$8 sps:$4 sm:$0xff]  }
 0x21c   : > { %7047 = vmatprep.mubr.bf16.mxu0 %v6674_v51  ;;  %v9715_v51 = vld [vmem:[%s9821_s6 + $0x11d4] ss:$8 sps:$4 sm:$0xff]  }
 0x21d   : > { %3842 = vmatpush1.bf16.msra.mxu1 %v9638_v38  ;;  %v7888_v38 = vld.sshfl [vmem:[%s11301_s0 + $0x230] sm:$0xf pattern:$0x76325410] }
 0x21e   : > { %7061 = vmatpush1.bf16.msra.mxu0 %v9641_v21  ;;  %3843 = vmatprep.subr.bf16.mxu1 %v9646_v0  ;;  %v7890_v21 = vld.sshfl [vmem:[%s11301_s0 + $0x240] sm:$0xf pattern:$0x76325410] }
 0x21f   : > { %7062 = vmatprep.subr.bf16.mxu0 %v9649_v39  ;;  %v9718_v0 = vld [vmem:[%s9821_s6 + $0x8e4] ss:$8 sps:$4 sm:$0xff]   ;;  %v7892_v39 = vld.sshfl [vmem:[%s11301_s0 + $0x250] sm:$0xf pattern:$0x76325410] }
 0x220   : > { %3203 = vmatmul.mubr.bf16.gmra.mrb[4].mxu1 %v2777_v49  ;;  %v9721_v49 = vld [vmem:[%s9821_s6 + $0x11e4] ss:$8 sps:$4 sm:$0xff]  }
 0x221   : > { %7048 = vmatmul.mubr.bf16.gmra.mrb[4].mxu0 %v6673_v52  ;;  %3844 = vmatpush1.bf16.msra.mxu1 %v9644_v24  ;;  %v7894_v52 = vld.sshfl [vmem:[%s11301_s0 + $0x260] sm:$0xf pattern:$0x76325410]  ;;  %v6642_v24 = vcombine.high %v11124_v25, %v11128_v50  ;;  %v9725_v25 = vld [vmem:[%s9821_s6 + $0x11f0] ss:$8 sps:$4 sm:$0xff]  }
 0x222   : > { %7063 = vmatpush1.bf16.msra.mxu0 %v9647_v40  ;;  %3845 = vmatprep.subr.bf16.mxu1 %v9652_v35  ;;  %v9716_v40 = vld [vmem:[%s9821_s6 + $0x8e0] ss:$8 sps:$4 sm:$0xff]  }
 0x223   : > { %7064 = vmatprep.subr.bf16.mxu0 %v9655_v36  ;;  %3871 = vmatprep.mubr.bf16.mxu1 %v3472_v15  ;;  %v9719_v35 = vld [vmem:[%s9821_s6 + $0x11e0] ss:$8 sps:$4 sm:$0xff]   ;;  %v7964_v36 = vcombine.low %v7888_v38, %v7890_v21  ;;  %v7966_v15 = vcombine.low %v7892_v39, %v7894_v52 }
 0x224   : > { %7090 = vmatprep.mubr.bf16.mxu0 %v6640_v43  ;;  %v9670_v43 = vld [vmem:[%s9821_s6 + $0x864] ss:$8 sps:$4 sm:$0xff]  }
 0x225   : > { %3846 = vmatpush1.bf16.msra.mxu1 %v9650_v32  ;;  %v6644_v32 = vcombine.high %v11132_v2, %v11136_v41  ;;  %v3485_v50 = vrot.slane %v7964_v36, %v9824_v11  ;;  %v3471_v2 = vcombine.low %v11179_v20, %v11182_v22 }
 0x226   : > { %7065 = vmatpush1.bf16.msra.mxu0 %v9653_v4  ;;  %3847 = vmatprep.subr.bf16.mxu1 %v9658_v8  ;;  %v9724_v4 = vld [vmem:[%s9821_s6 + $0x8f4] ss:$8 sps:$4 sm:$0xff]  }
 0x227   : > { %7066 = vmatprep.subr.bf16.mxu0 %v9661_v9  ;;  %v9727_v8 = vld [vmem:[%s9821_s6 + $0x11f4] ss:$8 sps:$4 sm:$0xff]   ;;  %v6658_v9 = vrot.slane %v6642_v24, %v9824_v11 }
 0x229   : > { %3848 = vmatpush1.bf16.msra.mxu1 %v9656_v12  ;;  %v9722_v12 = vld [vmem:[%s9821_s6 + $0x8f0] ss:$8 sps:$4 sm:$0xff]   ;;  %s7295_s6 = sshll.u32 %s9786_s15, 1 }
 0x22a   : > { %7067 = vmatpush1.bf16.msra.mxu0 %v9659_v44  ;;  %3849 = vmatprep.subr.bf16.mxu1 %v9664_v46  ;;  %v3499_v44 = vrot.slane %v7966_v15, %v9824_v11  ;;  %v6672_v46 = vrot.slane %v6644_v32, %v9824_v11  ;;  %p180_p8 = scmp.lt.s32.totalorder %s7295_s6, 3  ;;  %v7123_v11 = vsub.s32 0, %v9813_v6 }
 0x22b   : > { %7068 = vmatprep.subr.bf16.mxu0 %v9667_v47 }
 0x22c   : > { %v3508_v41 = vcombine.high %v3485_v50, %v3499_v44  ;;  %v6676_v47 = vcombine.high %v6658_v9, %v6672_v46  ;;  %s11316_s6 = smov (!%p180_p8, %s7295_s6), 3 }
 0x22d   : > { %3850 = vmatpush1.bf16.msra.mxu1 %v9662_v5  ;;  %v3507_v5 = vcombine.low %v3485_v50, %v3499_v44  ;;  %s182_s4 = scalar_lea.vmem %s11303_s2, %s11316_s6 }
 0x22e   : > { %7069 = vmatpush1.bf16.msra.mxu0 %v9665_v59  ;;  %3851 = vmatprep.subr.bf16.mxu1 %v9670_v43  ;;  %v6675_v59 = vcombine.low %v6658_v9, %v6672_v46  ;;  %v7119_v20 = vld [vmem:[%s182_s4] sm:$0x3] }
 0x22f   : > { %7070 = vmatprep.subr.bf16.mxu0 %v9673_v28  ;;  %v7124_v27 = vrot.slane %v7119_v20, %v7123_v11  ;;  %v7128_v43 = vrot.slane %v7119_v20, %v7127_v42 }
 0x231   : > { %3852 = vmatpush1.bf16.msra.mxu1 %v9668_v7 }
 0x232   : > { %7071 = vmatpush1.bf16.msra.mxu0 %v9671_v13  ;;  %3853 = vmatprep.subr.bf16.mxu1 %v9676_v18 }
 0x233   : > { %7072 = vmatprep.subr.bf16.mxu0 %v9679_v54 }
 0x235   : > { %3854 = vmatpush1.bf16.msra.mxu1 %v9674_v55 }
 0x236   : > { %7073 = vmatpush1.bf16.msra.mxu0 %v9677_v56  ;;  %3855 = vmatprep.subr.bf16.mxu1 %v9682_v57 }
 0x237   : > { %7074 = vmatprep.subr.bf16.mxu0 %v9685_v19 }
 0x239   : > { %3856 = vmatpush1.bf16.msra.mxu1 %v9680_v58 }
 0x23a   : > { %7075 = vmatpush1.bf16.msra.mxu0 %v9683_v29  ;;  %3857 = vmatprep.subr.bf16.mxu1 %v9688_v31 }
 0x23b   : > { %7076 = vmatprep.subr.bf16.mxu0 %v9691_v60 }
 0x23d   : > { %3858 = vmatpush1.bf16.msra.mxu1 %v9686_v34 }
 0x23e   : > { %7077 = vmatpush1.bf16.msra.mxu0 %v9689_v26  ;;  %3859 = vmatprep.subr.bf16.mxu1 %v9694_v61 }
 0x23f   : > { %7078 = vmatprep.subr.bf16.mxu0 %v9697_v63 }
 0x241   : > { %3860 = vmatpush1.bf16.msra.mxu1 %v9692_v30 }
 0x242   : > { %7079 = vmatpush1.bf16.msra.mxu0 %v9695_v62  ;;  %3861 = vmatprep.subr.bf16.mxu1 %v9700_v1 }
 0x243   : > { %7080 = vmatprep.subr.bf16.mxu0 %v9703_v14 }
 0x245   : > { %3862 = vmatpush1.bf16.msra.mxu1 %v9698_v45 }
 0x246   : > { %7081 = vmatpush1.bf16.msra.mxu0 %v9701_v16  ;;  %3863 = vmatprep.subr.bf16.mxu1 %v9706_v17 }
 0x247   : > { %7082 = vmatprep.subr.bf16.mxu0 %v9709_v23 }
 0x249   : > { %3864 = vmatpush1.bf16.msra.mxu1 %v9704_v48 }
 0x24a   : > { %7083 = vmatpush1.bf16.msra.mxu0 %v9707_v10  ;;  %3865 = vmatprep.subr.bf16.mxu1 %v9712_v3 }
 0x24b   : > { %7084 = vmatprep.subr.bf16.mxu0 %v9715_v51 }
 0x24d   : > { %3866 = vmatpush1.bf16.msra.mxu1 %v9710_v53 }
 0x24e   : > { %7085 = vmatpush1.bf16.msra.mxu0 %v9713_v33  ;;  %3867 = vmatprep.subr.bf16.mxu1 %v9718_v0 }
 0x24f   : > { %7086 = vmatprep.subr.bf16.mxu0 %v9721_v49 }
 0x251   : > { %3868 = vmatpush1.bf16.msra.mxu1 %v9716_v40 }
 0x252   : > { %7087 = vmatpush1.bf16.msra.mxu0 %v9719_v35  ;;  %3869 = vmatprep.subr.bf16.mxu1 %v9724_v4 }
 0x253   : > { %7088 = vmatprep.subr.bf16.mxu0 %v9727_v8 }
 0x255   : > { %3870 = vmatpush1.bf16.msra.mxu1 %v9722_v12 }
 0x256   : > { %7089 = vmatpush1.bf16.msra.mxu0 %v9725_v25 }
 0x258   : > { %3872 = vmatmul.mubr.bf16.vlgmr.msra.gmra.mrb[0].mxu1 %v3471_v2 }
 0x259   : > { %7091 = vmatmul.mubr.bf16.vlgmr.msra.gmra.mrb[0].mxu0 %v6639_v37  ;;  %3881 = vmatprep.mubr.bf16.mxu1 %v3508_v41 }
 0x25a   : > { %7100 = vmatprep.mubr.bf16.mxu0 %v6676_v47 }
 0x260   : > { %3882 = vmatmul.mubr.bf16.gmra.mrb[4].mxu1 %v3507_v5 }
 0x261   : > { %7101 = vmatmul.mubr.bf16.gmra.mrb[4].mxu0 %v6675_v59 }
 0x32b   : > { %v3873_v37 = vpop.f32.mrb[0].mxu1 }
 0x32c   : > { %v7092_v22 = vpop.f32.mrb[0].mxu0  ;;  %v3875_v7 = vpop.f32.mrb[1].mxu1 }
 0x32d   : > { %v8702_v28 = vadd.f32 %v7092_v22, %v3873_v37  ;;  %v7094_v13 = vpop.f32.mrb[1].mxu0  ;;  %v3877_v54 = vpop.f32.mrb[2].mxu1 }
 0x32e   : > { %v8703_v18 = vadd.f32 %v7094_v13, %v3875_v7  ;;  %v7096_v55 = vpop.f32.mrb[2].mxu0  ;;  %v3879_v19 = vpop.f32.mrb[3].mxu1 }
 0x32f   : > { %v7131_v56 = vadd.f32 %v8702_v28, %v7124_v27  ;;  %v8704_v57 = vadd.f32 %v7096_v55, %v3877_v54  ;;  %v7098_v58 = vpop.f32.mrb[3].mxu0 }
 0x330   : > { %v7132_v29 = vadd.f32 %v8703_v18, %v7128_v43  ;;  %v8705_v31 = vadd.f32 %v7098_v58, %v3879_v19 }
 0x331   : > { %v7139_v60 = vmax.f32 %v7131_v56, 0.0  ;;  %v7133_v6 = vadd.f32 %v8704_v57, %v7124_v27 }
 0x332   : > { %v7140_v34 = vmax.f32 %v7132_v29, 0.0  ;;  %v7134_v26 = vadd.f32 %v8705_v31, %v7128_v43 }
 0x333   : > { %v7141_v61 = vmax.f32 %v7133_v6, 0.0  ;;  %v3883_v62 = vpop.f32.mrb[4].mxu1 }
 0x334   : > { %v8697_v63 = vpack.c.bf16 %v7140_v34, %v7139_v60  ;;  %v7142_v30 = vmax.f32 %v7134_v26, 0.0  ;;  %v7102_v1 = vpop.f32.mrb[4].mxu0  ;;  %v3885_v45 = vpop.f32.mrb[5].mxu1 }
 0x335   : > { %v8706_v14 = vadd.f32 %v7102_v1, %v3883_v62  ;;  %v7104_v16 = vpop.f32.mrb[5].mxu0  ;;  %v3887_v48 = vpop.f32.mrb[6].mxu1 }
 0x336   : > { %7171 = vst [vmem:[%s11275_s12] sm:$0xff] %v8697_v63  ;;  %v8698_v17 = vpack.c.bf16 %v7142_v30, %v7141_v61  ;;  %v8707_v23 = vadd.f32 %v7104_v16, %v3885_v45  ;;  %v7106_v10 = vpop.f32.mrb[6].mxu0  ;;  %v3889_v53 = vpop.f32.mrb[7].mxu1 }
 0x337   : > { %v7135_v3 = vadd.f32 %v8706_v14, %v7124_v27  ;;  %v8708_v51 = vadd.f32 %v7106_v10, %v3887_v48  ;;  %v7108_v33 = vpop.f32.mrb[7].mxu0 }
 0x338   : > { %7172 = vst [vmem:[%s11275_s12 + $0x8] sm:$0xff] %v8698_v17  ;;  %v7136_v38 = vadd.f32 %v8707_v23, %v7128_v43  ;;  %v8709_v21 = vadd.f32 %v7108_v33, %v3889_v53 }
 0x339   : > { %v7143_v0 = vmax.f32 %v7135_v3, 0.0  ;;  %v7137_v39 = vadd.f32 %v8708_v51, %v7124_v27 }
 0x33a   : > { %v7144_v49 = vmax.f32 %v7136_v38, 0.0  ;;  %v7138_v52 = vadd.f32 %v8709_v21, %v7128_v43  ;;  %7181 = sbr.rel (!%p9798_p4) target bundleno = 841 (0x349), region = 36 }
 0x33b   : > { %v7145_v24 = vmax.f32 %v7137_v39, 0.0 }
 0x33c   : > { %v8699_v40 = vpack.c.bf16 %v7144_v49, %v7143_v0  ;;  %v7146_v35 = vmax.f32 %v7138_v52, 0.0 }
 0x33d   : > { %v7218_v15 = vld [vmem:[%s11275_s12] sm:$0xff] (%p9798_p4) }
 0x33e   : > { %7173 = vst [vmem:[%s11275_s12 + $0x10] sm:$0xff] %v8699_v40  ;;  %v8700_v36 = vpack.c.bf16 %v7146_v35, %v7145_v24  ;;  %7219 = vst [vmem:[%s7184_s11] sm:$0xff] (%p9798_p4), %v7218_v15 }
 0x33f   : > { %v7220_v32 = vld [vmem:[%s11275_s12 + $0x8] sm:$0xff] (%p9798_p4) }
 0x340   : > { %7174 = vst [vmem:[%s11275_s12 + $0x18] sm:$0xff] %v8700_v36  ;;  %7221 = vst [vmem:[%s7184_s11 + $0x10] sm:$0xff] (%p9798_p4), %v7220_v32 }
 0x345   : > { %v7222_v4 = vld [vmem:[%s11275_s12 + $0x10] sm:$0xff] }
 0x346   : > { %7223 = vst [vmem:[%s7184_s11 + $0x20] sm:$0xff] %v7222_v4 }
 0x347   : > { %v7224_v8 = vld [vmem:[%s11275_s12 + $0x18] sm:$0xff] }
 0x348   : > { %7225 = vst [vmem:[%s7184_s11 + $0x30] sm:$0xff] %v7224_v8 }
 0x349 PF: > { %p10_p9 = scmp.ge.s32.totalorder %s9788_s16, 4   ;;  %s11312_s12 = smov %s9746_s13 }
 0x34a   : > { %s11313_s13 = smov %s9796_s19  ;;  %s11314_s14 = smov %s9788_s16 }
 0x34b   :  { %12 = sbr.rel (!%p10_p9) target bundleno = 2 (0x2), region = 116 }

// kernel: discriminator_forward.5
= control target key start
LH: loop header
LB: loop body
LE: loop exit
PB: predicated region body
PF: predicated region fallthrough
CT: control target
= control target key end

     0   :  { %s4063_s9 = smov 0   ;;  %s4399_s0 = inlined_call_operand.vmem [shape: bf16[2,8192], index: 0, kind: input, shape index: {}]   ;;  %s4400_s1 = inlined_call_operand.vmem [shape: bf16[8192,128], index: 1, kind: input, shape index: {}]   ;;  %s4401_s2 = inlined_call_operand.vmem [shape: f32[2,2,128], index: 2, kind: output, shape index: {}]  }
   0x1 LB: > { %s4069_s10 = sadd.s32 4294967295, %s4045_s9   ;;  %p3155_p0 = scmp.ge.s32.totalorder %s4045_s9, 1  ;;  %s4045_s9 = sphi %s4063_s9, %s12_s9  }
   0x2   : > { %p123_p1 = scmp.lt.s32.totalorder %s4045_s9, 3 }
   0x4   : > { %p124_p2 = pnand %p3155_p0, %p123_p1 }
   0x5   : > { %s3157_s11 = sshll.u32 (!%p124_p2), %s4069_s10, 9  ;;  %s3156_s16 = sshll.u32 (!%p124_p2), %s4069_s10, 5  ;;  %v688_v21 = vlaneseq (!%p124_p2)  ;;  %v4047_v23 = vmov (!%p124_p2), 1966171168  }
   0x6   : > { %127 = sbr.rel (%p124_p2) target bundleno = 494 (0x1ee), region = 28  ;;  %p154_p3 = scmp.lt.s32.totalorder (!%p124_p2), %s3157_s11, 1023  ;;  %v686_v24 = vunpack.c.l.s4 (!%p124_p2), %v4047_v23 }
   0x7   : > { %p149_p4 = scmp.lt.s32.totalorder (!%p124_p2), %s3156_s16, 63  ;;  %v689_v28 = vshrl.u32 (!%p124_p2), %v688_v21, 7  ;;  %p159_p5 = scmp.lt.s32.totalorder (!%p124_p2), %s4069_s10, 1 }
   0x8   : > { %v687_v30 = vunpack.c.0.s8 (!%p124_p2), %v686_v24 }
   0xa   : > { %v4115_v35 = vsub.s32 (!%p124_p2), %v687_v30, %v689_v28 }
   0xd   : > { %s4403_s11 = smov (!%p154_p3, %s3157_s11), 1023  ;;  %s4405_s16 = smov (!%p149_p4, %s3156_s16), 63 }
   0xe   : > { %s3158_s12 = sshll.u32 %s4403_s11, 2  ;;  %s4113_s19 = scalar_lea.vmem %s4399_s0, %s4405_s16 }
   0xf   : > { %s4077_s15 = scalar_lea.vmem %s4400_s1, %s3158_s12  ;;  %v164_v38 = vld [vmem:[%s4113_s19] sm:$0xff]  ;;  %s4407_s10 = smov (!%p159_p5, %s4069_s10), 1 }
  0x10   : > { %v3779_v0 = vld [vmem:[%s4077_s15 + $0x40] sm:$0xff]   ;;  %v3783_v4 = vld [vmem:[%s4077_s15 + $0x48] sm:$0xff]   ;;  %v3787_v8 = vld [vmem:[%s4077_s15 + $0x50] sm:$0xff]   ;;  %v684_v39 = vcombine.high %v164_v38, %v164_v38  ;;  %v691_v40 = vrot.slane %v164_v38, %v4115_v35  ;;  %s3159_s20 = sshll.u32 %s4407_s10, 1 }
  0x11   : > { %v3780_v1 = vld [vmem:[%s4077_s15 + $0xc0] sm:$0xff]   ;;  %3418 = vmatprep.subr.bf16.mxu0 %v3779_v0  ;;  %v3784_v5 = vld [vmem:[%s4077_s15 + $0xc8] sm:$0xff]   ;;  %v3788_v9 = vld [vmem:[%s4077_s15 + $0xd0] sm:$0xff]   ;;  %s162_s23 = scalar_lea.vmem %s4401_s2, %s3159_s20 }
  0x12   : > { %v3781_v2 = vld [vmem:[%s4077_s15] sm:$0xff]   ;;  %3440 = vmatprep.subr.bf16.mxu1 %v3780_v1  ;;  %v3785_v6 = vld [vmem:[%s4077_s15 + $0x8] sm:$0xff]   ;;  %v3789_v10 = vld [vmem:[%s4077_s15 + $0x10] sm:$0xff]   ;;  %v699_v43 = vcombine.high %v691_v40, %v691_v40  ;;  %v707_v44 = vrot.slane %v691_v40, %v4115_v35  ;;  %v4125_v45 = vrot.slane %v684_v39, %v4115_v35 }
  0x13   : > { %v3782_v3 = vld [vmem:[%s4077_s15 + $0x80] sm:$0xff]   ;;  %3419 = vmatpush3.bf16.msra.mxu0 %v3781_v2  ;;  %v3786_v7 = vld [vmem:[%s4077_s15 + $0x88] sm:$0xff]   ;;  %v3790_v11 = vld [vmem:[%s4077_s15 + $0x90] sm:$0xff]  }
  0x14   : > { %3441 = vmatpush3.bf16.msra.mxu1 %v3782_v3  ;;  %3420 = vmatprep.subr.bf16.mxu0 %v3783_v4  ;;  %v3791_v12 = vld [vmem:[%s4077_s15 + $0x58] sm:$0xff]   ;;  %v3795_v16 = vld [vmem:[%s4077_s15 + $0x60] sm:$0xff]   ;;  %v3799_v20 = vld [vmem:[%s4077_s15 + $0x68] sm:$0xff]   ;;  %v721_v47 = vrot.slane %v699_v43, %v4115_v35  ;;  %v700_v49 = vcombine.high %v4125_v45, %v4125_v45  ;;  %v729_v50 = vcombine.high %v707_v44, %v707_v44 }
  0x15   : > { %3442 = vmatprep.subr.bf16.mxu1 %v3784_v5  ;;  %v3792_v13 = vld [vmem:[%s4077_s15 + $0xd8] sm:$0xff]   ;;  %v3796_v17 = vld [vmem:[%s4077_s15 + $0xe0] sm:$0xff]   ;;  %v3800_v22 = vld [vmem:[%s4077_s15 + $0xe8] sm:$0xff]  }
  0x16   : > { %v3793_v14 = vld [vmem:[%s4077_s15 + $0x18] sm:$0xff]   ;;  %v3797_v18 = vld [vmem:[%s4077_s15 + $0x20] sm:$0xff]   ;;  %v3801_v25 = vld [vmem:[%s4077_s15 + $0x28] sm:$0xff]   ;;  %2480 = vmatprep.mubr.bf16.mxu0 %v721_v47  ;;  %v731_v52 = vcombine.high %v721_v47, %v721_v47  ;;  %v728_v54 = vrot.slane %v700_v49, %v4115_v35 }
  0x17   : > { %3421 = vmatpush3.bf16.msra.mxu0 %v3785_v6  ;;  %v3794_v15 = vld [vmem:[%s4077_s15 + $0x98] sm:$0xff]   ;;  %v3798_v19 = vld [vmem:[%s4077_s15 + $0xa0] sm:$0xff]   ;;  %v3802_v26 = vld [vmem:[%s4077_s15 + $0xa8] sm:$0xff]  }
  0x18   : > { %3443 = vmatpush3.bf16.msra.mxu1 %v3786_v7  ;;  %3422 = vmatprep.subr.bf16.mxu0 %v3787_v8  ;;  %v3803_v27 = vld [vmem:[%s4077_s15 + $0x70] sm:$0xff]   ;;  %v3807_v33 = vld [vmem:[%s4077_s15 + $0x78] sm:$0xff]   ;;  %v3812_v41 = vld [vmem:[%s4077_s15 + $0x140] sm:$0xff]   ;;  %v732_v57 = vcombine.high %v728_v54, %v728_v54 }
  0x19   : > { %3444 = vmatprep.subr.bf16.mxu1 %v3788_v9  ;;  %v3804_v29 = vld [vmem:[%s4077_s15 + $0xf0] sm:$0xff]   ;;  %v3808_v34 = vld [vmem:[%s4077_s15 + $0xf8] sm:$0xff]   ;;  %v3813_v42 = vld [vmem:[%s4077_s15 + $0x1c0] sm:$0xff]   ;;  %2520 = vmatprep.mubr.bf16.mxu1 %v731_v52 }
  0x1a   : > { %v3805_v31 = vld [vmem:[%s4077_s15 + $0x30] sm:$0xff]   ;;  %v3809_v36 = vld [vmem:[%s4077_s15 + $0x38] sm:$0xff]   ;;  %v3814_v46 = vld [vmem:[%s4077_s15 + $0x100] sm:$0xff]  }
  0x1b   : > { %3423 = vmatpush3.bf16.msra.mxu0 %v3789_v10  ;;  %v3806_v32 = vld [vmem:[%s4077_s15 + $0xb0] sm:$0xff]   ;;  %v3810_v37 = vld [vmem:[%s4077_s15 + $0xb8] sm:$0xff]   ;;  %v3815_v48 = vld [vmem:[%s4077_s15 + $0x180] sm:$0xff]  }
  0x1c   : > { %3445 = vmatpush3.bf16.msra.mxu1 %v3790_v11  ;;  %3424 = vmatprep.subr.bf16.mxu0 %v3791_v12  ;;  %v3816_v51 = vld [vmem:[%s4077_s15 + $0x148] sm:$0xff]   ;;  %v3820_v58 = vld [vmem:[%s4077_s15 + $0x150] sm:$0xff]   ;;  %v3824_v62 = vld [vmem:[%s4077_s15 + $0x158] sm:$0xff]  }
  0x1d   : > { %3446 = vmatprep.subr.bf16.mxu1 %v3792_v13  ;;  %v3817_v53 = vld [vmem:[%s4077_s15 + $0x1c8] sm:$0xff]   ;;  %v3821_v59 = vld [vmem:[%s4077_s15 + $0x1d0] sm:$0xff]   ;;  %v3825_v63 = vld [vmem:[%s4077_s15 + $0x1d8] sm:$0xff]  }
  0x1e   : > { %v3818_v55 = vld [vmem:[%s4077_s15 + $0x108] sm:$0xff]   ;;  %v3822_v60 = vld [vmem:[%s4077_s15 + $0x110] sm:$0xff]   ;;  %v3826_v0 = vld [vmem:[%s4077_s15 + $0x118] sm:$0xff]  }
  0x1f   : > { %3425 = vmatpush3.bf16.msra.mxu0 %v3793_v14  ;;  %v3819_v56 = vld [vmem:[%s4077_s15 + $0x188] sm:$0xff]   ;;  %v3823_v61 = vld [vmem:[%s4077_s15 + $0x190] sm:$0xff]   ;;  %v3827_v1 = vld [vmem:[%s4077_s15 + $0x198] sm:$0xff]  }
  0x20   : > { %3447 = vmatpush3.bf16.msra.mxu1 %v3794_v15  ;;  %3426 = vmatprep.subr.bf16.mxu0 %v3795_v16  ;;  %v3828_v2 = vld [vmem:[%s4077_s15 + $0x160] sm:$0xff]   ;;  %v3832_v6 = vld [vmem:[%s4077_s15 + $0x168] sm:$0xff]   ;;  %v3836_v10 = vld [vmem:[%s4077_s15 + $0x170] sm:$0xff]  }
  0x21   : > { %3448 = vmatprep.subr.bf16.mxu1 %v3796_v17  ;;  %v3829_v3 = vld [vmem:[%s4077_s15 + $0x1e0] sm:$0xff]   ;;  %v3833_v7 = vld [vmem:[%s4077_s15 + $0x1e8] sm:$0xff]   ;;  %v3837_v11 = vld [vmem:[%s4077_s15 + $0x1f0] sm:$0xff]  }
  0x22   : > { %v3830_v4 = vld [vmem:[%s4077_s15 + $0x120] sm:$0xff]   ;;  %v3834_v8 = vld [vmem:[%s4077_s15 + $0x128] sm:$0xff]   ;;  %v3838_v12 = vld [vmem:[%s4077_s15 + $0x130] sm:$0xff]  }
  0x23   : > { %3427 = vmatpush3.bf16.msra.mxu0 %v3797_v18  ;;  %v3831_v5 = vld [vmem:[%s4077_s15 + $0x1a0] sm:$0xff]   ;;  %v3835_v9 = vld [vmem:[%s4077_s15 + $0x1a8] sm:$0xff]   ;;  %v3839_v13 = vld [vmem:[%s4077_s15 + $0x1b0] sm:$0xff]   ;;  %v714_v18 = vrot.slane %v4125_v45, %v4115_v35 }
  0x24   : > { %3449 = vmatpush3.bf16.msra.mxu1 %v3798_v19  ;;  %3428 = vmatprep.subr.bf16.mxu0 %v3799_v20  ;;  %v3840_v14 = vld [vmem:[%s4077_s15 + $0x178] sm:$0xff]   ;;  %v3844_v19 = vld [vmem:[%s4077_s15 + $0x240] sm:$0xff]   ;;  %v3848_v24 = vld [vmem:[%s4077_s15 + $0x248] sm:$0xff]  }
  0x25   : > { %3450 = vmatprep.subr.bf16.mxu1 %v3800_v22  ;;  %v3841_v15 = vld [vmem:[%s4077_s15 + $0x1f8] sm:$0xff]   ;;  %v3845_v20 = vld [vmem:[%s4077_s15 + $0x2c0] sm:$0xff]   ;;  %v730_v23 = vcombine.high %v714_v18, %v714_v18  ;;  %v3852_v28 = vld [vmem:[%s4077_s15 + $0x250] sm:$0xff]  }
  0x26   : > { %v3842_v16 = vld [vmem:[%s4077_s15 + $0x138] sm:$0xff]   ;;  %v3846_v21 = vld [vmem:[%s4077_s15 + $0x200] sm:$0xff]   ;;  %v3854_v30 = vld [vmem:[%s4077_s15 + $0x210] sm:$0xff]  }
  0x27   : > { %3429 = vmatpush3.bf16.msra.mxu0 %v3801_v25  ;;  %v3843_v17 = vld [vmem:[%s4077_s15 + $0x1b8] sm:$0xff]   ;;  %v3847_v22 = vld [vmem:[%s4077_s15 + $0x280] sm:$0xff]   ;;  %v3849_v25 = vld [vmem:[%s4077_s15 + $0x2c8] sm:$0xff]  }
  0x28   : > { %3451 = vmatpush3.bf16.msra.mxu1 %v3802_v26  ;;  %3430 = vmatprep.subr.bf16.mxu0 %v3803_v27  ;;  %v3850_v26 = vld [vmem:[%s4077_s15 + $0x208] sm:$0xff]   ;;  %v3861_v38 = vld [vmem:[%s4077_s15 + $0x2e0] sm:$0xff]   ;;  %v3868_v45 = vld [vmem:[%s4077_s15 + $0x270] sm:$0xff]  }
  0x29   : > { %3452 = vmatprep.subr.bf16.mxu1 %v3804_v29  ;;  %v3851_v27 = vld [vmem:[%s4077_s15 + $0x288] sm:$0xff]   ;;  %v3853_v29 = vld [vmem:[%s4077_s15 + $0x2d0] sm:$0xff]   ;;  %v3862_v39 = vld [vmem:[%s4077_s15 + $0x220] sm:$0xff]  }
  0x2a   : > { %v3863_v40 = vld [vmem:[%s4077_s15 + $0x2a0] sm:$0xff]   ;;  %v3866_v43 = vld [vmem:[%s4077_s15 + $0x228] sm:$0xff]   ;;  %v3870_v47 = vld [vmem:[%s4077_s15 + $0x230] sm:$0xff]  }
  0x2b   : > { %3431 = vmatpush3.bf16.msra.mxu0 %v3805_v31  ;;  %v3855_v31 = vld [vmem:[%s4077_s15 + $0x290] sm:$0xff]   ;;  %v3872_v49 = vld [vmem:[%s4077_s15 + $0x278] sm:$0xff]   ;;  %v165_v52 = vld [vmem:[%s4113_s19 + $0x8] sm:$0xff] }
  0x2c   : > { %3453 = vmatpush3.bf16.msra.mxu1 %v3806_v32  ;;  %3432 = vmatprep.subr.bf16.mxu0 %v3807_v33  ;;  %v3856_v32 = vld [vmem:[%s4077_s15 + $0x258] sm:$0xff]  }
  0x2d   : > { %3454 = vmatprep.subr.bf16.mxu1 %v3808_v34  ;;  %v3857_v33 = vld [vmem:[%s4077_s15 + $0x2d8] sm:$0xff]  }
  0x2e   : > { %v3858_v34 = vld [vmem:[%s4077_s15 + $0x218] sm:$0xff]  }
  0x2f   : > { %3433 = vmatpush3.bf16.msra.mxu0 %v3809_v36  ;;  %v3859_v36 = vld [vmem:[%s4077_s15 + $0x298] sm:$0xff]  }
  0x30   : > { %3455 = vmatpush3.bf16.msra.mxu1 %v3810_v37  ;;  %3462 = vmatprep.subr.bf16.mxu0 %v3812_v41  ;;  %v3860_v37 = vld [vmem:[%s4077_s15 + $0x260] sm:$0xff]   ;;  %v3864_v41 = vld [vmem:[%s4077_s15 + $0x268] sm:$0xff]  }
  0x31   : > { %3484 = vmatprep.subr.bf16.mxu1 %v3813_v42  ;;  %v3865_v42 = vld [vmem:[%s4077_s15 + $0x2e8] sm:$0xff]  }
  0x32   : > { %2481 = vmatmul.mubr.bf16.vlgmr.msra.gmra.mrb[0].mxu0 %v707_v44  ;;  %v3867_v44 = vld [vmem:[%s4077_s15 + $0x2a8] sm:$0xff]  }
  0x33   : > { %3463 = vmatpush3.bf16.msra.mxu0 %v3814_v46  ;;  %2521 = vmatmul.mubr.bf16.vlgmr.msra.gmra.mrb[0].mxu1 %v729_v50  ;;  %v3869_v46 = vld [vmem:[%s4077_s15 + $0x2f0] sm:$0xff]   ;;  %v3873_v50 = vld [vmem:[%s4077_s15 + $0x2f8] sm:$0xff]  }
  0x34   : > { %3464 = vmatprep.subr.bf16.mxu0 %v3816_v51  ;;  %3485 = vmatpush3.bf16.msra.mxu1 %v3815_v48  ;;  %v3871_v48 = vld [vmem:[%s4077_s15 + $0x2b0] sm:$0xff]   ;;  %v3874_v51 = vld [vmem:[%s4077_s15 + $0x238] sm:$0xff]  }
  0x35   : > { %2560 = vmatprep.mubr.bf16.mxu0 %v728_v54  ;;  %3486 = vmatprep.subr.bf16.mxu1 %v3817_v53  ;;  %v3875_v53 = vld [vmem:[%s4077_s15 + $0x2b8] sm:$0xff]   ;;  %v740_v54 = vrot.slane %v165_v52, %v4115_v35 }
  0x36   : > { %2600 = vmatprep.mubr.bf16.mxu1 %v732_v57 }
  0x37   : > { %3465 = vmatpush3.bf16.msra.mxu0 %v3818_v55  ;;  %v733_v55 = vcombine.high %v165_v52, %v165_v52  ;;  %v748_v57 = vcombine.high %v740_v54, %v740_v54  ;;  %v3925_v52 = vld [vmem:[%s4077_s15 + $0x460] sm:$0xff]  }
  0x38   : > { %3466 = vmatprep.subr.bf16.mxu0 %v3820_v58  ;;  %3487 = vmatpush3.bf16.msra.mxu1 %v3819_v56  ;;  %v3876_v56 = vld [vmem:[%s4077_s15 + $0x340] sm:$0xff]   ;;  %v756_v58 = vrot.slane %v740_v54, %v4115_v35 }
  0x39   : > { %3488 = vmatprep.subr.bf16.mxu1 %v3821_v59  ;;  %v3877_v59 = vld [vmem:[%s4077_s15 + $0x3c0] sm:$0xff]  }
  0x3a   : > { %v3927_v54 = vld [vmem:[%s4077_s15 + $0x420] sm:$0xff]  }
  0x3b   : > { %3467 = vmatpush3.bf16.msra.mxu0 %v3822_v60  ;;  %v4201_v60 = vrot.slane %v733_v55, %v4115_v35  ;;  %v3928_v55 = vld [vmem:[%s4077_s15 + $0x4a0] sm:$0xff]  }
  0x3c   : > { %3468 = vmatprep.subr.bf16.mxu0 %v3824_v62  ;;  %3489 = vmatpush3.bf16.msra.mxu1 %v3823_v61  ;;  %v3878_v61 = vld [vmem:[%s4077_s15 + $0x300] sm:$0xff]   ;;  %v770_v62 = vrot.slane %v748_v57, %v4115_v35  ;;  %v3930_v57 = vld [vmem:[%s4077_s15 + $0x4e8] sm:$0xff]  }
  0x3d   : > { %3490 = vmatprep.subr.bf16.mxu1 %v3825_v63  ;;  %v3879_v63 = vld [vmem:[%s4077_s15 + $0x380] sm:$0xff]  }
  0x3f   : > { %3469 = vmatpush3.bf16.msra.mxu0 %v3826_v0  ;;  %v749_v0 = vcombine.high %v4201_v60, %v4201_v60 }
  0x40   : > { %3470 = vmatprep.subr.bf16.mxu0 %v3828_v2  ;;  %3491 = vmatpush3.bf16.msra.mxu1 %v3827_v1  ;;  %v778_v1 = vcombine.high %v756_v58, %v756_v58  ;;  %v3880_v2 = vld [vmem:[%s4077_s15 + $0x348] sm:$0xff]  }
  0x41   : > { %3492 = vmatprep.subr.bf16.mxu1 %v3829_v3  ;;  %v780_v3 = vcombine.high %v770_v62, %v770_v62 }
  0x43   : > { %3471 = vmatpush3.bf16.msra.mxu0 %v3830_v4  ;;  %v3881_v4 = vld [vmem:[%s4077_s15 + $0x3c8] sm:$0xff]  }
  0x44   : > { %3472 = vmatprep.subr.bf16.mxu0 %v3832_v6  ;;  %3493 = vmatpush3.bf16.msra.mxu1 %v3831_v5  ;;  %v777_v5 = vrot.slane %v749_v0, %v4115_v35  ;;  %v3882_v6 = vld [vmem:[%s4077_s15 + $0x308] sm:$0xff]   ;;  %v3937_v0 = vld [vmem:[%s4077_s15 + $0x478] sm:$0xff]  }
  0x45   : > { %3494 = vmatprep.subr.bf16.mxu1 %v3833_v7  ;;  %v3883_v7 = vld [vmem:[%s4077_s15 + $0x388] sm:$0xff]  }
  0x47   : > { %3473 = vmatpush3.bf16.msra.mxu0 %v3834_v8  ;;  %v781_v8 = vcombine.high %v777_v5, %v777_v5 }
  0x48   : > { %3474 = vmatprep.subr.bf16.mxu0 %v3836_v10  ;;  %3495 = vmatpush3.bf16.msra.mxu1 %v3835_v9  ;;  %v3884_v9 = vld [vmem:[%s4077_s15 + $0x350] sm:$0xff]  }
  0x49   : > { %3496 = vmatprep.subr.bf16.mxu1 %v3837_v11  ;;  %v3885_v10 = vld [vmem:[%s4077_s15 + $0x3d0] sm:$0xff]  }
  0x4a   : > { %v3886_v11 = vld [vmem:[%s4077_s15 + $0x310] sm:$0xff]  }
  0x4b   : > { %3475 = vmatpush3.bf16.msra.mxu0 %v3838_v12  ;;  %v3887_v12 = vld [vmem:[%s4077_s15 + $0x390] sm:$0xff]  }
  0x4c   : > { %3476 = vmatprep.subr.bf16.mxu0 %v3840_v14  ;;  %3497 = vmatpush3.bf16.msra.mxu1 %v3839_v13  ;;  %v3888_v13 = vld [vmem:[%s4077_s15 + $0x358] sm:$0xff]  }
  0x4d   : > { %3498 = vmatprep.subr.bf16.mxu1 %v3841_v15  ;;  %v3889_v14 = vld [vmem:[%s4077_s15 + $0x3d8] sm:$0xff]  }
  0x4e   : > { %v3890_v15 = vld [vmem:[%s4077_s15 + $0x318] sm:$0xff]  }
  0x4f   : > { %3477 = vmatpush3.bf16.msra.mxu0 %v3842_v16  ;;  %v3891_v16 = vld [vmem:[%s4077_s15 + $0x398] sm:$0xff]  }
  0x50   : > { %3506 = vmatprep.subr.bf16.mxu0 %v3844_v19  ;;  %3499 = vmatpush3.bf16.msra.mxu1 %v3843_v17  ;;  %v3892_v17 = vld [vmem:[%s4077_s15 + $0x360] sm:$0xff]  }
  0x51   : > { %3528 = vmatprep.subr.bf16.mxu1 %v3845_v20  ;;  %v3894_v19 = vld [vmem:[%s4077_s15 + $0x320] sm:$0xff]  }
  0x52   : > { %2561 = vmatmul.mubr.bf16.vlgmr.msra.gmra.mrb[4].mxu0 %v714_v18  ;;  %v3893_v18 = vld [vmem:[%s4077_s15 + $0x3e0] sm:$0xff]  }
  0x53   : > { %3507 = vmatpush3.bf16.msra.mxu0 %v3846_v21  ;;  %2601 = vmatmul.mubr.bf16.vlgmr.msra.gmra.mrb[4].mxu1 %v730_v23  ;;  %v3895_v20 = vld [vmem:[%s4077_s15 + $0x3a0] sm:$0xff]   ;;  %v3896_v21 = vld [vmem:[%s4077_s15 + $0x368] sm:$0xff]  }
  0x54   : > { %3508 = vmatprep.subr.bf16.mxu0 %v3848_v24  ;;  %3529 = vmatpush3.bf16.msra.mxu1 %v3847_v22  ;;  %v3897_v22 = vld [vmem:[%s4077_s15 + $0x3e8] sm:$0xff]  }
  0x55   : > { %3530 = vmatprep.subr.bf16.mxu1 %v3849_v25  ;;  %2640 = vmatprep.mubr.bf16.mxu0 %v770_v62  ;;  %v3898_v23 = vld [vmem:[%s4077_s15 + $0x328] sm:$0xff]   ;;  %v3900_v25 = vld [vmem:[%s4077_s15 + $0x370] sm:$0xff]  }
  0x56   : > { %2680 = vmatprep.mubr.bf16.mxu1 %v780_v3  ;;  %v3899_v24 = vld [vmem:[%s4077_s15 + $0x3a8] sm:$0xff]   ;;  %v3935_v62 = vld [vmem:[%s4077_s15 + $0x430] sm:$0xff]  }
  0x57   : > { %3509 = vmatpush3.bf16.msra.mxu0 %v3850_v26  ;;  %v3901_v26 = vld [vmem:[%s4077_s15 + $0x3f0] sm:$0xff]  }
  0x58   : > { %3510 = vmatprep.subr.bf16.mxu0 %v3852_v28  ;;  %3531 = vmatpush3.bf16.msra.mxu1 %v3851_v27  ;;  %v3902_v27 = vld [vmem:[%s4077_s15 + $0x330] sm:$0xff]  }
  0x59   : > { %3532 = vmatprep.subr.bf16.mxu1 %v3853_v29  ;;  %v3903_v28 = vld [vmem:[%s4077_s15 + $0x3b0] sm:$0xff]   ;;  %v3904_v29 = vld [vmem:[%s4077_s15 + $0x378] sm:$0xff]  }
  0x5a   : > { %v166_v3 = vld [vmem:[%s4113_s19 + $0x10] sm:$0xff] }
  0x5b   : > { %3511 = vmatpush3.bf16.msra.mxu0 %v3854_v30  ;;  %v3905_v30 = vld [vmem:[%s4077_s15 + $0x3f8] sm:$0xff]  }
  0x5c   : > { %3512 = vmatprep.subr.bf16.mxu0 %v3856_v32  ;;  %3533 = vmatpush3.bf16.msra.mxu1 %v3855_v31  ;;  %v3906_v31 = vld [vmem:[%s4077_s15 + $0x338] sm:$0xff]  }
  0x5d   : > { %3534 = vmatprep.subr.bf16.mxu1 %v3857_v33  ;;  %v3907_v32 = vld [vmem:[%s4077_s15 + $0x3b8] sm:$0xff]   ;;  %v763_v33 = vrot.slane %v4201_v60, %v4115_v35  ;;  %v3933_v60 = vld [vmem:[%s4077_s15 + $0x470] sm:$0xff]  }
  0x5f   : > { %3513 = vmatpush3.bf16.msra.mxu0 %v3858_v34  ;;  %v3909_v34 = vld [vmem:[%s4077_s15 + $0x440] sm:$0xff]  }
  0x60   : > { %3514 = vmatprep.subr.bf16.mxu0 %v3860_v37  ;;  %3535 = vmatpush3.bf16.msra.mxu1 %v3859_v36  ;;  %v3910_v36 = vld [vmem:[%s4077_s15 + $0x4c0] sm:$0xff]  }
  0x61   : > { %3536 = vmatprep.subr.bf16.mxu1 %v3861_v38  ;;  %v3911_v37 = vld [vmem:[%s4077_s15 + $0x400] sm:$0xff]  }
  0x62   : > { %v3912_v38 = vld [vmem:[%s4077_s15 + $0x480] sm:$0xff]  }
  0x63   : > { %3515 = vmatpush3.bf16.msra.mxu0 %v3862_v39  ;;  %v779_v39 = vcombine.high %v763_v33, %v763_v33 }
  0x64   : > { %3516 = vmatprep.subr.bf16.mxu0 %v3864_v41  ;;  %3537 = vmatpush3.bf16.msra.mxu1 %v3863_v40  ;;  %v3913_v40 = vld [vmem:[%s4077_s15 + $0x448] sm:$0xff]  }
  0x65   : > { %3538 = vmatprep.subr.bf16.mxu1 %v3865_v42  ;;  %v3914_v41 = vld [vmem:[%s4077_s15 + $0x4c8] sm:$0xff]  }
  0x66   : > { %v3915_v42 = vld [vmem:[%s4077_s15 + $0x408] sm:$0xff]  }
  0x67   : > { %3517 = vmatpush3.bf16.msra.mxu0 %v3866_v43  ;;  %v3916_v43 = vld [vmem:[%s4077_s15 + $0x488] sm:$0xff]  }
  0x68   : > { %3518 = vmatprep.subr.bf16.mxu0 %v3868_v45  ;;  %3539 = vmatpush3.bf16.msra.mxu1 %v3867_v44  ;;  %v3917_v44 = vld [vmem:[%s4077_s15 + $0x450] sm:$0xff]  }
  0x69   : > { %3540 = vmatprep.subr.bf16.mxu1 %v3869_v46  ;;  %v3918_v45 = vld [vmem:[%s4077_s15 + $0x4d0] sm:$0xff]  }
  0x6a   : > { %v3919_v46 = vld [vmem:[%s4077_s15 + $0x410] sm:$0xff]  }
  0x6b   : > { %3519 = vmatpush3.bf16.msra.mxu0 %v3870_v47  ;;  %v3920_v47 = vld [vmem:[%s4077_s15 + $0x490] sm:$0xff]  }
  0x6c   : > { %3520 = vmatprep.subr.bf16.mxu0 %v3872_v49  ;;  %3541 = vmatpush3.bf16.msra.mxu1 %v3871_v48  ;;  %v3921_v48 = vld [vmem:[%s4077_s15 + $0x458] sm:$0xff]  }
  0x6d   : > { %3542 = vmatprep.subr.bf16.mxu1 %v3873_v50  ;;  %v3922_v49 = vld [vmem:[%s4077_s15 + $0x4d8] sm:$0xff]  }
  0x6e   : > { %v3923_v50 = vld [vmem:[%s4077_s15 + $0x418] sm:$0xff]  }
  0x6f   : > { %3521 = vmatpush3.bf16.msra.mxu0 %v3874_v51  ;;  %v3924_v51 = vld [vmem:[%s4077_s15 + $0x498] sm:$0xff]  }
  0x70   : > { %3550 = vmatprep.subr.bf16.mxu0 %v3876_v56  ;;  %3543 = vmatpush3.bf16.msra.mxu1 %v3875_v53  ;;  %v3926_v53 = vld [vmem:[%s4077_s15 + $0x4e0] sm:$0xff]   ;;  %v3929_v56 = vld [vmem:[%s4077_s15 + $0x468] sm:$0xff]  }
  0x71   : > { %3572 = vmatprep.subr.bf16.mxu1 %v3877_v59  ;;  %v3932_v59 = vld [vmem:[%s4077_s15 + $0x4a8] sm:$0xff]  }
  0x72   : > { %2641 = vmatmul.mubr.bf16.vlgmr.msra.gmra.mrb[8].mxu0 %v756_v58  ;;  %v3931_v58 = vld [vmem:[%s4077_s15 + $0x428] sm:$0xff]  }
  0x73   : > { %3551 = vmatpush3.bf16.msra.mxu0 %v3878_v61  ;;  %2681 = vmatmul.mubr.bf16.vlgmr.msra.gmra.mrb[8].mxu1 %v778_v1  ;;  %v3934_v61 = vld [vmem:[%s4077_s15 + $0x4f0] sm:$0xff]   ;;  %v3938_v1 = vld [vmem:[%s4077_s15 + $0x4f8] sm:$0xff]  }
  0x74   : > { %3552 = vmatprep.subr.bf16.mxu0 %v3880_v2  ;;  %3573 = vmatpush3.bf16.msra.mxu1 %v3879_v63  ;;  %v3936_v63 = vld [vmem:[%s4077_s15 + $0x4b0] sm:$0xff]   ;;  %v3939_v2 = vld [vmem:[%s4077_s15 + $0x438] sm:$0xff]  }
  0x75   : > { %2720 = vmatprep.mubr.bf16.mxu0 %v777_v5  ;;  %3574 = vmatprep.subr.bf16.mxu1 %v3881_v4  ;;  %v3940_v4 = vld [vmem:[%s4077_s15 + $0x4b8] sm:$0xff]   ;;  %v789_v5 = vrot.slane %v166_v3, %v4115_v35 }
  0x76   : > { %2760 = vmatprep.mubr.bf16.mxu1 %v781_v8 }
  0x77   : > { %3553 = vmatpush3.bf16.msra.mxu0 %v3882_v6  ;;  %v782_v6 = vcombine.high %v166_v3, %v166_v3  ;;  %v797_v8 = vcombine.high %v789_v5, %v789_v5  ;;  %v3990_v3 = vld [vmem:[%s4077_s15 + $0x660] sm:$0xff]  }
  0x78   : > { %3554 = vmatprep.subr.bf16.mxu0 %v3884_v9  ;;  %3575 = vmatpush3.bf16.msra.mxu1 %v3883_v7  ;;  %v3941_v7 = vld [vmem:[%s4077_s15 + $0x540] sm:$0xff]   ;;  %v805_v9 = vrot.slane %v789_v5, %v4115_v35 }
  0x79   : > { %3576 = vmatprep.subr.bf16.mxu1 %v3885_v10  ;;  %v3942_v10 = vld [vmem:[%s4077_s15 + $0x5c0] sm:$0xff]  }
  0x7a   : > { %v3992_v5 = vld [vmem:[%s4077_s15 + $0x620] sm:$0xff]  }
  0x7b   : > { %3555 = vmatpush3.bf16.msra.mxu0 %v3886_v11  ;;  %v4277_v11 = vrot.slane %v782_v6, %v4115_v35  ;;  %v3993_v6 = vld [vmem:[%s4077_s15 + $0x6a0] sm:$0xff]  }
  0x7c   : > { %3556 = vmatprep.subr.bf16.mxu0 %v3888_v13  ;;  %3577 = vmatpush3.bf16.msra.mxu1 %v3887_v12  ;;  %v3943_v12 = vld [vmem:[%s4077_s15 + $0x500] sm:$0xff]   ;;  %v819_v13 = vrot.slane %v797_v8, %v4115_v35  ;;  %v3995_v8 = vld [vmem:[%s4077_s15 + $0x6e8] sm:$0xff]  }
  0x7d   : > { %3578 = vmatprep.subr.bf16.mxu1 %v3889_v14  ;;  %v3944_v14 = vld [vmem:[%s4077_s15 + $0x580] sm:$0xff]  }
  0x7f   : > { %3557 = vmatpush3.bf16.msra.mxu0 %v3890_v15  ;;  %v798_v15 = vcombine.high %v4277_v11, %v4277_v11 }
  0x80   : > { %3558 = vmatprep.subr.bf16.mxu0 %v3892_v17  ;;  %3579 = vmatpush3.bf16.msra.mxu1 %v3891_v16  ;;  %v827_v16 = vcombine.high %v805_v9, %v805_v9  ;;  %v3945_v17 = vld [vmem:[%s4077_s15 + $0x548] sm:$0xff]  }
  0x81   : > { %3580 = vmatprep.subr.bf16.mxu1 %v3893_v18  ;;  %v829_v18 = vcombine.high %v819_v13, %v819_v13 }
  0x83   : > { %3559 = vmatpush3.bf16.msra.mxu0 %v3894_v19  ;;  %v3946_v19 = vld [vmem:[%s4077_s15 + $0x5c8] sm:$0xff]  }
  0x84   : > { %3560 = vmatprep.subr.bf16.mxu0 %v3896_v21  ;;  %3581 = vmatpush3.bf16.msra.mxu1 %v3895_v20  ;;  %v826_v20 = vrot.slane %v798_v15, %v4115_v35  ;;  %v3947_v21 = vld [vmem:[%s4077_s15 + $0x508] sm:$0xff]   ;;  %v4002_v15 = vld [vmem:[%s4077_s15 + $0x678] sm:$0xff]  }
  0x85   : > { %3582 = vmatprep.subr.bf16.mxu1 %v3897_v22  ;;  %v3948_v22 = vld [vmem:[%s4077_s15 + $0x588] sm:$0xff]  }
  0x87   : > { %3561 = vmatpush3.bf16.msra.mxu0 %v3898_v23  ;;  %v830_v23 = vcombine.high %v826_v20, %v826_v20 }
  0x88   : > { %3562 = vmatprep.subr.bf16.mxu0 %v3900_v25  ;;  %3583 = vmatpush3.bf16.msra.mxu1 %v3899_v24  ;;  %v3949_v24 = vld [vmem:[%s4077_s15 + $0x550] sm:$0xff]  }
  0x89   : > { %3584 = vmatprep.subr.bf16.mxu1 %v3901_v26  ;;  %v3950_v25 = vld [vmem:[%s4077_s15 + $0x5d0] sm:$0xff]  }
  0x8a   : > { %v3951_v26 = vld [vmem:[%s4077_s15 + $0x510] sm:$0xff]  }
  0x8b   : > { %3563 = vmatpush3.bf16.msra.mxu0 %v3902_v27  ;;  %v3952_v27 = vld [vmem:[%s4077_s15 + $0x590] sm:$0xff]  }
  0x8c   : > { %3564 = vmatprep.subr.bf16.mxu0 %v3904_v29  ;;  %3585 = vmatpush3.bf16.msra.mxu1 %v3903_v28  ;;  %v3953_v28 = vld [vmem:[%s4077_s15 + $0x558] sm:$0xff]  }
  0x8d   : > { %3586 = vmatprep.subr.bf16.mxu1 %v3905_v30  ;;  %v3954_v29 = vld [vmem:[%s4077_s15 + $0x5d8] sm:$0xff]  }
  0x8e   : > { %v3955_v30 = vld [vmem:[%s4077_s15 + $0x518] sm:$0xff]  }
  0x8f   : > { %3565 = vmatpush3.bf16.msra.mxu0 %v3906_v31  ;;  %v3956_v31 = vld [vmem:[%s4077_s15 + $0x598] sm:$0xff]  }
  0x90   : > { %3594 = vmatprep.subr.bf16.mxu0 %v3909_v34  ;;  %3587 = vmatpush3.bf16.msra.mxu1 %v3907_v32  ;;  %v3957_v32 = vld [vmem:[%s4077_s15 + $0x560] sm:$0xff]  }
  0x91   : > { %3616 = vmatprep.subr.bf16.mxu1 %v3910_v36  ;;  %v3959_v34 = vld [vmem:[%s4077_s15 + $0x520] sm:$0xff]  }
  0x92   : > { %2721 = vmatmul.mubr.bf16.vlgmr.msra.gmra.mrb[12].mxu0 %v763_v33  ;;  %v3958_v33 = vld [vmem:[%s4077_s15 + $0x5e0] sm:$0xff]  }
  0x93   : > { %3595 = vmatpush3.bf16.msra.mxu0 %v3911_v37  ;;  %2761 = vmatmul.mubr.bf16.vlgmr.msra.gmra.mrb[12].mxu1 %v779_v39  ;;  %v3960_v36 = vld [vmem:[%s4077_s15 + $0x5a0] sm:$0xff]   ;;  %v3961_v37 = vld [vmem:[%s4077_s15 + $0x568] sm:$0xff]  }
  0x94   : > { %3596 = vmatprep.subr.bf16.mxu0 %v3913_v40  ;;  %3617 = vmatpush3.bf16.msra.mxu1 %v3912_v38  ;;  %v3962_v38 = vld [vmem:[%s4077_s15 + $0x5e8] sm:$0xff]  }
  0x95   : > { %3618 = vmatprep.subr.bf16.mxu1 %v3914_v41  ;;  %2800 = vmatprep.mubr.bf16.mxu0 %v819_v13  ;;  %v3963_v39 = vld [vmem:[%s4077_s15 + $0x528] sm:$0xff]   ;;  %v3965_v41 = vld [vmem:[%s4077_s15 + $0x570] sm:$0xff]  }
  0x96   : > { %2840 = vmatprep.mubr.bf16.mxu1 %v829_v18  ;;  %v3964_v40 = vld [vmem:[%s4077_s15 + $0x5a8] sm:$0xff]   ;;  %v4000_v13 = vld [vmem:[%s4077_s15 + $0x630] sm:$0xff]   ;;  %v167_v18 = vld [vmem:[%s4113_s19 + $0x18] sm:$0xff] }
  0x97   : > { %3597 = vmatpush3.bf16.msra.mxu0 %v3915_v42  ;;  %v3966_v42 = vld [vmem:[%s4077_s15 + $0x5f0] sm:$0xff]  }
  0x98   : > { %3598 = vmatprep.subr.bf16.mxu0 %v3917_v44  ;;  %3619 = vmatpush3.bf16.msra.mxu1 %v3916_v43  ;;  %v3967_v43 = vld [vmem:[%s4077_s15 + $0x530] sm:$0xff]  }
  0x99   : > { %3620 = vmatprep.subr.bf16.mxu1 %v3918_v45  ;;  %v3968_v44 = vld [vmem:[%s4077_s15 + $0x5b0] sm:$0xff]   ;;  %v3969_v45 = vld [vmem:[%s4077_s15 + $0x578] sm:$0xff]  }
  0x9b   : > { %3599 = vmatpush3.bf16.msra.mxu0 %v3919_v46  ;;  %v3970_v46 = vld [vmem:[%s4077_s15 + $0x5f8] sm:$0xff]  }
  0x9c   : > { %3600 = vmatprep.subr.bf16.mxu0 %v3921_v48  ;;  %3621 = vmatpush3.bf16.msra.mxu1 %v3920_v47  ;;  %v3971_v47 = vld [vmem:[%s4077_s15 + $0x538] sm:$0xff]  }
  0x9d   : > { %3622 = vmatprep.subr.bf16.mxu1 %v3922_v49  ;;  %v3972_v48 = vld [vmem:[%s4077_s15 + $0x5b8] sm:$0xff]   ;;  %v812_v49 = vrot.slane %v4277_v11, %v4115_v35  ;;  %v3998_v11 = vld [vmem:[%s4077_s15 + $0x670] sm:$0xff]  }
  0x9f   : > { %3601 = vmatpush3.bf16.msra.mxu0 %v3923_v50  ;;  %v3974_v50 = vld [vmem:[%s4077_s15 + $0x640] sm:$0xff]  }
  0xa0   : > { %3602 = vmatprep.subr.bf16.mxu0 %v3925_v52  ;;  %3623 = vmatpush3.bf16.msra.mxu1 %v3924_v51  ;;  %v3975_v51 = vld [vmem:[%s4077_s15 + $0x6c0] sm:$0xff]  }
  0xa1   : > { %3624 = vmatprep.subr.bf16.mxu1 %v3926_v53  ;;  %v3976_v52 = vld [vmem:[%s4077_s15 + $0x600] sm:$0xff]  }
  0xa2   : > { %v3977_v53 = vld [vmem:[%s4077_s15 + $0x680] sm:$0xff]  }
  0xa3   : > { %3603 = vmatpush3.bf16.msra.mxu0 %v3927_v54  ;;  %v828_v54 = vcombine.high %v812_v49, %v812_v49 }
  0xa4   : > { %3604 = vmatprep.subr.bf16.mxu0 %v3929_v56  ;;  %3625 = vmatpush3.bf16.msra.mxu1 %v3928_v55  ;;  %v3978_v55 = vld [vmem:[%s4077_s15 + $0x648] sm:$0xff]  }
  0xa5   : > { %3626 = vmatprep.subr.bf16.mxu1 %v3930_v57  ;;  %v3979_v56 = vld [vmem:[%s4077_s15 + $0x6c8] sm:$0xff]  }
  0xa6   : > { %v3980_v57 = vld [vmem:[%s4077_s15 + $0x608] sm:$0xff]  }
  0xa7   : > { %3605 = vmatpush3.bf16.msra.mxu0 %v3931_v58  ;;  %v3981_v58 = vld [vmem:[%s4077_s15 + $0x688] sm:$0xff]  }
  0xa8   : > { %3606 = vmatprep.subr.bf16.mxu0 %v3933_v60  ;;  %3627 = vmatpush3.bf16.msra.mxu1 %v3932_v59  ;;  %v3982_v59 = vld [vmem:[%s4077_s15 + $0x650] sm:$0xff]  }
  0xa9   : > { %3628 = vmatprep.subr.bf16.mxu1 %v3934_v61  ;;  %v3983_v60 = vld [vmem:[%s4077_s15 + $0x6d0] sm:$0xff]  }
  0xaa   : > { %v3984_v61 = vld [vmem:[%s4077_s15 + $0x610] sm:$0xff]  }
  0xab   : > { %3607 = vmatpush3.bf16.msra.mxu0 %v3935_v62  ;;  %v3985_v62 = vld [vmem:[%s4077_s15 + $0x690] sm:$0xff]  }
  0xac   : > { %3608 = vmatprep.subr.bf16.mxu0 %v3937_v0  ;;  %3629 = vmatpush3.bf16.msra.mxu1 %v3936_v63  ;;  %v3986_v63 = vld [vmem:[%s4077_s15 + $0x658] sm:$0xff]  }
  0xad   : > { %3630 = vmatprep.subr.bf16.mxu1 %v3938_v1  ;;  %v3987_v0 = vld [vmem:[%s4077_s15 + $0x6d8] sm:$0xff]  }
  0xae   : > { %v3988_v1 = vld [vmem:[%s4077_s15 + $0x618] sm:$0xff]  }
  0xaf   : > { %3609 = vmatpush3.bf16.msra.mxu0 %v3939_v2  ;;  %v3989_v2 = vld [vmem:[%s4077_s15 + $0x698] sm:$0xff]  }
  0xb0   : > { %3638 = vmatprep.subr.bf16.mxu0 %v3941_v7  ;;  %3631 = vmatpush3.bf16.msra.mxu1 %v3940_v4  ;;  %v3991_v4 = vld [vmem:[%s4077_s15 + $0x6e0] sm:$0xff]   ;;  %v3994_v7 = vld [vmem:[%s4077_s15 + $0x668] sm:$0xff]  }
  0xb1   : > { %3660 = vmatprep.subr.bf16.mxu1 %v3942_v10  ;;  %v3997_v10 = vld [vmem:[%s4077_s15 + $0x6a8] sm:$0xff]  }
  0xb2   : > { %2801 = vmatmul.mubr.bf16.vlgmr.msra.gmra.mrb[16].mxu0 %v805_v9  ;;  %v3996_v9 = vld [vmem:[%s4077_s15 + $0x628] sm:$0xff]  }
  0xb3   : > { %3639 = vmatpush3.bf16.msra.mxu0 %v3943_v12  ;;  %2841 = vmatmul.mubr.bf16.vlgmr.msra.gmra.mrb[16].mxu1 %v827_v16  ;;  %v3999_v12 = vld [vmem:[%s4077_s15 + $0x6f0] sm:$0xff]   ;;  %v4003_v16 = vld [vmem:[%s4077_s15 + $0x6f8] sm:$0xff]  }
  0xb4   : > { %3640 = vmatprep.subr.bf16.mxu0 %v3945_v17  ;;  %3661 = vmatpush3.bf16.msra.mxu1 %v3944_v14  ;;  %v4001_v14 = vld [vmem:[%s4077_s15 + $0x6b0] sm:$0xff]   ;;  %v4004_v17 = vld [vmem:[%s4077_s15 + $0x638] sm:$0xff]  }
  0xb5   : > { %2880 = vmatprep.mubr.bf16.mxu0 %v826_v20  ;;  %3662 = vmatprep.subr.bf16.mxu1 %v3946_v19  ;;  %v838_v19 = vrot.slane %v167_v18, %v4115_v35  ;;  %v4006_v20 = vld [vmem:[%s4077_s15 + $0x740] sm:$0xff]  }
  0xb6   : > { %2920 = vmatprep.mubr.bf16.mxu1 %v830_v23 }
  0xb7   : > { %3641 = vmatpush3.bf16.msra.mxu0 %v3947_v21  ;;  %v831_v21 = vcombine.high %v167_v18, %v167_v18  ;;  %v846_v23 = vcombine.high %v838_v19, %v838_v19 }
  0xb8   : > { %3642 = vmatprep.subr.bf16.mxu0 %v3949_v24  ;;  %3663 = vmatpush3.bf16.msra.mxu1 %v3948_v22  ;;  %v4005_v22 = vld [vmem:[%s4077_s15 + $0x6b8] sm:$0xff]   ;;  %v854_v24 = vrot.slane %v838_v19, %v4115_v35 }
  0xb9   : > { %3664 = vmatprep.subr.bf16.mxu1 %v3950_v25  ;;  %v4007_v25 = vld [vmem:[%s4077_s15 + $0x7c0] sm:$0xff]  }
  0xbb   : > { %3643 = vmatpush3.bf16.msra.mxu0 %v3951_v26  ;;  %v4353_v26 = vrot.slane %v831_v21, %v4115_v35 }
  0xbc   : > { %3644 = vmatprep.subr.bf16.mxu0 %v3953_v28  ;;  %3665 = vmatpush3.bf16.msra.mxu1 %v3952_v27  ;;  %v868_v27 = vrot.slane %v846_v23, %v4115_v35  ;;  %v4008_v28 = vld [vmem:[%s4077_s15 + $0x700] sm:$0xff]  }
  0xbd   : > { %3666 = vmatprep.subr.bf16.mxu1 %v3954_v29  ;;  %v847_v29 = vcombine.high %v4353_v26, %v4353_v26 }
  0xbf   : > { %3645 = vmatpush3.bf16.msra.mxu0 %v3955_v30  ;;  %v876_v30 = vcombine.high %v854_v24, %v854_v24 }
  0xc0   : > { %3646 = vmatprep.subr.bf16.mxu0 %v3957_v32  ;;  %3667 = vmatpush3.bf16.msra.mxu1 %v3956_v31  ;;  %v4010_v31 = vld [vmem:[%s4077_s15 + $0x748] sm:$0xff]   ;;  %v878_v32 = vcombine.high %v868_v27, %v868_v27 }
  0xc1   : > { %3668 = vmatprep.subr.bf16.mxu1 %v3958_v33  ;;  %v4009_v33 = vld [vmem:[%s4077_s15 + $0x780] sm:$0xff]  }
  0xc3   : > { %3647 = vmatpush3.bf16.msra.mxu0 %v3959_v34  ;;  %v875_v34 = vrot.slane %v847_v29, %v4115_v35 }
  0xc4   : > { %3648 = vmatprep.subr.bf16.mxu0 %v3961_v37  ;;  %3669 = vmatpush3.bf16.msra.mxu1 %v3960_v36  ;;  %v4011_v36 = vld [vmem:[%s4077_s15 + $0x7c8] sm:$0xff]  }
  0xc5   : > { %3670 = vmatprep.subr.bf16.mxu1 %v3962_v38  ;;  %v4012_v37 = vld [vmem:[%s4077_s15 + $0x708] sm:$0xff]   ;;  %v879_v38 = vcombine.high %v875_v34, %v875_v34 }
  0xc7   : > { %3649 = vmatpush3.bf16.msra.mxu0 %v3963_v39  ;;  %v4014_v39 = vld [vmem:[%s4077_s15 + $0x750] sm:$0xff]  }
  0xc8   : > { %3650 = vmatprep.subr.bf16.mxu0 %v3965_v41  ;;  %3671 = vmatpush3.bf16.msra.mxu1 %v3964_v40  ;;  %v4013_v40 = vld [vmem:[%s4077_s15 + $0x788] sm:$0xff]   ;;  %v4015_v41 = vld [vmem:[%s4077_s15 + $0x7d0] sm:$0xff]  }
  0xc9   : > { %3672 = vmatprep.subr.bf16.mxu1 %v3966_v42  ;;  %v4016_v42 = vld [vmem:[%s4077_s15 + $0x710] sm:$0xff]  }
  0xcb   : > { %3651 = vmatpush3.bf16.msra.mxu0 %v3967_v43  ;;  %v4018_v43 = vld [vmem:[%s4077_s15 + $0x758] sm:$0xff]  }
  0xcc   : > { %3652 = vmatprep.subr.bf16.mxu0 %v3969_v45  ;;  %3673 = vmatpush3.bf16.msra.mxu1 %v3968_v44  ;;  %v4017_v44 = vld [vmem:[%s4077_s15 + $0x790] sm:$0xff]   ;;  %v4019_v45 = vld [vmem:[%s4077_s15 + $0x7d8] sm:$0xff]  }
  0xcd   : > { %3674 = vmatprep.subr.bf16.mxu1 %v3970_v46  ;;  %v4020_v46 = vld [vmem:[%s4077_s15 + $0x718] sm:$0xff]  }
  0xcf   : > { %3653 = vmatpush3.bf16.msra.mxu0 %v3971_v47  ;;  %v4022_v47 = vld [vmem:[%s4077_s15 + $0x760] sm:$0xff]  }
  0xd0   : > { %3682 = vmatprep.subr.bf16.mxu0 %v3974_v50  ;;  %3675 = vmatpush3.bf16.msra.mxu1 %v3972_v48  ;;  %v4021_v48 = vld [vmem:[%s4077_s15 + $0x798] sm:$0xff]   ;;  %v4024_v50 = vld [vmem:[%s4077_s15 + $0x720] sm:$0xff]  }
  0xd1   : > { %3704 = vmatprep.subr.bf16.mxu1 %v3975_v51  ;;  %v4026_v51 = vld [vmem:[%s4077_s15 + $0x768] sm:$0xff]  }
  0xd2   : > { %2881 = vmatmul.mubr.bf16.vlgmr.msra.gmra.mrb[20].mxu0 %v812_v49  ;;  %v4023_v49 = vld [vmem:[%s4077_s15 + $0x7e0] sm:$0xff]  }
  0xd3   : > { %3683 = vmatpush3.bf16.msra.mxu0 %v3976_v52  ;;  %2921 = vmatmul.mubr.bf16.vlgmr.msra.gmra.mrb[20].mxu1 %v828_v54  ;;  %v4025_v52 = vld [vmem:[%s4077_s15 + $0x7a0] sm:$0xff]   ;;  %v4028_v54 = vld [vmem:[%s4077_s15 + $0x728] sm:$0xff]  }
  0xd4   : > { %3684 = vmatprep.subr.bf16.mxu0 %v3978_v55  ;;  %3705 = vmatpush3.bf16.msra.mxu1 %v3977_v53  ;;  %v4027_v53 = vld [vmem:[%s4077_s15 + $0x7e8] sm:$0xff]  }
  0xd5   : > { %3706 = vmatprep.subr.bf16.mxu1 %v3979_v56  ;;  %2960 = vmatprep.mubr.bf16.mxu0 %v868_v27  ;;  %v4030_v56 = vld [vmem:[%s4077_s15 + $0x770] sm:$0xff]  }
  0xd6   : > { %3000 = vmatprep.mubr.bf16.mxu1 %v878_v32 }
  0xd7   : > { %3685 = vmatpush3.bf16.msra.mxu0 %v3980_v57 }
  0xd8   : > { %3686 = vmatprep.subr.bf16.mxu0 %v3982_v59  ;;  %3707 = vmatpush3.bf16.msra.mxu1 %v3981_v58  ;;  %v4029_v58 = vld [vmem:[%s4077_s15 + $0x7a8] sm:$0xff]  }
  0xd9   : > { %3708 = vmatprep.subr.bf16.mxu1 %v3983_v60 }
  0xdb   : > { %3687 = vmatpush3.bf16.msra.mxu0 %v3984_v61 }
  0xdc   : > { %3688 = vmatprep.subr.bf16.mxu0 %v3986_v63  ;;  %3709 = vmatpush3.bf16.msra.mxu1 %v3985_v62  ;;  %v4031_v62 = vld [vmem:[%s4077_s15 + $0x7f0] sm:$0xff]  }
  0xdd   : > { %3710 = vmatprep.subr.bf16.mxu1 %v3987_v0  ;;  %v4032_v63 = vld [vmem:[%s4077_s15 + $0x730] sm:$0xff]  }
  0xdf   : > { %3689 = vmatpush3.bf16.msra.mxu0 %v3988_v1 }
  0xe0   : > { %3690 = vmatprep.subr.bf16.mxu0 %v3990_v3  ;;  %3711 = vmatpush3.bf16.msra.mxu1 %v3989_v2 }
  0xe1   : > { %3712 = vmatprep.subr.bf16.mxu1 %v3991_v4  ;;  %v4034_v4 = vld [vmem:[%s4077_s15 + $0x778] sm:$0xff]  }
  0xe3   : > { %3691 = vmatpush3.bf16.msra.mxu0 %v3992_v5 }
  0xe4   : > { %3692 = vmatprep.subr.bf16.mxu0 %v3994_v7  ;;  %3713 = vmatpush3.bf16.msra.mxu1 %v3993_v6  ;;  %v4033_v6 = vld [vmem:[%s4077_s15 + $0x7b0] sm:$0xff]  }
  0xe5   : > { %3714 = vmatprep.subr.bf16.mxu1 %v3995_v8  ;;  %v4035_v8 = vld [vmem:[%s4077_s15 + $0x7f8] sm:$0xff]  }
  0xe7   : > { %3693 = vmatpush3.bf16.msra.mxu0 %v3996_v9  ;;  %v4036_v9 = vld [vmem:[%s4077_s15 + $0x738] sm:$0xff]  }
  0xe8   : > { %3694 = vmatprep.subr.bf16.mxu0 %v3998_v11  ;;  %3715 = vmatpush3.bf16.msra.mxu1 %v3997_v10  ;;  %v861_v10 = vrot.slane %v4353_v26, %v4115_v35  ;;  %v4037_v11 = vld [vmem:[%s4077_s15 + $0x7b8] sm:$0xff]  }
  0xe9   : > { %3716 = vmatprep.subr.bf16.mxu1 %v3999_v12 }
  0xea   : > { %v877_v12 = vcombine.high %v861_v10, %v861_v10 }
  0xeb   : > { %3695 = vmatpush3.bf16.msra.mxu0 %v4000_v13 }
  0xec   : > { %3696 = vmatprep.subr.bf16.mxu0 %v4002_v15  ;;  %3717 = vmatpush3.bf16.msra.mxu1 %v4001_v14 }
  0xed   : > { %3718 = vmatprep.subr.bf16.mxu1 %v4003_v16 }
  0xef   : > { %3697 = vmatpush3.bf16.msra.mxu0 %v4004_v17 }
  0xf0   : > { %3726 = vmatprep.subr.bf16.mxu0 %v4006_v20  ;;  %3719 = vmatpush3.bf16.msra.mxu1 %v4005_v22 }
  0xf1   : > { %3748 = vmatprep.subr.bf16.mxu1 %v4007_v25 }
  0xf2   : > { %2961 = vmatmul.mubr.bf16.vlgmr.msra.gmra.mrb[24].mxu0 %v854_v24 }
  0xf3   : > { %3727 = vmatpush3.bf16.msra.mxu0 %v4008_v28  ;;  %3001 = vmatmul.mubr.bf16.vlgmr.msra.gmra.mrb[24].mxu1 %v876_v30 }
  0xf4   : > { %3728 = vmatprep.subr.bf16.mxu0 %v4010_v31  ;;  %3749 = vmatpush3.bf16.msra.mxu1 %v4009_v33 }
  0xf5   : > { %3040 = vmatprep.mubr.bf16.mxu0 %v875_v34  ;;  %3750 = vmatprep.subr.bf16.mxu1 %v4011_v36 }
  0xf6   : > { %3080 = vmatprep.mubr.bf16.mxu1 %v879_v38 }
  0xf7   : > { %3729 = vmatpush3.bf16.msra.mxu0 %v4012_v37 }
  0xf8   : > { %3730 = vmatprep.subr.bf16.mxu0 %v4014_v39  ;;  %3751 = vmatpush3.bf16.msra.mxu1 %v4013_v40 }
  0xf9   : > { %3752 = vmatprep.subr.bf16.mxu1 %v4015_v41 }
  0xfb   : > { %3731 = vmatpush3.bf16.msra.mxu0 %v4016_v42 }
  0xfc   : > { %3732 = vmatprep.subr.bf16.mxu0 %v4018_v43  ;;  %3753 = vmatpush3.bf16.msra.mxu1 %v4017_v44 }
  0xfd   : > { %3754 = vmatprep.subr.bf16.mxu1 %v4019_v45 }
  0xff   : > { %3733 = vmatpush3.bf16.msra.mxu0 %v4020_v46 }
 0x100   : > { %3734 = vmatprep.subr.bf16.mxu0 %v4022_v47  ;;  %3755 = vmatpush3.bf16.msra.mxu1 %v4021_v48 }
 0x101   : > { %3756 = vmatprep.subr.bf16.mxu1 %v4023_v49 }
 0x103   : > { %3735 = vmatpush3.bf16.msra.mxu0 %v4024_v50 }
 0x104   : > { %3736 = vmatprep.subr.bf16.mxu0 %v4026_v51  ;;  %3757 = vmatpush3.bf16.msra.mxu1 %v4025_v52 }
 0x105   : > { %v3434_v55 = vpop.f32.mrb[0].mxu0  ;;  %3758 = vmatprep.subr.bf16.mxu1 %v4027_v53 }
 0x106   : > { %v3435_v57 = vpop.f32.mrb[1].mxu0  ;;  %v3456_v59 = vpop.f32.mrb[0].mxu1 }
 0x107   : > { %v3436_v60 = vadd.f32 %v3435_v57, %v3434_v55  ;;  %v3437_v61 = vpop.f32.mrb[2].mxu0  ;;  %v3457_v0 = vpop.f32.mrb[1].mxu1  ;;  %3737 = vmatpush3.bf16.msra.mxu0 %v4028_v54 }
 0x108   : > { %v3438_v1 = vpop.f32.mrb[3].mxu0  ;;  %v3458_v2 = vadd.f32 %v3457_v0, %v3456_v59  ;;  %v3459_v3 = vpop.f32.mrb[2].mxu1  ;;  %3738 = vmatprep.subr.bf16.mxu0 %v4030_v56  ;;  %3759 = vmatpush3.bf16.msra.mxu1 %v4029_v58 }
 0x109   : > { %v3460_v5 = vpop.f32.mrb[3].mxu1  ;;  %3760 = vmatprep.subr.bf16.mxu1 %v4031_v62 }
 0x10a   : > { %v2523_v7 = vadd.f32 %v3458_v2, %v3436_v60 }
 0x10b   : > { %3739 = vmatpush3.bf16.msra.mxu0 %v4032_v63 }
 0x10c   : > { %3740 = vmatprep.subr.bf16.mxu0 %v4034_v4  ;;  %3761 = vmatpush3.bf16.msra.mxu1 %v4033_v6 }
 0x10d   : > { %3762 = vmatprep.subr.bf16.mxu1 %v4035_v8 }
 0x10f   : > { %3741 = vmatpush3.bf16.msra.mxu0 %v4036_v9 }
 0x110   : > { %3763 = vmatpush3.bf16.msra.mxu1 %v4037_v11 }
 0x112   : > { %3041 = vmatmul.mubr.bf16.vlgmr.msra.gmra.mrb[28].mxu0 %v861_v10 }
 0x113   : > { %3081 = vmatmul.mubr.bf16.vlgmr.msra.gmra.mrb[28].mxu1 %v877_v12 }
 0x125   : > { %v3478_v13 = vpop.f32.mrb[4].mxu0 }
 0x126   : > { %v3479_v14 = vpop.f32.mrb[5].mxu0  ;;  %v3500_v15 = vpop.f32.mrb[4].mxu1 }
 0x127   : > { %v3480_v16 = vadd.f32 %v3479_v14, %v3478_v13  ;;  %v3481_v17 = vpop.f32.mrb[6].mxu0  ;;  %v3501_v18 = vpop.f32.mrb[5].mxu1 }
 0x128   : > { %v3482_v19 = vpop.f32.mrb[7].mxu0  ;;  %v3502_v21 = vadd.f32 %v3501_v18, %v3500_v15  ;;  %v3503_v22 = vpop.f32.mrb[6].mxu1 }
 0x129   : > { %v2563_v20 = vadd.f32 %v3480_v16, %v2523_v7  ;;  %v3504_v23 = vpop.f32.mrb[7].mxu1 }
 0x12b   : > { %v2603_v35 = vadd.f32 %v3502_v21, %v2563_v20 }
 0x145   : > { %v3522_v24 = vpop.f32.mrb[8].mxu0 }
 0x146   : > { %v3523_v25 = vpop.f32.mrb[9].mxu0  ;;  %v3544_v26 = vpop.f32.mrb[8].mxu1 }
 0x147   : > { %v3524_v27 = vadd.f32 %v3523_v25, %v3522_v24  ;;  %v3525_v28 = vpop.f32.mrb[10].mxu0  ;;  %v3545_v29 = vpop.f32.mrb[9].mxu1 }
 0x148   : > { %v3526_v30 = vpop.f32.mrb[11].mxu0  ;;  %v3546_v32 = vadd.f32 %v3545_v29, %v3544_v26  ;;  %v3547_v33 = vpop.f32.mrb[10].mxu1 }
 0x149   : > { %v2643_v31 = vadd.f32 %v3524_v27, %v2603_v35  ;;  %v3548_v34 = vpop.f32.mrb[11].mxu1 }
 0x14b   : > { %v2683_v36 = vadd.f32 %v3546_v32, %v2643_v31 }
 0x165   : > { %v3566_v37 = vpop.f32.mrb[12].mxu0 }
 0x166   : > { %v3567_v38 = vpop.f32.mrb[13].mxu0  ;;  %v3588_v39 = vpop.f32.mrb[12].mxu1 }
 0x167   : > { %v3568_v40 = vadd.f32 %v3567_v38, %v3566_v37  ;;  %v3569_v41 = vpop.f32.mrb[14].mxu0  ;;  %v3589_v42 = vpop.f32.mrb[13].mxu1 }
 0x168   : > { %v3570_v43 = vpop.f32.mrb[15].mxu0  ;;  %v3590_v45 = vadd.f32 %v3589_v42, %v3588_v39  ;;  %v3591_v46 = vpop.f32.mrb[14].mxu1 }
 0x169   : > { %v2723_v44 = vadd.f32 %v3568_v40, %v2683_v36  ;;  %v3592_v47 = vpop.f32.mrb[15].mxu1 }
 0x16b   : > { %v2763_v48 = vadd.f32 %v3590_v45, %v2723_v44 }
 0x185   : > { %v3610_v49 = vpop.f32.mrb[16].mxu0 }
 0x186   : > { %v3611_v50 = vpop.f32.mrb[17].mxu0  ;;  %v3632_v51 = vpop.f32.mrb[16].mxu1 }
 0x187   : > { %v3612_v52 = vadd.f32 %v3611_v50, %v3610_v49  ;;  %v3613_v53 = vpop.f32.mrb[18].mxu0  ;;  %v3633_v54 = vpop.f32.mrb[17].mxu1 }
 0x188   : > { %v3614_v55 = vpop.f32.mrb[19].mxu0  ;;  %v3634_v57 = vadd.f32 %v3633_v54, %v3632_v51  ;;  %v3635_v58 = vpop.f32.mrb[18].mxu1 }
 0x189   : > { %v2803_v56 = vadd.f32 %v3612_v52, %v2763_v48  ;;  %v3636_v59 = vpop.f32.mrb[19].mxu1 }
 0x18b   : > { %v2843_v60 = vadd.f32 %v3634_v57, %v2803_v56 }
 0x1a5   : > { %v3654_v61 = vpop.f32.mrb[20].mxu0 }
 0x1a6   : > { %v3655_v62 = vpop.f32.mrb[21].mxu0  ;;  %v3676_v63 = vpop.f32.mrb[20].mxu1 }
 0x1a7   : > { %v3656_v0 = vadd.f32 %v3655_v62, %v3654_v61  ;;  %v3657_v1 = vpop.f32.mrb[22].mxu0  ;;  %v3677_v2 = vpop.f32.mrb[21].mxu1 }
 0x1a8   : > { %v3658_v3 = vpop.f32.mrb[23].mxu0  ;;  %v3678_v5 = vadd.f32 %v3677_v2, %v3676_v63  ;;  %v3679_v6 = vpop.f32.mrb[22].mxu1 }
 0x1a9   : > { %v2883_v4 = vadd.f32 %v3656_v0, %v2843_v60  ;;  %v3680_v7 = vpop.f32.mrb[23].mxu1 }
 0x1ab   : > { %v2923_v8 = vadd.f32 %v3678_v5, %v2883_v4 }
 0x1c5   : > { %v3698_v9 = vpop.f32.mrb[24].mxu0 }
 0x1c6   : > { %v3699_v10 = vpop.f32.mrb[25].mxu0  ;;  %v3720_v11 = vpop.f32.mrb[24].mxu1 }
 0x1c7   : > { %v3700_v12 = vadd.f32 %v3699_v10, %v3698_v9  ;;  %v3701_v13 = vpop.f32.mrb[26].mxu0  ;;  %v3721_v14 = vpop.f32.mrb[25].mxu1 }
 0x1c8   : > { %v3702_v15 = vpop.f32.mrb[27].mxu0  ;;  %v3722_v17 = vadd.f32 %v3721_v14, %v3720_v11  ;;  %v3723_v18 = vpop.f32.mrb[26].mxu1 }
 0x1c9   : > { %v2963_v16 = vadd.f32 %v3700_v12, %v2923_v8  ;;  %v3724_v19 = vpop.f32.mrb[27].mxu1 }
 0x1cb   : > { %v3003_v20 = vadd.f32 %v3722_v17, %v2963_v16 }
 0x1e5   : > { %v3742_v21 = vpop.f32.mrb[28].mxu0 }
 0x1e6   : > { %v3743_v22 = vpop.f32.mrb[29].mxu0  ;;  %v3764_v23 = vpop.f32.mrb[28].mxu1 }
 0x1e7   : > { %v3744_v35 = vadd.f32 %v3743_v22, %v3742_v21  ;;  %v3745_v24 = vpop.f32.mrb[30].mxu0  ;;  %v3765_v25 = vpop.f32.mrb[29].mxu1 }
 0x1e8   : > { %v3746_v26 = vpop.f32.mrb[31].mxu0  ;;  %v3766_v28 = vadd.f32 %v3765_v25, %v3764_v23  ;;  %v3767_v29 = vpop.f32.mrb[30].mxu1 }
 0x1e9   : > { %v3043_v27 = vadd.f32 %v3744_v35, %v3003_v20  ;;  %v3768_v30 = vpop.f32.mrb[31].mxu1 }
 0x1eb   : > { %v3083_v31 = vadd.f32 %v3766_v28, %v3043_v27 }
 0x1ed   : > { %3088 = vst [vmem:[%s162_s23] sm:$0x3] %v3083_v31 }
 0x1ee PF: > { %s12_s9 = sadd.s32 1, %s4045_s9  }
 0x1ef   : > { %p9_p6 = scmp.ge.s32.totalorder %s12_s9, 4  }
 0x1f1   :  { %11 = sbr.rel (!%p9_p6) target bundleno = 1 (0x1), region = 61 }

</bundles_post_ra>
